<compile_context>
chip_gen: v6e
topology: v6e:2x2x1
jax: 0.10.0
libtpu: 0.0.40
codegen_flags: <defaults>
</compile_context>

<pallas_src>
import jax
import jax.numpy as jnp
import numpy as np
from jax.experimental import pallas as pl
from jax.experimental.pallas import tpu as pltpu


def _plain_decoder_kernel(emb_ref, mask_ref, h0_ref,
                          wih_ref, whh_ref, bih_ref, bhn_ref,
                          wout_ref, bout_ref,
                          logp_ref, hid_ref,
                          gi_ref, hs_ref):
    # emb_ref : (tT, tB, E)  bf16   time-major embedding chunk (pipelined)
    # mask_ref: (tT, tB, 1)  f32    1.0 where t < lengths[b] else 0.0
    # h0_ref  : (tB, H)      f32    initial hidden state (encoder hidden)
    # wih_ref : (E, 3H) bf16 ; whh_ref : (H, 3H) bf16
    # bih_ref : (1, 3H) f32  (b_ih with b_hh folded into the r,z slices)
    # bhn_ref : (1, H)  f32  (b_hh n-gate slice; multiplied by r per GRU spec)
    # wout_ref: (H, V)  bf16 ; bout_ref: (1, V) f32
    # logp_ref: (tB, tT, V)  f32    output chunk, written directly in (B, T, V) layout
    # hid_ref : (tB, H)      f32    resident output block == recurrent carry
    # gi_ref  : (tT, tB, 3H) f32    VMEM staging for the hoisted input projection
    # hs_ref  : (tB, tT, H)  f32    VMEM staging for the masked hidden states
    tT, tB, E = emb_ref.shape
    H = h0_ref.shape[1]

    @pl.when(pl.program_id(1) == 0)
    def _():
        hid_ref[...] = h0_ref[...]          # (re)load carry at the start of each batch tile

    # ---- input projection hoisted out of the recurrence: one big MXU matmul per chunk,
    #      staged through VMEM so the unrolled loop only keeps one time-step live in vregs.
    emb = emb_ref[...].reshape(tT * tB, E)                                   # bf16
    gi = jnp.dot(emb, wih_ref[...], preferred_element_type=jnp.float32)      # (tT*tB, 3H) f32
    gi_ref[...] = (gi + bih_ref[...]).reshape(tT, tB, 3 * H)

    whh = whh_ref[...]                                  # (H, 3H) bf16, hoisted
    bhn = jnp.broadcast_to(bhn_ref[...], (tB, H))       # broadcast hoisted out of the loop

    h = hid_ref[...]                                    # (tB, H) f32 carry
    # Statically unrolled recurrence over the chunk (grid step bounds live ranges).
    for t in range(tT):
        gi_t = gi_ref[t]                                                     # (tB, 3H) f32
        # bf16 operands, f32 accumulation on the serial critical path.
        gh = jnp.dot(h.astype(whh.dtype), whh, preferred_element_type=jnp.float32)
        # PyTorch GRU gate order (r, z, n); slices are lane-aligned when H % 128 == 0.
        r = jax.nn.sigmoid(gi_t[:, 0:H] + gh[:, 0:H])
        z = jax.nn.sigmoid(gi_t[:, H:2 * H] + gh[:, H:2 * H])
        n = jnp.tanh(gi_t[:, 2 * H:] + r * (gh[:, 2 * H:] + bhn))
        h_new = (1.0 - z) * n + z * h
        m = mask_ref[t]                                                      # (tB, 1)
        hm = h_new * m
        hs_ref[:, t, :] = hm              # padded positions -> 0 (pad_packed_sequence)
        h = hm + h * (1.0 - m)            # hold state past the sequence end
    hid_ref[...] = h                      # resident output block is the carry

    # ---- output projection + log_softmax, emitted directly in (B, tT, V)
    hs2 = hs_ref[...].reshape(tB * tT, H).astype(wout_ref.dtype)             # bf16 for MXU
    logits = jnp.dot(hs2, wout_ref[...], preferred_element_type=jnp.float32) + bout_ref[...]
    mx = jnp.max(logits, axis=-1, keepdims=True)
    lse = mx + jnp.log(jnp.sum(jnp.exp(logits - mx), axis=-1, keepdims=True))
    logp_ref[...] = (logits - lse).reshape(tB, tT, -1)


def prepare_params(params):
    """One-time (per set of weights) transposes / casts / bias folding."""
    H3 = params["w_ih"].shape[0]
    H = H3 // 3
    b_ih = params["b_ih"].astype(jnp.float32)
    b_hh = params["b_hh"].astype(jnp.float32)
    # Fold b_hh into b_ih for the r,z gates (they are simply summed); keep the n-gate
    # hidden bias separate because PyTorch multiplies it by r: n = tanh(gi_n + r*(gh_n+b_hn)).
    b_ih_comb = b_ih.at[:2 * H].add(b_hh[:2 * H]).reshape(1, -1)
    return {
        "embedding_bf16": params["embedding"].astype(jnp.bfloat16),          # (V, E)
        "w_ih_t": params["w_ih"].T.astype(jnp.bfloat16),                     # (E, 3H)
        "w_hh_t": params["w_hh"].T.astype(jnp.bfloat16),                     # (H, 3H)
        "b_ih_comb": b_ih_comb,                                              # (1, 3H)
        "b_hh_n": b_hh[2 * H:].reshape(1, H),                                # (1, H)
        "w_out_t": params["w_out"].T.astype(jnp.bfloat16),                   # (H, V)
        "b_out_row": params["b_out"].reshape(1, -1).astype(jnp.float32),     # (1, V)
    }


def plain_decoder_forward(inputs, lengths, hidden, prep, *, tT=32, tB=None):
    """inputs: (B, T) int32; lengths: (B,) int32; hidden: (1, B, H) f32.

    tT: timesteps per chunk (32 fills the 256-row MXU on v6e/v7x at B=8; use 16 on v5e).
    tB: batch rows per tile (>=8, multiple of 8).  With tB < B the leading grid axis is
        'parallel', so v7x's two TensorCores split the batch.
    """
    B, T = inputs.shape
    E = prep["w_ih_t"].shape[0]
    H = prep["w_hh_t"].shape[0]
    V = prep["w_out_t"].shape[1]
    if tB is None:
        tB = B
    assert B % tB == 0 and tB % 8 == 0, "tB must divide B and be a multiple of 8"
    nb = B // tB

    Tp = pl.cdiv(T, tT) * tT                # pad T to a multiple of the chunk size
    n_chunks = Tp // tT

    # Embedding gather straight into time-major (Tp, B, E); only the tiny int id matrix
    # is transposed, never the big activation tensor.
    ids_tb = jnp.transpose(inputs.astype(jnp.int32))                         # (T, B)
    if Tp != T:
        ids_tb = jnp.pad(ids_tb, ((0, Tp - T), (0, 0)))
    emb_tbe = prep["embedding_bf16"][ids_tb]                                 # (Tp, B, E) bf16

    # Validity mask, precomputed once (hoists the per-step length comparison).
    t_idx = jnp.arange(Tp, dtype=jnp.int32)[:, None]                         # (Tp, 1)
    mask = (t_idx < lengths.astype(jnp.int32)[None, :]).astype(jnp.float32)[..., None]

    h0 = hidden[0].astype(jnp.float32)                                       # (B, H)

    logp, hid = pl.pallas_call(
        _plain_decoder_kernel,
        grid=(nb, n_chunks),
        in_specs=[
            pl.BlockSpec((tT, tB, E), lambda b, i: (i, b, 0)),   # emb chunk (pipelined)
            pl.BlockSpec((tT, tB, 1), lambda b, i: (i, b, 0)),   # validity mask chunk
            pl.BlockSpec((tB, H), lambda b, i: (b, 0)),          # h0 (resident per tile)
            pl.BlockSpec((E, 3 * H), lambda b, i: (0, 0)),       # W_ih^T (resident)
            pl.BlockSpec((H, 3 * H), lambda b, i: (0, 0)),       # W_hh^T (resident, bf16)
            pl.BlockSpec((1, 3 * H), lambda b, i: (0, 0)),       # b_ih (+ folded b_hh r,z)
            pl.BlockSpec((1, H), lambda b, i: (0, 0)),           # b_hh n-gate slice
            pl.BlockSpec((H, V), lambda b, i: (0, 0)),           # W_out^T (resident)
            pl.BlockSpec((1, V), lambda b, i: (0, 0)),           # b_out
        ],
        out_specs=(
            pl.BlockSpec((tB, tT, V), lambda b, i: (b, i, 0)),   # logp written as (B, T, V)
            pl.BlockSpec((tB, H), lambda b, i: (b, 0)),          # final hidden == carry
        ),
        out_shape=(
            jax.ShapeDtypeStruct((B, Tp, V), jnp.float32),
            jax.ShapeDtypeStruct((B, H), jnp.float32),
        ),
        scratch_shapes=[
            pltpu.VMEM((tT, tB, 3 * H), jnp.float32),            # gi staging
            pltpu.VMEM((tB, tT, H), jnp.float32),                # hs staging (B-major)
        ],
        compiler_params=pltpu.CompilerParams(
            # batch tiles are independent (v7x dual-TC); the chunk axis carries the recurrence
            dimension_semantics=("parallel", "arbitrary")),
    )(emb_tbe, mask, h0, prep["w_ih_t"], prep["w_hh_t"],
      prep["b_ih_comb"], prep["b_hh_n"], prep["w_out_t"], prep["b_out_row"])

    output = logp[:, :T, :]                                      # drop T padding, already (B,T,V)
    return output, hid[None]                                     # hid: (1, B, H)


def _reference_forward(inputs, lengths, hidden, params):
    """Pure-JAX f32 reference mirroring the PyTorch semantics (eval-mode dropout)."""
    B, T = inputs.shape
    H = hidden.shape[-1]
    emb = params["embedding"][inputs]
    wih_t, whh_t = params["w_ih"].T, params["w_hh"].T
    bih, bhh = params["b_ih"], params["b_hh"]
    h = hidden[0]
    outs = []
    for t in range(T):
        x = emb[:, t, :]
        gi = x @ wih_t + bih
        gh = h @ whh_t + bhh
        r = jax.nn.sigmoid(gi[:, :H] + gh[:, :H])
        z = jax.nn.sigmoid(gi[:, H:2 * H] + gh[:, H:2 * H])
        n = jnp.tanh(gi[:, 2 * H:] + r * gh[:, 2 * H:])
        h_new = (1.0 - z) * n + z * h
        valid = (t < lengths)[:, None]
        outs.append(jnp.where(valid, h_new, 0.0))
        h = jnp.where(valid, h_new, h)
    out = jnp.stack(outs, axis=1)                                 # (B, T, H)
    logits = out @ params["w_out"].T + params["b_out"]
    return jax.nn.log_softmax(logits, -1), h[None]


def init_params(key, vocab_size, embed_size, hidden_size):
    ks = jax.random.split(key, 7)
    bound = 1.0 / np.sqrt(hidden_size)
    return {
        "embedding": jax.random.uniform(ks[0], (vocab_size, embed_size),
                                        jnp.float32, -0.25, 0.25),
        "w_ih": jax.random.uniform(ks[1], (3 * hidden_size, embed_size),
                                   jnp.float32, -bound, bound),
        "w_hh": jax.random.uniform(ks[2], (3 * hidden_size, hidden_size),
                                   jnp.float32, -bound, bound),
        "b_ih": jax.random.uniform(ks[3], (3 * hidden_size,), jnp.float32, -bound, bound),
        "b_hh": jax.random.uniform(ks[4], (3 * hidden_size,), jnp.float32, -bound, bound),
        "w_out": jax.random.uniform(ks[5], (vocab_size, hidden_size),
                                    jnp.float32, -bound, bound),
        "b_out": jax.random.uniform(ks[6], (vocab_size,), jnp.float32, -bound, bound),
    }


if __name__ == "__main__":
    # Lane/sublane-aligned small sizes: B multiple of 8; E, H, 3H, V multiples of 128.
    # T=64 with tT=32 exercises the cross-chunk recurrent carry (2 chunks).
    B, T, E, H, V = 8, 64, 128, 128, 256

    key = jax.random.PRNGKey(0)
    k_par, k_tok, k_hid = jax.random.split(key, 3)

    params = init_params(k_par, V, E, H)
    prep = prepare_params(params)                                 # one-time weight prep
    inputs = jax.random.randint(k_tok, (B, T), 0, V, dtype=jnp.int32)
    lengths = jnp.array([64, 50, 64, 17, 33, 1, 64, 27], dtype=jnp.int32)  # max == T
    hidden = jax.random.normal(k_hid, (1, B, H), dtype=jnp.float32)

    output, hid = plain_decoder_forward(inputs, lengths, hidden, prep, tT=32, tB=8)
    jax.block_until_ready((output, hid))

    ref_out, ref_hid = _reference_forward(inputs, lengths, hidden, params)
    assert output.shape == (B, T, V) and hid.shape == (1, B, H)
    # Tolerance accounts for bf16 operands (f32 accumulation) on all three matmuls,
    # including the recurrence carry over T=64 steps; gate math stays f32.
    np.testing.assert_allclose(np.asarray(output), np.asarray(ref_out), rtol=2e-2, atol=5e-2)
    np.testing.assert_allclose(np.asarray(hid), np.asarray(ref_hid), rtol=2e-2, atol=5e-2)

    print("KERNEL_OK")
</pallas_src>

<mosaic_0001>
module attributes {stable_mosaic.version = 11 : i64} {
  func.func @_plain_decoder_kernel(%arg0: i32, %arg1: i32, %arg2: memref<32x8x128xbf16, #tpu.memory_space<vmem>>, %arg3: memref<32x8x1xf32, #tpu.memory_space<vmem>>, %arg4: memref<8x128xf32, #tpu.memory_space<vmem>>, %arg5: memref<128x384xbf16, #tpu.memory_space<vmem>>, %arg6: memref<128x384xbf16, #tpu.memory_space<vmem>>, %arg7: memref<1x384xf32, #tpu.memory_space<vmem>>, %arg8: memref<1x128xf32, #tpu.memory_space<vmem>>, %arg9: memref<128x256xbf16, #tpu.memory_space<vmem>>, %arg10: memref<1x256xf32, #tpu.memory_space<vmem>>, %arg11: memref<8x32x256xf32, #tpu.memory_space<vmem>>, %arg12: memref<8x128xf32, #tpu.memory_space<vmem>>, %arg13: memref<32x8x384xf32, #tpu.memory_space<vmem>>, %arg14: memref<8x32x128xf32, #tpu.memory_space<vmem>>) attributes {dimension_semantics = [#tpu.dimension_semantics<parallel>, #tpu.dimension_semantics<arbitrary>], iteration_bounds = array<i64: 1, 2>, scalar_prefetch = 0 : i64, scratch_operands = 2 : i64, tpu.core_type = #tpu.core_type<tc>, window_params = [{transform_indices = @transform_0, window_bounds = array<i64: 32, 8, 128>}, {transform_indices = @transform_1, window_bounds = array<i64: 32, 8, 1>}, {transform_indices = @transform_2, window_bounds = array<i64: 8, 128>}, {pipeline_mode = #tpu.pipeline_mode<synchronous>, transform_indices = @transform_3, window_bounds = array<i64: 128, 384>}, {pipeline_mode = #tpu.pipeline_mode<synchronous>, transform_indices = @transform_4, window_bounds = array<i64: 128, 384>}, {pipeline_mode = #tpu.pipeline_mode<synchronous>, transform_indices = @transform_5, window_bounds = array<i64: 1, 384>}, {pipeline_mode = #tpu.pipeline_mode<synchronous>, transform_indices = @transform_6, window_bounds = array<i64: 1, 128>}, {pipeline_mode = #tpu.pipeline_mode<synchronous>, transform_indices = @transform_7, window_bounds = array<i64: 128, 256>}, {pipeline_mode = #tpu.pipeline_mode<synchronous>, transform_indices = @transform_8, window_bounds = array<i64: 1, 256>}, {transform_indices = @transform_9, window_bounds = array<i64: 8, 32, 256>}, {transform_indices = @transform_10, window_bounds = array<i64: 8, 128>}]} {
    %c0_i32 = arith.constant 0 : i32
    %0 = arith.cmpi eq, %arg1, %c0_i32 : i32
    %1 = arith.extui %0 : i1 to i32
    %c0_i32_0 = arith.constant 0 : i32
    %2 = arith.cmpi ne, %1, %c0_i32_0 : i32
    scf.if %2 {
      %c0_448 = arith.constant 0 : index
      %c0_449 = arith.constant 0 : index
      %1415 = vector.load %arg4[%c0_448, %c0_449] : memref<8x128xf32, #tpu.memory_space<vmem>>, vector<8x128xf32>
      %c0_450 = arith.constant 0 : index
      %c0_451 = arith.constant 0 : index
      %1416 = vector.load %arg12[%c0_450, %c0_451] : memref<8x128xf32, #tpu.memory_space<vmem>>, vector<8x128xf32>
      tpu.vector_store %arg12[%c0_450, %c0_451], %1415 {strides = array<i32>} : memref<8x128xf32, #tpu.memory_space<vmem>>, vector<8x128xf32>,
    } else {
    }
    %c0 = arith.constant 0 : index
    %c0_1 = arith.constant 0 : index
    %c0_2 = arith.constant 0 : index
    %3 = vector.load %arg2[%c0, %c0_1, %c0_2] : memref<32x8x128xbf16, #tpu.memory_space<vmem>>, vector<32x8x128xbf16>
    %4 = vector.shape_cast %3 : vector<32x8x128xbf16> to vector<256x128xbf16>
    %c0_3 = arith.constant 0 : index
    %c0_4 = arith.constant 0 : index
    %5 = vector.load %arg5[%c0_3, %c0_4] : memref<128x384xbf16, #tpu.memory_space<vmem>>, vector<128x384xbf16>
    %cst = arith.constant dense<0.000000e+00> : vector<256x384xf32>
    %6 = tpu.matmul %4, %5, %cst {dimension_numbers = #tpu.dot_dimension_numbers<[1], [0], [0], [1], [0, 0, 1, 1], [], []>} : vector<256x128xbf16>, vector<128x384xbf16>, vector<256x384xf32> -> vector<256x384xf32>
    %c0_5 = arith.constant 0 : index
    %c0_6 = arith.constant 0 : index
    %7 = vector.load %arg7[%c0_5, %c0_6] : memref<1x384xf32, #tpu.memory_space<vmem>>, vector<1x384xf32>
    %8 = vector.broadcast %7 : vector<1x384xf32> to vector<256x384xf32>
    %9 = arith.addf %6, %8 : vector<256x384xf32>
    %10 = vector.shape_cast %9 : vector<256x384xf32> to vector<32x8x384xf32>
    %c0_7 = arith.constant 0 : index
    %c0_8 = arith.constant 0 : index
    %c0_9 = arith.constant 0 : index
    %11 = vector.load %arg13[%c0_7, %c0_8, %c0_9] : memref<32x8x384xf32, #tpu.memory_space<vmem>>, vector<32x8x384xf32>
    tpu.vector_store %arg13[%c0_7, %c0_8, %c0_9], %10 {strides = array<i32>} : memref<32x8x384xf32, #tpu.memory_space<vmem>>, vector<32x8x384xf32>,
    %c0_10 = arith.constant 0 : index
    %c0_11 = arith.constant 0 : index
    %12 = vector.load %arg6[%c0_10, %c0_11] : memref<128x384xbf16, #tpu.memory_space<vmem>>, vector<128x384xbf16>
    %c0_12 = arith.constant 0 : index
    %c0_13 = arith.constant 0 : index
    %13 = vector.load %arg8[%c0_12, %c0_13] : memref<1x128xf32, #tpu.memory_space<vmem>>, vector<1x128xf32>
    %14 = vector.shape_cast %13 : vector<1x128xf32> to vector<1x128xf32>
    %15 = vector.broadcast %14 : vector<1x128xf32> to vector<8x128xf32>
    %c0_14 = arith.constant 0 : index
    %c0_15 = arith.constant 0 : index
    %16 = vector.load %arg12[%c0_14, %c0_15] : memref<8x128xf32, #tpu.memory_space<vmem>>, vector<8x128xf32>
    %c0_16 = arith.constant 0 : index
    %c0_17 = arith.constant 0 : index
    %c0_18 = arith.constant 0 : index
    %17 = vector.load %arg13[%c0_16, %c0_17, %c0_18] : memref<32x8x384xf32, #tpu.memory_space<vmem>>, vector<1x8x384xf32>
    %18 = vector.shape_cast %17 : vector<1x8x384xf32> to vector<8x384xf32>
    %19 = arith.truncf %16 : vector<8x128xf32> to vector<8x128xbf16>
    %cst_19 = arith.constant dense<0.000000e+00> : vector<8x384xf32>
    %20 = tpu.matmul %19, %12, %cst_19 {dimension_numbers = #tpu.dot_dimension_numbers<[1], [0], [0], [1], [0, 0, 1, 1], [], []>} : vector<8x128xbf16>, vector<128x384xbf16>, vector<8x384xf32> -> vector<8x384xf32>
    %21 = vector.extract_strided_slice %18 {offsets = [0, 0], sizes = [8, 128], strides = [1, 1]} : vector<8x384xf32> to vector<8x128xf32>
    %22 = vector.extract_strided_slice %20 {offsets = [0, 0], sizes = [8, 128], strides = [1, 1]} : vector<8x384xf32> to vector<8x128xf32>
    %23 = arith.addf %21, %22 : vector<8x128xf32>
    %24 = arith.negf %23 : vector<8x128xf32>
    %25 = math.exp %24 : vector<8x128xf32>
    %cst_20 = arith.constant 1.000000e+00 : f32
    %26 = vector.broadcast %cst_20 : f32 to vector<8x128xf32>
    %27 = arith.addf %26, %25 : vector<8x128xf32>
    %28 = arith.divf %26, %27 : vector<8x128xf32>
    %29 = vector.extract_strided_slice %18 {offsets = [0, 128], sizes = [8, 128], strides = [1, 1]} : vector<8x384xf32> to vector<8x128xf32>
    %30 = vector.extract_strided_slice %20 {offsets = [0, 128], sizes = [8, 128], strides = [1, 1]} : vector<8x384xf32> to vector<8x128xf32>
    %31 = arith.addf %29, %30 : vector<8x128xf32>
    %32 = arith.negf %31 : vector<8x128xf32>
    %33 = math.exp %32 : vector<8x128xf32>
    %cst_21 = arith.constant 1.000000e+00 : f32
    %34 = vector.broadcast %cst_21 : f32 to vector<8x128xf32>
    %35 = arith.addf %34, %33 : vector<8x128xf32>
    %36 = arith.divf %34, %35 : vector<8x128xf32>
    %37 = vector.extract_strided_slice %18 {offsets = [0, 256], sizes = [8, 128], strides = [1, 1]} : vector<8x384xf32> to vector<8x128xf32>
    %38 = vector.extract_strided_slice %20 {offsets = [0, 256], sizes = [8, 128], strides = [1, 1]} : vector<8x384xf32> to vector<8x128xf32>
    %39 = arith.addf %38, %15 : vector<8x128xf32>
    %40 = arith.mulf %28, %39 : vector<8x128xf32>
    %41 = arith.addf %37, %40 : vector<8x128xf32>
    %42 = math.tanh %41 : vector<8x128xf32>
    %cst_22 = arith.constant 1.000000e+00 : f32
    %43 = vector.broadcast %cst_22 : f32 to vector<8x128xf32>
    %44 = arith.subf %43, %36 : vector<8x128xf32>
    %45 = arith.mulf %44, %42 : vector<8x128xf32>
    %46 = arith.mulf %36, %16 : vector<8x128xf32>
    %47 = arith.addf %45, %46 : vector<8x128xf32>
    %c0_23 = arith.constant 0 : index
    %c0_24 = arith.constant 0 : index
    %c0_25 = arith.constant 0 : index
    %48 = vector.load %arg3[%c0_23, %c0_24, %c0_25] : memref<32x8x1xf32, #tpu.memory_space<vmem>>, vector<1x8x1xf32>
    %49 = vector.shape_cast %48 : vector<1x8x1xf32> to vector<8x1xf32>
    %50 = vector.broadcast %49 : vector<8x1xf32> to vector<8x128xf32>
    %51 = arith.mulf %47, %50 : vector<8x128xf32>
    %c0_26 = arith.constant 0 : index
    %c0_27 = arith.constant 0 : index
    %c0_28 = arith.constant 0 : index
    %52 = vector.load %arg14[%c0_26, %c0_27, %c0_28] : memref<8x32x128xf32, #tpu.memory_space<vmem>>, vector<8x1x128xf32>
    %53 = vector.shape_cast %52 : vector<8x1x128xf32> to vector<8x128xf32>
    %54 = vector.shape_cast %51 : vector<8x128xf32> to vector<8x1x128xf32>
    tpu.vector_store %arg14[%c0_26, %c0_27, %c0_28], %54 {strides = array<i32>} : memref<8x32x128xf32, #tpu.memory_space<vmem>>, vector<8x1x128xf32>,
    %cst_29 = arith.constant 1.000000e+00 : f32
    %55 = vector.broadcast %cst_29 : f32 to vector<8x1xf32>
    %56 = arith.subf %55, %49 : vector<8x1xf32>
    %57 = vector.broadcast %56 : vector<8x1xf32> to vector<8x128xf32>
    %58 = arith.mulf %16, %57 : vector<8x128xf32>
    %59 = arith.addf %51, %58 : vector<8x128xf32>
    %c1 = arith.constant 1 : index
    %c0_30 = arith.constant 0 : index
    %c0_31 = arith.constant 0 : index
    %60 = vector.load %arg13[%c1, %c0_30, %c0_31] : memref<32x8x384xf32, #tpu.memory_space<vmem>>, vector<1x8x384xf32>
    %61 = vector.shape_cast %60 : vector<1x8x384xf32> to vector<8x384xf32>
    %62 = arith.truncf %59 : vector<8x128xf32> to vector<8x128xbf16>
    %cst_32 = arith.constant dense<0.000000e+00> : vector<8x384xf32>
    %63 = tpu.matmul %62, %12, %cst_32 {dimension_numbers = #tpu.dot_dimension_numbers<[1], [0], [0], [1], [0, 0, 1, 1], [], []>} : vector<8x128xbf16>, vector<128x384xbf16>, vector<8x384xf32> -> vector<8x384xf32>
    %64 = vector.extract_strided_slice %61 {offsets = [0, 0], sizes = [8, 128], strides = [1, 1]} : vector<8x384xf32> to vector<8x128xf32>
    %65 = vector.extract_strided_slice %63 {offsets = [0, 0], sizes = [8, 128], strides = [1, 1]} : vector<8x384xf32> to vector<8x128xf32>
    %66 = arith.addf %64, %65 : vector<8x128xf32>
    %67 = arith.negf %66 : vector<8x128xf32>
    %68 = math.exp %67 : vector<8x128xf32>
    %cst_33 = arith.constant 1.000000e+00 : f32
    %69 = vector.broadcast %cst_33 : f32 to vector<8x128xf32>
    %70 = arith.addf %69, %68 : vector<8x128xf32>
    %71 = arith.divf %69, %70 : vector<8x128xf32>
    %72 = vector.extract_strided_slice %61 {offsets = [0, 128], sizes = [8, 128], strides = [1, 1]} : vector<8x384xf32> to vector<8x128xf32>
    %73 = vector.extract_strided_slice %63 {offsets = [0, 128], sizes = [8, 128], strides = [1, 1]} : vector<8x384xf32> to vector<8x128xf32>
    %74 = arith.addf %72, %73 : vector<8x128xf32>
    %75 = arith.negf %74 : vector<8x128xf32>
    %76 = math.exp %75 : vector<8x128xf32>
    %cst_34 = arith.constant 1.000000e+00 : f32
    %77 = vector.broadcast %cst_34 : f32 to vector<8x128xf32>
    %78 = arith.addf %77, %76 : vector<8x128xf32>
    %79 = arith.divf %77, %78 : vector<8x128xf32>
    %80 = vector.extract_strided_slice %61 {offsets = [0, 256], sizes = [8, 128], strides = [1, 1]} : vector<8x384xf32> to vector<8x128xf32>
    %81 = vector.extract_strided_slice %63 {offsets = [0, 256], sizes = [8, 128], strides = [1, 1]} : vector<8x384xf32> to vector<8x128xf32>
    %82 = arith.addf %81, %15 : vector<8x128xf32>
    %83 = arith.mulf %71, %82 : vector<8x128xf32>
    %84 = arith.addf %80, %83 : vector<8x128xf32>
    %85 = math.tanh %84 : vector<8x128xf32>
    %cst_35 = arith.constant 1.000000e+00 : f32
    %86 = vector.broadcast %cst_35 : f32 to vector<8x128xf32>
    %87 = arith.subf %86, %79 : vector<8x128xf32>
    %88 = arith.mulf %87, %85 : vector<8x128xf32>
    %89 = arith.mulf %79, %59 : vector<8x128xf32>
    %90 = arith.addf %88, %89 : vector<8x128xf32>
    %c1_36 = arith.constant 1 : index
    %c0_37 = arith.constant 0 : index
    %c0_38 = arith.constant 0 : index
    %91 = vector.load %arg3[%c1_36, %c0_37, %c0_38] : memref<32x8x1xf32, #tpu.memory_space<vmem>>, vector<1x8x1xf32>
    %92 = vector.shape_cast %91 : vector<1x8x1xf32> to vector<8x1xf32>
    %93 = vector.broadcast %92 : vector<8x1xf32> to vector<8x128xf32>
    %94 = arith.mulf %90, %93 : vector<8x128xf32>
    %c0_39 = arith.constant 0 : index
    %c1_40 = arith.constant 1 : index
    %c0_41 = arith.constant 0 : index
    %95 = vector.load %arg14[%c0_39, %c1_40, %c0_41] : memref<8x32x128xf32, #tpu.memory_space<vmem>>, vector<8x1x128xf32>
    %96 = vector.shape_cast %95 : vector<8x1x128xf32> to vector<8x128xf32>
    %97 = vector.shape_cast %94 : vector<8x128xf32> to vector<8x1x128xf32>
    tpu.vector_store %arg14[%c0_39, %c1_40, %c0_41], %97 {strides = array<i32>} : memref<8x32x128xf32, #tpu.memory_space<vmem>>, vector<8x1x128xf32>,
    %cst_42 = arith.constant 1.000000e+00 : f32
    %98 = vector.broadcast %cst_42 : f32 to vector<8x1xf32>
    %99 = arith.subf %98, %92 : vector<8x1xf32>
    %100 = vector.broadcast %99 : vector<8x1xf32> to vector<8x128xf32>
    %101 = arith.mulf %59, %100 : vector<8x128xf32>
    %102 = arith.addf %94, %101 : vector<8x128xf32>
    %c2 = arith.constant 2 : index
    %c0_43 = arith.constant 0 : index
    %c0_44 = arith.constant 0 : index
    %103 = vector.load %arg13[%c2, %c0_43, %c0_44] : memref<32x8x384xf32, #tpu.memory_space<vmem>>, vector<1x8x384xf32>
    %104 = vector.shape_cast %103 : vector<1x8x384xf32> to vector<8x384xf32>
    %105 = arith.truncf %102 : vector<8x128xf32> to vector<8x128xbf16>
    %cst_45 = arith.constant dense<0.000000e+00> : vector<8x384xf32>
    %106 = tpu.matmul %105, %12, %cst_45 {dimension_numbers = #tpu.dot_dimension_numbers<[1], [0], [0], [1], [0, 0, 1, 1], [], []>} : vector<8x128xbf16>, vector<128x384xbf16>, vector<8x384xf32> -> vector<8x384xf32>
    %107 = vector.extract_strided_slice %104 {offsets = [0, 0], sizes = [8, 128], strides = [1, 1]} : vector<8x384xf32> to vector<8x128xf32>
    %108 = vector.extract_strided_slice %106 {offsets = [0, 0], sizes = [8, 128], strides = [1, 1]} : vector<8x384xf32> to vector<8x128xf32>
    %109 = arith.addf %107, %108 : vector<8x128xf32>
    %110 = arith.negf %109 : vector<8x128xf32>
    %111 = math.exp %110 : vector<8x128xf32>
    %cst_46 = arith.constant 1.000000e+00 : f32
    %112 = vector.broadcast %cst_46 : f32 to vector<8x128xf32>
    %113 = arith.addf %112, %111 : vector<8x128xf32>
    %114 = arith.divf %112, %113 : vector<8x128xf32>
    %115 = vector.extract_strided_slice %104 {offsets = [0, 128], sizes = [8, 128], strides = [1, 1]} : vector<8x384xf32> to vector<8x128xf32>
    %116 = vector.extract_strided_slice %106 {offsets = [0, 128], sizes = [8, 128], strides = [1, 1]} : vector<8x384xf32> to vector<8x128xf32>
    %117 = arith.addf %115, %116 : vector<8x128xf32>
    %118 = arith.negf %117 : vector<8x128xf32>
    %119 = math.exp %118 : vector<8x128xf32>
    %cst_47 = arith.constant 1.000000e+00 : f32
    %120 = vector.broadcast %cst_47 : f32 to vector<8x128xf32>
    %121 = arith.addf %120, %119 : vector<8x128xf32>
    %122 = arith.divf %120, %121 : vector<8x128xf32>
    %123 = vector.extract_strided_slice %104 {offsets = [0, 256], sizes = [8, 128], strides = [1, 1]} : vector<8x384xf32> to vector<8x128xf32>
    %124 = vector.extract_strided_slice %106 {offsets = [0, 256], sizes = [8, 128], strides = [1, 1]} : vector<8x384xf32> to vector<8x128xf32>
    %125 = arith.addf %124, %15 : vector<8x128xf32>
    %126 = arith.mulf %114, %125 : vector<8x128xf32>
    %127 = arith.addf %123, %126 : vector<8x128xf32>
    %128 = math.tanh %127 : vector<8x128xf32>
    %cst_48 = arith.constant 1.000000e+00 : f32
    %129 = vector.broadcast %cst_48 : f32 to vector<8x128xf32>
    %130 = arith.subf %129, %122 : vector<8x128xf32>
    %131 = arith.mulf %130, %128 : vector<8x128xf32>
    %132 = arith.mulf %122, %102 : vector<8x128xf32>
    %133 = arith.addf %131, %132 : vector<8x128xf32>
    %c2_49 = arith.constant 2 : index
    %c0_50 = arith.constant 0 : index
    %c0_51 = arith.constant 0 : index
    %134 = vector.load %arg3[%c2_49, %c0_50, %c0_51] : memref<32x8x1xf32, #tpu.memory_space<vmem>>, vector<1x8x1xf32>
    %135 = vector.shape_cast %134 : vector<1x8x1xf32> to vector<8x1xf32>
    %136 = vector.broadcast %135 : vector<8x1xf32> to vector<8x128xf32>
    %137 = arith.mulf %133, %136 : vector<8x128xf32>
    %c0_52 = arith.constant 0 : index
    %c2_53 = arith.constant 2 : index
    %c0_54 = arith.constant 0 : index
    %138 = vector.load %arg14[%c0_52, %c2_53, %c0_54] : memref<8x32x128xf32, #tpu.memory_space<vmem>>, vector<8x1x128xf32>
    %139 = vector.shape_cast %138 : vector<8x1x128xf32> to vector<8x128xf32>
    %140 = vector.shape_cast %137 : vector<8x128xf32> to vector<8x1x128xf32>
    tpu.vector_store %arg14[%c0_52, %c2_53, %c0_54], %140 {strides = array<i32>} : memref<8x32x128xf32, #tpu.memory_space<vmem>>, vector<8x1x128xf32>,
    %cst_55 = arith.constant 1.000000e+00 : f32
    %141 = vector.broadcast %cst_55 : f32 to vector<8x1xf32>
    %142 = arith.subf %141, %135 : vector<8x1xf32>
    %143 = vector.broadcast %142 : vector<8x1xf32> to vector<8x128xf32>
    %144 = arith.mulf %102, %143 : vector<8x128xf32>
    %145 = arith.addf %137, %144 : vector<8x128xf32>
    %c3 = arith.constant 3 : index
    %c0_56 = arith.constant 0 : index
    %c0_57 = arith.constant 0 : index
    %146 = vector.load %arg13[%c3, %c0_56, %c0_57] : memref<32x8x384xf32, #tpu.memory_space<vmem>>, vector<1x8x384xf32>
    %147 = vector.shape_cast %146 : vector<1x8x384xf32> to vector<8x384xf32>
    %148 = arith.truncf %145 : vector<8x128xf32> to vector<8x128xbf16>
    %cst_58 = arith.constant dense<0.000000e+00> : vector<8x384xf32>
    %149 = tpu.matmul %148, %12, %cst_58 {dimension_numbers = #tpu.dot_dimension_numbers<[1], [0], [0], [1], [0, 0, 1, 1], [], []>} : vector<8x128xbf16>, vector<128x384xbf16>, vector<8x384xf32> -> vector<8x384xf32>
    %150 = vector.extract_strided_slice %147 {offsets = [0, 0], sizes = [8, 128], strides = [1, 1]} : vector<8x384xf32> to vector<8x128xf32>
    %151 = vector.extract_strided_slice %149 {offsets = [0, 0], sizes = [8, 128], strides = [1, 1]} : vector<8x384xf32> to vector<8x128xf32>
    %152 = arith.addf %150, %151 : vector<8x128xf32>
    %153 = arith.negf %152 : vector<8x128xf32>
    %154 = math.exp %153 : vector<8x128xf32>
    %cst_59 = arith.constant 1.000000e+00 : f32
    %155 = vector.broadcast %cst_59 : f32 to vector<8x128xf32>
    %156 = arith.addf %155, %154 : vector<8x128xf32>
    %157 = arith.divf %155, %156 : vector<8x128xf32>
    %158 = vector.extract_strided_slice %147 {offsets = [0, 128], sizes = [8, 128], strides = [1, 1]} : vector<8x384xf32> to vector<8x128xf32>
    %159 = vector.extract_strided_slice %149 {offsets = [0, 128], sizes = [8, 128], strides = [1, 1]} : vector<8x384xf32> to vector<8x128xf32>
    %160 = arith.addf %158, %159 : vector<8x128xf32>
    %161 = arith.negf %160 : vector<8x128xf32>
    %162 = math.exp %161 : vector<8x128xf32>
    %cst_60 = arith.constant 1.000000e+00 : f32
    %163 = vector.broadcast %cst_60 : f32 to vector<8x128xf32>
    %164 = arith.addf %163, %162 : vector<8x128xf32>
    %165 = arith.divf %163, %164 : vector<8x128xf32>
    %166 = vector.extract_strided_slice %147 {offsets = [0, 256], sizes = [8, 128], strides = [1, 1]} : vector<8x384xf32> to vector<8x128xf32>
    %167 = vector.extract_strided_slice %149 {offsets = [0, 256], sizes = [8, 128], strides = [1, 1]} : vector<8x384xf32> to vector<8x128xf32>
    %168 = arith.addf %167, %15 : vector<8x128xf32>
    %169 = arith.mulf %157, %168 : vector<8x128xf32>
    %170 = arith.addf %166, %169 : vector<8x128xf32>
    %171 = math.tanh %170 : vector<8x128xf32>
    %cst_61 = arith.constant 1.000000e+00 : f32
    %172 = vector.broadcast %cst_61 : f32 to vector<8x128xf32>
    %173 = arith.subf %172, %165 : vector<8x128xf32>
    %174 = arith.mulf %173, %171 : vector<8x128xf32>
    %175 = arith.mulf %165, %145 : vector<8x128xf32>
    %176 = arith.addf %174, %175 : vector<8x128xf32>
    %c3_62 = arith.constant 3 : index
    %c0_63 = arith.constant 0 : index
    %c0_64 = arith.constant 0 : index
    %177 = vector.load %arg3[%c3_62, %c0_63, %c0_64] : memref<32x8x1xf32, #tpu.memory_space<vmem>>, vector<1x8x1xf32>
    %178 = vector.shape_cast %177 : vector<1x8x1xf32> to vector<8x1xf32>
    %179 = vector.broadcast %178 : vector<8x1xf32> to vector<8x128xf32>
    %180 = arith.mulf %176, %179 : vector<8x128xf32>
    %c0_65 = arith.constant 0 : index
    %c3_66 = arith.constant 3 : index
    %c0_67 = arith.constant 0 : index
    %181 = vector.load %arg14[%c0_65, %c3_66, %c0_67] : memref<8x32x128xf32, #tpu.memory_space<vmem>>, vector<8x1x128xf32>
    %182 = vector.shape_cast %181 : vector<8x1x128xf32> to vector<8x128xf32>
    %183 = vector.shape_cast %180 : vector<8x128xf32> to vector<8x1x128xf32>
    tpu.vector_store %arg14[%c0_65, %c3_66, %c0_67], %183 {strides = array<i32>} : memref<8x32x128xf32, #tpu.memory_space<vmem>>, vector<8x1x128xf32>,
    %cst_68 = arith.constant 1.000000e+00 : f32
    %184 = vector.broadcast %cst_68 : f32 to vector<8x1xf32>
    %185 = arith.subf %184, %178 : vector<8x1xf32>
    %186 = vector.broadcast %185 : vector<8x1xf32> to vector<8x128xf32>
    %187 = arith.mulf %145, %186 : vector<8x128xf32>
    %188 = arith.addf %180, %187 : vector<8x128xf32>
    %c4 = arith.constant 4 : index
    %c0_69 = arith.constant 0 : index
    %c0_70 = arith.constant 0 : index
    %189 = vector.load %arg13[%c4, %c0_69, %c0_70] : memref<32x8x384xf32, #tpu.memory_space<vmem>>, vector<1x8x384xf32>
    %190 = vector.shape_cast %189 : vector<1x8x384xf32> to vector<8x384xf32>
    %191 = arith.truncf %188 : vector<8x128xf32> to vector<8x128xbf16>
    %cst_71 = arith.constant dense<0.000000e+00> : vector<8x384xf32>
    %192 = tpu.matmul %191, %12, %cst_71 {dimension_numbers = #tpu.dot_dimension_numbers<[1], [0], [0], [1], [0, 0, 1, 1], [], []>} : vector<8x128xbf16>, vector<128x384xbf16>, vector<8x384xf32> -> vector<8x384xf32>
    %193 = vector.extract_strided_slice %190 {offsets = [0, 0], sizes = [8, 128], strides = [1, 1]} : vector<8x384xf32> to vector<8x128xf32>
    %194 = vector.extract_strided_slice %192 {offsets = [0, 0], sizes = [8, 128], strides = [1, 1]} : vector<8x384xf32> to vector<8x128xf32>
    %195 = arith.addf %193, %194 : vector<8x128xf32>
    %196 = arith.negf %195 : vector<8x128xf32>
    %197 = math.exp %196 : vector<8x128xf32>
    %cst_72 = arith.constant 1.000000e+00 : f32
    %198 = vector.broadcast %cst_72 : f32 to vector<8x128xf32>
    %199 = arith.addf %198, %197 : vector<8x128xf32>
    %200 = arith.divf %198, %199 : vector<8x128xf32>
    %201 = vector.extract_strided_slice %190 {offsets = [0, 128], sizes = [8, 128], strides = [1, 1]} : vector<8x384xf32> to vector<8x128xf32>
    %202 = vector.extract_strided_slice %192 {offsets = [0, 128], sizes = [8, 128], strides = [1, 1]} : vector<8x384xf32> to vector<8x128xf32>
    %203 = arith.addf %201, %202 : vector<8x128xf32>
    %204 = arith.negf %203 : vector<8x128xf32>
    %205 = math.exp %204 : vector<8x128xf32>
    %cst_73 = arith.constant 1.000000e+00 : f32
    %206 = vector.broadcast %cst_73 : f32 to vector<8x128xf32>
    %207 = arith.addf %206, %205 : vector<8x128xf32>
    %208 = arith.divf %206, %207 : vector<8x128xf32>
    %209 = vector.extract_strided_slice %190 {offsets = [0, 256], sizes = [8, 128], strides = [1, 1]} : vector<8x384xf32> to vector<8x128xf32>
    %210 = vector.extract_strided_slice %192 {offsets = [0, 256], sizes = [8, 128], strides = [1, 1]} : vector<8x384xf32> to vector<8x128xf32>
    %211 = arith.addf %210, %15 : vector<8x128xf32>
    %212 = arith.mulf %200, %211 : vector<8x128xf32>
    %213 = arith.addf %209, %212 : vector<8x128xf32>
    %214 = math.tanh %213 : vector<8x128xf32>
    %cst_74 = arith.constant 1.000000e+00 : f32
    %215 = vector.broadcast %cst_74 : f32 to vector<8x128xf32>
    %216 = arith.subf %215, %208 : vector<8x128xf32>
    %217 = arith.mulf %216, %214 : vector<8x128xf32>
    %218 = arith.mulf %208, %188 : vector<8x128xf32>
    %219 = arith.addf %217, %218 : vector<8x128xf32>
    %c4_75 = arith.constant 4 : index
    %c0_76 = arith.constant 0 : index
    %c0_77 = arith.constant 0 : index
    %220 = vector.load %arg3[%c4_75, %c0_76, %c0_77] : memref<32x8x1xf32, #tpu.memory_space<vmem>>, vector<1x8x1xf32>
    %221 = vector.shape_cast %220 : vector<1x8x1xf32> to vector<8x1xf32>
    %222 = vector.broadcast %221 : vector<8x1xf32> to vector<8x128xf32>
    %223 = arith.mulf %219, %222 : vector<8x128xf32>
    %c0_78 = arith.constant 0 : index
    %c4_79 = arith.constant 4 : index
    %c0_80 = arith.constant 0 : index
    %224 = vector.load %arg14[%c0_78, %c4_79, %c0_80] : memref<8x32x128xf32, #tpu.memory_space<vmem>>, vector<8x1x128xf32>
    %225 = vector.shape_cast %224 : vector<8x1x128xf32> to vector<8x128xf32>
    %226 = vector.shape_cast %223 : vector<8x128xf32> to vector<8x1x128xf32>
    tpu.vector_store %arg14[%c0_78, %c4_79, %c0_80], %226 {strides = array<i32>} : memref<8x32x128xf32, #tpu.memory_space<vmem>>, vector<8x1x128xf32>,
    %cst_81 = arith.constant 1.000000e+00 : f32
    %227 = vector.broadcast %cst_81 : f32 to vector<8x1xf32>
    %228 = arith.subf %227, %221 : vector<8x1xf32>
    %229 = vector.broadcast %228 : vector<8x1xf32> to vector<8x128xf32>
    %230 = arith.mulf %188, %229 : vector<8x128xf32>
    %231 = arith.addf %223, %230 : vector<8x128xf32>
    %c5 = arith.constant 5 : index
    %c0_82 = arith.constant 0 : index
    %c0_83 = arith.constant 0 : index
    %232 = vector.load %arg13[%c5, %c0_82, %c0_83] : memref<32x8x384xf32, #tpu.memory_space<vmem>>, vector<1x8x384xf32>
    %233 = vector.shape_cast %232 : vector<1x8x384xf32> to vector<8x384xf32>
    %234 = arith.truncf %231 : vector<8x128xf32> to vector<8x128xbf16>
    %cst_84 = arith.constant dense<0.000000e+00> : vector<8x384xf32>
    %235 = tpu.matmul %234, %12, %cst_84 {dimension_numbers = #tpu.dot_dimension_numbers<[1], [0], [0], [1], [0, 0, 1, 1], [], []>} : vector<8x128xbf16>, vector<128x384xbf16>, vector<8x384xf32> -> vector<8x384xf32>
    %236 = vector.extract_strided_slice %233 {offsets = [0, 0], sizes = [8, 128], strides = [1, 1]} : vector<8x384xf32> to vector<8x128xf32>
    %237 = vector.extract_strided_slice %235 {offsets = [0, 0], sizes = [8, 128], strides = [1, 1]} : vector<8x384xf32> to vector<8x128xf32>
    %238 = arith.addf %236, %237 : vector<8x128xf32>
    %239 = arith.negf %238 : vector<8x128xf32>
    %240 = math.exp %239 : vector<8x128xf32>
    %cst_85 = arith.constant 1.000000e+00 : f32
    %241 = vector.broadcast %cst_85 : f32 to vector<8x128xf32>
    %242 = arith.addf %241, %240 : vector<8x128xf32>
    %243 = arith.divf %241, %242 : vector<8x128xf32>
    %244 = vector.extract_strided_slice %233 {offsets = [0, 128], sizes = [8, 128], strides = [1, 1]} : vector<8x384xf32> to vector<8x128xf32>
    %245 = vector.extract_strided_slice %235 {offsets = [0, 128], sizes = [8, 128], strides = [1, 1]} : vector<8x384xf32> to vector<8x128xf32>
    %246 = arith.addf %244, %245 : vector<8x128xf32>
    %247 = arith.negf %246 : vector<8x128xf32>
    %248 = math.exp %247 : vector<8x128xf32>
    %cst_86 = arith.constant 1.000000e+00 : f32
    %249 = vector.broadcast %cst_86 : f32 to vector<8x128xf32>
    %250 = arith.addf %249, %248 : vector<8x128xf32>
    %251 = arith.divf %249, %250 : vector<8x128xf32>
    %252 = vector.extract_strided_slice %233 {offsets = [0, 256], sizes = [8, 128], strides = [1, 1]} : vector<8x384xf32> to vector<8x128xf32>
    %253 = vector.extract_strided_slice %235 {offsets = [0, 256], sizes = [8, 128], strides = [1, 1]} : vector<8x384xf32> to vector<8x128xf32>
    %254 = arith.addf %253, %15 : vector<8x128xf32>
    %255 = arith.mulf %243, %254 : vector<8x128xf32>
    %256 = arith.addf %252, %255 : vector<8x128xf32>
    %257 = math.tanh %256 : vector<8x128xf32>
    %cst_87 = arith.constant 1.000000e+00 : f32
    %258 = vector.broadcast %cst_87 : f32 to vector<8x128xf32>
    %259 = arith.subf %258, %251 : vector<8x128xf32>
    %260 = arith.mulf %259, %257 : vector<8x128xf32>
    %261 = arith.mulf %251, %231 : vector<8x128xf32>
    %262 = arith.addf %260, %261 : vector<8x128xf32>
    %c5_88 = arith.constant 5 : index
    %c0_89 = arith.constant 0 : index
    %c0_90 = arith.constant 0 : index
    %263 = vector.load %arg3[%c5_88, %c0_89, %c0_90] : memref<32x8x1xf32, #tpu.memory_space<vmem>>, vector<1x8x1xf32>
    %264 = vector.shape_cast %263 : vector<1x8x1xf32> to vector<8x1xf32>
    %265 = vector.broadcast %264 : vector<8x1xf32> to vector<8x128xf32>
    %266 = arith.mulf %262, %265 : vector<8x128xf32>
    %c0_91 = arith.constant 0 : index
    %c5_92 = arith.constant 5 : index
    %c0_93 = arith.constant 0 : index
    %267 = vector.load %arg14[%c0_91, %c5_92, %c0_93] : memref<8x32x128xf32, #tpu.memory_space<vmem>>, vector<8x1x128xf32>
    %268 = vector.shape_cast %267 : vector<8x1x128xf32> to vector<8x128xf32>
    %269 = vector.shape_cast %266 : vector<8x128xf32> to vector<8x1x128xf32>
    tpu.vector_store %arg14[%c0_91, %c5_92, %c0_93], %269 {strides = array<i32>} : memref<8x32x128xf32, #tpu.memory_space<vmem>>, vector<8x1x128xf32>,
    %cst_94 = arith.constant 1.000000e+00 : f32
    %270 = vector.broadcast %cst_94 : f32 to vector<8x1xf32>
    %271 = arith.subf %270, %264 : vector<8x1xf32>
    %272 = vector.broadcast %271 : vector<8x1xf32> to vector<8x128xf32>
    %273 = arith.mulf %231, %272 : vector<8x128xf32>
    %274 = arith.addf %266, %273 : vector<8x128xf32>
    %c6 = arith.constant 6 : index
    %c0_95 = arith.constant 0 : index
    %c0_96 = arith.constant 0 : index
    %275 = vector.load %arg13[%c6, %c0_95, %c0_96] : memref<32x8x384xf32, #tpu.memory_space<vmem>>, vector<1x8x384xf32>
    %276 = vector.shape_cast %275 : vector<1x8x384xf32> to vector<8x384xf32>
    %277 = arith.truncf %274 : vector<8x128xf32> to vector<8x128xbf16>
    %cst_97 = arith.constant dense<0.000000e+00> : vector<8x384xf32>
    %278 = tpu.matmul %277, %12, %cst_97 {dimension_numbers = #tpu.dot_dimension_numbers<[1], [0], [0], [1], [0, 0, 1, 1], [], []>} : vector<8x128xbf16>, vector<128x384xbf16>, vector<8x384xf32> -> vector<8x384xf32>
    %279 = vector.extract_strided_slice %276 {offsets = [0, 0], sizes = [8, 128], strides = [1, 1]} : vector<8x384xf32> to vector<8x128xf32>
    %280 = vector.extract_strided_slice %278 {offsets = [0, 0], sizes = [8, 128], strides = [1, 1]} : vector<8x384xf32> to vector<8x128xf32>
    %281 = arith.addf %279, %280 : vector<8x128xf32>
    %282 = arith.negf %281 : vector<8x128xf32>
    %283 = math.exp %282 : vector<8x128xf32>
    %cst_98 = arith.constant 1.000000e+00 : f32
    %284 = vector.broadcast %cst_98 : f32 to vector<8x128xf32>
    %285 = arith.addf %284, %283 : vector<8x128xf32>
    %286 = arith.divf %284, %285 : vector<8x128xf32>
    %287 = vector.extract_strided_slice %276 {offsets = [0, 128], sizes = [8, 128], strides = [1, 1]} : vector<8x384xf32> to vector<8x128xf32>
    %288 = vector.extract_strided_slice %278 {offsets = [0, 128], sizes = [8, 128], strides = [1, 1]} : vector<8x384xf32> to vector<8x128xf32>
    %289 = arith.addf %287, %288 : vector<8x128xf32>
    %290 = arith.negf %289 : vector<8x128xf32>
    %291 = math.exp %290 : vector<8x128xf32>
    %cst_99 = arith.constant 1.000000e+00 : f32
    %292 = vector.broadcast %cst_99 : f32 to vector<8x128xf32>
    %293 = arith.addf %292, %291 : vector<8x128xf32>
    %294 = arith.divf %292, %293 : vector<8x128xf32>
    %295 = vector.extract_strided_slice %276 {offsets = [0, 256], sizes = [8, 128], strides = [1, 1]} : vector<8x384xf32> to vector<8x128xf32>
    %296 = vector.extract_strided_slice %278 {offsets = [0, 256], sizes = [8, 128], strides = [1, 1]} : vector<8x384xf32> to vector<8x128xf32>
    %297 = arith.addf %296, %15 : vector<8x128xf32>
    %298 = arith.mulf %286, %297 : vector<8x128xf32>
    %299 = arith.addf %295, %298 : vector<8x128xf32>
    %300 = math.tanh %299 : vector<8x128xf32>
    %cst_100 = arith.constant 1.000000e+00 : f32
    %301 = vector.broadcast %cst_100 : f32 to vector<8x128xf32>
    %302 = arith.subf %301, %294 : vector<8x128xf32>
    %303 = arith.mulf %302, %300 : vector<8x128xf32>
    %304 = arith.mulf %294, %274 : vector<8x128xf32>
    %305 = arith.addf %303, %304 : vector<8x128xf32>
    %c6_101 = arith.constant 6 : index
    %c0_102 = arith.constant 0 : index
    %c0_103 = arith.constant 0 : index
    %306 = vector.load %arg3[%c6_101, %c0_102, %c0_103] : memref<32x8x1xf32, #tpu.memory_space<vmem>>, vector<1x8x1xf32>
    %307 = vector.shape_cast %306 : vector<1x8x1xf32> to vector<8x1xf32>
    %308 = vector.broadcast %307 : vector<8x1xf32> to vector<8x128xf32>
    %309 = arith.mulf %305, %308 : vector<8x128xf32>
    %c0_104 = arith.constant 0 : index
    %c6_105 = arith.constant 6 : index
    %c0_106 = arith.constant 0 : index
    %310 = vector.load %arg14[%c0_104, %c6_105, %c0_106] : memref<8x32x128xf32, #tpu.memory_space<vmem>>, vector<8x1x128xf32>
    %311 = vector.shape_cast %310 : vector<8x1x128xf32> to vector<8x128xf32>
    %312 = vector.shape_cast %309 : vector<8x128xf32> to vector<8x1x128xf32>
    tpu.vector_store %arg14[%c0_104, %c6_105, %c0_106], %312 {strides = array<i32>} : memref<8x32x128xf32, #tpu.memory_space<vmem>>, vector<8x1x128xf32>,
    %cst_107 = arith.constant 1.000000e+00 : f32
    %313 = vector.broadcast %cst_107 : f32 to vector<8x1xf32>
    %314 = arith.subf %313, %307 : vector<8x1xf32>
    %315 = vector.broadcast %314 : vector<8x1xf32> to vector<8x128xf32>
    %316 = arith.mulf %274, %315 : vector<8x128xf32>
    %317 = arith.addf %309, %316 : vector<8x128xf32>
    %c7 = arith.constant 7 : index
    %c0_108 = arith.constant 0 : index
    %c0_109 = arith.constant 0 : index
    %318 = vector.load %arg13[%c7, %c0_108, %c0_109] : memref<32x8x384xf32, #tpu.memory_space<vmem>>, vector<1x8x384xf32>
    %319 = vector.shape_cast %318 : vector<1x8x384xf32> to vector<8x384xf32>
    %320 = arith.truncf %317 : vector<8x128xf32> to vector<8x128xbf16>
    %cst_110 = arith.constant dense<0.000000e+00> : vector<8x384xf32>
    %321 = tpu.matmul %320, %12, %cst_110 {dimension_numbers = #tpu.dot_dimension_numbers<[1], [0], [0], [1], [0, 0, 1, 1], [], []>} : vector<8x128xbf16>, vector<128x384xbf16>, vector<8x384xf32> -> vector<8x384xf32>
    %322 = vector.extract_strided_slice %319 {offsets = [0, 0], sizes = [8, 128], strides = [1, 1]} : vector<8x384xf32> to vector<8x128xf32>
    %323 = vector.extract_strided_slice %321 {offsets = [0, 0], sizes = [8, 128], strides = [1, 1]} : vector<8x384xf32> to vector<8x128xf32>
    %324 = arith.addf %322, %323 : vector<8x128xf32>
    %325 = arith.negf %324 : vector<8x128xf32>
    %326 = math.exp %325 : vector<8x128xf32>
    %cst_111 = arith.constant 1.000000e+00 : f32
    %327 = vector.broadcast %cst_111 : f32 to vector<8x128xf32>
    %328 = arith.addf %327, %326 : vector<8x128xf32>
    %329 = arith.divf %327, %328 : vector<8x128xf32>
    %330 = vector.extract_strided_slice %319 {offsets = [0, 128], sizes = [8, 128], strides = [1, 1]} : vector<8x384xf32> to vector<8x128xf32>
    %331 = vector.extract_strided_slice %321 {offsets = [0, 128], sizes = [8, 128], strides = [1, 1]} : vector<8x384xf32> to vector<8x128xf32>
    %332 = arith.addf %330, %331 : vector<8x128xf32>
    %333 = arith.negf %332 : vector<8x128xf32>
    %334 = math.exp %333 : vector<8x128xf32>
    %cst_112 = arith.constant 1.000000e+00 : f32
    %335 = vector.broadcast %cst_112 : f32 to vector<8x128xf32>
    %336 = arith.addf %335, %334 : vector<8x128xf32>
    %337 = arith.divf %335, %336 : vector<8x128xf32>
    %338 = vector.extract_strided_slice %319 {offsets = [0, 256], sizes = [8, 128], strides = [1, 1]} : vector<8x384xf32> to vector<8x128xf32>
    %339 = vector.extract_strided_slice %321 {offsets = [0, 256], sizes = [8, 128], strides = [1, 1]} : vector<8x384xf32> to vector<8x128xf32>
    %340 = arith.addf %339, %15 : vector<8x128xf32>
    %341 = arith.mulf %329, %340 : vector<8x128xf32>
    %342 = arith.addf %338, %341 : vector<8x128xf32>
    %343 = math.tanh %342 : vector<8x128xf32>
    %cst_113 = arith.constant 1.000000e+00 : f32
    %344 = vector.broadcast %cst_113 : f32 to vector<8x128xf32>
    %345 = arith.subf %344, %337 : vector<8x128xf32>
    %346 = arith.mulf %345, %343 : vector<8x128xf32>
    %347 = arith.mulf %337, %317 : vector<8x128xf32>
    %348 = arith.addf %346, %347 : vector<8x128xf32>
    %c7_114 = arith.constant 7 : index
    %c0_115 = arith.constant 0 : index
    %c0_116 = arith.constant 0 : index
    %349 = vector.load %arg3[%c7_114, %c0_115, %c0_116] : memref<32x8x1xf32, #tpu.memory_space<vmem>>, vector<1x8x1xf32>
    %350 = vector.shape_cast %349 : vector<1x8x1xf32> to vector<8x1xf32>
    %351 = vector.broadcast %350 : vector<8x1xf32> to vector<8x128xf32>
    %352 = arith.mulf %348, %351 : vector<8x128xf32>
    %c0_117 = arith.constant 0 : index
    %c7_118 = arith.constant 7 : index
    %c0_119 = arith.constant 0 : index
    %353 = vector.load %arg14[%c0_117, %c7_118, %c0_119] : memref<8x32x128xf32, #tpu.memory_space<vmem>>, vector<8x1x128xf32>
    %354 = vector.shape_cast %353 : vector<8x1x128xf32> to vector<8x128xf32>
    %355 = vector.shape_cast %352 : vector<8x128xf32> to vector<8x1x128xf32>
    tpu.vector_store %arg14[%c0_117, %c7_118, %c0_119], %355 {strides = array<i32>} : memref<8x32x128xf32, #tpu.memory_space<vmem>>, vector<8x1x128xf32>,
    %cst_120 = arith.constant 1.000000e+00 : f32
    %356 = vector.broadcast %cst_120 : f32 to vector<8x1xf32>
    %357 = arith.subf %356, %350 : vector<8x1xf32>
    %358 = vector.broadcast %357 : vector<8x1xf32> to vector<8x128xf32>
    %359 = arith.mulf %317, %358 : vector<8x128xf32>
    %360 = arith.addf %352, %359 : vector<8x128xf32>
    %c8 = arith.constant 8 : index
    %c0_121 = arith.constant 0 : index
    %c0_122 = arith.constant 0 : index
    %361 = vector.load %arg13[%c8, %c0_121, %c0_122] : memref<32x8x384xf32, #tpu.memory_space<vmem>>, vector<1x8x384xf32>
    %362 = vector.shape_cast %361 : vector<1x8x384xf32> to vector<8x384xf32>
    %363 = arith.truncf %360 : vector<8x128xf32> to vector<8x128xbf16>
    %cst_123 = arith.constant dense<0.000000e+00> : vector<8x384xf32>
    %364 = tpu.matmul %363, %12, %cst_123 {dimension_numbers = #tpu.dot_dimension_numbers<[1], [0], [0], [1], [0, 0, 1, 1], [], []>} : vector<8x128xbf16>, vector<128x384xbf16>, vector<8x384xf32> -> vector<8x384xf32>
    %365 = vector.extract_strided_slice %362 {offsets = [0, 0], sizes = [8, 128], strides = [1, 1]} : vector<8x384xf32> to vector<8x128xf32>
    %366 = vector.extract_strided_slice %364 {offsets = [0, 0], sizes = [8, 128], strides = [1, 1]} : vector<8x384xf32> to vector<8x128xf32>
    %367 = arith.addf %365, %366 : vector<8x128xf32>
    %368 = arith.negf %367 : vector<8x128xf32>
    %369 = math.exp %368 : vector<8x128xf32>
    %cst_124 = arith.constant 1.000000e+00 : f32
    %370 = vector.broadcast %cst_124 : f32 to vector<8x128xf32>
    %371 = arith.addf %370, %369 : vector<8x128xf32>
    %372 = arith.divf %370, %371 : vector<8x128xf32>
    %373 = vector.extract_strided_slice %362 {offsets = [0, 128], sizes = [8, 128], strides = [1, 1]} : vector<8x384xf32> to vector<8x128xf32>
    %374 = vector.extract_strided_slice %364 {offsets = [0, 128], sizes = [8, 128], strides = [1, 1]} : vector<8x384xf32> to vector<8x128xf32>
    %375 = arith.addf %373, %374 : vector<8x128xf32>
    %376 = arith.negf %375 : vector<8x128xf32>
    %377 = math.exp %376 : vector<8x128xf32>
    %cst_125 = arith.constant 1.000000e+00 : f32
    %378 = vector.broadcast %cst_125 : f32 to vector<8x128xf32>
    %379 = arith.addf %378, %377 : vector<8x128xf32>
    %380 = arith.divf %378, %379 : vector<8x128xf32>
    %381 = vector.extract_strided_slice %362 {offsets = [0, 256], sizes = [8, 128], strides = [1, 1]} : vector<8x384xf32> to vector<8x128xf32>
    %382 = vector.extract_strided_slice %364 {offsets = [0, 256], sizes = [8, 128], strides = [1, 1]} : vector<8x384xf32> to vector<8x128xf32>
    %383 = arith.addf %382, %15 : vector<8x128xf32>
    %384 = arith.mulf %372, %383 : vector<8x128xf32>
    %385 = arith.addf %381, %384 : vector<8x128xf32>
    %386 = math.tanh %385 : vector<8x128xf32>
    %cst_126 = arith.constant 1.000000e+00 : f32
    %387 = vector.broadcast %cst_126 : f32 to vector<8x128xf32>
    %388 = arith.subf %387, %380 : vector<8x128xf32>
    %389 = arith.mulf %388, %386 : vector<8x128xf32>
    %390 = arith.mulf %380, %360 : vector<8x128xf32>
    %391 = arith.addf %389, %390 : vector<8x128xf32>
    %c8_127 = arith.constant 8 : index
    %c0_128 = arith.constant 0 : index
    %c0_129 = arith.constant 0 : index
    %392 = vector.load %arg3[%c8_127, %c0_128, %c0_129] : memref<32x8x1xf32, #tpu.memory_space<vmem>>, vector<1x8x1xf32>
    %393 = vector.shape_cast %392 : vector<1x8x1xf32> to vector<8x1xf32>
    %394 = vector.broadcast %393 : vector<8x1xf32> to vector<8x128xf32>
    %395 = arith.mulf %391, %394 : vector<8x128xf32>
    %c0_130 = arith.constant 0 : index
    %c8_131 = arith.constant 8 : index
    %c0_132 = arith.constant 0 : index
    %396 = vector.load %arg14[%c0_130, %c8_131, %c0_132] : memref<8x32x128xf32, #tpu.memory_space<vmem>>, vector<8x1x128xf32>
    %397 = vector.shape_cast %396 : vector<8x1x128xf32> to vector<8x128xf32>
    %398 = vector.shape_cast %395 : vector<8x128xf32> to vector<8x1x128xf32>
    tpu.vector_store %arg14[%c0_130, %c8_131, %c0_132], %398 {strides = array<i32>} : memref<8x32x128xf32, #tpu.memory_space<vmem>>, vector<8x1x128xf32>,
    %cst_133 = arith.constant 1.000000e+00 : f32
    %399 = vector.broadcast %cst_133 : f32 to vector<8x1xf32>
    %400 = arith.subf %399, %393 : vector<8x1xf32>
    %401 = vector.broadcast %400 : vector<8x1xf32> to vector<8x128xf32>
    %402 = arith.mulf %360, %401 : vector<8x128xf32>
    %403 = arith.addf %395, %402 : vector<8x128xf32>
    %c9 = arith.constant 9 : index
    %c0_134 = arith.constant 0 : index
    %c0_135 = arith.constant 0 : index
    %404 = vector.load %arg13[%c9, %c0_134, %c0_135] : memref<32x8x384xf32, #tpu.memory_space<vmem>>, vector<1x8x384xf32>
    %405 = vector.shape_cast %404 : vector<1x8x384xf32> to vector<8x384xf32>
    %406 = arith.truncf %403 : vector<8x128xf32> to vector<8x128xbf16>
    %cst_136 = arith.constant dense<0.000000e+00> : vector<8x384xf32>
    %407 = tpu.matmul %406, %12, %cst_136 {dimension_numbers = #tpu.dot_dimension_numbers<[1], [0], [0], [1], [0, 0, 1, 1], [], []>} : vector<8x128xbf16>, vector<128x384xbf16>, vector<8x384xf32> -> vector<8x384xf32>
    %408 = vector.extract_strided_slice %405 {offsets = [0, 0], sizes = [8, 128], strides = [1, 1]} : vector<8x384xf32> to vector<8x128xf32>
    %409 = vector.extract_strided_slice %407 {offsets = [0, 0], sizes = [8, 128], strides = [1, 1]} : vector<8x384xf32> to vector<8x128xf32>
    %410 = arith.addf %408, %409 : vector<8x128xf32>
    %411 = arith.negf %410 : vector<8x128xf32>
    %412 = math.exp %411 : vector<8x128xf32>
    %cst_137 = arith.constant 1.000000e+00 : f32
    %413 = vector.broadcast %cst_137 : f32 to vector<8x128xf32>
    %414 = arith.addf %413, %412 : vector<8x128xf32>
    %415 = arith.divf %413, %414 : vector<8x128xf32>
    %416 = vector.extract_strided_slice %405 {offsets = [0, 128], sizes = [8, 128], strides = [1, 1]} : vector<8x384xf32> to vector<8x128xf32>
    %417 = vector.extract_strided_slice %407 {offsets = [0, 128], sizes = [8, 128], strides = [1, 1]} : vector<8x384xf32> to vector<8x128xf32>
    %418 = arith.addf %416, %417 : vector<8x128xf32>
    %419 = arith.negf %418 : vector<8x128xf32>
    %420 = math.exp %419 : vector<8x128xf32>
    %cst_138 = arith.constant 1.000000e+00 : f32
    %421 = vector.broadcast %cst_138 : f32 to vector<8x128xf32>
    %422 = arith.addf %421, %420 : vector<8x128xf32>
    %423 = arith.divf %421, %422 : vector<8x128xf32>
    %424 = vector.extract_strided_slice %405 {offsets = [0, 256], sizes = [8, 128], strides = [1, 1]} : vector<8x384xf32> to vector<8x128xf32>
    %425 = vector.extract_strided_slice %407 {offsets = [0, 256], sizes = [8, 128], strides = [1, 1]} : vector<8x384xf32> to vector<8x128xf32>
    %426 = arith.addf %425, %15 : vector<8x128xf32>
    %427 = arith.mulf %415, %426 : vector<8x128xf32>
    %428 = arith.addf %424, %427 : vector<8x128xf32>
    %429 = math.tanh %428 : vector<8x128xf32>
    %cst_139 = arith.constant 1.000000e+00 : f32
    %430 = vector.broadcast %cst_139 : f32 to vector<8x128xf32>
    %431 = arith.subf %430, %423 : vector<8x128xf32>
    %432 = arith.mulf %431, %429 : vector<8x128xf32>
    %433 = arith.mulf %423, %403 : vector<8x128xf32>
    %434 = arith.addf %432, %433 : vector<8x128xf32>
    %c9_140 = arith.constant 9 : index
    %c0_141 = arith.constant 0 : index
    %c0_142 = arith.constant 0 : index
    %435 = vector.load %arg3[%c9_140, %c0_141, %c0_142] : memref<32x8x1xf32, #tpu.memory_space<vmem>>, vector<1x8x1xf32>
    %436 = vector.shape_cast %435 : vector<1x8x1xf32> to vector<8x1xf32>
    %437 = vector.broadcast %436 : vector<8x1xf32> to vector<8x128xf32>
    %438 = arith.mulf %434, %437 : vector<8x128xf32>
    %c0_143 = arith.constant 0 : index
    %c9_144 = arith.constant 9 : index
    %c0_145 = arith.constant 0 : index
    %439 = vector.load %arg14[%c0_143, %c9_144, %c0_145] : memref<8x32x128xf32, #tpu.memory_space<vmem>>, vector<8x1x128xf32>
    %440 = vector.shape_cast %439 : vector<8x1x128xf32> to vector<8x128xf32>
    %441 = vector.shape_cast %438 : vector<8x128xf32> to vector<8x1x128xf32>
    tpu.vector_store %arg14[%c0_143, %c9_144, %c0_145], %441 {strides = array<i32>} : memref<8x32x128xf32, #tpu.memory_space<vmem>>, vector<8x1x128xf32>,
    %cst_146 = arith.constant 1.000000e+00 : f32
    %442 = vector.broadcast %cst_146 : f32 to vector<8x1xf32>
    %443 = arith.subf %442, %436 : vector<8x1xf32>
    %444 = vector.broadcast %443 : vector<8x1xf32> to vector<8x128xf32>
    %445 = arith.mulf %403, %444 : vector<8x128xf32>
    %446 = arith.addf %438, %445 : vector<8x128xf32>
    %c10 = arith.constant 10 : index
    %c0_147 = arith.constant 0 : index
    %c0_148 = arith.constant 0 : index
    %447 = vector.load %arg13[%c10, %c0_147, %c0_148] : memref<32x8x384xf32, #tpu.memory_space<vmem>>, vector<1x8x384xf32>
    %448 = vector.shape_cast %447 : vector<1x8x384xf32> to vector<8x384xf32>
    %449 = arith.truncf %446 : vector<8x128xf32> to vector<8x128xbf16>
    %cst_149 = arith.constant dense<0.000000e+00> : vector<8x384xf32>
    %450 = tpu.matmul %449, %12, %cst_149 {dimension_numbers = #tpu.dot_dimension_numbers<[1], [0], [0], [1], [0, 0, 1, 1], [], []>} : vector<8x128xbf16>, vector<128x384xbf16>, vector<8x384xf32> -> vector<8x384xf32>
    %451 = vector.extract_strided_slice %448 {offsets = [0, 0], sizes = [8, 128], strides = [1, 1]} : vector<8x384xf32> to vector<8x128xf32>
    %452 = vector.extract_strided_slice %450 {offsets = [0, 0], sizes = [8, 128], strides = [1, 1]} : vector<8x384xf32> to vector<8x128xf32>
    %453 = arith.addf %451, %452 : vector<8x128xf32>
    %454 = arith.negf %453 : vector<8x128xf32>
    %455 = math.exp %454 : vector<8x128xf32>
    %cst_150 = arith.constant 1.000000e+00 : f32
    %456 = vector.broadcast %cst_150 : f32 to vector<8x128xf32>
    %457 = arith.addf %456, %455 : vector<8x128xf32>
    %458 = arith.divf %456, %457 : vector<8x128xf32>
    %459 = vector.extract_strided_slice %448 {offsets = [0, 128], sizes = [8, 128], strides = [1, 1]} : vector<8x384xf32> to vector<8x128xf32>
    %460 = vector.extract_strided_slice %450 {offsets = [0, 128], sizes = [8, 128], strides = [1, 1]} : vector<8x384xf32> to vector<8x128xf32>
    %461 = arith.addf %459, %460 : vector<8x128xf32>
    %462 = arith.negf %461 : vector<8x128xf32>
    %463 = math.exp %462 : vector<8x128xf32>
    %cst_151 = arith.constant 1.000000e+00 : f32
    %464 = vector.broadcast %cst_151 : f32 to vector<8x128xf32>
    %465 = arith.addf %464, %463 : vector<8x128xf32>
    %466 = arith.divf %464, %465 : vector<8x128xf32>
    %467 = vector.extract_strided_slice %448 {offsets = [0, 256], sizes = [8, 128], strides = [1, 1]} : vector<8x384xf32> to vector<8x128xf32>
    %468 = vector.extract_strided_slice %450 {offsets = [0, 256], sizes = [8, 128], strides = [1, 1]} : vector<8x384xf32> to vector<8x128xf32>
    %469 = arith.addf %468, %15 : vector<8x128xf32>
    %470 = arith.mulf %458, %469 : vector<8x128xf32>
    %471 = arith.addf %467, %470 : vector<8x128xf32>
    %472 = math.tanh %471 : vector<8x128xf32>
    %cst_152 = arith.constant 1.000000e+00 : f32
    %473 = vector.broadcast %cst_152 : f32 to vector<8x128xf32>
    %474 = arith.subf %473, %466 : vector<8x128xf32>
    %475 = arith.mulf %474, %472 : vector<8x128xf32>
    %476 = arith.mulf %466, %446 : vector<8x128xf32>
    %477 = arith.addf %475, %476 : vector<8x128xf32>
    %c10_153 = arith.constant 10 : index
    %c0_154 = arith.constant 0 : index
    %c0_155 = arith.constant 0 : index
    %478 = vector.load %arg3[%c10_153, %c0_154, %c0_155] : memref<32x8x1xf32, #tpu.memory_space<vmem>>, vector<1x8x1xf32>
    %479 = vector.shape_cast %478 : vector<1x8x1xf32> to vector<8x1xf32>
    %480 = vector.broadcast %479 : vector<8x1xf32> to vector<8x128xf32>
    %481 = arith.mulf %477, %480 : vector<8x128xf32>
    %c0_156 = arith.constant 0 : index
    %c10_157 = arith.constant 10 : index
    %c0_158 = arith.constant 0 : index
    %482 = vector.load %arg14[%c0_156, %c10_157, %c0_158] : memref<8x32x128xf32, #tpu.memory_space<vmem>>, vector<8x1x128xf32>
    %483 = vector.shape_cast %482 : vector<8x1x128xf32> to vector<8x128xf32>
    %484 = vector.shape_cast %481 : vector<8x128xf32> to vector<8x1x128xf32>
    tpu.vector_store %arg14[%c0_156, %c10_157, %c0_158], %484 {strides = array<i32>} : memref<8x32x128xf32, #tpu.memory_space<vmem>>, vector<8x1x128xf32>,
    %cst_159 = arith.constant 1.000000e+00 : f32
    %485 = vector.broadcast %cst_159 : f32 to vector<8x1xf32>
    %486 = arith.subf %485, %479 : vector<8x1xf32>
    %487 = vector.broadcast %486 : vector<8x1xf32> to vector<8x128xf32>
    %488 = arith.mulf %446, %487 : vector<8x128xf32>
    %489 = arith.addf %481, %488 : vector<8x128xf32>
    %c11 = arith.constant 11 : index
    %c0_160 = arith.constant 0 : index
    %c0_161 = arith.constant 0 : index
    %490 = vector.load %arg13[%c11, %c0_160, %c0_161] : memref<32x8x384xf32, #tpu.memory_space<vmem>>, vector<1x8x384xf32>
    %491 = vector.shape_cast %490 : vector<1x8x384xf32> to vector<8x384xf32>
    %492 = arith.truncf %489 : vector<8x128xf32> to vector<8x128xbf16>
    %cst_162 = arith.constant dense<0.000000e+00> : vector<8x384xf32>
    %493 = tpu.matmul %492, %12, %cst_162 {dimension_numbers = #tpu.dot_dimension_numbers<[1], [0], [0], [1], [0, 0, 1, 1], [], []>} : vector<8x128xbf16>, vector<128x384xbf16>, vector<8x384xf32> -> vector<8x384xf32>
    %494 = vector.extract_strided_slice %491 {offsets = [0, 0], sizes = [8, 128], strides = [1, 1]} : vector<8x384xf32> to vector<8x128xf32>
    %495 = vector.extract_strided_slice %493 {offsets = [0, 0], sizes = [8, 128], strides = [1, 1]} : vector<8x384xf32> to vector<8x128xf32>
    %496 = arith.addf %494, %495 : vector<8x128xf32>
    %497 = arith.negf %496 : vector<8x128xf32>
    %498 = math.exp %497 : vector<8x128xf32>
    %cst_163 = arith.constant 1.000000e+00 : f32
    %499 = vector.broadcast %cst_163 : f32 to vector<8x128xf32>
    %500 = arith.addf %499, %498 : vector<8x128xf32>
    %501 = arith.divf %499, %500 : vector<8x128xf32>
    %502 = vector.extract_strided_slice %491 {offsets = [0, 128], sizes = [8, 128], strides = [1, 1]} : vector<8x384xf32> to vector<8x128xf32>
    %503 = vector.extract_strided_slice %493 {offsets = [0, 128], sizes = [8, 128], strides = [1, 1]} : vector<8x384xf32> to vector<8x128xf32>
    %504 = arith.addf %502, %503 : vector<8x128xf32>
    %505 = arith.negf %504 : vector<8x128xf32>
    %506 = math.exp %505 : vector<8x128xf32>
    %cst_164 = arith.constant 1.000000e+00 : f32
    %507 = vector.broadcast %cst_164 : f32 to vector<8x128xf32>
    %508 = arith.addf %507, %506 : vector<8x128xf32>
    %509 = arith.divf %507, %508 : vector<8x128xf32>
    %510 = vector.extract_strided_slice %491 {offsets = [0, 256], sizes = [8, 128], strides = [1, 1]} : vector<8x384xf32> to vector<8x128xf32>
    %511 = vector.extract_strided_slice %493 {offsets = [0, 256], sizes = [8, 128], strides = [1, 1]} : vector<8x384xf32> to vector<8x128xf32>
    %512 = arith.addf %511, %15 : vector<8x128xf32>
    %513 = arith.mulf %501, %512 : vector<8x128xf32>
    %514 = arith.addf %510, %513 : vector<8x128xf32>
    %515 = math.tanh %514 : vector<8x128xf32>
    %cst_165 = arith.constant 1.000000e+00 : f32
    %516 = vector.broadcast %cst_165 : f32 to vector<8x128xf32>
    %517 = arith.subf %516, %509 : vector<8x128xf32>
    %518 = arith.mulf %517, %515 : vector<8x128xf32>
    %519 = arith.mulf %509, %489 : vector<8x128xf32>
    %520 = arith.addf %518, %519 : vector<8x128xf32>
    %c11_166 = arith.constant 11 : index
    %c0_167 = arith.constant 0 : index
    %c0_168 = arith.constant 0 : index
    %521 = vector.load %arg3[%c11_166, %c0_167, %c0_168] : memref<32x8x1xf32, #tpu.memory_space<vmem>>, vector<1x8x1xf32>
    %522 = vector.shape_cast %521 : vector<1x8x1xf32> to vector<8x1xf32>
    %523 = vector.broadcast %522 : vector<8x1xf32> to vector<8x128xf32>
    %524 = arith.mulf %520, %523 : vector<8x128xf32>
    %c0_169 = arith.constant 0 : index
    %c11_170 = arith.constant 11 : index
    %c0_171 = arith.constant 0 : index
    %525 = vector.load %arg14[%c0_169, %c11_170, %c0_171] : memref<8x32x128xf32, #tpu.memory_space<vmem>>, vector<8x1x128xf32>
    %526 = vector.shape_cast %525 : vector<8x1x128xf32> to vector<8x128xf32>
    %527 = vector.shape_cast %524 : vector<8x128xf32> to vector<8x1x128xf32>
    tpu.vector_store %arg14[%c0_169, %c11_170, %c0_171], %527 {strides = array<i32>} : memref<8x32x128xf32, #tpu.memory_space<vmem>>, vector<8x1x128xf32>,
    %cst_172 = arith.constant 1.000000e+00 : f32
    %528 = vector.broadcast %cst_172 : f32 to vector<8x1xf32>
    %529 = arith.subf %528, %522 : vector<8x1xf32>
    %530 = vector.broadcast %529 : vector<8x1xf32> to vector<8x128xf32>
    %531 = arith.mulf %489, %530 : vector<8x128xf32>
    %532 = arith.addf %524, %531 : vector<8x128xf32>
    %c12 = arith.constant 12 : index
    %c0_173 = arith.constant 0 : index
    %c0_174 = arith.constant 0 : index
    %533 = vector.load %arg13[%c12, %c0_173, %c0_174] : memref<32x8x384xf32, #tpu.memory_space<vmem>>, vector<1x8x384xf32>
    %534 = vector.shape_cast %533 : vector<1x8x384xf32> to vector<8x384xf32>
    %535 = arith.truncf %532 : vector<8x128xf32> to vector<8x128xbf16>
    %cst_175 = arith.constant dense<0.000000e+00> : vector<8x384xf32>
    %536 = tpu.matmul %535, %12, %cst_175 {dimension_numbers = #tpu.dot_dimension_numbers<[1], [0], [0], [1], [0, 0, 1, 1], [], []>} : vector<8x128xbf16>, vector<128x384xbf16>, vector<8x384xf32> -> vector<8x384xf32>
    %537 = vector.extract_strided_slice %534 {offsets = [0, 0], sizes = [8, 128], strides = [1, 1]} : vector<8x384xf32> to vector<8x128xf32>
    %538 = vector.extract_strided_slice %536 {offsets = [0, 0], sizes = [8, 128], strides = [1, 1]} : vector<8x384xf32> to vector<8x128xf32>
    %539 = arith.addf %537, %538 : vector<8x128xf32>
    %540 = arith.negf %539 : vector<8x128xf32>
    %541 = math.exp %540 : vector<8x128xf32>
    %cst_176 = arith.constant 1.000000e+00 : f32
    %542 = vector.broadcast %cst_176 : f32 to vector<8x128xf32>
    %543 = arith.addf %542, %541 : vector<8x128xf32>
    %544 = arith.divf %542, %543 : vector<8x128xf32>
    %545 = vector.extract_strided_slice %534 {offsets = [0, 128], sizes = [8, 128], strides = [1, 1]} : vector<8x384xf32> to vector<8x128xf32>
    %546 = vector.extract_strided_slice %536 {offsets = [0, 128], sizes = [8, 128], strides = [1, 1]} : vector<8x384xf32> to vector<8x128xf32>
    %547 = arith.addf %545, %546 : vector<8x128xf32>
    %548 = arith.negf %547 : vector<8x128xf32>
    %549 = math.exp %548 : vector<8x128xf32>
    %cst_177 = arith.constant 1.000000e+00 : f32
    %550 = vector.broadcast %cst_177 : f32 to vector<8x128xf32>
    %551 = arith.addf %550, %549 : vector<8x128xf32>
    %552 = arith.divf %550, %551 : vector<8x128xf32>
    %553 = vector.extract_strided_slice %534 {offsets = [0, 256], sizes = [8, 128], strides = [1, 1]} : vector<8x384xf32> to vector<8x128xf32>
    %554 = vector.extract_strided_slice %536 {offsets = [0, 256], sizes = [8, 128], strides = [1, 1]} : vector<8x384xf32> to vector<8x128xf32>
    %555 = arith.addf %554, %15 : vector<8x128xf32>
    %556 = arith.mulf %544, %555 : vector<8x128xf32>
    %557 = arith.addf %553, %556 : vector<8x128xf32>
    %558 = math.tanh %557 : vector<8x128xf32>
    %cst_178 = arith.constant 1.000000e+00 : f32
    %559 = vector.broadcast %cst_178 : f32 to vector<8x128xf32>
    %560 = arith.subf %559, %552 : vector<8x128xf32>
    %561 = arith.mulf %560, %558 : vector<8x128xf32>
    %562 = arith.mulf %552, %532 : vector<8x128xf32>
    %563 = arith.addf %561, %562 : vector<8x128xf32>
    %c12_179 = arith.constant 12 : index
    %c0_180 = arith.constant 0 : index
    %c0_181 = arith.constant 0 : index
    %564 = vector.load %arg3[%c12_179, %c0_180, %c0_181] : memref<32x8x1xf32, #tpu.memory_space<vmem>>, vector<1x8x1xf32>
    %565 = vector.shape_cast %564 : vector<1x8x1xf32> to vector<8x1xf32>
    %566 = vector.broadcast %565 : vector<8x1xf32> to vector<8x128xf32>
    %567 = arith.mulf %563, %566 : vector<8x128xf32>
    %c0_182 = arith.constant 0 : index
    %c12_183 = arith.constant 12 : index
    %c0_184 = arith.constant 0 : index
    %568 = vector.load %arg14[%c0_182, %c12_183, %c0_184] : memref<8x32x128xf32, #tpu.memory_space<vmem>>, vector<8x1x128xf32>
    %569 = vector.shape_cast %568 : vector<8x1x128xf32> to vector<8x128xf32>
    %570 = vector.shape_cast %567 : vector<8x128xf32> to vector<8x1x128xf32>
    tpu.vector_store %arg14[%c0_182, %c12_183, %c0_184], %570 {strides = array<i32>} : memref<8x32x128xf32, #tpu.memory_space<vmem>>, vector<8x1x128xf32>,
    %cst_185 = arith.constant 1.000000e+00 : f32
    %571 = vector.broadcast %cst_185 : f32 to vector<8x1xf32>
    %572 = arith.subf %571, %565 : vector<8x1xf32>
    %573 = vector.broadcast %572 : vector<8x1xf32> to vector<8x128xf32>
    %574 = arith.mulf %532, %573 : vector<8x128xf32>
    %575 = arith.addf %567, %574 : vector<8x128xf32>
    %c13 = arith.constant 13 : index
    %c0_186 = arith.constant 0 : index
    %c0_187 = arith.constant 0 : index
    %576 = vector.load %arg13[%c13, %c0_186, %c0_187] : memref<32x8x384xf32, #tpu.memory_space<vmem>>, vector<1x8x384xf32>
    %577 = vector.shape_cast %576 : vector<1x8x384xf32> to vector<8x384xf32>
    %578 = arith.truncf %575 : vector<8x128xf32> to vector<8x128xbf16>
    %cst_188 = arith.constant dense<0.000000e+00> : vector<8x384xf32>
    %579 = tpu.matmul %578, %12, %cst_188 {dimension_numbers = #tpu.dot_dimension_numbers<[1], [0], [0], [1], [0, 0, 1, 1], [], []>} : vector<8x128xbf16>, vector<128x384xbf16>, vector<8x384xf32> -> vector<8x384xf32>
    %580 = vector.extract_strided_slice %577 {offsets = [0, 0], sizes = [8, 128], strides = [1, 1]} : vector<8x384xf32> to vector<8x128xf32>
    %581 = vector.extract_strided_slice %579 {offsets = [0, 0], sizes = [8, 128], strides = [1, 1]} : vector<8x384xf32> to vector<8x128xf32>
    %582 = arith.addf %580, %581 : vector<8x128xf32>
    %583 = arith.negf %582 : vector<8x128xf32>
    %584 = math.exp %583 : vector<8x128xf32>
    %cst_189 = arith.constant 1.000000e+00 : f32
    %585 = vector.broadcast %cst_189 : f32 to vector<8x128xf32>
    %586 = arith.addf %585, %584 : vector<8x128xf32>
    %587 = arith.divf %585, %586 : vector<8x128xf32>
    %588 = vector.extract_strided_slice %577 {offsets = [0, 128], sizes = [8, 128], strides = [1, 1]} : vector<8x384xf32> to vector<8x128xf32>
    %589 = vector.extract_strided_slice %579 {offsets = [0, 128], sizes = [8, 128], strides = [1, 1]} : vector<8x384xf32> to vector<8x128xf32>
    %590 = arith.addf %588, %589 : vector<8x128xf32>
    %591 = arith.negf %590 : vector<8x128xf32>
    %592 = math.exp %591 : vector<8x128xf32>
    %cst_190 = arith.constant 1.000000e+00 : f32
    %593 = vector.broadcast %cst_190 : f32 to vector<8x128xf32>
    %594 = arith.addf %593, %592 : vector<8x128xf32>
    %595 = arith.divf %593, %594 : vector<8x128xf32>
    %596 = vector.extract_strided_slice %577 {offsets = [0, 256], sizes = [8, 128], strides = [1, 1]} : vector<8x384xf32> to vector<8x128xf32>
    %597 = vector.extract_strided_slice %579 {offsets = [0, 256], sizes = [8, 128], strides = [1, 1]} : vector<8x384xf32> to vector<8x128xf32>
    %598 = arith.addf %597, %15 : vector<8x128xf32>
    %599 = arith.mulf %587, %598 : vector<8x128xf32>
    %600 = arith.addf %596, %599 : vector<8x128xf32>
    %601 = math.tanh %600 : vector<8x128xf32>
    %cst_191 = arith.constant 1.000000e+00 : f32
    %602 = vector.broadcast %cst_191 : f32 to vector<8x128xf32>
    %603 = arith.subf %602, %595 : vector<8x128xf32>
    %604 = arith.mulf %603, %601 : vector<8x128xf32>
    %605 = arith.mulf %595, %575 : vector<8x128xf32>
    %606 = arith.addf %604, %605 : vector<8x128xf32>
    %c13_192 = arith.constant 13 : index
    %c0_193 = arith.constant 0 : index
    %c0_194 = arith.constant 0 : index
    %607 = vector.load %arg3[%c13_192, %c0_193, %c0_194] : memref<32x8x1xf32, #tpu.memory_space<vmem>>, vector<1x8x1xf32>
    %608 = vector.shape_cast %607 : vector<1x8x1xf32> to vector<8x1xf32>
    %609 = vector.broadcast %608 : vector<8x1xf32> to vector<8x128xf32>
    %610 = arith.mulf %606, %609 : vector<8x128xf32>
    %c0_195 = arith.constant 0 : index
    %c13_196 = arith.constant 13 : index
    %c0_197 = arith.constant 0 : index
    %611 = vector.load %arg14[%c0_195, %c13_196, %c0_197] : memref<8x32x128xf32, #tpu.memory_space<vmem>>, vector<8x1x128xf32>
    %612 = vector.shape_cast %611 : vector<8x1x128xf32> to vector<8x128xf32>
    %613 = vector.shape_cast %610 : vector<8x128xf32> to vector<8x1x128xf32>
    tpu.vector_store %arg14[%c0_195, %c13_196, %c0_197], %613 {strides = array<i32>} : memref<8x32x128xf32, #tpu.memory_space<vmem>>, vector<8x1x128xf32>,
    %cst_198 = arith.constant 1.000000e+00 : f32
    %614 = vector.broadcast %cst_198 : f32 to vector<8x1xf32>
    %615 = arith.subf %614, %608 : vector<8x1xf32>
    %616 = vector.broadcast %615 : vector<8x1xf32> to vector<8x128xf32>
    %617 = arith.mulf %575, %616 : vector<8x128xf32>
    %618 = arith.addf %610, %617 : vector<8x128xf32>
    %c14 = arith.constant 14 : index
    %c0_199 = arith.constant 0 : index
    %c0_200 = arith.constant 0 : index
    %619 = vector.load %arg13[%c14, %c0_199, %c0_200] : memref<32x8x384xf32, #tpu.memory_space<vmem>>, vector<1x8x384xf32>
    %620 = vector.shape_cast %619 : vector<1x8x384xf32> to vector<8x384xf32>
    %621 = arith.truncf %618 : vector<8x128xf32> to vector<8x128xbf16>
    %cst_201 = arith.constant dense<0.000000e+00> : vector<8x384xf32>
    %622 = tpu.matmul %621, %12, %cst_201 {dimension_numbers = #tpu.dot_dimension_numbers<[1], [0], [0], [1], [0, 0, 1, 1], [], []>} : vector<8x128xbf16>, vector<128x384xbf16>, vector<8x384xf32> -> vector<8x384xf32>
    %623 = vector.extract_strided_slice %620 {offsets = [0, 0], sizes = [8, 128], strides = [1, 1]} : vector<8x384xf32> to vector<8x128xf32>
    %624 = vector.extract_strided_slice %622 {offsets = [0, 0], sizes = [8, 128], strides = [1, 1]} : vector<8x384xf32> to vector<8x128xf32>
    %625 = arith.addf %623, %624 : vector<8x128xf32>
    %626 = arith.negf %625 : vector<8x128xf32>
    %627 = math.exp %626 : vector<8x128xf32>
    %cst_202 = arith.constant 1.000000e+00 : f32
    %628 = vector.broadcast %cst_202 : f32 to vector<8x128xf32>
    %629 = arith.addf %628, %627 : vector<8x128xf32>
    %630 = arith.divf %628, %629 : vector<8x128xf32>
    %631 = vector.extract_strided_slice %620 {offsets = [0, 128], sizes = [8, 128], strides = [1, 1]} : vector<8x384xf32> to vector<8x128xf32>
    %632 = vector.extract_strided_slice %622 {offsets = [0, 128], sizes = [8, 128], strides = [1, 1]} : vector<8x384xf32> to vector<8x128xf32>
    %633 = arith.addf %631, %632 : vector<8x128xf32>
    %634 = arith.negf %633 : vector<8x128xf32>
    %635 = math.exp %634 : vector<8x128xf32>
    %cst_203 = arith.constant 1.000000e+00 : f32
    %636 = vector.broadcast %cst_203 : f32 to vector<8x128xf32>
    %637 = arith.addf %636, %635 : vector<8x128xf32>
    %638 = arith.divf %636, %637 : vector<8x128xf32>
    %639 = vector.extract_strided_slice %620 {offsets = [0, 256], sizes = [8, 128], strides = [1, 1]} : vector<8x384xf32> to vector<8x128xf32>
    %640 = vector.extract_strided_slice %622 {offsets = [0, 256], sizes = [8, 128], strides = [1, 1]} : vector<8x384xf32> to vector<8x128xf32>
    %641 = arith.addf %640, %15 : vector<8x128xf32>
    %642 = arith.mulf %630, %641 : vector<8x128xf32>
    %643 = arith.addf %639, %642 : vector<8x128xf32>
    %644 = math.tanh %643 : vector<8x128xf32>
    %cst_204 = arith.constant 1.000000e+00 : f32
    %645 = vector.broadcast %cst_204 : f32 to vector<8x128xf32>
    %646 = arith.subf %645, %638 : vector<8x128xf32>
    %647 = arith.mulf %646, %644 : vector<8x128xf32>
    %648 = arith.mulf %638, %618 : vector<8x128xf32>
    %649 = arith.addf %647, %648 : vector<8x128xf32>
    %c14_205 = arith.constant 14 : index
    %c0_206 = arith.constant 0 : index
    %c0_207 = arith.constant 0 : index
    %650 = vector.load %arg3[%c14_205, %c0_206, %c0_207] : memref<32x8x1xf32, #tpu.memory_space<vmem>>, vector<1x8x1xf32>
    %651 = vector.shape_cast %650 : vector<1x8x1xf32> to vector<8x1xf32>
    %652 = vector.broadcast %651 : vector<8x1xf32> to vector<8x128xf32>
    %653 = arith.mulf %649, %652 : vector<8x128xf32>
    %c0_208 = arith.constant 0 : index
    %c14_209 = arith.constant 14 : index
    %c0_210 = arith.constant 0 : index
    %654 = vector.load %arg14[%c0_208, %c14_209, %c0_210] : memref<8x32x128xf32, #tpu.memory_space<vmem>>, vector<8x1x128xf32>
    %655 = vector.shape_cast %654 : vector<8x1x128xf32> to vector<8x128xf32>
    %656 = vector.shape_cast %653 : vector<8x128xf32> to vector<8x1x128xf32>
    tpu.vector_store %arg14[%c0_208, %c14_209, %c0_210], %656 {strides = array<i32>} : memref<8x32x128xf32, #tpu.memory_space<vmem>>, vector<8x1x128xf32>,
    %cst_211 = arith.constant 1.000000e+00 : f32
    %657 = vector.broadcast %cst_211 : f32 to vector<8x1xf32>
    %658 = arith.subf %657, %651 : vector<8x1xf32>
    %659 = vector.broadcast %658 : vector<8x1xf32> to vector<8x128xf32>
    %660 = arith.mulf %618, %659 : vector<8x128xf32>
    %661 = arith.addf %653, %660 : vector<8x128xf32>
    %c15 = arith.constant 15 : index
    %c0_212 = arith.constant 0 : index
    %c0_213 = arith.constant 0 : index
    %662 = vector.load %arg13[%c15, %c0_212, %c0_213] : memref<32x8x384xf32, #tpu.memory_space<vmem>>, vector<1x8x384xf32>
    %663 = vector.shape_cast %662 : vector<1x8x384xf32> to vector<8x384xf32>
    %664 = arith.truncf %661 : vector<8x128xf32> to vector<8x128xbf16>
    %cst_214 = arith.constant dense<0.000000e+00> : vector<8x384xf32>
    %665 = tpu.matmul %664, %12, %cst_214 {dimension_numbers = #tpu.dot_dimension_numbers<[1], [0], [0], [1], [0, 0, 1, 1], [], []>} : vector<8x128xbf16>, vector<128x384xbf16>, vector<8x384xf32> -> vector<8x384xf32>
    %666 = vector.extract_strided_slice %663 {offsets = [0, 0], sizes = [8, 128], strides = [1, 1]} : vector<8x384xf32> to vector<8x128xf32>
    %667 = vector.extract_strided_slice %665 {offsets = [0, 0], sizes = [8, 128], strides = [1, 1]} : vector<8x384xf32> to vector<8x128xf32>
    %668 = arith.addf %666, %667 : vector<8x128xf32>
    %669 = arith.negf %668 : vector<8x128xf32>
    %670 = math.exp %669 : vector<8x128xf32>
    %cst_215 = arith.constant 1.000000e+00 : f32
    %671 = vector.broadcast %cst_215 : f32 to vector<8x128xf32>
    %672 = arith.addf %671, %670 : vector<8x128xf32>
    %673 = arith.divf %671, %672 : vector<8x128xf32>
    %674 = vector.extract_strided_slice %663 {offsets = [0, 128], sizes = [8, 128], strides = [1, 1]} : vector<8x384xf32> to vector<8x128xf32>
    %675 = vector.extract_strided_slice %665 {offsets = [0, 128], sizes = [8, 128], strides = [1, 1]} : vector<8x384xf32> to vector<8x128xf32>
    %676 = arith.addf %674, %675 : vector<8x128xf32>
    %677 = arith.negf %676 : vector<8x128xf32>
    %678 = math.exp %677 : vector<8x128xf32>
    %cst_216 = arith.constant 1.000000e+00 : f32
    %679 = vector.broadcast %cst_216 : f32 to vector<8x128xf32>
    %680 = arith.addf %679, %678 : vector<8x128xf32>
    %681 = arith.divf %679, %680 : vector<8x128xf32>
    %682 = vector.extract_strided_slice %663 {offsets = [0, 256], sizes = [8, 128], strides = [1, 1]} : vector<8x384xf32> to vector<8x128xf32>
    %683 = vector.extract_strided_slice %665 {offsets = [0, 256], sizes = [8, 128], strides = [1, 1]} : vector<8x384xf32> to vector<8x128xf32>
    %684 = arith.addf %683, %15 : vector<8x128xf32>
    %685 = arith.mulf %673, %684 : vector<8x128xf32>
    %686 = arith.addf %682, %685 : vector<8x128xf32>
    %687 = math.tanh %686 : vector<8x128xf32>
    %cst_217 = arith.constant 1.000000e+00 : f32
    %688 = vector.broadcast %cst_217 : f32 to vector<8x128xf32>
    %689 = arith.subf %688, %681 : vector<8x128xf32>
    %690 = arith.mulf %689, %687 : vector<8x128xf32>
    %691 = arith.mulf %681, %661 : vector<8x128xf32>
    %692 = arith.addf %690, %691 : vector<8x128xf32>
    %c15_218 = arith.constant 15 : index
    %c0_219 = arith.constant 0 : index
    %c0_220 = arith.constant 0 : index
    %693 = vector.load %arg3[%c15_218, %c0_219, %c0_220] : memref<32x8x1xf32, #tpu.memory_space<vmem>>, vector<1x8x1xf32>
    %694 = vector.shape_cast %693 : vector<1x8x1xf32> to vector<8x1xf32>
    %695 = vector.broadcast %694 : vector<8x1xf32> to vector<8x128xf32>
    %696 = arith.mulf %692, %695 : vector<8x128xf32>
    %c0_221 = arith.constant 0 : index
    %c15_222 = arith.constant 15 : index
    %c0_223 = arith.constant 0 : index
    %697 = vector.load %arg14[%c0_221, %c15_222, %c0_223] : memref<8x32x128xf32, #tpu.memory_space<vmem>>, vector<8x1x128xf32>
    %698 = vector.shape_cast %697 : vector<8x1x128xf32> to vector<8x128xf32>
    %699 = vector.shape_cast %696 : vector<8x128xf32> to vector<8x1x128xf32>
    tpu.vector_store %arg14[%c0_221, %c15_222, %c0_223], %699 {strides = array<i32>} : memref<8x32x128xf32, #tpu.memory_space<vmem>>, vector<8x1x128xf32>,
    %cst_224 = arith.constant 1.000000e+00 : f32
    %700 = vector.broadcast %cst_224 : f32 to vector<8x1xf32>
    %701 = arith.subf %700, %694 : vector<8x1xf32>
    %702 = vector.broadcast %701 : vector<8x1xf32> to vector<8x128xf32>
    %703 = arith.mulf %661, %702 : vector<8x128xf32>
    %704 = arith.addf %696, %703 : vector<8x128xf32>
    %c16 = arith.constant 16 : index
    %c0_225 = arith.constant 0 : index
    %c0_226 = arith.constant 0 : index
    %705 = vector.load %arg13[%c16, %c0_225, %c0_226] : memref<32x8x384xf32, #tpu.memory_space<vmem>>, vector<1x8x384xf32>
    %706 = vector.shape_cast %705 : vector<1x8x384xf32> to vector<8x384xf32>
    %707 = arith.truncf %704 : vector<8x128xf32> to vector<8x128xbf16>
    %cst_227 = arith.constant dense<0.000000e+00> : vector<8x384xf32>
    %708 = tpu.matmul %707, %12, %cst_227 {dimension_numbers = #tpu.dot_dimension_numbers<[1], [0], [0], [1], [0, 0, 1, 1], [], []>} : vector<8x128xbf16>, vector<128x384xbf16>, vector<8x384xf32> -> vector<8x384xf32>
    %709 = vector.extract_strided_slice %706 {offsets = [0, 0], sizes = [8, 128], strides = [1, 1]} : vector<8x384xf32> to vector<8x128xf32>
    %710 = vector.extract_strided_slice %708 {offsets = [0, 0], sizes = [8, 128], strides = [1, 1]} : vector<8x384xf32> to vector<8x128xf32>
    %711 = arith.addf %709, %710 : vector<8x128xf32>
    %712 = arith.negf %711 : vector<8x128xf32>
    %713 = math.exp %712 : vector<8x128xf32>
    %cst_228 = arith.constant 1.000000e+00 : f32
    %714 = vector.broadcast %cst_228 : f32 to vector<8x128xf32>
    %715 = arith.addf %714, %713 : vector<8x128xf32>
    %716 = arith.divf %714, %715 : vector<8x128xf32>
    %717 = vector.extract_strided_slice %706 {offsets = [0, 128], sizes = [8, 128], strides = [1, 1]} : vector<8x384xf32> to vector<8x128xf32>
    %718 = vector.extract_strided_slice %708 {offsets = [0, 128], sizes = [8, 128], strides = [1, 1]} : vector<8x384xf32> to vector<8x128xf32>
    %719 = arith.addf %717, %718 : vector<8x128xf32>
    %720 = arith.negf %719 : vector<8x128xf32>
    %721 = math.exp %720 : vector<8x128xf32>
    %cst_229 = arith.constant 1.000000e+00 : f32
    %722 = vector.broadcast %cst_229 : f32 to vector<8x128xf32>
    %723 = arith.addf %722, %721 : vector<8x128xf32>
    %724 = arith.divf %722, %723 : vector<8x128xf32>
    %725 = vector.extract_strided_slice %706 {offsets = [0, 256], sizes = [8, 128], strides = [1, 1]} : vector<8x384xf32> to vector<8x128xf32>
    %726 = vector.extract_strided_slice %708 {offsets = [0, 256], sizes = [8, 128], strides = [1, 1]} : vector<8x384xf32> to vector<8x128xf32>
    %727 = arith.addf %726, %15 : vector<8x128xf32>
    %728 = arith.mulf %716, %727 : vector<8x128xf32>
    %729 = arith.addf %725, %728 : vector<8x128xf32>
    %730 = math.tanh %729 : vector<8x128xf32>
    %cst_230 = arith.constant 1.000000e+00 : f32
    %731 = vector.broadcast %cst_230 : f32 to vector<8x128xf32>
    %732 = arith.subf %731, %724 : vector<8x128xf32>
    %733 = arith.mulf %732, %730 : vector<8x128xf32>
    %734 = arith.mulf %724, %704 : vector<8x128xf32>
    %735 = arith.addf %733, %734 : vector<8x128xf32>
    %c16_231 = arith.constant 16 : index
    %c0_232 = arith.constant 0 : index
    %c0_233 = arith.constant 0 : index
    %736 = vector.load %arg3[%c16_231, %c0_232, %c0_233] : memref<32x8x1xf32, #tpu.memory_space<vmem>>, vector<1x8x1xf32>
    %737 = vector.shape_cast %736 : vector<1x8x1xf32> to vector<8x1xf32>
    %738 = vector.broadcast %737 : vector<8x1xf32> to vector<8x128xf32>
    %739 = arith.mulf %735, %738 : vector<8x128xf32>
    %c0_234 = arith.constant 0 : index
    %c16_235 = arith.constant 16 : index
    %c0_236 = arith.constant 0 : index
    %740 = vector.load %arg14[%c0_234, %c16_235, %c0_236] : memref<8x32x128xf32, #tpu.memory_space<vmem>>, vector<8x1x128xf32>
    %741 = vector.shape_cast %740 : vector<8x1x128xf32> to vector<8x128xf32>
    %742 = vector.shape_cast %739 : vector<8x128xf32> to vector<8x1x128xf32>
    tpu.vector_store %arg14[%c0_234, %c16_235, %c0_236], %742 {strides = array<i32>} : memref<8x32x128xf32, #tpu.memory_space<vmem>>, vector<8x1x128xf32>,
    %cst_237 = arith.constant 1.000000e+00 : f32
    %743 = vector.broadcast %cst_237 : f32 to vector<8x1xf32>
    %744 = arith.subf %743, %737 : vector<8x1xf32>
    %745 = vector.broadcast %744 : vector<8x1xf32> to vector<8x128xf32>
    %746 = arith.mulf %704, %745 : vector<8x128xf32>
    %747 = arith.addf %739, %746 : vector<8x128xf32>
    %c17 = arith.constant 17 : index
    %c0_238 = arith.constant 0 : index
    %c0_239 = arith.constant 0 : index
    %748 = vector.load %arg13[%c17, %c0_238, %c0_239] : memref<32x8x384xf32, #tpu.memory_space<vmem>>, vector<1x8x384xf32>
    %749 = vector.shape_cast %748 : vector<1x8x384xf32> to vector<8x384xf32>
    %750 = arith.truncf %747 : vector<8x128xf32> to vector<8x128xbf16>
    %cst_240 = arith.constant dense<0.000000e+00> : vector<8x384xf32>
    %751 = tpu.matmul %750, %12, %cst_240 {dimension_numbers = #tpu.dot_dimension_numbers<[1], [0], [0], [1], [0, 0, 1, 1], [], []>} : vector<8x128xbf16>, vector<128x384xbf16>, vector<8x384xf32> -> vector<8x384xf32>
    %752 = vector.extract_strided_slice %749 {offsets = [0, 0], sizes = [8, 128], strides = [1, 1]} : vector<8x384xf32> to vector<8x128xf32>
    %753 = vector.extract_strided_slice %751 {offsets = [0, 0], sizes = [8, 128], strides = [1, 1]} : vector<8x384xf32> to vector<8x128xf32>
    %754 = arith.addf %752, %753 : vector<8x128xf32>
    %755 = arith.negf %754 : vector<8x128xf32>
    %756 = math.exp %755 : vector<8x128xf32>
    %cst_241 = arith.constant 1.000000e+00 : f32
    %757 = vector.broadcast %cst_241 : f32 to vector<8x128xf32>
    %758 = arith.addf %757, %756 : vector<8x128xf32>
    %759 = arith.divf %757, %758 : vector<8x128xf32>
    %760 = vector.extract_strided_slice %749 {offsets = [0, 128], sizes = [8, 128], strides = [1, 1]} : vector<8x384xf32> to vector<8x128xf32>
    %761 = vector.extract_strided_slice %751 {offsets = [0, 128], sizes = [8, 128], strides = [1, 1]} : vector<8x384xf32> to vector<8x128xf32>
    %762 = arith.addf %760, %761 : vector<8x128xf32>
    %763 = arith.negf %762 : vector<8x128xf32>
    %764 = math.exp %763 : vector<8x128xf32>
    %cst_242 = arith.constant 1.000000e+00 : f32
    %765 = vector.broadcast %cst_242 : f32 to vector<8x128xf32>
    %766 = arith.addf %765, %764 : vector<8x128xf32>
    %767 = arith.divf %765, %766 : vector<8x128xf32>
    %768 = vector.extract_strided_slice %749 {offsets = [0, 256], sizes = [8, 128], strides = [1, 1]} : vector<8x384xf32> to vector<8x128xf32>
    %769 = vector.extract_strided_slice %751 {offsets = [0, 256], sizes = [8, 128], strides = [1, 1]} : vector<8x384xf32> to vector<8x128xf32>
    %770 = arith.addf %769, %15 : vector<8x128xf32>
    %771 = arith.mulf %759, %770 : vector<8x128xf32>
    %772 = arith.addf %768, %771 : vector<8x128xf32>
    %773 = math.tanh %772 : vector<8x128xf32>
    %cst_243 = arith.constant 1.000000e+00 : f32
    %774 = vector.broadcast %cst_243 : f32 to vector<8x128xf32>
    %775 = arith.subf %774, %767 : vector<8x128xf32>
    %776 = arith.mulf %775, %773 : vector<8x128xf32>
    %777 = arith.mulf %767, %747 : vector<8x128xf32>
    %778 = arith.addf %776, %777 : vector<8x128xf32>
    %c17_244 = arith.constant 17 : index
    %c0_245 = arith.constant 0 : index
    %c0_246 = arith.constant 0 : index
    %779 = vector.load %arg3[%c17_244, %c0_245, %c0_246] : memref<32x8x1xf32, #tpu.memory_space<vmem>>, vector<1x8x1xf32>
    %780 = vector.shape_cast %779 : vector<1x8x1xf32> to vector<8x1xf32>
    %781 = vector.broadcast %780 : vector<8x1xf32> to vector<8x128xf32>
    %782 = arith.mulf %778, %781 : vector<8x128xf32>
    %c0_247 = arith.constant 0 : index
    %c17_248 = arith.constant 17 : index
    %c0_249 = arith.constant 0 : index
    %783 = vector.load %arg14[%c0_247, %c17_248, %c0_249] : memref<8x32x128xf32, #tpu.memory_space<vmem>>, vector<8x1x128xf32>
    %784 = vector.shape_cast %783 : vector<8x1x128xf32> to vector<8x128xf32>
    %785 = vector.shape_cast %782 : vector<8x128xf32> to vector<8x1x128xf32>
    tpu.vector_store %arg14[%c0_247, %c17_248, %c0_249], %785 {strides = array<i32>} : memref<8x32x128xf32, #tpu.memory_space<vmem>>, vector<8x1x128xf32>,
    %cst_250 = arith.constant 1.000000e+00 : f32
    %786 = vector.broadcast %cst_250 : f32 to vector<8x1xf32>
    %787 = arith.subf %786, %780 : vector<8x1xf32>
    %788 = vector.broadcast %787 : vector<8x1xf32> to vector<8x128xf32>
    %789 = arith.mulf %747, %788 : vector<8x128xf32>
    %790 = arith.addf %782, %789 : vector<8x128xf32>
    %c18 = arith.constant 18 : index
    %c0_251 = arith.constant 0 : index
    %c0_252 = arith.constant 0 : index
    %791 = vector.load %arg13[%c18, %c0_251, %c0_252] : memref<32x8x384xf32, #tpu.memory_space<vmem>>, vector<1x8x384xf32>
    %792 = vector.shape_cast %791 : vector<1x8x384xf32> to vector<8x384xf32>
    %793 = arith.truncf %790 : vector<8x128xf32> to vector<8x128xbf16>
    %cst_253 = arith.constant dense<0.000000e+00> : vector<8x384xf32>
    %794 = tpu.matmul %793, %12, %cst_253 {dimension_numbers = #tpu.dot_dimension_numbers<[1], [0], [0], [1], [0, 0, 1, 1], [], []>} : vector<8x128xbf16>, vector<128x384xbf16>, vector<8x384xf32> -> vector<8x384xf32>
    %795 = vector.extract_strided_slice %792 {offsets = [0, 0], sizes = [8, 128], strides = [1, 1]} : vector<8x384xf32> to vector<8x128xf32>
    %796 = vector.extract_strided_slice %794 {offsets = [0, 0], sizes = [8, 128], strides = [1, 1]} : vector<8x384xf32> to vector<8x128xf32>
    %797 = arith.addf %795, %796 : vector<8x128xf32>
    %798 = arith.negf %797 : vector<8x128xf32>
    %799 = math.exp %798 : vector<8x128xf32>
    %cst_254 = arith.constant 1.000000e+00 : f32
    %800 = vector.broadcast %cst_254 : f32 to vector<8x128xf32>
    %801 = arith.addf %800, %799 : vector<8x128xf32>
    %802 = arith.divf %800, %801 : vector<8x128xf32>
    %803 = vector.extract_strided_slice %792 {offsets = [0, 128], sizes = [8, 128], strides = [1, 1]} : vector<8x384xf32> to vector<8x128xf32>
    %804 = vector.extract_strided_slice %794 {offsets = [0, 128], sizes = [8, 128], strides = [1, 1]} : vector<8x384xf32> to vector<8x128xf32>
    %805 = arith.addf %803, %804 : vector<8x128xf32>
    %806 = arith.negf %805 : vector<8x128xf32>
    %807 = math.exp %806 : vector<8x128xf32>
    %cst_255 = arith.constant 1.000000e+00 : f32
    %808 = vector.broadcast %cst_255 : f32 to vector<8x128xf32>
    %809 = arith.addf %808, %807 : vector<8x128xf32>
    %810 = arith.divf %808, %809 : vector<8x128xf32>
    %811 = vector.extract_strided_slice %792 {offsets = [0, 256], sizes = [8, 128], strides = [1, 1]} : vector<8x384xf32> to vector<8x128xf32>
    %812 = vector.extract_strided_slice %794 {offsets = [0, 256], sizes = [8, 128], strides = [1, 1]} : vector<8x384xf32> to vector<8x128xf32>
    %813 = arith.addf %812, %15 : vector<8x128xf32>
    %814 = arith.mulf %802, %813 : vector<8x128xf32>
    %815 = arith.addf %811, %814 : vector<8x128xf32>
    %816 = math.tanh %815 : vector<8x128xf32>
    %cst_256 = arith.constant 1.000000e+00 : f32
    %817 = vector.broadcast %cst_256 : f32 to vector<8x128xf32>
    %818 = arith.subf %817, %810 : vector<8x128xf32>
    %819 = arith.mulf %818, %816 : vector<8x128xf32>
    %820 = arith.mulf %810, %790 : vector<8x128xf32>
    %821 = arith.addf %819, %820 : vector<8x128xf32>
    %c18_257 = arith.constant 18 : index
    %c0_258 = arith.constant 0 : index
    %c0_259 = arith.constant 0 : index
    %822 = vector.load %arg3[%c18_257, %c0_258, %c0_259] : memref<32x8x1xf32, #tpu.memory_space<vmem>>, vector<1x8x1xf32>
    %823 = vector.shape_cast %822 : vector<1x8x1xf32> to vector<8x1xf32>
    %824 = vector.broadcast %823 : vector<8x1xf32> to vector<8x128xf32>
    %825 = arith.mulf %821, %824 : vector<8x128xf32>
    %c0_260 = arith.constant 0 : index
    %c18_261 = arith.constant 18 : index
    %c0_262 = arith.constant 0 : index
    %826 = vector.load %arg14[%c0_260, %c18_261, %c0_262] : memref<8x32x128xf32, #tpu.memory_space<vmem>>, vector<8x1x128xf32>
    %827 = vector.shape_cast %826 : vector<8x1x128xf32> to vector<8x128xf32>
    %828 = vector.shape_cast %825 : vector<8x128xf32> to vector<8x1x128xf32>
    tpu.vector_store %arg14[%c0_260, %c18_261, %c0_262], %828 {strides = array<i32>} : memref<8x32x128xf32, #tpu.memory_space<vmem>>, vector<8x1x128xf32>,
    %cst_263 = arith.constant 1.000000e+00 : f32
    %829 = vector.broadcast %cst_263 : f32 to vector<8x1xf32>
    %830 = arith.subf %829, %823 : vector<8x1xf32>
    %831 = vector.broadcast %830 : vector<8x1xf32> to vector<8x128xf32>
    %832 = arith.mulf %790, %831 : vector<8x128xf32>
    %833 = arith.addf %825, %832 : vector<8x128xf32>
    %c19 = arith.constant 19 : index
    %c0_264 = arith.constant 0 : index
    %c0_265 = arith.constant 0 : index
    %834 = vector.load %arg13[%c19, %c0_264, %c0_265] : memref<32x8x384xf32, #tpu.memory_space<vmem>>, vector<1x8x384xf32>
    %835 = vector.shape_cast %834 : vector<1x8x384xf32> to vector<8x384xf32>
    %836 = arith.truncf %833 : vector<8x128xf32> to vector<8x128xbf16>
    %cst_266 = arith.constant dense<0.000000e+00> : vector<8x384xf32>
    %837 = tpu.matmul %836, %12, %cst_266 {dimension_numbers = #tpu.dot_dimension_numbers<[1], [0], [0], [1], [0, 0, 1, 1], [], []>} : vector<8x128xbf16>, vector<128x384xbf16>, vector<8x384xf32> -> vector<8x384xf32>
    %838 = vector.extract_strided_slice %835 {offsets = [0, 0], sizes = [8, 128], strides = [1, 1]} : vector<8x384xf32> to vector<8x128xf32>
    %839 = vector.extract_strided_slice %837 {offsets = [0, 0], sizes = [8, 128], strides = [1, 1]} : vector<8x384xf32> to vector<8x128xf32>
    %840 = arith.addf %838, %839 : vector<8x128xf32>
    %841 = arith.negf %840 : vector<8x128xf32>
    %842 = math.exp %841 : vector<8x128xf32>
    %cst_267 = arith.constant 1.000000e+00 : f32
    %843 = vector.broadcast %cst_267 : f32 to vector<8x128xf32>
    %844 = arith.addf %843, %842 : vector<8x128xf32>
    %845 = arith.divf %843, %844 : vector<8x128xf32>
    %846 = vector.extract_strided_slice %835 {offsets = [0, 128], sizes = [8, 128], strides = [1, 1]} : vector<8x384xf32> to vector<8x128xf32>
    %847 = vector.extract_strided_slice %837 {offsets = [0, 128], sizes = [8, 128], strides = [1, 1]} : vector<8x384xf32> to vector<8x128xf32>
    %848 = arith.addf %846, %847 : vector<8x128xf32>
    %849 = arith.negf %848 : vector<8x128xf32>
    %850 = math.exp %849 : vector<8x128xf32>
    %cst_268 = arith.constant 1.000000e+00 : f32
    %851 = vector.broadcast %cst_268 : f32 to vector<8x128xf32>
    %852 = arith.addf %851, %850 : vector<8x128xf32>
    %853 = arith.divf %851, %852 : vector<8x128xf32>
    %854 = vector.extract_strided_slice %835 {offsets = [0, 256], sizes = [8, 128], strides = [1, 1]} : vector<8x384xf32> to vector<8x128xf32>
    %855 = vector.extract_strided_slice %837 {offsets = [0, 256], sizes = [8, 128], strides = [1, 1]} : vector<8x384xf32> to vector<8x128xf32>
    %856 = arith.addf %855, %15 : vector<8x128xf32>
    %857 = arith.mulf %845, %856 : vector<8x128xf32>
    %858 = arith.addf %854, %857 : vector<8x128xf32>
    %859 = math.tanh %858 : vector<8x128xf32>
    %cst_269 = arith.constant 1.000000e+00 : f32
    %860 = vector.broadcast %cst_269 : f32 to vector<8x128xf32>
    %861 = arith.subf %860, %853 : vector<8x128xf32>
    %862 = arith.mulf %861, %859 : vector<8x128xf32>
    %863 = arith.mulf %853, %833 : vector<8x128xf32>
    %864 = arith.addf %862, %863 : vector<8x128xf32>
    %c19_270 = arith.constant 19 : index
    %c0_271 = arith.constant 0 : index
    %c0_272 = arith.constant 0 : index
    %865 = vector.load %arg3[%c19_270, %c0_271, %c0_272] : memref<32x8x1xf32, #tpu.memory_space<vmem>>, vector<1x8x1xf32>
    %866 = vector.shape_cast %865 : vector<1x8x1xf32> to vector<8x1xf32>
    %867 = vector.broadcast %866 : vector<8x1xf32> to vector<8x128xf32>
    %868 = arith.mulf %864, %867 : vector<8x128xf32>
    %c0_273 = arith.constant 0 : index
    %c19_274 = arith.constant 19 : index
    %c0_275 = arith.constant 0 : index
    %869 = vector.load %arg14[%c0_273, %c19_274, %c0_275] : memref<8x32x128xf32, #tpu.memory_space<vmem>>, vector<8x1x128xf32>
    %870 = vector.shape_cast %869 : vector<8x1x128xf32> to vector<8x128xf32>
    %871 = vector.shape_cast %868 : vector<8x128xf32> to vector<8x1x128xf32>
    tpu.vector_store %arg14[%c0_273, %c19_274, %c0_275], %871 {strides = array<i32>} : memref<8x32x128xf32, #tpu.memory_space<vmem>>, vector<8x1x128xf32>,
    %cst_276 = arith.constant 1.000000e+00 : f32
    %872 = vector.broadcast %cst_276 : f32 to vector<8x1xf32>
    %873 = arith.subf %872, %866 : vector<8x1xf32>
    %874 = vector.broadcast %873 : vector<8x1xf32> to vector<8x128xf32>
    %875 = arith.mulf %833, %874 : vector<8x128xf32>
    %876 = arith.addf %868, %875 : vector<8x128xf32>
    %c20 = arith.constant 20 : index
    %c0_277 = arith.constant 0 : index
    %c0_278 = arith.constant 0 : index
    %877 = vector.load %arg13[%c20, %c0_277, %c0_278] : memref<32x8x384xf32, #tpu.memory_space<vmem>>, vector<1x8x384xf32>
    %878 = vector.shape_cast %877 : vector<1x8x384xf32> to vector<8x384xf32>
    %879 = arith.truncf %876 : vector<8x128xf32> to vector<8x128xbf16>
    %cst_279 = arith.constant dense<0.000000e+00> : vector<8x384xf32>
    %880 = tpu.matmul %879, %12, %cst_279 {dimension_numbers = #tpu.dot_dimension_numbers<[1], [0], [0], [1], [0, 0, 1, 1], [], []>} : vector<8x128xbf16>, vector<128x384xbf16>, vector<8x384xf32> -> vector<8x384xf32>
    %881 = vector.extract_strided_slice %878 {offsets = [0, 0], sizes = [8, 128], strides = [1, 1]} : vector<8x384xf32> to vector<8x128xf32>
    %882 = vector.extract_strided_slice %880 {offsets = [0, 0], sizes = [8, 128], strides = [1, 1]} : vector<8x384xf32> to vector<8x128xf32>
    %883 = arith.addf %881, %882 : vector<8x128xf32>
    %884 = arith.negf %883 : vector<8x128xf32>
    %885 = math.exp %884 : vector<8x128xf32>
    %cst_280 = arith.constant 1.000000e+00 : f32
    %886 = vector.broadcast %cst_280 : f32 to vector<8x128xf32>
    %887 = arith.addf %886, %885 : vector<8x128xf32>
    %888 = arith.divf %886, %887 : vector<8x128xf32>
    %889 = vector.extract_strided_slice %878 {offsets = [0, 128], sizes = [8, 128], strides = [1, 1]} : vector<8x384xf32> to vector<8x128xf32>
    %890 = vector.extract_strided_slice %880 {offsets = [0, 128], sizes = [8, 128], strides = [1, 1]} : vector<8x384xf32> to vector<8x128xf32>
    %891 = arith.addf %889, %890 : vector<8x128xf32>
    %892 = arith.negf %891 : vector<8x128xf32>
    %893 = math.exp %892 : vector<8x128xf32>
    %cst_281 = arith.constant 1.000000e+00 : f32
    %894 = vector.broadcast %cst_281 : f32 to vector<8x128xf32>
    %895 = arith.addf %894, %893 : vector<8x128xf32>
    %896 = arith.divf %894, %895 : vector<8x128xf32>
    %897 = vector.extract_strided_slice %878 {offsets = [0, 256], sizes = [8, 128], strides = [1, 1]} : vector<8x384xf32> to vector<8x128xf32>
    %898 = vector.extract_strided_slice %880 {offsets = [0, 256], sizes = [8, 128], strides = [1, 1]} : vector<8x384xf32> to vector<8x128xf32>
    %899 = arith.addf %898, %15 : vector<8x128xf32>
    %900 = arith.mulf %888, %899 : vector<8x128xf32>
    %901 = arith.addf %897, %900 : vector<8x128xf32>
    %902 = math.tanh %901 : vector<8x128xf32>
    %cst_282 = arith.constant 1.000000e+00 : f32
    %903 = vector.broadcast %cst_282 : f32 to vector<8x128xf32>
    %904 = arith.subf %903, %896 : vector<8x128xf32>
    %905 = arith.mulf %904, %902 : vector<8x128xf32>
    %906 = arith.mulf %896, %876 : vector<8x128xf32>
    %907 = arith.addf %905, %906 : vector<8x128xf32>
    %c20_283 = arith.constant 20 : index
    %c0_284 = arith.constant 0 : index
    %c0_285 = arith.constant 0 : index
    %908 = vector.load %arg3[%c20_283, %c0_284, %c0_285] : memref<32x8x1xf32, #tpu.memory_space<vmem>>, vector<1x8x1xf32>
    %909 = vector.shape_cast %908 : vector<1x8x1xf32> to vector<8x1xf32>
    %910 = vector.broadcast %909 : vector<8x1xf32> to vector<8x128xf32>
    %911 = arith.mulf %907, %910 : vector<8x128xf32>
    %c0_286 = arith.constant 0 : index
    %c20_287 = arith.constant 20 : index
    %c0_288 = arith.constant 0 : index
    %912 = vector.load %arg14[%c0_286, %c20_287, %c0_288] : memref<8x32x128xf32, #tpu.memory_space<vmem>>, vector<8x1x128xf32>
    %913 = vector.shape_cast %912 : vector<8x1x128xf32> to vector<8x128xf32>
    %914 = vector.shape_cast %911 : vector<8x128xf32> to vector<8x1x128xf32>
    tpu.vector_store %arg14[%c0_286, %c20_287, %c0_288], %914 {strides = array<i32>} : memref<8x32x128xf32, #tpu.memory_space<vmem>>, vector<8x1x128xf32>,
    %cst_289 = arith.constant 1.000000e+00 : f32
    %915 = vector.broadcast %cst_289 : f32 to vector<8x1xf32>
    %916 = arith.subf %915, %909 : vector<8x1xf32>
    %917 = vector.broadcast %916 : vector<8x1xf32> to vector<8x128xf32>
    %918 = arith.mulf %876, %917 : vector<8x128xf32>
    %919 = arith.addf %911, %918 : vector<8x128xf32>
    %c21 = arith.constant 21 : index
    %c0_290 = arith.constant 0 : index
    %c0_291 = arith.constant 0 : index
    %920 = vector.load %arg13[%c21, %c0_290, %c0_291] : memref<32x8x384xf32, #tpu.memory_space<vmem>>, vector<1x8x384xf32>
    %921 = vector.shape_cast %920 : vector<1x8x384xf32> to vector<8x384xf32>
    %922 = arith.truncf %919 : vector<8x128xf32> to vector<8x128xbf16>
    %cst_292 = arith.constant dense<0.000000e+00> : vector<8x384xf32>
    %923 = tpu.matmul %922, %12, %cst_292 {dimension_numbers = #tpu.dot_dimension_numbers<[1], [0], [0], [1], [0, 0, 1, 1], [], []>} : vector<8x128xbf16>, vector<128x384xbf16>, vector<8x384xf32> -> vector<8x384xf32>
    %924 = vector.extract_strided_slice %921 {offsets = [0, 0], sizes = [8, 128], strides = [1, 1]} : vector<8x384xf32> to vector<8x128xf32>
    %925 = vector.extract_strided_slice %923 {offsets = [0, 0], sizes = [8, 128], strides = [1, 1]} : vector<8x384xf32> to vector<8x128xf32>
    %926 = arith.addf %924, %925 : vector<8x128xf32>
    %927 = arith.negf %926 : vector<8x128xf32>
    %928 = math.exp %927 : vector<8x128xf32>
    %cst_293 = arith.constant 1.000000e+00 : f32
    %929 = vector.broadcast %cst_293 : f32 to vector<8x128xf32>
    %930 = arith.addf %929, %928 : vector<8x128xf32>
    %931 = arith.divf %929, %930 : vector<8x128xf32>
    %932 = vector.extract_strided_slice %921 {offsets = [0, 128], sizes = [8, 128], strides = [1, 1]} : vector<8x384xf32> to vector<8x128xf32>
    %933 = vector.extract_strided_slice %923 {offsets = [0, 128], sizes = [8, 128], strides = [1, 1]} : vector<8x384xf32> to vector<8x128xf32>
    %934 = arith.addf %932, %933 : vector<8x128xf32>
    %935 = arith.negf %934 : vector<8x128xf32>
    %936 = math.exp %935 : vector<8x128xf32>
    %cst_294 = arith.constant 1.000000e+00 : f32
    %937 = vector.broadcast %cst_294 : f32 to vector<8x128xf32>
    %938 = arith.addf %937, %936 : vector<8x128xf32>
    %939 = arith.divf %937, %938 : vector<8x128xf32>
    %940 = vector.extract_strided_slice %921 {offsets = [0, 256], sizes = [8, 128], strides = [1, 1]} : vector<8x384xf32> to vector<8x128xf32>
    %941 = vector.extract_strided_slice %923 {offsets = [0, 256], sizes = [8, 128], strides = [1, 1]} : vector<8x384xf32> to vector<8x128xf32>
    %942 = arith.addf %941, %15 : vector<8x128xf32>
    %943 = arith.mulf %931, %942 : vector<8x128xf32>
    %944 = arith.addf %940, %943 : vector<8x128xf32>
    %945 = math.tanh %944 : vector<8x128xf32>
    %cst_295 = arith.constant 1.000000e+00 : f32
    %946 = vector.broadcast %cst_295 : f32 to vector<8x128xf32>
    %947 = arith.subf %946, %939 : vector<8x128xf32>
    %948 = arith.mulf %947, %945 : vector<8x128xf32>
    %949 = arith.mulf %939, %919 : vector<8x128xf32>
    %950 = arith.addf %948, %949 : vector<8x128xf32>
    %c21_296 = arith.constant 21 : index
    %c0_297 = arith.constant 0 : index
    %c0_298 = arith.constant 0 : index
    %951 = vector.load %arg3[%c21_296, %c0_297, %c0_298] : memref<32x8x1xf32, #tpu.memory_space<vmem>>, vector<1x8x1xf32>
    %952 = vector.shape_cast %951 : vector<1x8x1xf32> to vector<8x1xf32>
    %953 = vector.broadcast %952 : vector<8x1xf32> to vector<8x128xf32>
    %954 = arith.mulf %950, %953 : vector<8x128xf32>
    %c0_299 = arith.constant 0 : index
    %c21_300 = arith.constant 21 : index
    %c0_301 = arith.constant 0 : index
    %955 = vector.load %arg14[%c0_299, %c21_300, %c0_301] : memref<8x32x128xf32, #tpu.memory_space<vmem>>, vector<8x1x128xf32>
    %956 = vector.shape_cast %955 : vector<8x1x128xf32> to vector<8x128xf32>
    %957 = vector.shape_cast %954 : vector<8x128xf32> to vector<8x1x128xf32>
    tpu.vector_store %arg14[%c0_299, %c21_300, %c0_301], %957 {strides = array<i32>} : memref<8x32x128xf32, #tpu.memory_space<vmem>>, vector<8x1x128xf32>,
    %cst_302 = arith.constant 1.000000e+00 : f32
    %958 = vector.broadcast %cst_302 : f32 to vector<8x1xf32>
    %959 = arith.subf %958, %952 : vector<8x1xf32>
    %960 = vector.broadcast %959 : vector<8x1xf32> to vector<8x128xf32>
    %961 = arith.mulf %919, %960 : vector<8x128xf32>
    %962 = arith.addf %954, %961 : vector<8x128xf32>
    %c22 = arith.constant 22 : index
    %c0_303 = arith.constant 0 : index
    %c0_304 = arith.constant 0 : index
    %963 = vector.load %arg13[%c22, %c0_303, %c0_304] : memref<32x8x384xf32, #tpu.memory_space<vmem>>, vector<1x8x384xf32>
    %964 = vector.shape_cast %963 : vector<1x8x384xf32> to vector<8x384xf32>
    %965 = arith.truncf %962 : vector<8x128xf32> to vector<8x128xbf16>
    %cst_305 = arith.constant dense<0.000000e+00> : vector<8x384xf32>
    %966 = tpu.matmul %965, %12, %cst_305 {dimension_numbers = #tpu.dot_dimension_numbers<[1], [0], [0], [1], [0, 0, 1, 1], [], []>} : vector<8x128xbf16>, vector<128x384xbf16>, vector<8x384xf32> -> vector<8x384xf32>
    %967 = vector.extract_strided_slice %964 {offsets = [0, 0], sizes = [8, 128], strides = [1, 1]} : vector<8x384xf32> to vector<8x128xf32>
    %968 = vector.extract_strided_slice %966 {offsets = [0, 0], sizes = [8, 128], strides = [1, 1]} : vector<8x384xf32> to vector<8x128xf32>
    %969 = arith.addf %967, %968 : vector<8x128xf32>
    %970 = arith.negf %969 : vector<8x128xf32>
    %971 = math.exp %970 : vector<8x128xf32>
    %cst_306 = arith.constant 1.000000e+00 : f32
    %972 = vector.broadcast %cst_306 : f32 to vector<8x128xf32>
    %973 = arith.addf %972, %971 : vector<8x128xf32>
    %974 = arith.divf %972, %973 : vector<8x128xf32>
    %975 = vector.extract_strided_slice %964 {offsets = [0, 128], sizes = [8, 128], strides = [1, 1]} : vector<8x384xf32> to vector<8x128xf32>
    %976 = vector.extract_strided_slice %966 {offsets = [0, 128], sizes = [8, 128], strides = [1, 1]} : vector<8x384xf32> to vector<8x128xf32>
    %977 = arith.addf %975, %976 : vector<8x128xf32>
    %978 = arith.negf %977 : vector<8x128xf32>
    %979 = math.exp %978 : vector<8x128xf32>
    %cst_307 = arith.constant 1.000000e+00 : f32
    %980 = vector.broadcast %cst_307 : f32 to vector<8x128xf32>
    %981 = arith.addf %980, %979 : vector<8x128xf32>
    %982 = arith.divf %980, %981 : vector<8x128xf32>
    %983 = vector.extract_strided_slice %964 {offsets = [0, 256], sizes = [8, 128], strides = [1, 1]} : vector<8x384xf32> to vector<8x128xf32>
    %984 = vector.extract_strided_slice %966 {offsets = [0, 256], sizes = [8, 128], strides = [1, 1]} : vector<8x384xf32> to vector<8x128xf32>
    %985 = arith.addf %984, %15 : vector<8x128xf32>
    %986 = arith.mulf %974, %985 : vector<8x128xf32>
    %987 = arith.addf %983, %986 : vector<8x128xf32>
    %988 = math.tanh %987 : vector<8x128xf32>
    %cst_308 = arith.constant 1.000000e+00 : f32
    %989 = vector.broadcast %cst_308 : f32 to vector<8x128xf32>
    %990 = arith.subf %989, %982 : vector<8x128xf32>
    %991 = arith.mulf %990, %988 : vector<8x128xf32>
    %992 = arith.mulf %982, %962 : vector<8x128xf32>
    %993 = arith.addf %991, %992 : vector<8x128xf32>
    %c22_309 = arith.constant 22 : index
    %c0_310 = arith.constant 0 : index
    %c0_311 = arith.constant 0 : index
    %994 = vector.load %arg3[%c22_309, %c0_310, %c0_311] : memref<32x8x1xf32, #tpu.memory_space<vmem>>, vector<1x8x1xf32>
    %995 = vector.shape_cast %994 : vector<1x8x1xf32> to vector<8x1xf32>
    %996 = vector.broadcast %995 : vector<8x1xf32> to vector<8x128xf32>
    %997 = arith.mulf %993, %996 : vector<8x128xf32>
    %c0_312 = arith.constant 0 : index
    %c22_313 = arith.constant 22 : index
    %c0_314 = arith.constant 0 : index
    %998 = vector.load %arg14[%c0_312, %c22_313, %c0_314] : memref<8x32x128xf32, #tpu.memory_space<vmem>>, vector<8x1x128xf32>
    %999 = vector.shape_cast %998 : vector<8x1x128xf32> to vector<8x128xf32>
    %1000 = vector.shape_cast %997 : vector<8x128xf32> to vector<8x1x128xf32>
    tpu.vector_store %arg14[%c0_312, %c22_313, %c0_314], %1000 {strides = array<i32>} : memref<8x32x128xf32, #tpu.memory_space<vmem>>, vector<8x1x128xf32>,
    %cst_315 = arith.constant 1.000000e+00 : f32
    %1001 = vector.broadcast %cst_315 : f32 to vector<8x1xf32>
    %1002 = arith.subf %1001, %995 : vector<8x1xf32>
    %1003 = vector.broadcast %1002 : vector<8x1xf32> to vector<8x128xf32>
    %1004 = arith.mulf %962, %1003 : vector<8x128xf32>
    %1005 = arith.addf %997, %1004 : vector<8x128xf32>
    %c23 = arith.constant 23 : index
    %c0_316 = arith.constant 0 : index
    %c0_317 = arith.constant 0 : index
    %1006 = vector.load %arg13[%c23, %c0_316, %c0_317] : memref<32x8x384xf32, #tpu.memory_space<vmem>>, vector<1x8x384xf32>
    %1007 = vector.shape_cast %1006 : vector<1x8x384xf32> to vector<8x384xf32>
    %1008 = arith.truncf %1005 : vector<8x128xf32> to vector<8x128xbf16>
    %cst_318 = arith.constant dense<0.000000e+00> : vector<8x384xf32>
    %1009 = tpu.matmul %1008, %12, %cst_318 {dimension_numbers = #tpu.dot_dimension_numbers<[1], [0], [0], [1], [0, 0, 1, 1], [], []>} : vector<8x128xbf16>, vector<128x384xbf16>, vector<8x384xf32> -> vector<8x384xf32>
    %1010 = vector.extract_strided_slice %1007 {offsets = [0, 0], sizes = [8, 128], strides = [1, 1]} : vector<8x384xf32> to vector<8x128xf32>
    %1011 = vector.extract_strided_slice %1009 {offsets = [0, 0], sizes = [8, 128], strides = [1, 1]} : vector<8x384xf32> to vector<8x128xf32>
    %1012 = arith.addf %1010, %1011 : vector<8x128xf32>
    %1013 = arith.negf %1012 : vector<8x128xf32>
    %1014 = math.exp %1013 : vector<8x128xf32>
    %cst_319 = arith.constant 1.000000e+00 : f32
    %1015 = vector.broadcast %cst_319 : f32 to vector<8x128xf32>
    %1016 = arith.addf %1015, %1014 : vector<8x128xf32>
    %1017 = arith.divf %1015, %1016 : vector<8x128xf32>
    %1018 = vector.extract_strided_slice %1007 {offsets = [0, 128], sizes = [8, 128], strides = [1, 1]} : vector<8x384xf32> to vector<8x128xf32>
    %1019 = vector.extract_strided_slice %1009 {offsets = [0, 128], sizes = [8, 128], strides = [1, 1]} : vector<8x384xf32> to vector<8x128xf32>
    %1020 = arith.addf %1018, %1019 : vector<8x128xf32>
    %1021 = arith.negf %1020 : vector<8x128xf32>
    %1022 = math.exp %1021 : vector<8x128xf32>
    %cst_320 = arith.constant 1.000000e+00 : f32
    %1023 = vector.broadcast %cst_320 : f32 to vector<8x128xf32>
    %1024 = arith.addf %1023, %1022 : vector<8x128xf32>
    %1025 = arith.divf %1023, %1024 : vector<8x128xf32>
    %1026 = vector.extract_strided_slice %1007 {offsets = [0, 256], sizes = [8, 128], strides = [1, 1]} : vector<8x384xf32> to vector<8x128xf32>
    %1027 = vector.extract_strided_slice %1009 {offsets = [0, 256], sizes = [8, 128], strides = [1, 1]} : vector<8x384xf32> to vector<8x128xf32>
    %1028 = arith.addf %1027, %15 : vector<8x128xf32>
    %1029 = arith.mulf %1017, %1028 : vector<8x128xf32>
    %1030 = arith.addf %1026, %1029 : vector<8x128xf32>
    %1031 = math.tanh %1030 : vector<8x128xf32>
    %cst_321 = arith.constant 1.000000e+00 : f32
    %1032 = vector.broadcast %cst_321 : f32 to vector<8x128xf32>
    %1033 = arith.subf %1032, %1025 : vector<8x128xf32>
    %1034 = arith.mulf %1033, %1031 : vector<8x128xf32>
    %1035 = arith.mulf %1025, %1005 : vector<8x128xf32>
    %1036 = arith.addf %1034, %1035 : vector<8x128xf32>
    %c23_322 = arith.constant 23 : index
    %c0_323 = arith.constant 0 : index
    %c0_324 = arith.constant 0 : index
    %1037 = vector.load %arg3[%c23_322, %c0_323, %c0_324] : memref<32x8x1xf32, #tpu.memory_space<vmem>>, vector<1x8x1xf32>
    %1038 = vector.shape_cast %1037 : vector<1x8x1xf32> to vector<8x1xf32>
    %1039 = vector.broadcast %1038 : vector<8x1xf32> to vector<8x128xf32>
    %1040 = arith.mulf %1036, %1039 : vector<8x128xf32>
    %c0_325 = arith.constant 0 : index
    %c23_326 = arith.constant 23 : index
    %c0_327 = arith.constant 0 : index
    %1041 = vector.load %arg14[%c0_325, %c23_326, %c0_327] : memref<8x32x128xf32, #tpu.memory_space<vmem>>, vector<8x1x128xf32>
    %1042 = vector.shape_cast %1041 : vector<8x1x128xf32> to vector<8x128xf32>
    %1043 = vector.shape_cast %1040 : vector<8x128xf32> to vector<8x1x128xf32>
    tpu.vector_store %arg14[%c0_325, %c23_326, %c0_327], %1043 {strides = array<i32>} : memref<8x32x128xf32, #tpu.memory_space<vmem>>, vector<8x1x128xf32>,
    %cst_328 = arith.constant 1.000000e+00 : f32
    %1044 = vector.broadcast %cst_328 : f32 to vector<8x1xf32>
    %1045 = arith.subf %1044, %1038 : vector<8x1xf32>
    %1046 = vector.broadcast %1045 : vector<8x1xf32> to vector<8x128xf32>
    %1047 = arith.mulf %1005, %1046 : vector<8x128xf32>
    %1048 = arith.addf %1040, %1047 : vector<8x128xf32>
    %c24 = arith.constant 24 : index
    %c0_329 = arith.constant 0 : index
    %c0_330 = arith.constant 0 : index
    %1049 = vector.load %arg13[%c24, %c0_329, %c0_330] : memref<32x8x384xf32, #tpu.memory_space<vmem>>, vector<1x8x384xf32>
    %1050 = vector.shape_cast %1049 : vector<1x8x384xf32> to vector<8x384xf32>
    %1051 = arith.truncf %1048 : vector<8x128xf32> to vector<8x128xbf16>
    %cst_331 = arith.constant dense<0.000000e+00> : vector<8x384xf32>
    %1052 = tpu.matmul %1051, %12, %cst_331 {dimension_numbers = #tpu.dot_dimension_numbers<[1], [0], [0], [1], [0, 0, 1, 1], [], []>} : vector<8x128xbf16>, vector<128x384xbf16>, vector<8x384xf32> -> vector<8x384xf32>
    %1053 = vector.extract_strided_slice %1050 {offsets = [0, 0], sizes = [8, 128], strides = [1, 1]} : vector<8x384xf32> to vector<8x128xf32>
    %1054 = vector.extract_strided_slice %1052 {offsets = [0, 0], sizes = [8, 128], strides = [1, 1]} : vector<8x384xf32> to vector<8x128xf32>
    %1055 = arith.addf %1053, %1054 : vector<8x128xf32>
    %1056 = arith.negf %1055 : vector<8x128xf32>
    %1057 = math.exp %1056 : vector<8x128xf32>
    %cst_332 = arith.constant 1.000000e+00 : f32
    %1058 = vector.broadcast %cst_332 : f32 to vector<8x128xf32>
    %1059 = arith.addf %1058, %1057 : vector<8x128xf32>
    %1060 = arith.divf %1058, %1059 : vector<8x128xf32>
    %1061 = vector.extract_strided_slice %1050 {offsets = [0, 128], sizes = [8, 128], strides = [1, 1]} : vector<8x384xf32> to vector<8x128xf32>
    %1062 = vector.extract_strided_slice %1052 {offsets = [0, 128], sizes = [8, 128], strides = [1, 1]} : vector<8x384xf32> to vector<8x128xf32>
    %1063 = arith.addf %1061, %1062 : vector<8x128xf32>
    %1064 = arith.negf %1063 : vector<8x128xf32>
    %1065 = math.exp %1064 : vector<8x128xf32>
    %cst_333 = arith.constant 1.000000e+00 : f32
    %1066 = vector.broadcast %cst_333 : f32 to vector<8x128xf32>
    %1067 = arith.addf %1066, %1065 : vector<8x128xf32>
    %1068 = arith.divf %1066, %1067 : vector<8x128xf32>
    %1069 = vector.extract_strided_slice %1050 {offsets = [0, 256], sizes = [8, 128], strides = [1, 1]} : vector<8x384xf32> to vector<8x128xf32>
    %1070 = vector.extract_strided_slice %1052 {offsets = [0, 256], sizes = [8, 128], strides = [1, 1]} : vector<8x384xf32> to vector<8x128xf32>
    %1071 = arith.addf %1070, %15 : vector<8x128xf32>
    %1072 = arith.mulf %1060, %1071 : vector<8x128xf32>
    %1073 = arith.addf %1069, %1072 : vector<8x128xf32>
    %1074 = math.tanh %1073 : vector<8x128xf32>
    %cst_334 = arith.constant 1.000000e+00 : f32
    %1075 = vector.broadcast %cst_334 : f32 to vector<8x128xf32>
    %1076 = arith.subf %1075, %1068 : vector<8x128xf32>
    %1077 = arith.mulf %1076, %1074 : vector<8x128xf32>
    %1078 = arith.mulf %1068, %1048 : vector<8x128xf32>
    %1079 = arith.addf %1077, %1078 : vector<8x128xf32>
    %c24_335 = arith.constant 24 : index
    %c0_336 = arith.constant 0 : index
    %c0_337 = arith.constant 0 : index
    %1080 = vector.load %arg3[%c24_335, %c0_336, %c0_337] : memref<32x8x1xf32, #tpu.memory_space<vmem>>, vector<1x8x1xf32>
    %1081 = vector.shape_cast %1080 : vector<1x8x1xf32> to vector<8x1xf32>
    %1082 = vector.broadcast %1081 : vector<8x1xf32> to vector<8x128xf32>
    %1083 = arith.mulf %1079, %1082 : vector<8x128xf32>
    %c0_338 = arith.constant 0 : index
    %c24_339 = arith.constant 24 : index
    %c0_340 = arith.constant 0 : index
    %1084 = vector.load %arg14[%c0_338, %c24_339, %c0_340] : memref<8x32x128xf32, #tpu.memory_space<vmem>>, vector<8x1x128xf32>
    %1085 = vector.shape_cast %1084 : vector<8x1x128xf32> to vector<8x128xf32>
    %1086 = vector.shape_cast %1083 : vector<8x128xf32> to vector<8x1x128xf32>
    tpu.vector_store %arg14[%c0_338, %c24_339, %c0_340], %1086 {strides = array<i32>} : memref<8x32x128xf32, #tpu.memory_space<vmem>>, vector<8x1x128xf32>,
    %cst_341 = arith.constant 1.000000e+00 : f32
    %1087 = vector.broadcast %cst_341 : f32 to vector<8x1xf32>
    %1088 = arith.subf %1087, %1081 : vector<8x1xf32>
    %1089 = vector.broadcast %1088 : vector<8x1xf32> to vector<8x128xf32>
    %1090 = arith.mulf %1048, %1089 : vector<8x128xf32>
    %1091 = arith.addf %1083, %1090 : vector<8x128xf32>
    %c25 = arith.constant 25 : index
    %c0_342 = arith.constant 0 : index
    %c0_343 = arith.constant 0 : index
    %1092 = vector.load %arg13[%c25, %c0_342, %c0_343] : memref<32x8x384xf32, #tpu.memory_space<vmem>>, vector<1x8x384xf32>
    %1093 = vector.shape_cast %1092 : vector<1x8x384xf32> to vector<8x384xf32>
    %1094 = arith.truncf %1091 : vector<8x128xf32> to vector<8x128xbf16>
    %cst_344 = arith.constant dense<0.000000e+00> : vector<8x384xf32>
    %1095 = tpu.matmul %1094, %12, %cst_344 {dimension_numbers = #tpu.dot_dimension_numbers<[1], [0], [0], [1], [0, 0, 1, 1], [], []>} : vector<8x128xbf16>, vector<128x384xbf16>, vector<8x384xf32> -> vector<8x384xf32>
    %1096 = vector.extract_strided_slice %1093 {offsets = [0, 0], sizes = [8, 128], strides = [1, 1]} : vector<8x384xf32> to vector<8x128xf32>
    %1097 = vector.extract_strided_slice %1095 {offsets = [0, 0], sizes = [8, 128], strides = [1, 1]} : vector<8x384xf32> to vector<8x128xf32>
    %1098 = arith.addf %1096, %1097 : vector<8x128xf32>
    %1099 = arith.negf %1098 : vector<8x128xf32>
    %1100 = math.exp %1099 : vector<8x128xf32>
    %cst_345 = arith.constant 1.000000e+00 : f32
    %1101 = vector.broadcast %cst_345 : f32 to vector<8x128xf32>
    %1102 = arith.addf %1101, %1100 : vector<8x128xf32>
    %1103 = arith.divf %1101, %1102 : vector<8x128xf32>
    %1104 = vector.extract_strided_slice %1093 {offsets = [0, 128], sizes = [8, 128], strides = [1, 1]} : vector<8x384xf32> to vector<8x128xf32>
    %1105 = vector.extract_strided_slice %1095 {offsets = [0, 128], sizes = [8, 128], strides = [1, 1]} : vector<8x384xf32> to vector<8x128xf32>
    %1106 = arith.addf %1104, %1105 : vector<8x128xf32>
    %1107 = arith.negf %1106 : vector<8x128xf32>
    %1108 = math.exp %1107 : vector<8x128xf32>
    %cst_346 = arith.constant 1.000000e+00 : f32
    %1109 = vector.broadcast %cst_346 : f32 to vector<8x128xf32>
    %1110 = arith.addf %1109, %1108 : vector<8x128xf32>
    %1111 = arith.divf %1109, %1110 : vector<8x128xf32>
    %1112 = vector.extract_strided_slice %1093 {offsets = [0, 256], sizes = [8, 128], strides = [1, 1]} : vector<8x384xf32> to vector<8x128xf32>
    %1113 = vector.extract_strided_slice %1095 {offsets = [0, 256], sizes = [8, 128], strides = [1, 1]} : vector<8x384xf32> to vector<8x128xf32>
    %1114 = arith.addf %1113, %15 : vector<8x128xf32>
    %1115 = arith.mulf %1103, %1114 : vector<8x128xf32>
    %1116 = arith.addf %1112, %1115 : vector<8x128xf32>
    %1117 = math.tanh %1116 : vector<8x128xf32>
    %cst_347 = arith.constant 1.000000e+00 : f32
    %1118 = vector.broadcast %cst_347 : f32 to vector<8x128xf32>
    %1119 = arith.subf %1118, %1111 : vector<8x128xf32>
    %1120 = arith.mulf %1119, %1117 : vector<8x128xf32>
    %1121 = arith.mulf %1111, %1091 : vector<8x128xf32>
    %1122 = arith.addf %1120, %1121 : vector<8x128xf32>
    %c25_348 = arith.constant 25 : index
    %c0_349 = arith.constant 0 : index
    %c0_350 = arith.constant 0 : index
    %1123 = vector.load %arg3[%c25_348, %c0_349, %c0_350] : memref<32x8x1xf32, #tpu.memory_space<vmem>>, vector<1x8x1xf32>
    %1124 = vector.shape_cast %1123 : vector<1x8x1xf32> to vector<8x1xf32>
    %1125 = vector.broadcast %1124 : vector<8x1xf32> to vector<8x128xf32>
    %1126 = arith.mulf %1122, %1125 : vector<8x128xf32>
    %c0_351 = arith.constant 0 : index
    %c25_352 = arith.constant 25 : index
    %c0_353 = arith.constant 0 : index
    %1127 = vector.load %arg14[%c0_351, %c25_352, %c0_353] : memref<8x32x128xf32, #tpu.memory_space<vmem>>, vector<8x1x128xf32>
    %1128 = vector.shape_cast %1127 : vector<8x1x128xf32> to vector<8x128xf32>
    %1129 = vector.shape_cast %1126 : vector<8x128xf32> to vector<8x1x128xf32>
    tpu.vector_store %arg14[%c0_351, %c25_352, %c0_353], %1129 {strides = array<i32>} : memref<8x32x128xf32, #tpu.memory_space<vmem>>, vector<8x1x128xf32>,
    %cst_354 = arith.constant 1.000000e+00 : f32
    %1130 = vector.broadcast %cst_354 : f32 to vector<8x1xf32>
    %1131 = arith.subf %1130, %1124 : vector<8x1xf32>
    %1132 = vector.broadcast %1131 : vector<8x1xf32> to vector<8x128xf32>
    %1133 = arith.mulf %1091, %1132 : vector<8x128xf32>
    %1134 = arith.addf %1126, %1133 : vector<8x128xf32>
    %c26 = arith.constant 26 : index
    %c0_355 = arith.constant 0 : index
    %c0_356 = arith.constant 0 : index
    %1135 = vector.load %arg13[%c26, %c0_355, %c0_356] : memref<32x8x384xf32, #tpu.memory_space<vmem>>, vector<1x8x384xf32>
    %1136 = vector.shape_cast %1135 : vector<1x8x384xf32> to vector<8x384xf32>
    %1137 = arith.truncf %1134 : vector<8x128xf32> to vector<8x128xbf16>
    %cst_357 = arith.constant dense<0.000000e+00> : vector<8x384xf32>
    %1138 = tpu.matmul %1137, %12, %cst_357 {dimension_numbers = #tpu.dot_dimension_numbers<[1], [0], [0], [1], [0, 0, 1, 1], [], []>} : vector<8x128xbf16>, vector<128x384xbf16>, vector<8x384xf32> -> vector<8x384xf32>
    %1139 = vector.extract_strided_slice %1136 {offsets = [0, 0], sizes = [8, 128], strides = [1, 1]} : vector<8x384xf32> to vector<8x128xf32>
    %1140 = vector.extract_strided_slice %1138 {offsets = [0, 0], sizes = [8, 128], strides = [1, 1]} : vector<8x384xf32> to vector<8x128xf32>
    %1141 = arith.addf %1139, %1140 : vector<8x128xf32>
    %1142 = arith.negf %1141 : vector<8x128xf32>
    %1143 = math.exp %1142 : vector<8x128xf32>
    %cst_358 = arith.constant 1.000000e+00 : f32
    %1144 = vector.broadcast %cst_358 : f32 to vector<8x128xf32>
    %1145 = arith.addf %1144, %1143 : vector<8x128xf32>
    %1146 = arith.divf %1144, %1145 : vector<8x128xf32>
    %1147 = vector.extract_strided_slice %1136 {offsets = [0, 128], sizes = [8, 128], strides = [1, 1]} : vector<8x384xf32> to vector<8x128xf32>
    %1148 = vector.extract_strided_slice %1138 {offsets = [0, 128], sizes = [8, 128], strides = [1, 1]} : vector<8x384xf32> to vector<8x128xf32>
    %1149 = arith.addf %1147, %1148 : vector<8x128xf32>
    %1150 = arith.negf %1149 : vector<8x128xf32>
    %1151 = math.exp %1150 : vector<8x128xf32>
    %cst_359 = arith.constant 1.000000e+00 : f32
    %1152 = vector.broadcast %cst_359 : f32 to vector<8x128xf32>
    %1153 = arith.addf %1152, %1151 : vector<8x128xf32>
    %1154 = arith.divf %1152, %1153 : vector<8x128xf32>
    %1155 = vector.extract_strided_slice %1136 {offsets = [0, 256], sizes = [8, 128], strides = [1, 1]} : vector<8x384xf32> to vector<8x128xf32>
    %1156 = vector.extract_strided_slice %1138 {offsets = [0, 256], sizes = [8, 128], strides = [1, 1]} : vector<8x384xf32> to vector<8x128xf32>
    %1157 = arith.addf %1156, %15 : vector<8x128xf32>
    %1158 = arith.mulf %1146, %1157 : vector<8x128xf32>
    %1159 = arith.addf %1155, %1158 : vector<8x128xf32>
    %1160 = math.tanh %1159 : vector<8x128xf32>
    %cst_360 = arith.constant 1.000000e+00 : f32
    %1161 = vector.broadcast %cst_360 : f32 to vector<8x128xf32>
    %1162 = arith.subf %1161, %1154 : vector<8x128xf32>
    %1163 = arith.mulf %1162, %1160 : vector<8x128xf32>
    %1164 = arith.mulf %1154, %1134 : vector<8x128xf32>
    %1165 = arith.addf %1163, %1164 : vector<8x128xf32>
    %c26_361 = arith.constant 26 : index
    %c0_362 = arith.constant 0 : index
    %c0_363 = arith.constant 0 : index
    %1166 = vector.load %arg3[%c26_361, %c0_362, %c0_363] : memref<32x8x1xf32, #tpu.memory_space<vmem>>, vector<1x8x1xf32>
    %1167 = vector.shape_cast %1166 : vector<1x8x1xf32> to vector<8x1xf32>
    %1168 = vector.broadcast %1167 : vector<8x1xf32> to vector<8x128xf32>
    %1169 = arith.mulf %1165, %1168 : vector<8x128xf32>
    %c0_364 = arith.constant 0 : index
    %c26_365 = arith.constant 26 : index
    %c0_366 = arith.constant 0 : index
    %1170 = vector.load %arg14[%c0_364, %c26_365, %c0_366] : memref<8x32x128xf32, #tpu.memory_space<vmem>>, vector<8x1x128xf32>
    %1171 = vector.shape_cast %1170 : vector<8x1x128xf32> to vector<8x128xf32>
    %1172 = vector.shape_cast %1169 : vector<8x128xf32> to vector<8x1x128xf32>
    tpu.vector_store %arg14[%c0_364, %c26_365, %c0_366], %1172 {strides = array<i32>} : memref<8x32x128xf32, #tpu.memory_space<vmem>>, vector<8x1x128xf32>,
    %cst_367 = arith.constant 1.000000e+00 : f32
    %1173 = vector.broadcast %cst_367 : f32 to vector<8x1xf32>
    %1174 = arith.subf %1173, %1167 : vector<8x1xf32>
    %1175 = vector.broadcast %1174 : vector<8x1xf32> to vector<8x128xf32>
    %1176 = arith.mulf %1134, %1175 : vector<8x128xf32>
    %1177 = arith.addf %1169, %1176 : vector<8x128xf32>
    %c27 = arith.constant 27 : index
    %c0_368 = arith.constant 0 : index
    %c0_369 = arith.constant 0 : index
    %1178 = vector.load %arg13[%c27, %c0_368, %c0_369] : memref<32x8x384xf32, #tpu.memory_space<vmem>>, vector<1x8x384xf32>
    %1179 = vector.shape_cast %1178 : vector<1x8x384xf32> to vector<8x384xf32>
    %1180 = arith.truncf %1177 : vector<8x128xf32> to vector<8x128xbf16>
    %cst_370 = arith.constant dense<0.000000e+00> : vector<8x384xf32>
    %1181 = tpu.matmul %1180, %12, %cst_370 {dimension_numbers = #tpu.dot_dimension_numbers<[1], [0], [0], [1], [0, 0, 1, 1], [], []>} : vector<8x128xbf16>, vector<128x384xbf16>, vector<8x384xf32> -> vector<8x384xf32>
    %1182 = vector.extract_strided_slice %1179 {offsets = [0, 0], sizes = [8, 128], strides = [1, 1]} : vector<8x384xf32> to vector<8x128xf32>
    %1183 = vector.extract_strided_slice %1181 {offsets = [0, 0], sizes = [8, 128], strides = [1, 1]} : vector<8x384xf32> to vector<8x128xf32>
    %1184 = arith.addf %1182, %1183 : vector<8x128xf32>
    %1185 = arith.negf %1184 : vector<8x128xf32>
    %1186 = math.exp %1185 : vector<8x128xf32>
    %cst_371 = arith.constant 1.000000e+00 : f32
    %1187 = vector.broadcast %cst_371 : f32 to vector<8x128xf32>
    %1188 = arith.addf %1187, %1186 : vector<8x128xf32>
    %1189 = arith.divf %1187, %1188 : vector<8x128xf32>
    %1190 = vector.extract_strided_slice %1179 {offsets = [0, 128], sizes = [8, 128], strides = [1, 1]} : vector<8x384xf32> to vector<8x128xf32>
    %1191 = vector.extract_strided_slice %1181 {offsets = [0, 128], sizes = [8, 128], strides = [1, 1]} : vector<8x384xf32> to vector<8x128xf32>
    %1192 = arith.addf %1190, %1191 : vector<8x128xf32>
    %1193 = arith.negf %1192 : vector<8x128xf32>
    %1194 = math.exp %1193 : vector<8x128xf32>
    %cst_372 = arith.constant 1.000000e+00 : f32
    %1195 = vector.broadcast %cst_372 : f32 to vector<8x128xf32>
    %1196 = arith.addf %1195, %1194 : vector<8x128xf32>
    %1197 = arith.divf %1195, %1196 : vector<8x128xf32>
    %1198 = vector.extract_strided_slice %1179 {offsets = [0, 256], sizes = [8, 128], strides = [1, 1]} : vector<8x384xf32> to vector<8x128xf32>
    %1199 = vector.extract_strided_slice %1181 {offsets = [0, 256], sizes = [8, 128], strides = [1, 1]} : vector<8x384xf32> to vector<8x128xf32>
    %1200 = arith.addf %1199, %15 : vector<8x128xf32>
    %1201 = arith.mulf %1189, %1200 : vector<8x128xf32>
    %1202 = arith.addf %1198, %1201 : vector<8x128xf32>
    %1203 = math.tanh %1202 : vector<8x128xf32>
    %cst_373 = arith.constant 1.000000e+00 : f32
    %1204 = vector.broadcast %cst_373 : f32 to vector<8x128xf32>
    %1205 = arith.subf %1204, %1197 : vector<8x128xf32>
    %1206 = arith.mulf %1205, %1203 : vector<8x128xf32>
    %1207 = arith.mulf %1197, %1177 : vector<8x128xf32>
    %1208 = arith.addf %1206, %1207 : vector<8x128xf32>
    %c27_374 = arith.constant 27 : index
    %c0_375 = arith.constant 0 : index
    %c0_376 = arith.constant 0 : index
    %1209 = vector.load %arg3[%c27_374, %c0_375, %c0_376] : memref<32x8x1xf32, #tpu.memory_space<vmem>>, vector<1x8x1xf32>
    %1210 = vector.shape_cast %1209 : vector<1x8x1xf32> to vector<8x1xf32>
    %1211 = vector.broadcast %1210 : vector<8x1xf32> to vector<8x128xf32>
    %1212 = arith.mulf %1208, %1211 : vector<8x128xf32>
    %c0_377 = arith.constant 0 : index
    %c27_378 = arith.constant 27 : index
    %c0_379 = arith.constant 0 : index
    %1213 = vector.load %arg14[%c0_377, %c27_378, %c0_379] : memref<8x32x128xf32, #tpu.memory_space<vmem>>, vector<8x1x128xf32>
    %1214 = vector.shape_cast %1213 : vector<8x1x128xf32> to vector<8x128xf32>
    %1215 = vector.shape_cast %1212 : vector<8x128xf32> to vector<8x1x128xf32>
    tpu.vector_store %arg14[%c0_377, %c27_378, %c0_379], %1215 {strides = array<i32>} : memref<8x32x128xf32, #tpu.memory_space<vmem>>, vector<8x1x128xf32>,
    %cst_380 = arith.constant 1.000000e+00 : f32
    %1216 = vector.broadcast %cst_380 : f32 to vector<8x1xf32>
    %1217 = arith.subf %1216, %1210 : vector<8x1xf32>
    %1218 = vector.broadcast %1217 : vector<8x1xf32> to vector<8x128xf32>
    %1219 = arith.mulf %1177, %1218 : vector<8x128xf32>
    %1220 = arith.addf %1212, %1219 : vector<8x128xf32>
    %c28 = arith.constant 28 : index
    %c0_381 = arith.constant 0 : index
    %c0_382 = arith.constant 0 : index
    %1221 = vector.load %arg13[%c28, %c0_381, %c0_382] : memref<32x8x384xf32, #tpu.memory_space<vmem>>, vector<1x8x384xf32>
    %1222 = vector.shape_cast %1221 : vector<1x8x384xf32> to vector<8x384xf32>
    %1223 = arith.truncf %1220 : vector<8x128xf32> to vector<8x128xbf16>
    %cst_383 = arith.constant dense<0.000000e+00> : vector<8x384xf32>
    %1224 = tpu.matmul %1223, %12, %cst_383 {dimension_numbers = #tpu.dot_dimension_numbers<[1], [0], [0], [1], [0, 0, 1, 1], [], []>} : vector<8x128xbf16>, vector<128x384xbf16>, vector<8x384xf32> -> vector<8x384xf32>
    %1225 = vector.extract_strided_slice %1222 {offsets = [0, 0], sizes = [8, 128], strides = [1, 1]} : vector<8x384xf32> to vector<8x128xf32>
    %1226 = vector.extract_strided_slice %1224 {offsets = [0, 0], sizes = [8, 128], strides = [1, 1]} : vector<8x384xf32> to vector<8x128xf32>
    %1227 = arith.addf %1225, %1226 : vector<8x128xf32>
    %1228 = arith.negf %1227 : vector<8x128xf32>
    %1229 = math.exp %1228 : vector<8x128xf32>
    %cst_384 = arith.constant 1.000000e+00 : f32
    %1230 = vector.broadcast %cst_384 : f32 to vector<8x128xf32>
    %1231 = arith.addf %1230, %1229 : vector<8x128xf32>
    %1232 = arith.divf %1230, %1231 : vector<8x128xf32>
    %1233 = vector.extract_strided_slice %1222 {offsets = [0, 128], sizes = [8, 128], strides = [1, 1]} : vector<8x384xf32> to vector<8x128xf32>
    %1234 = vector.extract_strided_slice %1224 {offsets = [0, 128], sizes = [8, 128], strides = [1, 1]} : vector<8x384xf32> to vector<8x128xf32>
    %1235 = arith.addf %1233, %1234 : vector<8x128xf32>
    %1236 = arith.negf %1235 : vector<8x128xf32>
    %1237 = math.exp %1236 : vector<8x128xf32>
    %cst_385 = arith.constant 1.000000e+00 : f32
    %1238 = vector.broadcast %cst_385 : f32 to vector<8x128xf32>
    %1239 = arith.addf %1238, %1237 : vector<8x128xf32>
    %1240 = arith.divf %1238, %1239 : vector<8x128xf32>
    %1241 = vector.extract_strided_slice %1222 {offsets = [0, 256], sizes = [8, 128], strides = [1, 1]} : vector<8x384xf32> to vector<8x128xf32>
    %1242 = vector.extract_strided_slice %1224 {offsets = [0, 256], sizes = [8, 128], strides = [1, 1]} : vector<8x384xf32> to vector<8x128xf32>
    %1243 = arith.addf %1242, %15 : vector<8x128xf32>
    %1244 = arith.mulf %1232, %1243 : vector<8x128xf32>
    %1245 = arith.addf %1241, %1244 : vector<8x128xf32>
    %1246 = math.tanh %1245 : vector<8x128xf32>
    %cst_386 = arith.constant 1.000000e+00 : f32
    %1247 = vector.broadcast %cst_386 : f32 to vector<8x128xf32>
    %1248 = arith.subf %1247, %1240 : vector<8x128xf32>
    %1249 = arith.mulf %1248, %1246 : vector<8x128xf32>
    %1250 = arith.mulf %1240, %1220 : vector<8x128xf32>
    %1251 = arith.addf %1249, %1250 : vector<8x128xf32>
    %c28_387 = arith.constant 28 : index
    %c0_388 = arith.constant 0 : index
    %c0_389 = arith.constant 0 : index
    %1252 = vector.load %arg3[%c28_387, %c0_388, %c0_389] : memref<32x8x1xf32, #tpu.memory_space<vmem>>, vector<1x8x1xf32>
    %1253 = vector.shape_cast %1252 : vector<1x8x1xf32> to vector<8x1xf32>
    %1254 = vector.broadcast %1253 : vector<8x1xf32> to vector<8x128xf32>
    %1255 = arith.mulf %1251, %1254 : vector<8x128xf32>
    %c0_390 = arith.constant 0 : index
    %c28_391 = arith.constant 28 : index
    %c0_392 = arith.constant 0 : index
    %1256 = vector.load %arg14[%c0_390, %c28_391, %c0_392] : memref<8x32x128xf32, #tpu.memory_space<vmem>>, vector<8x1x128xf32>
    %1257 = vector.shape_cast %1256 : vector<8x1x128xf32> to vector<8x128xf32>
    %1258 = vector.shape_cast %1255 : vector<8x128xf32> to vector<8x1x128xf32>
    tpu.vector_store %arg14[%c0_390, %c28_391, %c0_392], %1258 {strides = array<i32>} : memref<8x32x128xf32, #tpu.memory_space<vmem>>, vector<8x1x128xf32>,
    %cst_393 = arith.constant 1.000000e+00 : f32
    %1259 = vector.broadcast %cst_393 : f32 to vector<8x1xf32>
    %1260 = arith.subf %1259, %1253 : vector<8x1xf32>
    %1261 = vector.broadcast %1260 : vector<8x1xf32> to vector<8x128xf32>
    %1262 = arith.mulf %1220, %1261 : vector<8x128xf32>
    %1263 = arith.addf %1255, %1262 : vector<8x128xf32>
    %c29 = arith.constant 29 : index
    %c0_394 = arith.constant 0 : index
    %c0_395 = arith.constant 0 : index
    %1264 = vector.load %arg13[%c29, %c0_394, %c0_395] : memref<32x8x384xf32, #tpu.memory_space<vmem>>, vector<1x8x384xf32>
    %1265 = vector.shape_cast %1264 : vector<1x8x384xf32> to vector<8x384xf32>
    %1266 = arith.truncf %1263 : vector<8x128xf32> to vector<8x128xbf16>
    %cst_396 = arith.constant dense<0.000000e+00> : vector<8x384xf32>
    %1267 = tpu.matmul %1266, %12, %cst_396 {dimension_numbers = #tpu.dot_dimension_numbers<[1], [0], [0], [1], [0, 0, 1, 1], [], []>} : vector<8x128xbf16>, vector<128x384xbf16>, vector<8x384xf32> -> vector<8x384xf32>
    %1268 = vector.extract_strided_slice %1265 {offsets = [0, 0], sizes = [8, 128], strides = [1, 1]} : vector<8x384xf32> to vector<8x128xf32>
    %1269 = vector.extract_strided_slice %1267 {offsets = [0, 0], sizes = [8, 128], strides = [1, 1]} : vector<8x384xf32> to vector<8x128xf32>
    %1270 = arith.addf %1268, %1269 : vector<8x128xf32>
    %1271 = arith.negf %1270 : vector<8x128xf32>
    %1272 = math.exp %1271 : vector<8x128xf32>
    %cst_397 = arith.constant 1.000000e+00 : f32
    %1273 = vector.broadcast %cst_397 : f32 to vector<8x128xf32>
    %1274 = arith.addf %1273, %1272 : vector<8x128xf32>
    %1275 = arith.divf %1273, %1274 : vector<8x128xf32>
    %1276 = vector.extract_strided_slice %1265 {offsets = [0, 128], sizes = [8, 128], strides = [1, 1]} : vector<8x384xf32> to vector<8x128xf32>
    %1277 = vector.extract_strided_slice %1267 {offsets = [0, 128], sizes = [8, 128], strides = [1, 1]} : vector<8x384xf32> to vector<8x128xf32>
    %1278 = arith.addf %1276, %1277 : vector<8x128xf32>
    %1279 = arith.negf %1278 : vector<8x128xf32>
    %1280 = math.exp %1279 : vector<8x128xf32>
    %cst_398 = arith.constant 1.000000e+00 : f32
    %1281 = vector.broadcast %cst_398 : f32 to vector<8x128xf32>
    %1282 = arith.addf %1281, %1280 : vector<8x128xf32>
    %1283 = arith.divf %1281, %1282 : vector<8x128xf32>
    %1284 = vector.extract_strided_slice %1265 {offsets = [0, 256], sizes = [8, 128], strides = [1, 1]} : vector<8x384xf32> to vector<8x128xf32>
    %1285 = vector.extract_strided_slice %1267 {offsets = [0, 256], sizes = [8, 128], strides = [1, 1]} : vector<8x384xf32> to vector<8x128xf32>
    %1286 = arith.addf %1285, %15 : vector<8x128xf32>
    %1287 = arith.mulf %1275, %1286 : vector<8x128xf32>
    %1288 = arith.addf %1284, %1287 : vector<8x128xf32>
    %1289 = math.tanh %1288 : vector<8x128xf32>
    %cst_399 = arith.constant 1.000000e+00 : f32
    %1290 = vector.broadcast %cst_399 : f32 to vector<8x128xf32>
    %1291 = arith.subf %1290, %1283 : vector<8x128xf32>
    %1292 = arith.mulf %1291, %1289 : vector<8x128xf32>
    %1293 = arith.mulf %1283, %1263 : vector<8x128xf32>
    %1294 = arith.addf %1292, %1293 : vector<8x128xf32>
    %c29_400 = arith.constant 29 : index
    %c0_401 = arith.constant 0 : index
    %c0_402 = arith.constant 0 : index
    %1295 = vector.load %arg3[%c29_400, %c0_401, %c0_402] : memref<32x8x1xf32, #tpu.memory_space<vmem>>, vector<1x8x1xf32>
    %1296 = vector.shape_cast %1295 : vector<1x8x1xf32> to vector<8x1xf32>
    %1297 = vector.broadcast %1296 : vector<8x1xf32> to vector<8x128xf32>
    %1298 = arith.mulf %1294, %1297 : vector<8x128xf32>
    %c0_403 = arith.constant 0 : index
    %c29_404 = arith.constant 29 : index
    %c0_405 = arith.constant 0 : index
    %1299 = vector.load %arg14[%c0_403, %c29_404, %c0_405] : memref<8x32x128xf32, #tpu.memory_space<vmem>>, vector<8x1x128xf32>
    %1300 = vector.shape_cast %1299 : vector<8x1x128xf32> to vector<8x128xf32>
    %1301 = vector.shape_cast %1298 : vector<8x128xf32> to vector<8x1x128xf32>
    tpu.vector_store %arg14[%c0_403, %c29_404, %c0_405], %1301 {strides = array<i32>} : memref<8x32x128xf32, #tpu.memory_space<vmem>>, vector<8x1x128xf32>,
    %cst_406 = arith.constant 1.000000e+00 : f32
    %1302 = vector.broadcast %cst_406 : f32 to vector<8x1xf32>
    %1303 = arith.subf %1302, %1296 : vector<8x1xf32>
    %1304 = vector.broadcast %1303 : vector<8x1xf32> to vector<8x128xf32>
    %1305 = arith.mulf %1263, %1304 : vector<8x128xf32>
    %1306 = arith.addf %1298, %1305 : vector<8x128xf32>
    %c30 = arith.constant 30 : index
    %c0_407 = arith.constant 0 : index
    %c0_408 = arith.constant 0 : index
    %1307 = vector.load %arg13[%c30, %c0_407, %c0_408] : memref<32x8x384xf32, #tpu.memory_space<vmem>>, vector<1x8x384xf32>
    %1308 = vector.shape_cast %1307 : vector<1x8x384xf32> to vector<8x384xf32>
    %1309 = arith.truncf %1306 : vector<8x128xf32> to vector<8x128xbf16>
    %cst_409 = arith.constant dense<0.000000e+00> : vector<8x384xf32>
    %1310 = tpu.matmul %1309, %12, %cst_409 {dimension_numbers = #tpu.dot_dimension_numbers<[1], [0], [0], [1], [0, 0, 1, 1], [], []>} : vector<8x128xbf16>, vector<128x384xbf16>, vector<8x384xf32> -> vector<8x384xf32>
    %1311 = vector.extract_strided_slice %1308 {offsets = [0, 0], sizes = [8, 128], strides = [1, 1]} : vector<8x384xf32> to vector<8x128xf32>
    %1312 = vector.extract_strided_slice %1310 {offsets = [0, 0], sizes = [8, 128], strides = [1, 1]} : vector<8x384xf32> to vector<8x128xf32>
    %1313 = arith.addf %1311, %1312 : vector<8x128xf32>
    %1314 = arith.negf %1313 : vector<8x128xf32>
    %1315 = math.exp %1314 : vector<8x128xf32>
    %cst_410 = arith.constant 1.000000e+00 : f32
    %1316 = vector.broadcast %cst_410 : f32 to vector<8x128xf32>
    %1317 = arith.addf %1316, %1315 : vector<8x128xf32>
    %1318 = arith.divf %1316, %1317 : vector<8x128xf32>
    %1319 = vector.extract_strided_slice %1308 {offsets = [0, 128], sizes = [8, 128], strides = [1, 1]} : vector<8x384xf32> to vector<8x128xf32>
    %1320 = vector.extract_strided_slice %1310 {offsets = [0, 128], sizes = [8, 128], strides = [1, 1]} : vector<8x384xf32> to vector<8x128xf32>
    %1321 = arith.addf %1319, %1320 : vector<8x128xf32>
    %1322 = arith.negf %1321 : vector<8x128xf32>
    %1323 = math.exp %1322 : vector<8x128xf32>
    %cst_411 = arith.constant 1.000000e+00 : f32
    %1324 = vector.broadcast %cst_411 : f32 to vector<8x128xf32>
    %1325 = arith.addf %1324, %1323 : vector<8x128xf32>
    %1326 = arith.divf %1324, %1325 : vector<8x128xf32>
    %1327 = vector.extract_strided_slice %1308 {offsets = [0, 256], sizes = [8, 128], strides = [1, 1]} : vector<8x384xf32> to vector<8x128xf32>
    %1328 = vector.extract_strided_slice %1310 {offsets = [0, 256], sizes = [8, 128], strides = [1, 1]} : vector<8x384xf32> to vector<8x128xf32>
    %1329 = arith.addf %1328, %15 : vector<8x128xf32>
    %1330 = arith.mulf %1318, %1329 : vector<8x128xf32>
    %1331 = arith.addf %1327, %1330 : vector<8x128xf32>
    %1332 = math.tanh %1331 : vector<8x128xf32>
    %cst_412 = arith.constant 1.000000e+00 : f32
    %1333 = vector.broadcast %cst_412 : f32 to vector<8x128xf32>
    %1334 = arith.subf %1333, %1326 : vector<8x128xf32>
    %1335 = arith.mulf %1334, %1332 : vector<8x128xf32>
    %1336 = arith.mulf %1326, %1306 : vector<8x128xf32>
    %1337 = arith.addf %1335, %1336 : vector<8x128xf32>
    %c30_413 = arith.constant 30 : index
    %c0_414 = arith.constant 0 : index
    %c0_415 = arith.constant 0 : index
    %1338 = vector.load %arg3[%c30_413, %c0_414, %c0_415] : memref<32x8x1xf32, #tpu.memory_space<vmem>>, vector<1x8x1xf32>
    %1339 = vector.shape_cast %1338 : vector<1x8x1xf32> to vector<8x1xf32>
    %1340 = vector.broadcast %1339 : vector<8x1xf32> to vector<8x128xf32>
    %1341 = arith.mulf %1337, %1340 : vector<8x128xf32>
    %c0_416 = arith.constant 0 : index
    %c30_417 = arith.constant 30 : index
    %c0_418 = arith.constant 0 : index
    %1342 = vector.load %arg14[%c0_416, %c30_417, %c0_418] : memref<8x32x128xf32, #tpu.memory_space<vmem>>, vector<8x1x128xf32>
    %1343 = vector.shape_cast %1342 : vector<8x1x128xf32> to vector<8x128xf32>
    %1344 = vector.shape_cast %1341 : vector<8x128xf32> to vector<8x1x128xf32>
    tpu.vector_store %arg14[%c0_416, %c30_417, %c0_418], %1344 {strides = array<i32>} : memref<8x32x128xf32, #tpu.memory_space<vmem>>, vector<8x1x128xf32>,
    %cst_419 = arith.constant 1.000000e+00 : f32
    %1345 = vector.broadcast %cst_419 : f32 to vector<8x1xf32>
    %1346 = arith.subf %1345, %1339 : vector<8x1xf32>
    %1347 = vector.broadcast %1346 : vector<8x1xf32> to vector<8x128xf32>
    %1348 = arith.mulf %1306, %1347 : vector<8x128xf32>
    %1349 = arith.addf %1341, %1348 : vector<8x128xf32>
    %c31 = arith.constant 31 : index
    %c0_420 = arith.constant 0 : index
    %c0_421 = arith.constant 0 : index
    %1350 = vector.load %arg13[%c31, %c0_420, %c0_421] : memref<32x8x384xf32, #tpu.memory_space<vmem>>, vector<1x8x384xf32>
    %1351 = vector.shape_cast %1350 : vector<1x8x384xf32> to vector<8x384xf32>
    %1352 = arith.truncf %1349 : vector<8x128xf32> to vector<8x128xbf16>
    %cst_422 = arith.constant dense<0.000000e+00> : vector<8x384xf32>
    %1353 = tpu.matmul %1352, %12, %cst_422 {dimension_numbers = #tpu.dot_dimension_numbers<[1], [0], [0], [1], [0, 0, 1, 1], [], []>} : vector<8x128xbf16>, vector<128x384xbf16>, vector<8x384xf32> -> vector<8x384xf32>
    %1354 = vector.extract_strided_slice %1351 {offsets = [0, 0], sizes = [8, 128], strides = [1, 1]} : vector<8x384xf32> to vector<8x128xf32>
    %1355 = vector.extract_strided_slice %1353 {offsets = [0, 0], sizes = [8, 128], strides = [1, 1]} : vector<8x384xf32> to vector<8x128xf32>
    %1356 = arith.addf %1354, %1355 : vector<8x128xf32>
    %1357 = arith.negf %1356 : vector<8x128xf32>
    %1358 = math.exp %1357 : vector<8x128xf32>
    %cst_423 = arith.constant 1.000000e+00 : f32
    %1359 = vector.broadcast %cst_423 : f32 to vector<8x128xf32>
    %1360 = arith.addf %1359, %1358 : vector<8x128xf32>
    %1361 = arith.divf %1359, %1360 : vector<8x128xf32>
    %1362 = vector.extract_strided_slice %1351 {offsets = [0, 128], sizes = [8, 128], strides = [1, 1]} : vector<8x384xf32> to vector<8x128xf32>
    %1363 = vector.extract_strided_slice %1353 {offsets = [0, 128], sizes = [8, 128], strides = [1, 1]} : vector<8x384xf32> to vector<8x128xf32>
    %1364 = arith.addf %1362, %1363 : vector<8x128xf32>
    %1365 = arith.negf %1364 : vector<8x128xf32>
    %1366 = math.exp %1365 : vector<8x128xf32>
    %cst_424 = arith.constant 1.000000e+00 : f32
    %1367 = vector.broadcast %cst_424 : f32 to vector<8x128xf32>
    %1368 = arith.addf %1367, %1366 : vector<8x128xf32>
    %1369 = arith.divf %1367, %1368 : vector<8x128xf32>
    %1370 = vector.extract_strided_slice %1351 {offsets = [0, 256], sizes = [8, 128], strides = [1, 1]} : vector<8x384xf32> to vector<8x128xf32>
    %1371 = vector.extract_strided_slice %1353 {offsets = [0, 256], sizes = [8, 128], strides = [1, 1]} : vector<8x384xf32> to vector<8x128xf32>
    %1372 = arith.addf %1371, %15 : vector<8x128xf32>
    %1373 = arith.mulf %1361, %1372 : vector<8x128xf32>
    %1374 = arith.addf %1370, %1373 : vector<8x128xf32>
    %1375 = math.tanh %1374 : vector<8x128xf32>
    %cst_425 = arith.constant 1.000000e+00 : f32
    %1376 = vector.broadcast %cst_425 : f32 to vector<8x128xf32>
    %1377 = arith.subf %1376, %1369 : vector<8x128xf32>
    %1378 = arith.mulf %1377, %1375 : vector<8x128xf32>
    %1379 = arith.mulf %1369, %1349 : vector<8x128xf32>
    %1380 = arith.addf %1378, %1379 : vector<8x128xf32>
    %c31_426 = arith.constant 31 : index
    %c0_427 = arith.constant 0 : index
    %c0_428 = arith.constant 0 : index
    %1381 = vector.load %arg3[%c31_426, %c0_427, %c0_428] : memref<32x8x1xf32, #tpu.memory_space<vmem>>, vector<1x8x1xf32>
    %1382 = vector.shape_cast %1381 : vector<1x8x1xf32> to vector<8x1xf32>
    %1383 = vector.broadcast %1382 : vector<8x1xf32> to vector<8x128xf32>
    %1384 = arith.mulf %1380, %1383 : vector<8x128xf32>
    %c0_429 = arith.constant 0 : index
    %c31_430 = arith.constant 31 : index
    %c0_431 = arith.constant 0 : index
    %1385 = vector.load %arg14[%c0_429, %c31_430, %c0_431] : memref<8x32x128xf32, #tpu.memory_space<vmem>>, vector<8x1x128xf32>
    %1386 = vector.shape_cast %1385 : vector<8x1x128xf32> to vector<8x128xf32>
    %1387 = vector.shape_cast %1384 : vector<8x128xf32> to vector<8x1x128xf32>
    tpu.vector_store %arg14[%c0_429, %c31_430, %c0_431], %1387 {strides = array<i32>} : memref<8x32x128xf32, #tpu.memory_space<vmem>>, vector<8x1x128xf32>,
    %cst_432 = arith.constant 1.000000e+00 : f32
    %1388 = vector.broadcast %cst_432 : f32 to vector<8x1xf32>
    %1389 = arith.subf %1388, %1382 : vector<8x1xf32>
    %1390 = vector.broadcast %1389 : vector<8x1xf32> to vector<8x128xf32>
    %1391 = arith.mulf %1349, %1390 : vector<8x128xf32>
    %1392 = arith.addf %1384, %1391 : vector<8x128xf32>
    %c0_433 = arith.constant 0 : index
    %c0_434 = arith.constant 0 : index
    %1393 = vector.load %arg12[%c0_433, %c0_434] : memref<8x128xf32, #tpu.memory_space<vmem>>, vector<8x128xf32>
    tpu.vector_store %arg12[%c0_433, %c0_434], %1392 {strides = array<i32>} : memref<8x128xf32, #tpu.memory_space<vmem>>, vector<8x128xf32>,
    %c0_435 = arith.constant 0 : index
    %c0_436 = arith.constant 0 : index
    %c0_437 = arith.constant 0 : index
    %1394 = vector.load %arg14[%c0_435, %c0_436, %c0_437] : memref<8x32x128xf32, #tpu.memory_space<vmem>>, vector<8x32x128xf32>
    %1395 = vector.shape_cast %1394 : vector<8x32x128xf32> to vector<256x128xf32>
    %1396 = arith.truncf %1395 : vector<256x128xf32> to vector<256x128xbf16>
    %c0_438 = arith.constant 0 : index
    %c0_439 = arith.constant 0 : index
    %1397 = vector.load %arg9[%c0_438, %c0_439] : memref<128x256xbf16, #tpu.memory_space<vmem>>, vector<128x256xbf16>
    %cst_440 = arith.constant dense<0.000000e+00> : vector<256x256xf32>
    %1398 = tpu.matmul %1396, %1397, %cst_440 {dimension_numbers = #tpu.dot_dimension_numbers<[1], [0], [0], [1], [0, 0, 1, 1], [], []>} : vector<256x128xbf16>, vector<128x256xbf16>, vector<256x256xf32> -> vector<256x256xf32>
    %c0_441 = arith.constant 0 : index
    %c0_442 = arith.constant 0 : index
    %1399 = vector.load %arg10[%c0_441, %c0_442] : memref<1x256xf32, #tpu.memory_space<vmem>>, vector<1x256xf32>
    %1400 = vector.broadcast %1399 : vector<1x256xf32> to vector<256x256xf32>
    %1401 = arith.addf %1398, %1400 : vector<256x256xf32>
    %cst_443 = arith.constant dense<0xFF800000> : vector<256xf32>
    %1402 = vector.multi_reduction <maximumf>, %1401, %cst_443 [1] : vector<256x256xf32> to vector<256xf32>
    %1403 = vector.shape_cast %1402 : vector<256xf32> to vector<256x1xf32>
    %1404 = vector.broadcast %1403 : vector<256x1xf32> to vector<256x256xf32>
    %1405 = arith.subf %1401, %1404 : vector<256x256xf32>
    %1406 = math.exp %1405 : vector<256x256xf32>
    %cst_444 = arith.constant dense<0.000000e+00> : vector<256xf32>
    %1407 = vector.multi_reduction <add>, %1406, %cst_444 [1] : vector<256x256xf32> to vector<256xf32>
    %1408 = vector.shape_cast %1407 : vector<256xf32> to vector<256x1xf32>
    %1409 = math.log %1408 : vector<256x1xf32>
    %1410 = arith.addf %1403, %1409 : vector<256x1xf32>
    %1411 = vector.broadcast %1410 : vector<256x1xf32> to vector<256x256xf32>
    %1412 = arith.subf %1401, %1411 : vector<256x256xf32>
    %1413 = vector.shape_cast %1412 : vector<256x256xf32> to vector<8x32x256xf32>
    %c0_445 = arith.constant 0 : index
    %c0_446 = arith.constant 0 : index
    %c0_447 = arith.constant 0 : index
    %1414 = vector.load %arg11[%c0_445, %c0_446, %c0_447] : memref<8x32x256xf32, #tpu.memory_space<vmem>>, vector<8x32x256xf32>
    tpu.vector_store %arg11[%c0_445, %c0_446, %c0_447], %1413 {strides = array<i32>} : memref<8x32x256xf32, #tpu.memory_space<vmem>>, vector<8x32x256xf32>,
    return
  }
  func.func @transform_0(%arg0: i32, %arg1: i32) -> (i32, i32, i32) {
    %c0_i32 = arith.constant 0 : i32
    %c0_i32_0 = arith.constant 0 : i32
    return %arg1, %arg0, %c0_i32 : i32, i32, i32
  }
  func.func @transform_1(%arg0: i32, %arg1: i32) -> (i32, i32, i32) {
    %c0_i32 = arith.constant 0 : i32
    %c0_i32_0 = arith.constant 0 : i32
    return %arg1, %arg0, %c0_i32 : i32, i32, i32
  }
  func.func @transform_2(%arg0: i32, %arg1: i32) -> (i32, i32) {
    %c0_i32 = arith.constant 0 : i32
    %c0_i32_0 = arith.constant 0 : i32
    return %arg0, %c0_i32 : i32, i32
  }
  func.func @transform_3(%arg0: i32, %arg1: i32) -> (i32, i32) {
    %c0_i32 = arith.constant 0 : i32
    %c0_i32_0 = arith.constant 0 : i32
    %c0_i32_1 = arith.constant 0 : i32
    return %c0_i32, %c0_i32_0 : i32, i32
  }
  func.func @transform_4(%arg0: i32, %arg1: i32) -> (i32, i32) {
    %c0_i32 = arith.constant 0 : i32
    %c0_i32_0 = arith.constant 0 : i32
    %c0_i32_1 = arith.constant 0 : i32
    return %c0_i32, %c0_i32_0 : i32, i32
  }
  func.func @transform_5(%arg0: i32, %arg1: i32) -> (i32, i32) {
    %c0_i32 = arith.constant 0 : i32
    %c0_i32_0 = arith.constant 0 : i32
    %c0_i32_1 = arith.constant 0 : i32
    return %c0_i32, %c0_i32_0 : i32, i32
  }
  func.func @transform_6(%arg0: i32, %arg1: i32) -> (i32, i32) {
    %c0_i32 = arith.constant 0 : i32
    %c0_i32_0 = arith.constant 0 : i32
    %c0_i32_1 = arith.constant 0 : i32
    return %c0_i32, %c0_i32_0 : i32, i32
  }
  func.func @transform_7(%arg0: i32, %arg1: i32) -> (i32, i32) {
    %c0_i32 = arith.constant 0 : i32
    %c0_i32_0 = arith.constant 0 : i32
    %c0_i32_1 = arith.constant 0 : i32
    return %c0_i32, %c0_i32_0 : i32, i32
  }
  func.func @transform_8(%arg0: i32, %arg1: i32) -> (i32, i32) {
    %c0_i32 = arith.constant 0 : i32
    %c0_i32_0 = arith.constant 0 : i32
    %c0_i32_1 = arith.constant 0 : i32
    return %c0_i32, %c0_i32_0 : i32, i32
  }
  func.func @transform_9(%arg0: i32, %arg1: i32) -> (i32, i32, i32) {
    %c0_i32 = arith.constant 0 : i32
    %c0_i32_0 = arith.constant 0 : i32
    return %arg0, %arg1, %c0_i32 : i32, i32, i32
  }
  func.func @transform_10(%arg0: i32, %arg1: i32) -> (i32, i32) {
    %c0_i32 = arith.constant 0 : i32
    %c0_i32_0 = arith.constant 0 : i32
    return %arg0, %c0_i32 : i32, i32
  }
}

</mosaic_0001>

<bundles_post_ra>
// kernel: tpu_custom_call.1
= control target key start
LH: loop header
LB: loop body
LE: loop exit
PB: predicated region body
PF: predicated region fallthrough
CT: control target
= control target key end

     0   :  { %16 = vsyncpa [#allocation5], 0  ;;  %s14418_s0 = inlined_call_operand.vmem [shape: bf16[64,8,128], index: 0, kind: input, shape index: {}]   ;;  %s14419_s1 = inlined_call_operand.vmem [shape: f32[64,8,1], index: 1, kind: input, shape index: {}]   ;;  %s14420_s2 = inlined_call_operand.vmem [shape: f32[8,128], index: 2, kind: input, shape index: {}]   ;;  %s14421_s3 = inlined_call_operand.vmem [shape: bf16[128,384], index: 3, kind: input, shape index: {}]   ;;  %s14422_s4 = inlined_call_operand.hbm [shape: bf16[128,384], index: 4, kind: input, shape index: {}]   ;;  %s14423_s5 = inlined_call_operand.vmem [shape: f32[1,384], index: 5, kind: input, shape index: {}]   ;;  %s14424_s6 = inlined_call_operand.vmem [shape: f32[1,128], index: 6, kind: input, shape index: {}]   ;;  %s14425_s7 = inlined_call_operand.hbm [shape: bf16[128,256], index: 7, kind: input, shape index: {}]   ;;  %s14426_s8 = inlined_call_operand.vmem [shape: f32[1,256], index: 8, kind: input, shape index: {}]   ;;  %s14427_s9 = inlined_call_operand.hbm [shape: f32[8,64,256], index: 9, kind: output, shape index: {0}]   ;;  %s14428_s10 = inlined_call_operand.hbm [shape: f32[8,128], index: 10, kind: output, shape index: {1}]  }
   0x1   :  { %17 = vsyncpa [#allocation8], 0 }
   0x2   :  { %18 = vsyncpa [#allocation6], 0 }
   0x3   :  { %20 = vsyncpa [#allocation6 + $0x1], 0 }
   0x4   :  { %21 = vsyncpa [#allocation11], 0  ;;  %s11039_s13 = smov 0   ;;  %s11041_s14 = smov 0  }
   0x5   :  { %s11043_s15 = smov 0   ;;  %s11045_s16 = smov 0  }
   0x6   :  { %s11047_s17 = smov 0   ;;  %s11049_s18 = smov 0  }
   0x7 LB: > { %14506 = sst [smem:[#allocation18_spill]] %s10952_s15  ;;  %s8632_s19 = sadd.s32 4294967295, %s10964_s18   ;;  %s10964_s18 = sphi %s11049_s18, %s27_s18   ;;  %s10960_s17 = sphi %s11047_s17, %s14793_s17   ;;  %s10956_s16 = sphi %s11045_s16, %s14792_s16   ;;  %s10952_s15 = sphi %s11043_s15, %s14791_s15   ;;  %s10948_s14 = sphi %s11041_s14, %s14795_s14   ;;  %s10944_s13 = sphi %s11039_s13, %s14794_s13  }
   0x8   : > { %14507 = sst [smem:[#allocation19_spill]] %s10960_s17  ;;  %s8633_s20 = sadd.s32 4294967294, %s10964_s18  }
   0x9   : > { %s36_s21 = sadd.s32 1, %s10960_s17  ;;  %s256_s22 = sadd.s32 1, %s10952_s15 }
   0xa   : > { %p37_p0 = scmp.ge.s32.totalorder %s36_s21, 2  ;;  %p266_p1 = scmp.ne.s32.totalorder %s10952_s15, %s10948_s14 }
   0xb   : > { %p11075_p2 = scmp.eq.s32.totalorder %s8632_s19, 1  ;;  %p272_p3 = scmp.ne.s32.totalorder %s10948_s14, %s10944_s13 }
   0xc   : > { %s14797_s21 = smov (%p37_p0, %s36_s21), 0  ;;  %p273_p5 = scmp.eq.s32.totalorder %s8633_s20, 1 }
   0xd   : > { %s14508_s23 = scalar_select %p11075_p2, 1, 0 }
   0xe   : > { %14509 = sst [smem:[#allocation20_spill]] %s14797_s21  ;;  %p11085_p4 = por %p11075_p2, %p266_p1 }
   0xf   : > { %s252_s25 = ssub.s32 %s10960_s17, %s14797_s21  ;;  %p8634_p6 = scmp.ge.s32.totalorder %s10964_s18, 1 }
  0x10   : > { %s14510_s24 = scalar_select %p11085_p4, 1, 0 }
  0x11   : > { %p254_p7 = scmp.eq.s32.totalorder %s252_s25, 0  ;;  %p11092_p8 = por %p273_p5, %p272_p3 }
  0x12   : > { %p306_p9 = scmp.lt.s32.totalorder %s10964_s18, 3  ;;  %p11104_p11 = scmp.eq.s32.totalorder %s8632_s19, 0 }
  0x13   : > { %s14511_s26 = scalar_select %p11092_p8, 1, 0 }
  0x14   : > { %s11098_s27 = scalar_select %p254_p7, %s10952_s15, %s256_s22  }
  0x15   : > { %14512 = sst [smem:[#allocation21_spill]] %s14511_s26  ;;  %p11100_p10 = pnand %p8634_p6, %p306_p9 }
  0x16   : > { %14513 = sst [smem:[#allocation22_spill]] %s11098_s27  ;;  %s10966_s30 = smov [#allocation4]  }
  0x17   : > { %p9998_p12 = pneg %p11100_p10  ;;  %s328_s11 = sshll.u32 %s10966_s30, 4  ;;  %s329_s11 = int_to_ptr.vmem [resolvable:$true] %s328_s11 }
  0x18   : > { %s10967_s20 = smov [#allocation7]   ;;  %s10837_s19 = scalar_lea.vmem %s329_s11, 3072 }
  0x19   : > { %p11112_p13 = pnand %p11104_p11, %p9998_p12  ;;  %s347_s22 = sshll.u32 %s10967_s20, 4  ;;  %s348_s22 = int_to_ptr.vmem [resolvable:$true] %s347_s22 }
  0x1a   : > { %p10838_p1 = scmp.ne.s32.totalorder %s329_s11, %s10837_s19  ;;  %p10845_p6 = scmp.lt.s32.totalorder %s329_s11, %s329_s11 }
  0x1b   : > { %p10828_p0 = pneg %p11112_p13  ;;  %p10846_p7 = scmp.lt.s32.totalorder %s10837_s19, %s10837_s19 }
  0x1d   : > { %p10840_p3 = pnand %p10838_p1, %p10828_p0  ;;  %p10847_p9 = por %p10846_p7, %p10845_p6 }
  0x1f   : > { %p10841_p5 = pneg %p10840_p3 }
  0x21   : > { %p10848_p12 = pnand %p10847_p9, %p10841_p5 }
  0x23   : > { %10851 = shalt.err (!%p10848_p12)
}
  0x24   : > { %s10968_s25 = smov 192   ;;  %s10969_s30 = smov 12  }
  0x25   : > { %10001 = dma.hbm_to_vmem [thread:$0]  (!%p11112_p13), %s14422_s4, 3072, %s329_s11, [#allocation5], %s10968_s25, %s10968_s25, %s10969_s30  }
  0x26   : > { %s10863_s17 = scalar_lea.vmem %s348_s22, 2048  ;;  %p10871_p2 = scmp.lt.s32.totalorder %s348_s22, %s348_s22 }
  0x27   : > { %p10864_p8 = scmp.ne.s32.totalorder %s348_s22, %s10863_s17  ;;  %p10872_p4 = scmp.lt.s32.totalorder %s10863_s17, %s10863_s17 }
  0x29   : > { %p10866_p1 = pnand %p10864_p8, %p10828_p0  ;;  %p10873_p6 = por %p10872_p4, %p10871_p2 }
  0x2b   : > { %p10867_p3 = pneg %p10866_p1 }
  0x2d   : > { %p10874_p5 = pnand %p10873_p6, %p10867_p3 }
  0x2f   : > { %10877 = shalt.err (!%p10874_p5)
}
  0x30   : > { %s10970_s19 = smov 128   ;;  %s10971_s27 = smov 8  }
  0x31   : > { %10004 = dma.hbm_to_vmem [thread:$0]  (!%p11112_p13), %s14425_s7, 2048, %s348_s22, [#allocation8], %s10970_s19, %s10970_s19, %s10971_s27  }
  0x32   : > { %390 = sbr.rel (%p11100_p10) target bundleno = 9096 (0x2388), region = 56 }
  0x37   : > { %10927 = dma.done.wait (%p11104_p11), [#allocation5], 3072  }
  0x38   : > { %10929 = vsyncadd (%p11104_p11), [#allocation5], 4294964224 }
  0x39   : > { %10931 = dma.done.wait (%p11104_p11), [#allocation8], 2048  }
  0x3a   : > { %10933 = vsyncadd (%p11104_p11), [#allocation8], 4294965248  ;;  %s442_s15 = sand.u32 1, %s10948_s14   ;;  %s8643_s17 = sshll.u32 %s10956_s16, 5 }
  0x3b   : > { %s8642_s21 = sshll.u32 %s442_s15, 9  ;;  %p448_p2 = scmp.lt.s32.totalorder %s8643_s17, 63 }
  0x3c   : > { %s11158_s30 = scalar_lea.vmem [#allocation9], %s8642_s21  ;;  %p8647_p4 = scmp.ne.s32.totalorder %s10956_s16, 0 }
  0x3d   : > { %s14799_s17 = smov (!%p448_p2, %s8643_s17), 63 }
  0x3e   : > { %s8644_s26 = sshll.u32 %s14799_s17, 2  ;;  %s8646_s27 = sshll.u32 %s14799_s17, 3 }
  0x3f   : > { %s11151_s12 = scalar_lea.vmem %s14418_s0, %s8644_s26  ;;  %s11156_s29 = scalar_lea.vmem %s14419_s1, %s8646_s27 }
  0x40   : > { %475 = sbr.rel (%p8647_p4) target bundleno = 71 (0x47), region = 68 }
  0x45   : > { %v476_v0 = vld [vmem:[%s14420_s2] sm:$0xff] }
  0x46   : > { %477 = vst [vmem:[#allocation10] sm:$0xff] %v476_v0 }
  0x47 PF: > { %v10084_v1 = vld [vmem:[%s14421_s3 + $0xac] ss:$12 sps:$4 sm:$0xff]   ;;  %v10086_v2 = vld [vmem:[%s14421_s3 + $0xa8] ss:$12 sps:$4 sm:$0xff]   ;;  %v14436_v3 = vmov 0   ;;  %v11228_v22 = vld [vmem:[%s11151_s12] sm:$0xff]  }
  0x48   : > { %885 = vmatprep.mubr.bf16.mxu1 %v14436_v3  ;;  %815 = vmatprep.mubr.bf16.mxu0 %v14436_v3  ;;  %v10087_v4 = vld [vmem:[%s14421_s3 + $0x94] ss:$12 sps:$4 sm:$0xff]   ;;  %v10089_v5 = vld [vmem:[%s14421_s3 + $0x90] ss:$12 sps:$4 sm:$0xff]   ;;  %v10092_v7 = vld [vmem:[%s14421_s3 + $0x78] ss:$12 sps:$4 sm:$0xff]  }
  0x49   : > { %9962 = vmatprep.subr.bf16.mxu1 %v10084_v1  ;;  %783 = vmatprep.subr.bf16.mxu0 %v10084_v1  ;;  %v10090_v6 = vld [vmem:[%s14421_s3 + $0x7c] ss:$12 sps:$4 sm:$0xff]   ;;  %v10093_v8 = vld [vmem:[%s14421_s3 + $0x64] ss:$12 sps:$4 sm:$0xff]   ;;  %v10095_v9 = vld [vmem:[%s14421_s3 + $0x60] ss:$12 sps:$4 sm:$0xff]  }
  0x4a   : > { %9970 = vmatpush1.bf16.msra.mxu1 %v10086_v2  ;;  %784 = vmatpush1.bf16.msra.mxu0 %v10086_v2  ;;  %v10096_v10 = vld [vmem:[%s14421_s3 + $0x4c] ss:$12 sps:$4 sm:$0xff]   ;;  %v10098_v11 = vld [vmem:[%s14421_s3 + $0x48] ss:$12 sps:$4 sm:$0xff]   ;;  %v10101_v13 = vld [vmem:[%s14421_s3 + $0x30] ss:$12 sps:$4 sm:$0xff]  }
  0x4b   : > { %9963 = vmatprep.subr.bf16.mxu1 %v10087_v4  ;;  %785 = vmatprep.subr.bf16.mxu0 %v10087_v4  ;;  %v10099_v12 = vld [vmem:[%s14421_s3 + $0x34] ss:$12 sps:$4 sm:$0xff]   ;;  %v10102_v14 = vld [vmem:[%s14421_s3 + $0x1c] ss:$12 sps:$4 sm:$0xff]   ;;  %v10104_v15 = vld [vmem:[%s14421_s3 + $0x18] ss:$12 sps:$4 sm:$0xff]  }
  0x4c   : > { %10082 = vset.pattern.permute.xlu0 %v14436_v3  ;;  %10083 = vset.pattern.permute.xlu1 %v14436_v3  ;;  %v10105_v16 = vld [vmem:[%s14421_s3 + $0x4] ss:$12 sps:$4 sm:$0xff]   ;;  %v10107_v17 = vld [vmem:[%s14421_s3] ss:$12 sps:$4 sm:$0xff]   ;;  %v11220_v19 = vld [vmem:[%s11151_s12 + $0x38] sm:$0xff]   ;;  %vm10974_vm0 = vmmov 0  }
  0x4d   : > { %v10109_v18 = vld [vmem:[%s14421_s3 + $0xb0] ss:$12 sps:$4 sm:$0xff]   ;;  %v11222_v20 = vld [vmem:[#allocation4 + $0xac] ss:$12 sps:$4 sm:$0xff]   ;;  %v11232_v23 = vld [vmem:[#allocation4 + $0xa8] ss:$12 sps:$4 sm:$0xff]  }
  0x4e   : > { %9971 = vmatpush1.bf16.msra.mxu1 %v10089_v5  ;;  %786 = vmatpush1.bf16.msra.mxu0 %v10089_v5  ;;  %v10111_v21 = vld [vmem:[%s14421_s3 + $0x98] ss:$12 sps:$4 sm:$0xff]   ;;  %v11236_v24 = vld [vmem:[#allocation4 + $0x94] ss:$12 sps:$4 sm:$0xff]   ;;  %v11247_v27 = vld [vmem:[#allocation4 + $0x90] ss:$12 sps:$4 sm:$0xff]  }
  0x4f   : > { %9964 = vmatprep.subr.bf16.mxu1 %v10090_v6  ;;  %787 = vmatprep.subr.bf16.mxu0 %v10090_v6  ;;  %v10113_v25 = vld [vmem:[%s14421_s3 + $0x80] ss:$12 sps:$4 sm:$0xff]   ;;  %v10115_v28 = vld [vmem:[%s14421_s3 + $0x68] ss:$12 sps:$4 sm:$0xff]   ;;  %v10117_v31 = vld [vmem:[%s14421_s3 + $0x50] ss:$12 sps:$4 sm:$0xff]  }
  0x50   : > { %v11243_v26 = vld [vmem:[%s11151_s12 + $0x40] sm:$0xff]   ;;  %v11252_v29 = vld [vmem:[#allocation4 + $0x7c] ss:$12 sps:$4 sm:$0xff]   ;;  %v11282_v39 = vld [vmem:[%s11151_s12 + $0x10] sm:$0xff]  }
  0x51   : > { %v11255_v30 = vld [vmem:[%s11151_s12 + $0x8] sm:$0xff]   ;;  %v11265_v32 = vld [vmem:[#allocation4 + $0x78] ss:$12 sps:$4 sm:$0xff]   ;;  %v11295_v43 = vld [vmem:[%s11156_s29 + $0x10] sm:$0xff] }
  0x52   : > { %9972 = vmatpush1.bf16.msra.mxu1 %v10092_v7  ;;  %788 = vmatpush1.bf16.msra.mxu0 %v10092_v7  ;;  %v11267_v33 = vld [vmem:[#allocation4 + $0x64] ss:$12 sps:$4 sm:$0xff]   ;;  %v11271_v34 = vld [vmem:[%s11151_s12 + $0x48] sm:$0xff]   ;;  %v11300_v45 = vld [vmem:[#allocation4 + $0x34] ss:$12 sps:$4 sm:$0xff]  }
  0x53   : > { %9965 = vmatprep.subr.bf16.mxu1 %v10093_v8  ;;  %789 = vmatprep.subr.bf16.mxu0 %v10093_v8  ;;  %v1508_v35 = vld [vmem:[%s11156_s29] sm:$0xff]  ;;  %v11284_v40 = vld [vmem:[#allocation4 + $0x4c] ss:$12 sps:$4 sm:$0xff]   ;;  %v11291_v42 = vld [vmem:[#allocation4 + $0x48] ss:$12 sps:$4 sm:$0xff]  }
  0x54   : > { %v1581_v36 = vsub.f32 1.0, %v1508_v35  ;;  %1511 = vperm.xlu0 %10082, %v1508_v35   ;;  %v11276_v37 = vld [vmem:[#allocation4 + $0x60] ss:$12 sps:$4 sm:$0xff]   ;;  %v10119_v38 = vld [vmem:[%s14421_s3 + $0x38] ss:$12 sps:$4 sm:$0xff]   ;;  %v11298_v44 = vld [vmem:[%s11151_s12 + $0x50] sm:$0xff]  }
  0x55   : > { %v10121_v41 = vld [vmem:[%s14421_s3 + $0x20] ss:$12 sps:$4 sm:$0xff]   ;;  %v10123_v46 = vld [vmem:[%s14421_s3 + $0x8] ss:$12 sps:$4 sm:$0xff]   ;;  %v11311_v47 = vld [vmem:[%s11156_s29 + $0x18] sm:$0xff] }
  0x56   : > { %9973 = vmatpush1.bf16.msra.mxu1 %v10095_v9  ;;  %790 = vmatpush1.bf16.msra.mxu0 %v10095_v9  ;;  %v11315_v48 = vld [vmem:[%s11151_s12 + $0x18] sm:$0xff]   ;;  %v11323_v50 = vld [vmem:[%s11156_s29 + $0x20] sm:$0xff]  ;;  %v11338_v54 = vld [vmem:[%s11156_s29 + $0x28] sm:$0xff] }
  0x57   : > { %9966 = vmatprep.subr.bf16.mxu1 %v10096_v10  ;;  %791 = vmatprep.subr.bf16.mxu0 %v10096_v10  ;;  %v11320_v49 = vld [vmem:[#allocation4 + $0x30] ss:$12 sps:$4 sm:$0xff]   ;;  %v11335_v53 = vld [vmem:[#allocation4 + $0x18] ss:$12 sps:$4 sm:$0xff]   ;;  %v11348_v57 = vld [vmem:[#allocation4] ss:$12 sps:$4 sm:$0xff]  }
  0x58   : > { %1584 = vperm.xlu0 %10082, %v1581_v36   ;;  %v11325_v51 = vld [vmem:[#allocation4 + $0x1c] ss:$12 sps:$4 sm:$0xff]   ;;  %v11341_v55 = vld [vmem:[#allocation4 + $0x4] ss:$12 sps:$4 sm:$0xff]  }
  0x59   : > { %v11331_v52 = vld [vmem:[%s11151_s12 + $0x58] sm:$0xff]   ;;  %v10135_v56 = vld [vmem:[%s11151_s12 + $0x20] sm:$0xff]   ;;  %v11351_v58 = vld [vmem:[%s11156_s29 + $0x30] sm:$0xff] }
  0x5a   : > { %9974 = vmatpush1.bf16.msra.mxu1 %v10098_v11  ;;  %792 = vmatpush1.bf16.msra.mxu0 %v10098_v11  ;;  %v11357_v59 = vld [vmem:[%s11151_s12 + $0x60] sm:$0xff]   ;;  %v11362_v60 = vld [vmem:[%s11156_s29 + $0x38] sm:$0xff]  ;;  %v10136_v61 = vld [vmem:[%s11151_s12 + $0x28] sm:$0xff]  }
  0x5b   : > { %9967 = vmatprep.subr.bf16.mxu1 %v10099_v12  ;;  %793 = vmatprep.subr.bf16.mxu0 %v10099_v12  ;;  %v11369_v62 = vld [vmem:[%s11156_s29 + $0x40] sm:$0xff]  ;;  %v11373_v63 = vld [vmem:[%s11151_s12 + $0x68] sm:$0xff]   ;;  %v10140_v1 = vld [vmem:[%s11151_s12 + $0x30] sm:$0xff]  }
  0x5c   : > { %1891 = vperm.xlu0 %10082, %v11295_v43   ;;  %v11377_v0 = vld [vmem:[%s11156_s29 + $0x48] sm:$0xff]  ;;  %v11384_v2 = vld [vmem:[%s11156_s29 + $0x50] sm:$0xff]  ;;  %v11392_v5 = vld [vmem:[%s11156_s29 + $0x58] sm:$0xff] }
  0x5d   : > { %v11388_v4 = vld [vmem:[%s11151_s12 + $0x70] sm:$0xff]   ;;  %v11398_v6 = vld [vmem:[%s11156_s29 + $0x60] sm:$0xff]  ;;  %v11401_v7 = vld [vmem:[%s11151_s12 + $0x78] sm:$0xff]  }
  0x5e   : > { %9975 = vmatpush1.bf16.msra.mxu1 %v10101_v13  ;;  %794 = vmatpush1.bf16.msra.mxu0 %v10101_v13  ;;  %v11405_v8 = vld [vmem:[%s11156_s29 + $0x68] sm:$0xff]  ;;  %v11411_v9 = vld [vmem:[%s11156_s29 + $0x70] sm:$0xff]  ;;  %v11415_v10 = vld [vmem:[%s11156_s29 + $0x78] sm:$0xff] }
  0x5f   : > { %9968 = vmatprep.subr.bf16.mxu1 %v10102_v14  ;;  %795 = vmatprep.subr.bf16.mxu0 %v10102_v14  ;;  %v11422_v11 = vld [vmem:[%s11156_s29 + $0x80] sm:$0xff]  ;;  %v11428_v12 = vld [vmem:[%s11156_s29 + $0x88] sm:$0xff]  ;;  %v11435_v13 = vld [vmem:[%s11156_s29 + $0x90] sm:$0xff] }
  0x60   : > { %2081 = vperm.xlu0 %10082, %v11311_v47   ;;  %v11441_v14 = vld [vmem:[%s11156_s29 + $0x98] sm:$0xff]  ;;  %v8721_v35 = vld [vmem:[%s11156_s29 + $0x8] sm:$0xff] }
  0x61   : > { %v1771_v36 = vsub.f32 1.0, %v8721_v35  ;;  %1701 = vperm.xlu1 %10083, %v8721_v35  }
  0x62   : > { %9976 = vmatpush1.bf16.msra.mxu1 %v10104_v15  ;;  %796 = vmatpush1.bf16.msra.mxu0 %v10104_v15  ;;  %v11447_v15 = vld [vmem:[%s11156_s29 + $0xa0] sm:$0xff] }
  0x63   : > { %9969 = vmatprep.subr.bf16.mxu1 %v10105_v16  ;;  %797 = vmatprep.subr.bf16.mxu0 %v10105_v16  ;;  %v11453_v16 = vld [vmem:[%s11156_s29 + $0xa8] sm:$0xff] }
  0x64   : > { %2271 = vperm.xlu0 %10082, %v11323_v50  }
  0x65   : > { %1774 = vperm.xlu1 %10083, %v1771_v36   ;;  %v5191_v36 = vsub.f32 1.0, %v11441_v14 }
  0x66   : > { %9977 = vmatpush1.bf16.msra.mxu1 %v10107_v17  ;;  %798 = vmatpush1.bf16.msra.mxu0 %v10107_v17  ;;  %v11461_v17 = vld [vmem:[%s11156_s29 + $0xb0] sm:$0xff] }
  0x67   : > { %9274 = vmatprep.subr.bf16.mxu1 %v10109_v18  ;;  %1594 = vmatprep.subr.bf16.mxu0 %v11222_v20 }
  0x68   : > { %2461 = vperm.xlu0 %10082, %v11338_v54  }
  0x69   : > { %886 = vmatmul.mubr.bf16.vlgmr.msra.gmra.mxu1 %v11220_v19  ;;  %816 = vmatmul.mubr.bf16.vlgmr.msra.gmra.mxu0 %v11228_v22 }
  0x6a   : > { %9275 = vmatpush3.bf16.msra.mxu1 %v10109_v18  ;;  %895 = vmatprep.mubr.bf16.mxu1 %v14436_v3  ;;  %v11467_v18 = vld [vmem:[%s11156_s29 + $0xb8] sm:$0xff] }
  0x6b   : > { %9276 = vmatprep.subr.bf16.mxu1 %v10111_v21  ;;  %1595 = vmatpush1.bf16.msra.mxu0 %v11232_v23 }
  0x6c   : > { %825 = vmatprep.mubr.bf16.mxu0 %v14436_v3  ;;  %1596 = vmatprep.subr.bf16.mxu0 %v11236_v24 }
  0x6d   : > { %2651 = vperm.xlu0 %10082, %v11351_v58  }
  0x6e   : > { %9277 = vmatpush3.bf16.msra.mxu1 %v10111_v21  ;;  %v11478_v21 = vld [vmem:[%s11156_s29 + $0xc8] sm:$0xff] }
  0x6f   : > { %9278 = vmatprep.subr.bf16.mxu1 %v10113_v25  ;;  %1597 = vmatpush1.bf16.msra.mxu0 %v11247_v27 }
  0x70   : > { %1598 = vmatprep.subr.bf16.mxu0 %v11252_v29 }
  0x71   : > { %896 = vmatmul.mubr.bf16.gmra.mxu1 %v11243_v26  ;;  %826 = vmatmul.mubr.bf16.gmra.mxu0 %v11255_v30 }
  0x72   : > { %905 = vmatprep.mubr.bf16.mxu1 %v14436_v3  ;;  %9279 = vmatpush3.bf16.msra.mxu1 %v10113_v25  ;;  %v11498_v25 = vld [vmem:[%s11156_s29 + $0xe8] sm:$0xff] }
  0x73   : > { %9280 = vmatprep.subr.bf16.mxu1 %v10115_v28  ;;  %835 = vmatprep.mubr.bf16.mxu0 %v14436_v3 }
  0x74   : > { %1599 = vmatpush1.bf16.msra.mxu0 %v11265_v32  ;;  %2841 = vperm.xlu0 %10082, %v11362_v60  }
  0x75   : > { %1600 = vmatprep.subr.bf16.mxu0 %v11267_v33 }
  0x76   : > { %9281 = vmatpush3.bf16.msra.mxu1 %v10115_v28  ;;  %v11506_v28 = vld [vmem:[%s11156_s29 + $0xf0] sm:$0xff] }
  0x77   : > { %9282 = vmatprep.subr.bf16.mxu1 %v10117_v31 }
  0x78   : > { %1601 = vmatpush1.bf16.msra.mxu0 %v11276_v37  ;;  %3031 = vperm.xlu0 %10082, %v11369_v62  }
  0x79   : > { %906 = vmatmul.mubr.bf16.gmra.mxu1 %v11271_v34  ;;  %836 = vmatmul.mubr.bf16.gmra.mxu0 %v11282_v39 }
  0x7a   : > { %915 = vmatprep.mubr.bf16.mxu1 %v14436_v3  ;;  %9283 = vmatpush3.bf16.msra.mxu1 %v10117_v31  ;;  %v11511_v31 = vld [vmem:[#allocation4 + $0xb0] ss:$12 sps:$4 sm:$0xff]  }
  0x7b   : > { %9284 = vmatprep.subr.bf16.mxu1 %v10119_v38  ;;  %845 = vmatprep.mubr.bf16.mxu0 %v14436_v3 }
  0x7c   : > { %1602 = vmatprep.subr.bf16.mxu0 %v11284_v40  ;;  %3221 = vperm.xlu0 %10082, %v11377_v0  }
  0x7d   : > { %1603 = vmatpush1.bf16.msra.mxu0 %v11291_v42 }
  0x7e   : > { %9285 = vmatpush3.bf16.msra.mxu1 %v10119_v38  ;;  %1604 = vmatprep.subr.bf16.mxu0 %v11300_v45  ;;  %v11516_v38 = vld [vmem:[#allocation4 + $0x98] ss:$12 sps:$4 sm:$0xff]  }
  0x7f   : > { %9286 = vmatprep.subr.bf16.mxu1 %v10121_v41 }
  0x80   : > { %3411 = vperm.xlu0 %10082, %v11384_v2  }
  0x81   : > { %916 = vmatmul.mubr.bf16.gmra.mxu1 %v11298_v44  ;;  %846 = vmatmul.mubr.bf16.gmra.mxu0 %v11315_v48 }
  0x82   : > { %925 = vmatprep.mubr.bf16.mxu1 %v14436_v3  ;;  %9287 = vmatpush3.bf16.msra.mxu1 %v10121_v41  ;;  %v11523_v41 = vld [vmem:[#allocation4 + $0x80] ss:$12 sps:$4 sm:$0xff]  }
  0x83   : > { %9288 = vmatprep.subr.bf16.mxu1 %v10123_v46  ;;  %855 = vmatprep.mubr.bf16.mxu0 %v14436_v3 }
  0x84   : > { %1605 = vmatpush1.bf16.msra.mxu0 %v11320_v49  ;;  %3601 = vperm.xlu0 %10082, %v11392_v5  }
  0x85   : > { %1606 = vmatprep.subr.bf16.mxu0 %v11325_v51 }
  0x86   : > { %9289 = vmatpush3.bf16.msra.mxu1 %v10123_v46  ;;  %v11528_v46 = vld [vmem:[#allocation4 + $0x68] ss:$12 sps:$4 sm:$0xff]  }
  0x87   : > { %1405 = vmatprep.subr.bf16.mxu1 %v11222_v20 }
  0x88   : > { %1607 = vmatpush1.bf16.msra.mxu0 %v11335_v53  ;;  %3791 = vperm.xlu0 %10082, %v11398_v6  }
  0x89   : > { %926 = vmatmul.mubr.bf16.gmra.mxu1 %v11331_v52  ;;  %1608 = vmatprep.subr.bf16.mxu0 %v11341_v55 }
  0x8a   : > { %935 = vmatprep.mubr.bf16.mxu1 %v14436_v3  ;;  %856 = vmatmul.mubr.bf16.gmra.mxu0 %v10135_v56 }
  0x8b   : > { %865 = vmatprep.mubr.bf16.mxu0 %v14436_v3 }
  0x8c   : > { %1609 = vmatpush1.bf16.msra.mxu0 %v11348_v57  ;;  %3981 = vperm.xlu0 %10082, %v11405_v8  }
  0x8d   : > { %1784 = vmatprep.subr.bf16.mxu0 %v11222_v20  ;;  %v11474_v20 = vld [vmem:[%s11156_s29 + $0xc0] sm:$0xff] }
  0x90   : > { %4171 = vperm.xlu0 %10082, %v11411_v9  }
  0x91   : > { %936 = vmatmul.mubr.bf16.gmra.mxu1 %v11357_v59 }
  0x92   : > { %945 = vmatprep.mubr.bf16.mxu1 %v14436_v3  ;;  %866 = vmatmul.mubr.bf16.gmra.mxu0 %v10136_v61 }
  0x93   : > { %875 = vmatprep.mubr.bf16.mxu0 %v14436_v3 }
  0x94   : > { %4361 = vperm.xlu0 %10082, %v11415_v10  }
  0x98   : > { %4551 = vperm.xlu0 %10082, %v11422_v11  }
  0x99   : > { %946 = vmatmul.mubr.bf16.gmra.mxu1 %v11373_v63 }
  0x9a   : > { %955 = vmatprep.mubr.bf16.mxu1 %v14436_v3  ;;  %876 = vmatmul.mubr.bf16.gmra.mxu0 %v10140_v1 }
  0x9b   : > { %1626 = vmatprep.mubr.bf16.mxu0 %v14436_v3 }
  0x9c   : > { %4741 = vperm.xlu0 %10082, %v11428_v12  }
  0xa0   : > { %4931 = vperm.xlu0 %10082, %v11435_v13  }
  0xa1   : > { %956 = vmatmul.mubr.bf16.gmra.mxu1 %v11388_v4 }
  0xa2   : > { %965 = vmatprep.mubr.bf16.mxu1 %v14436_v3 }
  0xa4   : > { %5121 = vperm.xlu0 %10082, %v11441_v14   ;;  %v5761_v14 = vsub.f32 1.0, %v11461_v17 }
  0xa8   : > { %5311 = vperm.xlu0 %10082, %v11447_v15  }
  0xa9   : > { %966 = vmatmul.mubr.bf16.gmra.mxu1 %v11401_v7 }
  0xaa   : > { %9290 = vmatprep.mubr.bf16.mxu1 %v11228_v22  ;;  %v11484_v22 = vld [vmem:[%s11156_s29 + $0xd0] sm:$0xff] }
  0xac   : > { %5501 = vperm.xlu0 %10082, %v11453_v16  }
  0xb0   : > { %5691 = vperm.xlu0 %10082, %v11461_v17   ;;  %v6331_v17 = vsub.f32 1.0, %v11478_v21 }
  0xb1   : > { %9291 = vmatmul.mubr.bf16.vlgmr.msra.gmra.mxu1 %v11255_v30 }
  0xb2   : > { %1406 = vmatpush1.bf16.msra.mxu1 %v11232_v23  ;;  %9294 = vmatprep.mubr.bf16.mxu1 %v11282_v39  ;;  %v11488_v23 = vld [vmem:[%s11156_s29 + $0xd8] sm:$0xff]  ;;  %v1961_v39 = vsub.f32 1.0, %v11295_v43 }
  0xb3   : > { %1407 = vmatprep.subr.bf16.mxu1 %v11236_v24  ;;  %v11494_v24 = vld [vmem:[%s11156_s29 + $0xe0] sm:$0xff]  ;;  %v11533_v43 = vld [vmem:[#allocation4 + $0x50] ss:$12 sps:$4 sm:$0xff]  }
  0xb4   : > { %5881 = vperm.xlu0 %10082, %v11467_v18   ;;  %1964 = vperm.xlu1 %10083, %v1961_v39  }
  0xb6   : > { %1408 = vmatpush1.bf16.msra.mxu1 %v11247_v27 }
  0xb7   : > { %1409 = vmatprep.subr.bf16.mxu1 %v11252_v29 }
  0xb8   : > { %6071 = vperm.xlu0 %10082, %v11474_v20  }
  0xb9   : > { %9295 = vmatmul.mubr.bf16.gmra.mxu1 %v11315_v48  ;;  %v2341_v48 = vsub.f32 1.0, %v11323_v50  ;;  %v11543_v50 = vld [vmem:[#allocation4 + $0x20] ss:$12 sps:$4 sm:$0xff]  }
  0xba   : > { %9298 = vmatprep.mubr.bf16.mxu1 %v10135_v56  ;;  %1410 = vmatpush1.bf16.msra.mxu1 %v11265_v32  ;;  %v2721_v56 = vsub.f32 1.0, %v11351_v58  ;;  %v3291_v58 = vsub.f32 1.0, %v11377_v0  ;;  %v4051_v0 = vsub.f32 1.0, %v11405_v8 }
  0xbb   : > { %1411 = vmatprep.subr.bf16.mxu1 %v11267_v33 }
  0xbc   : > { %6261 = vperm.xlu0 %10082, %v11478_v21   ;;  %v6901_v21 = vsub.f32 1.0, %v11494_v24 }
  0xbe   : > { %1412 = vmatpush1.bf16.msra.mxu1 %v11276_v37 }
  0xbf   : > { %1413 = vmatprep.subr.bf16.mxu1 %v11284_v40 }
  0xc0   : > { %6451 = vperm.xlu0 %10082, %v11484_v22  }
  0xc1   : > { %9299 = vmatmul.mubr.bf16.gmra.mxu1 %v10136_v61  ;;  %v3101_v61 = vsub.f32 1.0, %v11369_v62  ;;  %v3671_v62 = vsub.f32 1.0, %v11392_v5 }
  0xc2   : > { %9302 = vmatprep.mubr.bf16.mxu1 %v10140_v1  ;;  %1414 = vmatpush1.bf16.msra.mxu1 %v11291_v42  ;;  %v4241_v1 = vsub.f32 1.0, %v11411_v9  ;;  %v4811_v9 = vsub.f32 1.0, %v11428_v12 }
  0xc3   : > { %1415 = vmatprep.subr.bf16.mxu1 %v11300_v45 }
  0xc4   : > { %6641 = vperm.xlu0 %10082, %v11488_v23  }
  0xc6   : > { %1416 = vmatpush1.bf16.msra.mxu1 %v11320_v49 }
  0xc7   : > { %1417 = vmatprep.subr.bf16.mxu1 %v11325_v51 }
  0xc8   : > { %6831 = vperm.xlu0 %10082, %v11494_v24  }
  0xc9   : > { %9303 = vmatmul.mubr.bf16.gmra.mxu1 %v11220_v19  ;;  %v14438_v19 = vmov 0.0  }
  0xca   : > { %9306 = vmatprep.mubr.bf16.mxu1 %v11243_v26  ;;  %1418 = vmatpush1.bf16.msra.mxu1 %v11335_v53  ;;  %v11503_v26 = vld [vmem:[#allocation10] sm:$0xff] }
  0xcb   : > { %1419 = vmatprep.subr.bf16.mxu1 %v11341_v55  ;;  %v1276_v30 = vpack.c.bf16 %v11503_v26, %v11503_v26 }
  0xcc   : > { %7021 = vperm.xlu0 %10082, %v11498_v25  }
  0xce   : > { %1420 = vmatpush1.bf16.msra.mxu1 %v11348_v57 }
  0xcf   : > { %9322 = vmatprep.subr.bf16.mxu1 %v14438_v19 }
  0xd0   : > { %7211 = vperm.xlu0 %10082, %v11506_v28  }
  0xd1   : > { %9307 = vmatmul.mubr.bf16.gmra.mxu1 %v11271_v34  ;;  %v8931_v34 = vld [vmem:[%s11156_s29 + $0xf8] sm:$0xff] }
  0xd2   : > { %9310 = vmatprep.mubr.bf16.mxu1 %v11298_v44  ;;  %v2151_v44 = vsub.f32 1.0, %v11311_v47  ;;  %v11538_v47 = vld [vmem:[#allocation4 + $0x38] ss:$12 sps:$4 sm:$0xff]  }
  0xd4   : > { %7401 = vperm.xlu0 %10082, %v8931_v34   ;;  %2154 = vperm.xlu1 %10083, %v2151_v44   ;;  %v5381_v44 = vsub.f32 1.0, %v11447_v15  ;;  %v5951_v15 = vsub.f32 1.0, %v11467_v18  ;;  %v6521_v18 = vsub.f32 1.0, %v11484_v22  ;;  %v7091_v22 = vsub.f32 1.0, %v11498_v25 }
  0xd8   : > { %2344 = vperm.xlu1 %10083, %v2341_v48  }
  0xd9   : > { %9311 = vmatmul.mubr.bf16.gmra.mxu1 %v11331_v52  ;;  %v2531_v52 = vsub.f32 1.0, %v11338_v54  ;;  %v11548_v54 = vld [vmem:[#allocation4 + $0x8] ss:$12 sps:$4 sm:$0xff]  }
  0xda   : > { %9314 = vmatprep.mubr.bf16.mxu1 %v11357_v59  ;;  %v2911_v59 = vsub.f32 1.0, %v11362_v60  ;;  %v3481_v60 = vsub.f32 1.0, %v11384_v2  ;;  %v4431_v2 = vsub.f32 1.0, %v11415_v10 }
  0xdc   : > { %2534 = vperm.xlu1 %10083, %v2531_v52  }
  0xe0   : > { %2724 = vperm.xlu1 %10083, %v2721_v56  }
  0xe1   : > { %9315 = vmatmul.mubr.bf16.gmra.mxu1 %v11373_v63  ;;  %v3861_v63 = vsub.f32 1.0, %v11398_v6  ;;  %v4621_v6 = vsub.f32 1.0, %v11422_v11  ;;  %v5001_v11 = vsub.f32 1.0, %v11435_v13  ;;  %v5571_v13 = vsub.f32 1.0, %v11453_v16 }
  0xe2   : > { %9318 = vmatprep.mubr.bf16.mxu1 %v11388_v4  ;;  %v6141_v16 = vsub.f32 1.0, %v11474_v20  ;;  %v6711_v20 = vsub.f32 1.0, %v11488_v23  ;;  %v7281_v23 = vsub.f32 1.0, %v11506_v28 }
  0xe4   : > { %2914 = vperm.xlu1 %10083, %v2911_v59  }
  0xe8   : > { %3104 = vperm.xlu1 %10083, %v3101_v61  }
  0xe9   : > { %9319 = vmatmul.mubr.bf16.gmra.mxu1 %v11401_v7 }
  0xea   : > { %1437 = vmatprep.mubr.bf16.mxu1 %v14436_v3  ;;  %v11668_v3 = vld [vmem:[%s14423_s5] sm:$0x7] }
  0xec   : > { %3294 = vperm.xlu1 %10083, %v3291_v58  }
  0xf0   : > { %3484 = vperm.xlu1 %10083, %v3481_v60  }
  0xf1   : > { %1438 = vmatmul.mubr.bf16.vlgmr.msra.gmra.mxu1 %v1276_v30 }
  0xf2   : > { %9323 = vmatpush3.bf16.msra.mxu1 %v11511_v31  ;;  %9338 = vmatprep.mubr.msk.bf16.mxu1 %vm10974_vm0, %v14438_v19 }
  0xf3   : > { %9324 = vmatprep.subr.bf16.mxu1 %v14438_v19 }
  0xf4   : > { %3674 = vperm.xlu1 %10083, %v3671_v62  }
  0xf6   : > { %9325 = vmatpush3.bf16.msra.mxu1 %v11516_v38 }
  0xf7   : > { %9326 = vmatprep.subr.bf16.mxu1 %v14438_v19 }
  0xf8   : > { %3864 = vperm.xlu1 %10083, %v3861_v63  }
  0xfa   : > { %9327 = vmatpush3.bf16.msra.mxu1 %v11523_v41 }
  0xfb   : > { %9328 = vmatprep.subr.bf16.mxu1 %v14438_v19 }
  0xfc   : > { %4054 = vperm.xlu1 %10083, %v4051_v0  }
  0xfe   : > { %9329 = vmatpush3.bf16.msra.mxu1 %v11528_v46 }
  0xff   : > { %9330 = vmatprep.subr.bf16.mxu1 %v14438_v19 }
 0x100   : > { %4244 = vperm.xlu1 %10083, %v4241_v1  }
 0x102   : > { %9331 = vmatpush3.bf16.msra.mxu1 %v11533_v43 }
 0x103   : > { %9332 = vmatprep.subr.bf16.mxu1 %v14438_v19 }
 0x104   : > { %4434 = vperm.xlu1 %10083, %v4431_v2  }
 0x106   : > { %9333 = vmatpush3.bf16.msra.mxu1 %v11538_v47 }
 0x107   : > { %9334 = vmatprep.subr.bf16.mxu1 %v14438_v19 }
 0x108   : > { %4624 = vperm.xlu1 %10083, %v4621_v6  }
 0x10a   : > { %9335 = vmatpush3.bf16.msra.mxu1 %v11543_v50 }
 0x10b   : > { %9336 = vmatprep.subr.bf16.mxu1 %v14438_v19 }
 0x10c   : > { %4814 = vperm.xlu1 %10083, %v4811_v9  }
 0x10e   : > { %9337 = vmatpush3.bf16.msra.mxu1 %v11548_v54 }
 0x10f   : > { %9342 = vmatprep.subr.bf16.mxu1 %v14438_v19 }
 0x110   : > { %5004 = vperm.xlu1 %10083, %v5001_v11  }
 0x111   : > { %9339 = vmatmul.mubr.bf16.vlgmr.msra.gmra.mxu1 %v1276_v30 }
 0x112   : > { %9343 = vmatpush3.bf16.msra.mxu1 %v11511_v31  ;;  %9358 = vmatprep.mubr.msk.bf16.mxu1 %vm10974_vm0, %v14438_v19 }
 0x113   : > { %9344 = vmatprep.subr.bf16.mxu1 %v14438_v19 }
 0x114   : > { %5194 = vperm.xlu1 %10083, %v5191_v36  }
 0x116   : > { %9345 = vmatpush3.bf16.msra.mxu1 %v11516_v38 }
 0x117   : > { %9346 = vmatprep.subr.bf16.mxu1 %v14438_v19 }
 0x118   : > { %5384 = vperm.xlu1 %10083, %v5381_v44  }
 0x11a   : > { %9347 = vmatpush3.bf16.msra.mxu1 %v11523_v41 }
 0x11b   : > { %9348 = vmatprep.subr.bf16.mxu1 %v14438_v19 }
 0x11c   : > { %5574 = vperm.xlu1 %10083, %v5571_v13  }
 0x11e   : > { %9349 = vmatpush3.bf16.msra.mxu1 %v11528_v46 }
 0x11f   : > { %9350 = vmatprep.subr.bf16.mxu1 %v14438_v19 }
 0x120   : > { %5764 = vperm.xlu1 %10083, %v5761_v14  }
 0x122   : > { %9351 = vmatpush3.bf16.msra.mxu1 %v11533_v43 }
 0x123   : > { %9352 = vmatprep.subr.bf16.mxu1 %v14438_v19 }
 0x124   : > { %5954 = vperm.xlu1 %10083, %v5951_v15  }
 0x126   : > { %9353 = vmatpush3.bf16.msra.mxu1 %v11538_v47 }
 0x127   : > { %9354 = vmatprep.subr.bf16.mxu1 %v14438_v19 }
 0x128   : > { %6144 = vperm.xlu1 %10083, %v6141_v16   ;;  %v544_v16 = vlaneseq }
 0x129   : > { %v11575_v4 = vpop.f32.mrf.mxu1 }
 0x12a   : > { %14517 = vst [vmem:[#allocation23_spill] sm:$0xff] %v11575_v4  ;;  %9355 = vmatpush3.bf16.msra.mxu1 %v11543_v50  ;;  %v11658_v24 = vshrl.u32 %v544_v16, 7 }
 0x12b   : > { %v11578_v5 = vpop.f32.mrf.mxu1  ;;  %9356 = vmatprep.subr.bf16.mxu1 %v14438_v19 }
 0x12c   : > { %14518 = vst [vmem:[#allocation24_spill] sm:$0xff] %v11578_v5  ;;  %6334 = vperm.xlu1 %10083, %v6331_v17   ;;  %14549 = vst [vmem:[#allocation55_spill] sm:$0xff] %v11658_v24  ;;  %v554_v25 = vsub.s32 2, %v11658_v24 }
 0x12d   : > { %v11582_v7 = vpop.f32.mrf.mxu1 }
 0x12e   : > { %14519 = vst [vmem:[#allocation25_spill] sm:$0xff] %v11582_v7  ;;  %9357 = vmatpush3.bf16.msra.mxu1 %v11548_v54 }
 0x12f   : > { %v11585_v8 = vpop.f32.mrf.mxu1  ;;  %9362 = vmatprep.subr.bf16.mxu1 %v14438_v19 }
 0x130   : > { %14520 = vst [vmem:[#allocation26_spill] sm:$0xff] %v11585_v8  ;;  %6524 = vperm.xlu1 %10083, %v6521_v18  }
 0x131   : > { %v11589_v10 = vpop.f32.mrf.mxu1 }
 0x132   : > { %14521 = vst [vmem:[#allocation27_spill] sm:$0xff] %v11589_v10 }
 0x133   : > { %v11591_v30 = vpop.f32.mrf.mxu1 }
 0x134   : > { %14522 = vst [vmem:[#allocation28_spill] sm:$0xff] %v11591_v30  ;;  %6714 = vperm.xlu1 %10083, %v6711_v20  }
 0x135   : > { %v11594_v34 = vpop.f32.mrf.mxu1 }
 0x136   : > { %14523 = vst [vmem:[#allocation29_spill] sm:$0xff] %v11594_v34 }
 0x137   : > { %v11596_v35 = vpop.f32.mrf.mxu1 }
 0x138   : > { %14524 = vst [vmem:[#allocation30_spill] sm:$0xff] %v11596_v35  ;;  %6904 = vperm.xlu1 %10083, %v6901_v21  }
 0x139   : > { %v11599_v39 = vpop.f32.mrf.mxu1 }
 0x13a   : > { %14525 = vst [vmem:[#allocation31_spill] sm:$0xff] %v11599_v39 }
 0x13b   : > { %v11601_v12 = vpop.f32.mrf.mxu1 }
 0x13c   : > { %14526 = vst [vmem:[#allocation32_spill] sm:$0xff] %v11601_v12  ;;  %7094 = vperm.xlu1 %10083, %v7091_v22   ;;  %v11673_v22 = vrot.slane %v11668_v3, %v554_v25 }
 0x13d   : > { %v11604_v48 = vpop.f32.mrf.mxu1 }
 0x13e   : > { %14527 = vst [vmem:[#allocation33_spill] sm:$0xff] %v11604_v48 }
 0x13f   : > { %v11606_v52 = vpop.f32.mrf.mxu1 }
 0x140   : > { %14528 = vst [vmem:[#allocation34_spill] sm:$0xff] %v11606_v52  ;;  %7284 = vperm.xlu1 %10083, %v7281_v23  }
 0x141   : > { %v11609_v56 = vpop.f32.mrf.mxu1 }
 0x142   : > { %14529 = vst [vmem:[#allocation35_spill] sm:$0xff] %v11609_v56 }
 0x143   : > { %v11611_v59 = vpop.f32.mrf.mxu1 }
 0x144   : > { %14530 = vst [vmem:[#allocation36_spill] sm:$0xff] %v11611_v59 }
 0x145   : > { %v11614_v61 = vpop.f32.mrf.mxu1 }
 0x146   : > { %14531 = vst [vmem:[#allocation37_spill] sm:$0xff] %v11614_v61 }
 0x147   : > { %v11616_v58 = vpop.f32.mrf.mxu1 }
 0x148   : > { %14532 = vst [vmem:[#allocation38_spill] sm:$0xff] %v11616_v58 }
 0x149   : > { %v11619_v60 = vpop.f32.mrf.mxu1 }
 0x14a   : > { %14533 = vst [vmem:[#allocation39_spill] sm:$0xff] %v11619_v60 }
 0x14b   : > { %v11621_v62 = vpop.f32.mrf.mxu1 }
 0x14c   : > { %14534 = vst [vmem:[#allocation40_spill] sm:$0xff] %v11621_v62 }
 0x14d   : > { %v11624_v63 = vpop.f32.mrf.mxu1 }
 0x14e   : > { %14535 = vst [vmem:[#allocation41_spill] sm:$0xff] %v11624_v63 }
 0x14f   : > { %v11626_v0 = vpop.f32.mrf.mxu1 }
 0x150   : > { %14536 = vst [vmem:[#allocation42_spill] sm:$0xff] %v11626_v0 }
 0x151   : > { %v11629_v1 = vpop.f32.mrf.mxu1 }
 0x152   : > { %14537 = vst [vmem:[#allocation43_spill] sm:$0xff] %v11629_v1 }
 0x153   : > { %v11631_v2 = vpop.f32.mrf.mxu1 }
 0x154   : > { %14538 = vst [vmem:[#allocation44_spill] sm:$0xff] %v11631_v2 }
 0x155   : > { %v11634_v6 = vpop.f32.mrf.mxu1 }
 0x156   : > { %14539 = vst [vmem:[#allocation45_spill] sm:$0xff] %v11634_v6 }
 0x157   : > { %v11636_v9 = vpop.f32.mrf.mxu1 }
 0x158   : > { %14540 = vst [vmem:[#allocation46_spill] sm:$0xff] %v11636_v9 }
 0x159   : > { %v11639_v11 = vpop.f32.mrf.mxu1 }
 0x15a   : > { %14541 = vst [vmem:[#allocation47_spill] sm:$0xff] %v11639_v11 }
 0x15b   : > { %v11641_v36 = vpop.f32.mrf.mxu1 }
 0x15c   : > { %14542 = vst [vmem:[#allocation48_spill] sm:$0xff] %v11641_v36 }
 0x15d   : > { %v11644_v44 = vpop.f32.mrf.mxu1 }
 0x15e   : > { %14543 = vst [vmem:[#allocation49_spill] sm:$0xff] %v11644_v44 }
 0x15f   : > { %v11646_v13 = vpop.f32.mrf.mxu1 }
 0x160   : > { %14544 = vst [vmem:[#allocation50_spill] sm:$0xff] %v11646_v13 }
 0x161   : > { %v11649_v14 = vpop.f32.mrf.mxu1 }
 0x162   : > { %14545 = vst [vmem:[#allocation51_spill] sm:$0xff] %v11649_v14 }
 0x163   : > { %v11651_v15 = vpop.f32.mrf.mxu1 }
 0x164   : > { %14546 = vst [vmem:[#allocation52_spill] sm:$0xff] %v11651_v15 }
 0x165   : > { %v11654_v17 = vpop.f32.mrf.mxu1 }
 0x166   : > { %14547 = vst [vmem:[#allocation53_spill] sm:$0xff] %v11654_v17 }
 0x167   : > { %v11656_v18 = vpop.f32.mrf.mxu1 }
 0x168   : > { %14548 = vst [vmem:[#allocation54_spill] sm:$0xff] %v11656_v18 }
 0x169   : > { %v11660_v20 = vpop.f32.mrf.mxu1 }
 0x16a   : > { %14550 = vst [vmem:[#allocation56_spill] sm:$0xff] %v11660_v20 }
 0x16b   : > { %v11663_v21 = vpop.f32.mrf.mxu1 }
 0x16c   : > { %14551 = vst [vmem:[#allocation57_spill] sm:$0xff] %v11663_v21 }
 0x16d   : > { %v11670_v28 = vpop.f32.mrf.mxu1 }
 0x16e   : > { %14552 = vst [vmem:[#allocation58_spill] sm:$0xff] %v11670_v28 }
 0x16f   : > { %v11675_v19 = vpop.f32.mrf.mxu1 }
 0x170   : > { %14553 = vst [vmem:[#allocation59_spill] sm:$0xff] %v11675_v19 }
 0x171   : > { %v9292_v23 = vpop.f32.mrf.mxu1 }
 0x172   : > { %v11678_v16 = vadd.f32 %v9292_v23, %v11673_v22 }
 0x173   : > { %v11680_v20 = vpop.f32.mrf.mxu1 }
 0x175   : > { %v9293_v18 = vpop.f32.mrf.mxu1 }
 0x176   : > { %v11683_v21 = vadd.f32 %v9293_v18, %v11673_v22 }
 0x177   : > { %v11685_v17 = vpop.f32.mrf.mxu1 }
 0x179   : > { %v9296_v15 = vpop.f32.mrf.mxu1 }
 0x17a   : > { %v11688_v28 = vadd.f32 %v9296_v15, %v11673_v22 }
 0x17b   : > { %v1026_v25 = vpop.f32.mrf.mxu1 }
 0x17c   : > { %v11691_v14 = vadd.f32 %v1026_v25, %v11673_v22 }
 0x17d   : > { %v9297_v19 = vpop.f32.mrf.mxu1 }
 0x17e   : > { %v11694_v23 = vadd.f32 %v9297_v19, %v11673_v22 }
 0x17f   : > { %v11696_v13 = vpop.f32.mrf.mxu1 }
 0x180   : > { %14554 = vst [vmem:[#allocation60_spill] sm:$0xff] %v11694_v23 }
 0x181   : > { %v9300_v44 = vpop.f32.mrf.mxu1 }
 0x182   : > { %v11699_v18 = vadd.f32 %v9300_v44, %v11673_v22 }
 0x183   : > { %v1042_v36 = vpop.f32.mrf.mxu1 }
 0x184   : > { %14555 = vst [vmem:[#allocation61_spill] sm:$0xff] %v11699_v18  ;;  %v11702_v11 = vadd.f32 %v1042_v36, %v11673_v22 }
 0x185   : > { %v9301_v15 = vpop.f32.mrf.mxu1 }
 0x186   : > { %14556 = vst [vmem:[#allocation62_spill] sm:$0xff] %v11702_v11  ;;  %v11705_v9 = vadd.f32 %v9301_v15, %v11673_v22 }
 0x187   : > { %v11707_v25 = vpop.f32.mrf.mxu1 }
 0x188   : > { %14557 = vst [vmem:[#allocation63_spill] sm:$0xff] %v11705_v9  ;;  %14558 = vst [vmem:[#allocation64_spill] sm:$0xff] %v11707_v25 }
 0x189   : > { %v9304_v6 = vpop.f32.mrf.mxu1 }
 0x18a   : > { %v11710_v19 = vadd.f32 %v9304_v6, %v11673_v22 }
 0x18b   : > { %v1058_v2 = vpop.f32.mrf.mxu1 }
 0x18c   : > { %14559 = vst [vmem:[#allocation65_spill] sm:$0xff] %v11710_v19  ;;  %v11713_v1 = vadd.f32 %v1058_v2, %v11673_v22 }
 0x18d   : > { %v9305_v44 = vpop.f32.mrf.mxu1 }
 0x18e   : > { %14560 = vst [vmem:[#allocation66_spill] sm:$0xff] %v11713_v1  ;;  %v11716_v0 = vadd.f32 %v9305_v44, %v11673_v22 }
 0x18f   : > { %v11718_v36 = vpop.f32.mrf.mxu1 }
 0x190   : > { %14561 = vst [vmem:[#allocation67_spill] sm:$0xff] %v11716_v0  ;;  %14562 = vst [vmem:[#allocation68_spill] sm:$0xff] %v11718_v36 }
 0x191   : > { %v9308_v63 = vpop.f32.mrf.mxu1 }
 0x192   : > { %v11721_v15 = vadd.f32 %v9308_v63, %v11673_v22 }
 0x193   : > { %v1074_v62 = vpop.f32.mrf.mxu1 }
 0x194   : > { %14563 = vst [vmem:[#allocation69_spill] sm:$0xff] %v11721_v15  ;;  %v11724_v60 = vadd.f32 %v1074_v62, %v11673_v22 }
 0x195   : > { %v9309_v6 = vpop.f32.mrf.mxu1 }
 0x196   : > { %14564 = vst [vmem:[#allocation70_spill] sm:$0xff] %v11724_v60  ;;  %v11727_v58 = vadd.f32 %v9309_v6, %v11673_v22  ;;  %v1512_v60 = vpop.permute.xlu0 %1511 }
 0x197   : > { %v11729_v2 = vpop.f32.mrf.mxu1 }
 0x198   : > { %14565 = vst [vmem:[#allocation71_spill] sm:$0xff] %v11727_v58  ;;  %14566 = vst [vmem:[#allocation72_spill] sm:$0xff] %v11729_v2 }
 0x199   : > { %v9312_v61 = vpop.f32.mrf.mxu1 }
 0x19a   : > { %v11732_v44 = vadd.f32 %v9312_v61, %v11673_v22 }
 0x19b   : > { %v1090_v59 = vpop.f32.mrf.mxu1 }
 0x19c   : > { %14567 = vst [vmem:[#allocation73_spill] sm:$0xff] %v11732_v44  ;;  %v11735_v56 = vadd.f32 %v1090_v59, %v11673_v22 }
 0x19d   : > { %v9313_v63 = vpop.f32.mrf.mxu1 }
 0x19e   : > { %14568 = vst [vmem:[#allocation74_spill] sm:$0xff] %v11735_v56  ;;  %v11738_v52 = vadd.f32 %v9313_v63, %v11673_v22  ;;  %v14440_v56 = vsub.s32 0, %v11658_v24 }
 0x19f   : > { %v11740_v62 = vpop.f32.mrf.mxu1 }
 0x1a0   : > { %14569 = vst [vmem:[#allocation75_spill] sm:$0xff] %v11738_v52  ;;  %14570 = vst [vmem:[#allocation76_spill] sm:$0xff] %v11740_v62 }
 0x1a1   : > { %v9316_v48 = vpop.f32.mrf.mxu1 }
 0x1a2   : > { %v11743_v6 = vadd.f32 %v9316_v48, %v11673_v22  ;;  %v11760_v48 = vrot.slane %v11668_v3, %v14440_v56 }
 0x1a3   : > { %v1106_v58 = vpop.f32.mrf.mxu1 }
 0x1a4   : > { %14571 = vst [vmem:[#allocation77_spill] sm:$0xff] %v11743_v6  ;;  %v11746_v15 = vadd.f32 %v1106_v58, %v11673_v22  ;;  %v817_v6 = vpop.f32.mrf.mxu0 }
 0x1a5   : > { %v9317_v61 = vpop.f32.mrf.mxu1 }
 0x1a6   : > { %14572 = vst [vmem:[#allocation78_spill] sm:$0xff] %v11746_v15  ;;  %v11749_v44 = vadd.f32 %v9317_v61, %v11673_v22 }
 0x1a7   : > { %v11751_v59 = vpop.f32.mrf.mxu1 }
 0x1a8   : > { %14573 = vst [vmem:[#allocation79_spill] sm:$0xff] %v11749_v44  ;;  %14574 = vst [vmem:[#allocation80_spill] sm:$0xff] %v11751_v59  ;;  %v818_v44 = vadd.f32 %v817_v6, %v11760_v48 }
 0x1a9   : > { %v9320_v63 = vpop.f32.mrf.mxu1 }
 0x1aa   : > { %v11755_v52 = vadd.f32 %v9320_v63, %v11673_v22  ;;  %v14441_v63 = vsub.s32 1, %v11658_v24 }
 0x1ab   : > { %v1122_v62 = vpop.f32.mrf.mxu1 }
 0x1ac   : > { %14575 = vst [vmem:[#allocation81_spill] sm:$0xff] %v11755_v52  ;;  %v11763_v58 = vadd.f32 %v1122_v62, %v11673_v22  ;;  %v11775_v56 = vrot.slane %v11668_v3, %v14441_v63 }
 0x1ad   : > { %v9321_v61 = vpop.f32.mrf.mxu1 }
 0x1ae   : > { %14576 = vst [vmem:[#allocation82_spill] sm:$0xff] %v11763_v58  ;;  %v11767_v59 = vadd.f32 %v9321_v61, %v11673_v22  ;;  %v819_v58 = vpop.f32.mrf.mxu0 }
 0x1af   : > { %v11769_v15 = vpop.f32.mrf.mxu1  ;;  %v820_v6 = vadd.f32 %v819_v58, %v11775_v56 }
 0x1b0   : > { %14577 = vst [vmem:[#allocation83_spill] sm:$0xff] %v11767_v59  ;;  %14578 = vst [vmem:[#allocation84_spill] sm:$0xff] %v11769_v15 }
 0x1b1   : > { %v1439_v52 = vpop.f32.mrf.mxu1 }
 0x1b2   : > { %v1486_v12 = vadd.f32 %v1439_v52, %v818_v44  ;;  %v11781_v44 = vld [vmem:[%s14424_s6] ss:$0 sm:$0xff] }
 0x1b3   : > { %v1441_v39 = vpop.f32.mrf.mxu1 }
 0x1b4   : > { %v8713_v62 = vmul.f32 -1.442695, %v1486_v12  ;;  %v1493_v59 = vadd.f32 %v1441_v39, %v820_v6  ;;  %v1011_v39 = vadd.f32 %v11680_v20, %v11673_v22  ;;  %v1585_v20 = vpop.permute.xlu0 %1584 }
 0x1b5   : > { %v1443_v2 = vpop.f32.mrf.mxu1 }
 0x1b6   : > { %10188 = vpow2.f32 %v8713_v62  ;;  %v8714_v35 = vmul.f32 -1.442695, %v1493_v59  ;;  %v10975_v62 = vmov 1966171168  }
 0x1b7   : > { %v1444_v61 = vpop.f32.mrf.mxu1  ;;  %v1518_v6 = vunpack.c.l.s4 %v10975_v62  ;;  %v11800_v62 = vld [vmem:[#allocation4 + $0xa8] ss:$12 sps:$4 sm:$0xff]  }
 0x1b8   : > { %10190 = vpow2.f32 %v8714_v35 }
 0x1b9   : > { %v1519_v30 = vunpack.c.0.s8 %v1518_v6 }
 0x1bb   : > { %v11788_v8 = vsub.s32 %v1519_v30, %v11658_v24 }
 0x1c3   : > { %v10189_v15 = vpop.eup %10188 }
 0x1c4   : > { %v1490_v34 = vadd.f32 1.0, %v10189_v15 }
 0x1c5   : > { %v10191_v52 = vpop.eup %10190 }
 0x1c6   : > { %10192 = vrcp.f32 %v1490_v34  ;;  %v1497_v3 = vadd.f32 1.0, %v10191_v52 }
 0x1c8   : > { %10194 = vrcp.f32 %v1497_v3 }
 0x1d1   : > { %v1480_v12 = vpop.f32.mrf.mxu1 }
 0x1d2   : > { %v1500_v2 = vadd.f32 %v11781_v44, %v1480_v12 }
 0x1d3   : > { %v10193_v63 = vpop.eup %10192  ;;  %v9340_v58 = vpop.f32.mrf.mxu1 }
 0x1d4   : > { %v1501_v35 = vmul.f32 %v10193_v63, %v1500_v2  ;;  %v1587_v63 = vmul.f32 %v1585_v20, %v11503_v26  ;;  %v14580_v20 = vmov 0  }
 0x1d5   : > { %v1483_v59 = vpop.f32.mrf.mxu1  ;;  %v10195_v61 = vpop.eup %10194 }
 0x1d6   : > { %v1502_v15 = vadd.f32 %v1501_v35, %v1011_v39  ;;  %v1504_v52 = vsub.f32 1.0, %v10195_v61  ;;  %v1506_v12 = vmul.f32 %v10195_v61, %v11503_v26 }
 0x1d7   : > { %v9341_v34 = vpop.f32.mrf.mxu1 }
 0x1d8   : > { %10196 = vtanh.f32 %v1502_v15 }
 0x1e5   : > { %v10197_v10 = vpop.eup %10196 }
 0x1e6   : > { %v1505_v0 = vmul.f32 %v10197_v10, %v1504_v52 }
 0x1e8   : > { %v1507_v58 = vadd.f32 %v1506_v12, %v1505_v0  ;;  %v11805_v12 = vld [vmem:[#allocation4 + $0x94] ss:$12 sps:$4 sm:$0xff]  }
 0x1ea   : > { %v1514_v3 = vmul.f32 %v1512_v60, %v1507_v58  ;;  %v14579_v58 = vmov 0.0  }
 0x1ec   : > { %v1516_v2 = vcombine.high %v1514_v3, %v1514_v3  ;;  %v1523_v39 = vrot.slane %v1514_v3, %v11788_v8  ;;  %v11792_v35 = vadd.f32 %v1587_v63, %v1514_v3 }
 0x1ee   : > { %v1530_v59 = vrot.slane %v1516_v2, %v11788_v8  ;;  %v1531_v15 = vcombine.high %v1523_v39, %v1523_v39  ;;  %v1539_v10 = vrot.slane %v1523_v39, %v11788_v8  ;;  %8715 = vst.sshfl [vmem:[#allocation3] sm:$0x1 pattern:$0x73625140] %v1523_v39  ;;  %v1593_v0 = vpack.c.bf16 %v11792_v35, %v11792_v35 }
 0x1f0   : > { %v1532_v30 = vcombine.high %v1530_v59, %v1530_v59  ;;  %v1546_v34 = vrot.slane %v1530_v59, %v11788_v8  ;;  %v1553_v26 = vrot.slane %v1531_v15, %v11788_v8  ;;  %v1561_v60 = vcombine.high %v1539_v10, %v1539_v10  ;;  %8716 = vst.sshfl [vmem:[#allocation3 + $0x20] sm:$0x1 pattern:$0x73625140] %v1531_v15 }
 0x1f1   : > { %8717 = vst.sshfl [vmem:[#allocation3 + $0x80] sm:$0x1 pattern:$0x73625140] %v1530_v59  ;;  %1627 = vmatmul.mubr.bf16.vlgmr.msra.gmra.mxu0 %v1593_v0  ;;  %9359 = vmatmul.mubr.bf16.vlgmr.msra.gmra.mxu1 %v1593_v0 }
 0x1f2   : > { %1785 = vmatpush1.bf16.msra.mxu0 %v11800_v62  ;;  %v1560_v6 = vrot.slane %v1532_v30, %v11788_v8  ;;  %v1562_v61 = vcombine.high %v1546_v34, %v1546_v34  ;;  %v1563_v52 = vcombine.high %v1553_v26, %v1553_v26  ;;  %1575 = vst [vmem:[#allocation3 + $0x40] sm:$0x1] %v1561_v60  ;;  %8718 = vst.sshfl [vmem:[#allocation3 + $0xa0] sm:$0x1 pattern:$0x73625140] %v1532_v30 }
 0x1f3   : > { %9363 = vmatpush3.bf16.msra.mxu1 %v11511_v31  ;;  %1786 = vmatprep.subr.bf16.mxu0 %v11805_v12 }
 0x1f4   : > { %9364 = vmatprep.subr.bf16.mxu1 %v14579_v58  ;;  %1816 = vmatprep.mubr.bf16.mxu0 %v14580_v20  ;;  %v1564_v63 = vcombine.high %v1560_v6, %v1560_v6  ;;  %1576 = vst [vmem:[#allocation3 + $0x60] sm:$0x1] %v1563_v52  ;;  %1579 = vst [vmem:[#allocation3 + $0xc0] sm:$0x1] %v1562_v61 }
 0x1f5   : > { %9378 = vmatprep.mubr.msk.bf16.mxu1 %vm10974_vm0, %v14579_v58 }
 0x1f6   : > { %1787 = vmatpush1.bf16.msra.mxu0 %v11247_v27  ;;  %1580 = vst [vmem:[#allocation3 + $0xe0] sm:$0x1] %v1564_v63  ;;  %v11838_v27 = vld [vmem:[#allocation4 + $0xac] ss:$12 sps:$4 sm:$0xff]  }
 0x1f7   : > { %9365 = vmatpush3.bf16.msra.mxu1 %v11516_v38  ;;  %1788 = vmatprep.subr.bf16.mxu0 %v11252_v29  ;;  %v821_v29 = vpop.f32.mrf.mxu0 }
 0x1f8   : > { %9366 = vmatprep.subr.bf16.mxu1 %v14579_v58  ;;  %v822_v63 = vadd.f32 %v821_v29, %v11760_v48 }
 0x1fa   : > { %1789 = vmatpush1.bf16.msra.mxu0 %v11265_v32  ;;  %v823_v32 = vpop.f32.mrf.mxu0 }
 0x1fb   : > { %9367 = vmatpush3.bf16.msra.mxu1 %v11523_v41  ;;  %1790 = vmatprep.subr.bf16.mxu0 %v11267_v33  ;;  %v824_v9 = vadd.f32 %v823_v32, %v11775_v56 }
 0x1fc   : > { %9368 = vmatprep.subr.bf16.mxu1 %v14579_v58  ;;  %v11842_v33 = vpop.f32.mrf.mxu0 }
 0x1fe   : > { %1791 = vmatpush1.bf16.msra.mxu0 %v11276_v37  ;;  %v11844_v37 = vpop.f32.mrf.mxu0 }
 0x1ff   : > { %9369 = vmatpush3.bf16.msra.mxu1 %v11528_v46  ;;  %1792 = vmatprep.subr.bf16.mxu0 %v11284_v40  ;;  %v830_v25 = vadd.f32 %v11844_v37, %v11775_v56 }
 0x200   : > { %9370 = vmatprep.subr.bf16.mxu1 %v14579_v58  ;;  %v11846_v40 = vpop.f32.mrf.mxu0 }
 0x202   : > { %1793 = vmatpush1.bf16.msra.mxu0 %v11291_v42  ;;  %v11848_v42 = vpop.f32.mrf.mxu0 }
 0x203   : > { %9371 = vmatpush3.bf16.msra.mxu1 %v11533_v43  ;;  %1794 = vmatprep.subr.bf16.mxu0 %v11300_v45 }
 0x204   : > { %9372 = vmatprep.subr.bf16.mxu1 %v14579_v58  ;;  %v11850_v45 = vpop.f32.mrf.mxu0 }
 0x206   : > { %1795 = vmatpush1.bf16.msra.mxu0 %v11320_v49  ;;  %v11852_v49 = vpop.f32.mrf.mxu0 }
 0x207   : > { %9373 = vmatpush3.bf16.msra.mxu1 %v11538_v47  ;;  %1796 = vmatprep.subr.bf16.mxu0 %v11325_v51 }
 0x208   : > { %9374 = vmatprep.subr.bf16.mxu1 %v14579_v58  ;;  %v11854_v51 = vpop.f32.mrf.mxu0 }
 0x20a   : > { %1797 = vmatpush1.bf16.msra.mxu0 %v11335_v53  ;;  %v11856_v53 = vpop.f32.mrf.mxu0 }
 0x20b   : > { %9375 = vmatpush3.bf16.msra.mxu1 %v11543_v50  ;;  %1798 = vmatprep.subr.bf16.mxu0 %v11341_v55 }
 0x20c   : > { %9376 = vmatprep.subr.bf16.mxu1 %v14579_v58  ;;  %v11858_v55 = vpop.f32.mrf.mxu0 }
 0x20e   : > { %1799 = vmatpush1.bf16.msra.mxu0 %v11348_v57  ;;  %v11860_v57 = vpop.f32.mrf.mxu0 }
 0x20f   : > { %9377 = vmatpush3.bf16.msra.mxu1 %v11548_v54  ;;  %1974 = vmatprep.subr.bf16.mxu0 %v11838_v27 }
 0x210   : > { %9382 = vmatprep.subr.bf16.mxu1 %v14579_v58  ;;  %v11862_v3 = vpop.f32.mrf.mxu0 }
 0x212   : > { %v11864_v2 = vpop.f32.mrf.mxu0 }
 0x213   : > { %14581 = vst [vmem:[#allocation85_spill] sm:$0xff] %v11864_v2 }
 0x214   : > { %v11866_v39 = vpop.f32.mrf.mxu0 }
 0x215   : > { %14582 = vst [vmem:[#allocation86_spill] sm:$0xff] %v11866_v39 }
 0x216   : > { %v11868_v59 = vpop.f32.mrf.mxu0 }
 0x217   : > { %14583 = vst [vmem:[#allocation87_spill] sm:$0xff] %v11868_v59 }
 0x218   : > { %v11870_v15 = vpop.f32.mrf.mxu0 }
 0x219   : > { %14584 = vst [vmem:[#allocation88_spill] sm:$0xff] %v11870_v15 }
 0x21a   : > { %v11872_v10 = vpop.f32.mrf.mxu0 }
 0x21b   : > { %14585 = vst [vmem:[#allocation89_spill] sm:$0xff] %v11872_v10 }
 0x21c   : > { %v11874_v0 = vpop.f32.mrf.mxu0 }
 0x21d   : > { %14586 = vst [vmem:[#allocation90_spill] sm:$0xff] %v11874_v0 }
 0x21e   : > { %v11876_v30 = vpop.f32.mrf.mxu0 }
 0x21f   : > { %14587 = vst [vmem:[#allocation91_spill] sm:$0xff] %v11876_v30 }
 0x220   : > { %v11878_v34 = vpop.f32.mrf.mxu0 }
 0x221   : > { %14588 = vst [vmem:[#allocation92_spill] sm:$0xff] %v11878_v34 }
 0x222   : > { %v11880_v26 = vpop.f32.mrf.mxu0 }
 0x223   : > { %14589 = vst [vmem:[#allocation93_spill] sm:$0xff] %v11880_v26 }
 0x224   : > { %v11882_v60 = vpop.f32.mrf.mxu0 }
 0x225   : > { %14590 = vst [vmem:[#allocation94_spill] sm:$0xff] %v11882_v60 }
 0x226   : > { %v11884_v6 = vpop.f32.mrf.mxu0 }
 0x227   : > { %14591 = vst [vmem:[#allocation95_spill] sm:$0xff] %v11884_v6 }
 0x228   : > { %v11886_v61 = vpop.f32.mrf.mxu0 }
 0x229   : > { %14592 = vst [vmem:[#allocation96_spill] sm:$0xff] %v11886_v61 }
 0x22a   : > { %v11888_v52 = vpop.f32.mrf.mxu0 }
 0x22b   : > { %14593 = vst [vmem:[#allocation97_spill] sm:$0xff] %v11888_v52 }
 0x2b1   : > { %v1628_v24 = vpop.f32.mrf.mxu0  ;;  %v1669_v19 = vpop.f32.mrf.mxu1 }
 0x2b2   : > { %v1675_v7 = vadd.f32 %v1628_v24, %v822_v63  ;;  %v1689_v24 = vadd.f32 %v11781_v44, %v1669_v19 }
 0x2b3   : > { %v1630_v5 = vpop.f32.mrf.mxu0  ;;  %v9360_v36 = vpop.f32.mrf.mxu1 }
 0x2b4   : > { %v8719_v4 = vmul.f32 -1.442695, %v1675_v7  ;;  %v1682_v34 = vadd.f32 %v1630_v5, %v824_v9  ;;  %v1014_v7 = vadd.f32 %v11685_v17, %v11673_v22  ;;  %v1702_v5 = vpop.permute.xlu1 %1701 }
 0x2b5   : > { %v1632_v1 = vpop.f32.mrf.mxu0  ;;  %v1672_v26 = vpop.f32.mrf.mxu1 }
 0x2b6   : > { %10198 = vpow2.f32 %v8719_v4  ;;  %v8720_v18 = vmul.f32 -1.442695, %v1682_v34 }
 0x2b7   : > { %v1633_v60 = vpop.f32.mrf.mxu0  ;;  %v9361_v6 = vpop.f32.mrf.mxu1 }
 0x2b8   : > { %10200 = vpow2.f32 %v8720_v18  ;;  %v1775_v26 = vpop.permute.xlu1 %1774 }
 0x2b9   : > { %v1777_v6 = vmul.f32 %v1775_v26, %v11792_v35  ;;  %v11922_v26 = vld [vmem:[#allocation4 + $0x78] ss:$12 sps:$4 sm:$0xff]  }
 0x2c3   : > { %v10199_v61 = vpop.eup %10198 }
 0x2c4   : > { %v1679_v52 = vadd.f32 1.0, %v10199_v61 }
 0x2c5   : > { %v10201_v29 = vpop.eup %10200 }
 0x2c6   : > { %10202 = vrcp.f32 %v1679_v52  ;;  %v1686_v30 = vadd.f32 1.0, %v10201_v29 }
 0x2c8   : > { %10204 = vrcp.f32 %v1686_v30 }
 0x2d3   : > { %v10203_v63 = vpop.eup %10202 }
 0x2d4   : > { %v1690_v1 = vmul.f32 %v10203_v63, %v1689_v24 }
 0x2d5   : > { %v10205_v36 = vpop.eup %10204 }
 0x2d6   : > { %v1691_v4 = vadd.f32 %v1690_v1, %v1014_v7  ;;  %v1693_v9 = vsub.f32 1.0, %v10205_v36  ;;  %v1695_v18 = vmul.f32 %v10205_v36, %v11792_v35 }
 0x2d8   : > { %10206 = vtanh.f32 %v1691_v4 }
 0x2e5   : > { %v10207_v32 = vpop.eup %10206 }
 0x2e6   : > { %v1694_v34 = vmul.f32 %v10207_v32, %v1693_v9 }
 0x2e8   : > { %v1696_v60 = vadd.f32 %v1695_v18, %v1694_v34  ;;  %v11914_v18 = vld [vmem:[#allocation4 + $0x90] ss:$12 sps:$4 sm:$0xff]  }
 0x2e9   : > { %v11918_v34 = vld [vmem:[#allocation4 + $0x7c] ss:$12 sps:$4 sm:$0xff]  }
 0x2ea   : > { %v1704_v19 = vmul.f32 %v1702_v5, %v1696_v60  ;;  %v11926_v60 = vld [vmem:[#allocation4 + $0x64] ss:$12 sps:$4 sm:$0xff]  }
 0x2ec   : > { %v1706_v61 = vcombine.high %v1704_v19, %v1704_v19  ;;  %v1713_v52 = vrot.slane %v1704_v19, %v11788_v8  ;;  %v11898_v17 = vadd.f32 %v1777_v6, %v1704_v19  ;;  %v11930_v6 = vld [vmem:[#allocation4 + $0x60] ss:$12 sps:$4 sm:$0xff]  }
 0x2ed   : > { %v11934_v19 = vld [vmem:[#allocation4 + $0x4c] ss:$12 sps:$4 sm:$0xff]  }
 0x2ee   : > { %v1720_v30 = vrot.slane %v1706_v61, %v11788_v8  ;;  %v1721_v29 = vcombine.high %v1713_v52, %v1713_v52  ;;  %v1729_v24 = vrot.slane %v1713_v52, %v11788_v8  ;;  %8722 = vst.sshfl [vmem:[#allocation3 + $0x1] sm:$0x1 pattern:$0x73625140] %v1713_v52  ;;  %v1783_v63 = vpack.c.bf16 %v11898_v17, %v11898_v17  ;;  %v11938_v61 = vld [vmem:[#allocation4 + $0x48] ss:$12 sps:$4 sm:$0xff]  }
 0x2ef   : > { %v11942_v52 = vld [vmem:[#allocation4 + $0x34] ss:$12 sps:$4 sm:$0xff]  }
 0x2f0   : > { %v1722_v7 = vcombine.high %v1720_v30, %v1720_v30  ;;  %v1736_v1 = vrot.slane %v1720_v30, %v11788_v8  ;;  %v1743_v35 = vrot.slane %v1721_v29, %v11788_v8  ;;  %v1751_v4 = vcombine.high %v1729_v24, %v1729_v24  ;;  %8723 = vst.sshfl [vmem:[#allocation3 + $0x21] sm:$0x1 pattern:$0x73625140] %v1721_v29  ;;  %v11950_v29 = vld [vmem:[#allocation4 + $0x1c] ss:$12 sps:$4 sm:$0xff]  }
 0x2f1   : > { %8724 = vst.sshfl [vmem:[#allocation3 + $0x81] sm:$0x1 pattern:$0x73625140] %v1720_v30  ;;  %1817 = vmatmul.mubr.bf16.vlgmr.msra.gmra.mxu0 %v1783_v63  ;;  %9379 = vmatmul.mubr.bf16.vlgmr.msra.gmra.mxu1 %v1783_v63  ;;  %v11946_v30 = vld [vmem:[#allocation4 + $0x30] ss:$12 sps:$4 sm:$0xff]  }
 0x2f2   : > { %1975 = vmatpush1.bf16.msra.mxu0 %v11800_v62  ;;  %v1750_v36 = vrot.slane %v1722_v7, %v11788_v8  ;;  %v1752_v5 = vcombine.high %v1736_v1, %v1736_v1  ;;  %v1753_v9 = vcombine.high %v1743_v35, %v1743_v35  ;;  %1765 = vst [vmem:[#allocation3 + $0x41] sm:$0x1] %v1751_v4  ;;  %8725 = vst.sshfl [vmem:[#allocation3 + $0xa1] sm:$0x1 pattern:$0x73625140] %v1722_v7 }
 0x2f3   : > { %9383 = vmatpush3.bf16.msra.mxu1 %v11511_v31  ;;  %1976 = vmatprep.subr.bf16.mxu0 %v11805_v12  ;;  %v11954_v24 = vld [vmem:[#allocation4 + $0x18] ss:$12 sps:$4 sm:$0xff]   ;;  %v11962_v7 = vld [vmem:[#allocation4] ss:$12 sps:$4 sm:$0xff]   ;;  %v828_v1 = vadd.f32 %v11842_v33, %v11760_v48 }
 0x2f4   : > { %9384 = vmatprep.subr.bf16.mxu1 %v14579_v58  ;;  %2006 = vmatprep.mubr.bf16.mxu0 %v14580_v20  ;;  %v1754_v32 = vcombine.high %v1750_v36, %v1750_v36  ;;  %1766 = vst [vmem:[#allocation3 + $0x61] sm:$0x1] %v1753_v9  ;;  %1769 = vst [vmem:[#allocation3 + $0xc1] sm:$0x1] %v1752_v5  ;;  %v11958_v63 = vld [vmem:[#allocation4 + $0x4] ss:$12 sps:$4 sm:$0xff]  }
 0x2f5   : > { %9398 = vmatprep.mubr.msk.bf16.mxu1 %vm10974_vm0, %v14579_v58 }
 0x2f6   : > { %1977 = vmatpush1.bf16.msra.mxu0 %v11914_v18  ;;  %1770 = vst [vmem:[#allocation3 + $0xe1] sm:$0x1] %v1754_v32 }
 0x2f7   : > { %9385 = vmatpush3.bf16.msra.mxu1 %v11516_v38  ;;  %1978 = vmatprep.subr.bf16.mxu0 %v11918_v34 }
 0x2f8   : > { %9386 = vmatprep.subr.bf16.mxu1 %v14579_v58 }
 0x2fa   : > { %1979 = vmatpush1.bf16.msra.mxu0 %v11922_v26 }
 0x2fb   : > { %9387 = vmatpush3.bf16.msra.mxu1 %v11523_v41  ;;  %1980 = vmatprep.subr.bf16.mxu0 %v11926_v60 }
 0x2fc   : > { %9388 = vmatprep.subr.bf16.mxu1 %v14579_v58 }
 0x2fe   : > { %1981 = vmatpush1.bf16.msra.mxu0 %v11930_v6 }
 0x2ff   : > { %9389 = vmatpush3.bf16.msra.mxu1 %v11528_v46  ;;  %1982 = vmatprep.subr.bf16.mxu0 %v11934_v19 }
 0x300   : > { %9390 = vmatprep.subr.bf16.mxu1 %v14579_v58 }
 0x302   : > { %1983 = vmatpush1.bf16.msra.mxu0 %v11938_v61 }
 0x303   : > { %9391 = vmatpush3.bf16.msra.mxu1 %v11533_v43  ;;  %1984 = vmatprep.subr.bf16.mxu0 %v11942_v52 }
 0x304   : > { %9392 = vmatprep.subr.bf16.mxu1 %v14579_v58 }
 0x306   : > { %1985 = vmatpush1.bf16.msra.mxu0 %v11946_v30 }
 0x307   : > { %9393 = vmatpush3.bf16.msra.mxu1 %v11538_v47  ;;  %1986 = vmatprep.subr.bf16.mxu0 %v11950_v29 }
 0x308   : > { %9394 = vmatprep.subr.bf16.mxu1 %v14579_v58 }
 0x30a   : > { %1987 = vmatpush1.bf16.msra.mxu0 %v11954_v24 }
 0x30b   : > { %9395 = vmatpush3.bf16.msra.mxu1 %v11543_v50  ;;  %1988 = vmatprep.subr.bf16.mxu0 %v11958_v63 }
 0x30c   : > { %9396 = vmatprep.subr.bf16.mxu1 %v14579_v58 }
 0x30e   : > { %1989 = vmatpush1.bf16.msra.mxu0 %v11962_v7 }
 0x30f   : > { %9397 = vmatpush3.bf16.msra.mxu1 %v11548_v54  ;;  %2164 = vmatprep.subr.bf16.mxu0 %v11838_v27 }
 0x310   : > { %9402 = vmatprep.subr.bf16.mxu1 %v14579_v58 }
 0x3b1   : > { %v1818_v35 = vpop.f32.mrf.mxu0  ;;  %v1859_v36 = vpop.f32.mrf.mxu1 }
 0x3b2   : > { %v1865_v4 = vadd.f32 %v1818_v35, %v828_v1  ;;  %v1879_v35 = vadd.f32 %v11781_v44, %v1859_v36 }
 0x3b3   : > { %v1820_v5 = vpop.f32.mrf.mxu0  ;;  %v9380_v32 = vpop.f32.mrf.mxu1 }
 0x3b4   : > { %v8726_v9 = vmul.f32 -1.442695, %v1865_v4  ;;  %v1872_v11 = vadd.f32 %v1820_v5, %v830_v25 }
 0x3b5   : > { %v1822_v0 = vpop.f32.mrf.mxu0  ;;  %v1862_v10 = vpop.f32.mrf.mxu1 }
 0x3b6   : > { %10208 = vpow2.f32 %v8726_v9  ;;  %v8727_v39 = vmul.f32 -1.442695, %v1872_v11 }
 0x3b7   : > { %v1823_v15 = vpop.f32.mrf.mxu0  ;;  %v9381_v59 = vpop.f32.mrf.mxu1 }
 0x3b8   : > { %10210 = vpow2.f32 %v8727_v39  ;;  %v1892_v59 = vpop.permute.xlu0 %1891 }
 0x3c3   : > { %v10209_v23 = vpop.eup %10208 }
 0x3c4   : > { %v1869_v2 = vadd.f32 1.0, %v10209_v23  ;;  %v1965_v23 = vpop.permute.xlu1 %1964 }
 0x3c5   : > { %v10211_v33 = vpop.eup %10210  ;;  %v1967_v5 = vmul.f32 %v1965_v23, %v11898_v17 }
 0x3c6   : > { %10212 = vrcp.f32 %v1869_v2  ;;  %v1876_v1 = vadd.f32 1.0, %v10211_v33 }
 0x3c8   : > { %10214 = vrcp.f32 %v1876_v1 }
 0x3d3   : > { %v10213_v4 = vpop.eup %10212 }
 0x3d4   : > { %v1880_v32 = vmul.f32 %v10213_v4, %v1879_v35 }
 0x3d5   : > { %v10215_v37 = vpop.eup %10214 }
 0x3d6   : > { %v1881_v0 = vadd.f32 %v1880_v32, %v11678_v16  ;;  %v1883_v10 = vsub.f32 1.0, %v10215_v37  ;;  %v1885_v25 = vmul.f32 %v10215_v37, %v11898_v17 }
 0x3d8   : > { %10216 = vtanh.f32 %v1881_v0 }
 0x3e5   : > { %v10217_v15 = vpop.eup %10216 }
 0x3e6   : > { %v1884_v11 = vmul.f32 %v10217_v15, %v1883_v10 }
 0x3e8   : > { %v1886_v39 = vadd.f32 %v1885_v25, %v1884_v11 }
 0x3ea   : > { %v1894_v2 = vmul.f32 %v1892_v59, %v1886_v39  ;;  %v834_v59 = vadd.f32 %v11848_v42, %v11775_v56 }
 0x3ec   : > { %v1896_v9 = vcombine.high %v1894_v2, %v1894_v2  ;;  %v1903_v36 = vrot.slane %v1894_v2, %v11788_v8  ;;  %v11977_v33 = vadd.f32 %v1967_v5, %v1894_v2 }
 0x3ee   : > { %v1910_v16 = vrot.slane %v1896_v9, %v11788_v8  ;;  %v1911_v1 = vcombine.high %v1903_v36, %v1903_v36  ;;  %v1919_v35 = vrot.slane %v1903_v36, %v11788_v8  ;;  %8729 = vst.sshfl [vmem:[#allocation3 + $0x2] sm:$0x1 pattern:$0x73625140] %v1903_v36  ;;  %v1973_v4 = vpack.c.bf16 %v11977_v33, %v11977_v33 }
 0x3f0   : > { %v1912_v32 = vcombine.high %v1910_v16, %v1910_v16  ;;  %v1926_v0 = vrot.slane %v1910_v16, %v11788_v8  ;;  %v1933_v37 = vrot.slane %v1911_v1, %v11788_v8  ;;  %v1941_v17 = vcombine.high %v1919_v35, %v1919_v35  ;;  %8730 = vst.sshfl [vmem:[#allocation3 + $0x22] sm:$0x1 pattern:$0x73625140] %v1911_v1 }
 0x3f1   : > { %8731 = vst.sshfl [vmem:[#allocation3 + $0x82] sm:$0x1 pattern:$0x73625140] %v1910_v16  ;;  %2007 = vmatmul.mubr.bf16.vlgmr.msra.gmra.mxu0 %v1973_v4  ;;  %9399 = vmatmul.mubr.bf16.vlgmr.msra.gmra.mxu1 %v1973_v4 }
 0x3f2   : > { %2165 = vmatpush1.bf16.msra.mxu0 %v11800_v62  ;;  %v1940_v10 = vrot.slane %v1912_v32, %v11788_v8  ;;  %v1942_v15 = vcombine.high %v1926_v0, %v1926_v0  ;;  %v1943_v25 = vcombine.high %v1933_v37, %v1933_v37  ;;  %1955 = vst [vmem:[#allocation3 + $0x42] sm:$0x1] %v1941_v17  ;;  %8732 = vst.sshfl [vmem:[#allocation3 + $0xa2] sm:$0x1 pattern:$0x73625140] %v1912_v32 }
 0x3f3   : > { %9403 = vmatpush3.bf16.msra.mxu1 %v11511_v31  ;;  %2166 = vmatprep.subr.bf16.mxu0 %v11805_v12  ;;  %v832_v31 = vadd.f32 %v11846_v40, %v11760_v48 }
 0x3f4   : > { %9404 = vmatprep.subr.bf16.mxu1 %v14579_v58  ;;  %2196 = vmatprep.mubr.bf16.mxu0 %v14580_v20  ;;  %v1944_v11 = vcombine.high %v1940_v10, %v1940_v10  ;;  %1956 = vst [vmem:[#allocation3 + $0x62] sm:$0x1] %v1943_v25  ;;  %1959 = vst [vmem:[#allocation3 + $0xc2] sm:$0x1] %v1942_v15 }
 0x3f5   : > { %9418 = vmatprep.mubr.msk.bf16.mxu1 %vm10974_vm0, %v14579_v58 }
 0x3f6   : > { %2167 = vmatpush1.bf16.msra.mxu0 %v11914_v18  ;;  %1960 = vst [vmem:[#allocation3 + $0xe2] sm:$0x1] %v1944_v11  ;;  %v2082_v11 = vpop.permute.xlu0 %2081 }
 0x3f7   : > { %9405 = vmatpush3.bf16.msra.mxu1 %v11516_v38  ;;  %2168 = vmatprep.subr.bf16.mxu0 %v11918_v34 }
 0x3f8   : > { %9406 = vmatprep.subr.bf16.mxu1 %v14579_v58 }
 0x3fa   : > { %2169 = vmatpush1.bf16.msra.mxu0 %v11922_v26 }
 0x3fb   : > { %9407 = vmatpush3.bf16.msra.mxu1 %v11523_v41  ;;  %2170 = vmatprep.subr.bf16.mxu0 %v11926_v60 }
 0x3fc   : > { %9408 = vmatprep.subr.bf16.mxu1 %v14579_v58 }
 0x3fe   : > { %2171 = vmatpush1.bf16.msra.mxu0 %v11930_v6 }
 0x3ff   : > { %9409 = vmatpush3.bf16.msra.mxu1 %v11528_v46  ;;  %2172 = vmatprep.subr.bf16.mxu0 %v11934_v19 }
 0x400   : > { %9410 = vmatprep.subr.bf16.mxu1 %v14579_v58 }
 0x402   : > { %2173 = vmatpush1.bf16.msra.mxu0 %v11938_v61 }
 0x403   : > { %9411 = vmatpush3.bf16.msra.mxu1 %v11533_v43  ;;  %2174 = vmatprep.subr.bf16.mxu0 %v11942_v52 }
 0x404   : > { %9412 = vmatprep.subr.bf16.mxu1 %v14579_v58 }
 0x406   : > { %2175 = vmatpush1.bf16.msra.mxu0 %v11946_v30 }
 0x407   : > { %9413 = vmatpush3.bf16.msra.mxu1 %v11538_v47  ;;  %2176 = vmatprep.subr.bf16.mxu0 %v11950_v29 }
 0x408   : > { %9414 = vmatprep.subr.bf16.mxu1 %v14579_v58 }
 0x40a   : > { %2177 = vmatpush1.bf16.msra.mxu0 %v11954_v24 }
 0x40b   : > { %9415 = vmatpush3.bf16.msra.mxu1 %v11543_v50  ;;  %2178 = vmatprep.subr.bf16.mxu0 %v11958_v63 }
 0x40c   : > { %9416 = vmatprep.subr.bf16.mxu1 %v14579_v58 }
 0x40e   : > { %2179 = vmatpush1.bf16.msra.mxu0 %v11962_v7 }
 0x40f   : > { %9417 = vmatpush3.bf16.msra.mxu1 %v11548_v54  ;;  %2354 = vmatprep.subr.bf16.mxu0 %v11838_v27 }
 0x410   : > { %9422 = vmatprep.subr.bf16.mxu1 %v14579_v58 }
 0x4b1   : > { %v2008_v38 = vpop.f32.mrf.mxu0  ;;  %v2049_v46 = vpop.f32.mrf.mxu1 }
 0x4b2   : > { %v2055_v41 = vadd.f32 %v2008_v38, %v832_v31  ;;  %v2069_v35 = vadd.f32 %v11781_v44, %v2049_v46  ;;  %v2155_v31 = vpop.permute.xlu1 %2154 }
 0x4b3   : > { %v2010_v43 = vpop.f32.mrf.mxu0  ;;  %v9400_v50 = vpop.f32.mrf.mxu1 }
 0x4b4   : > { %v8733_v47 = vmul.f32 -1.442695, %v2055_v41  ;;  %v2062_v2 = vadd.f32 %v2010_v43, %v834_v59  ;;  %v2157_v41 = vmul.f32 %v2155_v31, %v11977_v33 }
 0x4b5   : > { %v2012_v39 = vpop.f32.mrf.mxu0  ;;  %v2052_v23 = vpop.f32.mrf.mxu1 }
 0x4b6   : > { %10218 = vpow2.f32 %v8733_v47  ;;  %v8734_v9 = vmul.f32 -1.442695, %v2062_v2 }
 0x4b7   : > { %v2013_v54 = vpop.f32.mrf.mxu0  ;;  %v9401_v5 = vpop.f32.mrf.mxu1 }
 0x4b8   : > { %10220 = vpow2.f32 %v8734_v9 }
 0x4c3   : > { %v10219_v36 = vpop.eup %10218 }
 0x4c4   : > { %v2059_v16 = vadd.f32 1.0, %v10219_v36 }
 0x4c5   : > { %v10221_v40 = vpop.eup %10220 }
 0x4c6   : > { %10222 = vrcp.f32 %v2059_v16  ;;  %v2066_v1 = vadd.f32 1.0, %v10221_v40  ;;  %v12040_v16 = vld [vmem:[#allocation4 + $0xb0] ss:$12 sps:$4 sm:$0xff]  }
 0x4c8   : > { %10224 = vrcp.f32 %v2066_v1  ;;  %v12049_v1 = vld [vmem:[#allocation4 + $0x98] ss:$12 sps:$4 sm:$0xff]  }
 0x4d3   : > { %v10223_v4 = vpop.eup %10222 }
 0x4d4   : > { %v2070_v32 = vmul.f32 %v10223_v4, %v2069_v35  ;;  %v12055_v35 = vld [vmem:[#allocation4 + $0x80] ss:$12 sps:$4 sm:$0xff]   ;;  %v12061_v4 = vld [vmem:[#allocation4 + $0x68] ss:$12 sps:$4 sm:$0xff]  }
 0x4d5   : > { %v10225_v42 = vpop.eup %10224 }
 0x4d6   : > { %v2071_v0 = vadd.f32 %v2070_v32, %v11683_v21  ;;  %v2073_v37 = vsub.f32 1.0, %v10225_v42  ;;  %v2075_v10 = vmul.f32 %v10225_v42, %v11977_v33  ;;  %v12067_v32 = vld [vmem:[#allocation4 + $0x50] ss:$12 sps:$4 sm:$0xff]   ;;  %v12079_v42 = vld [vmem:[#allocation4 + $0x20] ss:$12 sps:$4 sm:$0xff]  }
 0x4d8   : > { %10226 = vtanh.f32 %v2071_v0  ;;  %v12073_v0 = vld [vmem:[#allocation4 + $0x38] ss:$12 sps:$4 sm:$0xff]  }
 0x4e5   : > { %v10227_v17 = vpop.eup %10226 }
 0x4e6   : > { %v2074_v15 = vmul.f32 %v10227_v17, %v2073_v37  ;;  %v12085_v37 = vld [vmem:[#allocation4 + $0x8] ss:$12 sps:$4 sm:$0xff]   ;;  %v838_v17 = vadd.f32 %v11850_v45, %v11760_v48 }
 0x4e8   : > { %v2076_v25 = vadd.f32 %v2075_v10, %v2074_v15 }
 0x4ea   : > { %v2084_v38 = vmul.f32 %v2082_v11, %v2076_v25 }
 0x4ec   : > { %v2086_v43 = vcombine.high %v2084_v38, %v2084_v38  ;;  %v2093_v46 = vrot.slane %v2084_v38, %v11788_v8  ;;  %v12030_v47 = vadd.f32 %v2157_v41, %v2084_v38 }
 0x4ee   : > { %v2100_v21 = vrot.slane %v2086_v43, %v11788_v8  ;;  %v2101_v50 = vcombine.high %v2093_v46, %v2093_v46  ;;  %v2109_v39 = vrot.slane %v2093_v46, %v11788_v8  ;;  %8736 = vst.sshfl [vmem:[#allocation3 + $0x3] sm:$0x1 pattern:$0x73625140] %v2093_v46  ;;  %v2163_v59 = vpack.c.bf16 %v12030_v47, %v12030_v47 }
 0x4ef   : > { %v840_v43 = vadd.f32 %v11852_v49, %v11775_v56 }
 0x4f0   : > { %v2102_v23 = vcombine.high %v2100_v21, %v2100_v21  ;;  %v2116_v54 = vrot.slane %v2100_v21, %v11788_v8  ;;  %v2123_v2 = vrot.slane %v2101_v50, %v11788_v8  ;;  %v2131_v33 = vcombine.high %v2109_v39, %v2109_v39  ;;  %8737 = vst.sshfl [vmem:[#allocation3 + $0x23] sm:$0x1 pattern:$0x73625140] %v2101_v50 }
 0x4f1   : > { %8738 = vst.sshfl [vmem:[#allocation3 + $0x83] sm:$0x1 pattern:$0x73625140] %v2100_v21  ;;  %2197 = vmatmul.mubr.bf16.vlgmr.msra.gmra.mxu0 %v2163_v59  ;;  %9419 = vmatmul.mubr.bf16.vlgmr.msra.gmra.mxu1 %v2163_v59 }
 0x4f2   : > { %2355 = vmatpush1.bf16.msra.mxu0 %v11800_v62  ;;  %v2130_v5 = vrot.slane %v2102_v23, %v11788_v8  ;;  %v2132_v9 = vcombine.high %v2116_v54, %v2116_v54  ;;  %v2133_v36 = vcombine.high %v2123_v2, %v2123_v2  ;;  %2145 = vst [vmem:[#allocation3 + $0x43] sm:$0x1] %v2131_v33  ;;  %8739 = vst.sshfl [vmem:[#allocation3 + $0xa3] sm:$0x1 pattern:$0x73625140] %v2102_v23 }
 0x4f3   : > { %9423 = vmatpush3.bf16.msra.mxu1 %v12040_v16  ;;  %2356 = vmatprep.subr.bf16.mxu0 %v11805_v12 }
 0x4f4   : > { %9424 = vmatprep.subr.bf16.mxu1 %v14579_v58  ;;  %2386 = vmatprep.mubr.bf16.mxu0 %v14580_v20  ;;  %v2134_v40 = vcombine.high %v2130_v5, %v2130_v5  ;;  %2146 = vst [vmem:[#allocation3 + $0x63] sm:$0x1] %v2133_v36  ;;  %2149 = vst [vmem:[#allocation3 + $0xc3] sm:$0x1] %v2132_v9 }
 0x4f5   : > { %9438 = vmatprep.mubr.msk.bf16.mxu1 %vm10974_vm0, %v14579_v58 }
 0x4f6   : > { %2357 = vmatpush1.bf16.msra.mxu0 %v11914_v18  ;;  %2150 = vst [vmem:[#allocation3 + $0xe3] sm:$0x1] %v2134_v40 }
 0x4f7   : > { %9425 = vmatpush3.bf16.msra.mxu1 %v12049_v1  ;;  %2358 = vmatprep.subr.bf16.mxu0 %v11918_v34 }
 0x4f8   : > { %9426 = vmatprep.subr.bf16.mxu1 %v14579_v58 }
 0x4fa   : > { %2359 = vmatpush1.bf16.msra.mxu0 %v11922_v26 }
 0x4fb   : > { %9427 = vmatpush3.bf16.msra.mxu1 %v12055_v35  ;;  %2360 = vmatprep.subr.bf16.mxu0 %v11926_v60 }
 0x4fc   : > { %9428 = vmatprep.subr.bf16.mxu1 %v14579_v58 }
 0x4fe   : > { %2361 = vmatpush1.bf16.msra.mxu0 %v11930_v6 }
 0x4ff   : > { %9429 = vmatpush3.bf16.msra.mxu1 %v12061_v4  ;;  %2362 = vmatprep.subr.bf16.mxu0 %v11934_v19 }
 0x500   : > { %9430 = vmatprep.subr.bf16.mxu1 %v14579_v58 }
 0x502   : > { %2363 = vmatpush1.bf16.msra.mxu0 %v11938_v61 }
 0x503   : > { %9431 = vmatpush3.bf16.msra.mxu1 %v12067_v32  ;;  %2364 = vmatprep.subr.bf16.mxu0 %v11942_v52 }
 0x504   : > { %9432 = vmatprep.subr.bf16.mxu1 %v14579_v58 }
 0x506   : > { %2365 = vmatpush1.bf16.msra.mxu0 %v11946_v30 }
 0x507   : > { %9433 = vmatpush3.bf16.msra.mxu1 %v12073_v0  ;;  %2366 = vmatprep.subr.bf16.mxu0 %v11950_v29 }
 0x508   : > { %9434 = vmatprep.subr.bf16.mxu1 %v14579_v58 }
 0x50a   : > { %2367 = vmatpush1.bf16.msra.mxu0 %v11954_v24 }
 0x50b   : > { %9435 = vmatpush3.bf16.msra.mxu1 %v12079_v42  ;;  %2368 = vmatprep.subr.bf16.mxu0 %v11958_v63 }
 0x50c   : > { %9436 = vmatprep.subr.bf16.mxu1 %v14579_v58 }
 0x50e   : > { %2369 = vmatpush1.bf16.msra.mxu0 %v11962_v7 }
 0x50f   : > { %9437 = vmatpush3.bf16.msra.mxu1 %v12085_v37  ;;  %2544 = vmatprep.subr.bf16.mxu0 %v11838_v27 }
 0x510   : > { %9442 = vmatprep.subr.bf16.mxu1 %v14579_v58 }
 0x5b1   : > { %v2198_v10 = vpop.f32.mrf.mxu0  ;;  %v2239_v25 = vpop.f32.mrf.mxu1 }
 0x5b2   : > { %v2245_v15 = vadd.f32 %v2198_v10, %v838_v17  ;;  %v2259_v33 = vadd.f32 %v11781_v44, %v2239_v25 }
 0x5b3   : > { %v2200_v11 = vpop.f32.mrf.mxu0  ;;  %v9420_v38 = vpop.f32.mrf.mxu1 }
 0x5b4   : > { %v8740_v31 = vmul.f32 -1.442695, %v2245_v15  ;;  %v2252_v50 = vadd.f32 %v2200_v11, %v840_v43  ;;  %v2345_v38 = vpop.permute.xlu1 %2344 }
 0x5b5   : > { %v2202_v41 = vpop.f32.mrf.mxu0  ;;  %v2242_v46 = vpop.f32.mrf.mxu1  ;;  %v2347_v43 = vmul.f32 %v2345_v38, %v12030_v47 }
 0x5b6   : > { %10228 = vpow2.f32 %v8740_v31  ;;  %v8741_v59 = vmul.f32 -1.442695, %v2252_v50  ;;  %v2272_v31 = vpop.permute.xlu0 %2271 }
 0x5b7   : > { %v2203_v21 = vpop.f32.mrf.mxu0  ;;  %v9421_v39 = vpop.f32.mrf.mxu1 }
 0x5b8   : > { %10230 = vpow2.f32 %v8741_v59 }
 0x5c3   : > { %v10229_v23 = vpop.eup %10228 }
 0x5c4   : > { %v2249_v54 = vadd.f32 1.0, %v10229_v23 }
 0x5c5   : > { %v10231_v45 = vpop.eup %10230 }
 0x5c6   : > { %10232 = vrcp.f32 %v2249_v54  ;;  %v2256_v2 = vadd.f32 1.0, %v10231_v45 }
 0x5c8   : > { %10234 = vrcp.f32 %v2256_v2 }
 0x5d3   : > { %v10233_v5 = vpop.eup %10232 }
 0x5d4   : > { %v2260_v9 = vmul.f32 %v10233_v5, %v2259_v33 }
 0x5d5   : > { %v10235_v49 = vpop.eup %10234 }
 0x5d6   : > { %v2261_v36 = vadd.f32 %v2260_v9, %v11691_v14  ;;  %v2263_v40 = vsub.f32 1.0, %v10235_v49  ;;  %v2265_v10 = vmul.f32 %v10235_v49, %v12030_v47  ;;  %v842_v9 = vadd.f32 %v11854_v51, %v11760_v48 }
 0x5d8   : > { %10236 = vtanh.f32 %v2261_v36 }
 0x5e5   : > { %v10237_v17 = vpop.eup %10236 }
 0x5e6   : > { %v2264_v15 = vmul.f32 %v10237_v17, %v2263_v40 }
 0x5e8   : > { %v2266_v11 = vadd.f32 %v2265_v10, %v2264_v15 }
 0x5ea   : > { %v2274_v41 = vmul.f32 %v2272_v31, %v2266_v11  ;;  %v844_v31 = vadd.f32 %v11856_v53, %v11775_v56 }
 0x5ec   : > { %v2276_v46 = vcombine.high %v2274_v41, %v2274_v41  ;;  %v2283_v44 = vrot.slane %v2274_v41, %v11788_v8  ;;  %v12099_v25 = vadd.f32 %v2347_v43, %v2274_v41 }
 0x5ee   : > { %v2290_v14 = vrot.slane %v2276_v46, %v11788_v8  ;;  %v2291_v21 = vcombine.high %v2283_v44, %v2283_v44  ;;  %v2299_v50 = vrot.slane %v2283_v44, %v11788_v8  ;;  %8743 = vst.sshfl [vmem:[#allocation3 + $0x4] sm:$0x1 pattern:$0x73625140] %v2283_v44  ;;  %v2353_v39 = vpack.c.bf16 %v12099_v25, %v12099_v25 }
 0x5f0   : > { %v2292_v59 = vcombine.high %v2290_v14, %v2290_v14  ;;  %v2306_v23 = vrot.slane %v2290_v14, %v11788_v8  ;;  %v2313_v54 = vrot.slane %v2291_v21, %v11788_v8  ;;  %v2321_v47 = vcombine.high %v2299_v50, %v2299_v50  ;;  %8744 = vst.sshfl [vmem:[#allocation3 + $0x24] sm:$0x1 pattern:$0x73625140] %v2291_v21 }
 0x5f1   : > { %8745 = vst.sshfl [vmem:[#allocation3 + $0x84] sm:$0x1 pattern:$0x73625140] %v2290_v14  ;;  %2387 = vmatmul.mubr.bf16.vlgmr.msra.gmra.mxu0 %v2353_v39  ;;  %9439 = vmatmul.mubr.bf16.vlgmr.msra.gmra.mxu1 %v2353_v39  ;;  %v12150_v39 = vld [vmem:[%s14424_s6] ss:$0 sm:$0xff] }
 0x5f2   : > { %2545 = vmatpush1.bf16.msra.mxu0 %v11800_v62  ;;  %v2320_v45 = vrot.slane %v2292_v59, %v11788_v8  ;;  %v2322_v2 = vcombine.high %v2306_v23, %v2306_v23  ;;  %v2323_v33 = vcombine.high %v2313_v54, %v2313_v54  ;;  %2335 = vst [vmem:[#allocation3 + $0x44] sm:$0x1] %v2321_v47  ;;  %8746 = vst.sshfl [vmem:[#allocation3 + $0xa4] sm:$0x1 pattern:$0x73625140] %v2292_v59 }
 0x5f3   : > { %9443 = vmatpush3.bf16.msra.mxu1 %v12040_v16  ;;  %2546 = vmatprep.subr.bf16.mxu0 %v11805_v12  ;;  %v1030_v23 = vadd.f32 %v11696_v13, %v11673_v22 }
 0x5f4   : > { %9444 = vmatprep.subr.bf16.mxu1 %v14579_v58  ;;  %2576 = vmatprep.mubr.bf16.mxu0 %v14580_v20  ;;  %v2324_v5 = vcombine.high %v2320_v45, %v2320_v45  ;;  %2336 = vst [vmem:[#allocation3 + $0x64] sm:$0x1] %v2323_v33  ;;  %2339 = vst [vmem:[#allocation3 + $0xc4] sm:$0x1] %v2322_v2 }
 0x5f5   : > { %9458 = vmatprep.mubr.msk.bf16.mxu1 %vm10974_vm0, %v14579_v58 }
 0x5f6   : > { %2547 = vmatpush1.bf16.msra.mxu0 %v11914_v18  ;;  %2340 = vst [vmem:[#allocation3 + $0xe4] sm:$0x1] %v2324_v5 }
 0x5f7   : > { %9445 = vmatpush3.bf16.msra.mxu1 %v12049_v1  ;;  %2548 = vmatprep.subr.bf16.mxu0 %v11918_v34 }
 0x5f8   : > { %9446 = vmatprep.subr.bf16.mxu1 %v14579_v58 }
 0x5fa   : > { %2549 = vmatpush1.bf16.msra.mxu0 %v11922_v26 }
 0x5fb   : > { %9447 = vmatpush3.bf16.msra.mxu1 %v12055_v35  ;;  %2550 = vmatprep.subr.bf16.mxu0 %v11926_v60 }
 0x5fc   : > { %9448 = vmatprep.subr.bf16.mxu1 %v14579_v58 }
 0x5fe   : > { %2551 = vmatpush1.bf16.msra.mxu0 %v11930_v6 }
 0x5ff   : > { %9449 = vmatpush3.bf16.msra.mxu1 %v12061_v4  ;;  %2552 = vmatprep.subr.bf16.mxu0 %v11934_v19 }
 0x600   : > { %9450 = vmatprep.subr.bf16.mxu1 %v14579_v58 }
 0x602   : > { %2553 = vmatpush1.bf16.msra.mxu0 %v11938_v61 }
 0x603   : > { %9451 = vmatpush3.bf16.msra.mxu1 %v12067_v32  ;;  %2554 = vmatprep.subr.bf16.mxu0 %v11942_v52 }
 0x604   : > { %9452 = vmatprep.subr.bf16.mxu1 %v14579_v58 }
 0x606   : > { %2555 = vmatpush1.bf16.msra.mxu0 %v11946_v30 }
 0x607   : > { %9453 = vmatpush3.bf16.msra.mxu1 %v12073_v0  ;;  %2556 = vmatprep.subr.bf16.mxu0 %v11950_v29 }
 0x608   : > { %9454 = vmatprep.subr.bf16.mxu1 %v14579_v58 }
 0x60a   : > { %2557 = vmatpush1.bf16.msra.mxu0 %v11954_v24 }
 0x60b   : > { %9455 = vmatpush3.bf16.msra.mxu1 %v12079_v42  ;;  %2558 = vmatprep.subr.bf16.mxu0 %v11958_v63 }
 0x60c   : > { %9456 = vmatprep.subr.bf16.mxu1 %v14579_v58 }
 0x60e   : > { %2559 = vmatpush1.bf16.msra.mxu0 %v11962_v7 }
 0x60f   : > { %9457 = vmatpush3.bf16.msra.mxu1 %v12085_v37  ;;  %2734 = vmatprep.subr.bf16.mxu0 %v11838_v27 }
 0x610   : > { %9462 = vmatprep.subr.bf16.mxu1 %v14579_v58 }
 0x6b1   : > { %v2388_v36 = vpop.f32.mrf.mxu0  ;;  %v2429_v40 = vpop.f32.mrf.mxu1 }
 0x6b2   : > { %v2435_v49 = vadd.f32 %v2388_v36, %v842_v9  ;;  %v2449_v59 = vadd.f32 %v12150_v39, %v2429_v40 }
 0x6b3   : > { %v2390_v17 = vpop.f32.mrf.mxu0  ;;  %v9440_v15 = vpop.f32.mrf.mxu1 }
 0x6b4   : > { %v8747_v10 = vmul.f32 -1.442695, %v2435_v49  ;;  %v2442_v43 = vadd.f32 %v2390_v17, %v844_v31  ;;  %v2462_v49 = vpop.permute.xlu0 %2461  ;;  %v2535_v17 = vpop.permute.xlu1 %2534 }
 0x6b5   : > { %v2392_v11 = vpop.f32.mrf.mxu0  ;;  %v2432_v38 = vpop.f32.mrf.mxu1  ;;  %v2537_v40 = vmul.f32 %v2535_v17, %v12099_v25 }
 0x6b6   : > { %10238 = vpow2.f32 %v8747_v10  ;;  %v8748_v44 = vmul.f32 -1.442695, %v2442_v43 }
 0x6b7   : > { %v2393_v41 = vpop.f32.mrf.mxu0  ;;  %v9441_v46 = vpop.f32.mrf.mxu1 }
 0x6b8   : > { %10240 = vpow2.f32 %v8748_v44 }
 0x6c3   : > { %v10239_v14 = vpop.eup %10238 }
 0x6c4   : > { %v2439_v21 = vadd.f32 1.0, %v10239_v14 }
 0x6c5   : > { %v10241_v51 = vpop.eup %10240 }
 0x6c6   : > { %10242 = vrcp.f32 %v2439_v21  ;;  %v2446_v50 = vadd.f32 1.0, %v10241_v51 }
 0x6c8   : > { %10244 = vrcp.f32 %v2446_v50 }
 0x6d3   : > { %v10243_v53 = vpop.eup %10242 }
 0x6d4   : > { %v2450_v54 = vmul.f32 %v10243_v53, %v2449_v59 }
 0x6d5   : > { %v10245_v45 = vpop.eup %10244 }
 0x6d6   : > { %v2451_v47 = vadd.f32 %v2450_v54, %v1030_v23  ;;  %v2453_v2 = vsub.f32 1.0, %v10245_v45  ;;  %v2455_v5 = vmul.f32 %v10245_v45, %v12099_v25 }
 0x6d8   : > { %10246 = vtanh.f32 %v2451_v47 }
 0x6e5   : > { %v10247_v33 = vpop.eup %10246 }
 0x6e6   : > { %v2454_v9 = vmul.f32 %v10247_v33, %v2453_v2  ;;  %v850_v33 = vadd.f32 %v11860_v57, %v11775_v56 }
 0x6e8   : > { %v2456_v36 = vadd.f32 %v2455_v5, %v2454_v9 }
 0x6ea   : > { %v2464_v10 = vmul.f32 %v2462_v49, %v2456_v36 }
 0x6ec   : > { %v2466_v15 = vcombine.high %v2464_v10, %v2464_v10  ;;  %v2473_v11 = vrot.slane %v2464_v10, %v11788_v8  ;;  %v12158_v13 = vadd.f32 %v2537_v40, %v2464_v10 }
 0x6ee   : > { %v2480_v31 = vrot.slane %v2466_v15, %v11788_v8  ;;  %v2481_v38 = vcombine.high %v2473_v11, %v2473_v11  ;;  %v2489_v41 = vrot.slane %v2473_v11, %v11788_v8  ;;  %8750 = vst.sshfl [vmem:[#allocation3 + $0x5] sm:$0x1 pattern:$0x73625140] %v2473_v11  ;;  %v2543_v43 = vpack.c.bf16 %v12158_v13, %v12158_v13 }
 0x6f0   : > { %v2482_v46 = vcombine.high %v2480_v31, %v2480_v31  ;;  %v2496_v44 = vrot.slane %v2480_v31, %v11788_v8  ;;  %v2503_v14 = vrot.slane %v2481_v38, %v11788_v8  ;;  %v2511_v25 = vcombine.high %v2489_v41, %v2489_v41  ;;  %8751 = vst.sshfl [vmem:[#allocation3 + $0x25] sm:$0x1 pattern:$0x73625140] %v2481_v38 }
 0x6f1   : > { %8752 = vst.sshfl [vmem:[#allocation3 + $0x85] sm:$0x1 pattern:$0x73625140] %v2480_v31  ;;  %2577 = vmatmul.mubr.bf16.vlgmr.msra.gmra.mxu0 %v2543_v43  ;;  %9459 = vmatmul.mubr.bf16.vlgmr.msra.gmra.mxu1 %v2543_v43 }
 0x6f2   : > { %2735 = vmatpush1.bf16.msra.mxu0 %v11800_v62  ;;  %v2510_v21 = vrot.slane %v2482_v46, %v11788_v8  ;;  %v2512_v51 = vcombine.high %v2496_v44, %v2496_v44  ;;  %v2513_v50 = vcombine.high %v2503_v14, %v2503_v14  ;;  %2525 = vst [vmem:[#allocation3 + $0x45] sm:$0x1] %v2511_v25  ;;  %8753 = vst.sshfl [vmem:[#allocation3 + $0xa5] sm:$0x1 pattern:$0x73625140] %v2482_v46  ;;  %v2652_v25 = vpop.permute.xlu0 %2651 }
 0x6f3   : > { %9463 = vmatpush3.bf16.msra.mxu1 %v12040_v16  ;;  %2736 = vmatprep.subr.bf16.mxu0 %v11805_v12  ;;  %v848_v62 = vadd.f32 %v11858_v55, %v11760_v48 }
 0x6f4   : > { %9464 = vmatprep.subr.bf16.mxu1 %v14579_v58  ;;  %2766 = vmatprep.mubr.bf16.mxu0 %v14580_v20  ;;  %v2514_v59 = vcombine.high %v2510_v21, %v2510_v21  ;;  %2526 = vst [vmem:[#allocation3 + $0x65] sm:$0x1] %v2513_v50  ;;  %2529 = vst [vmem:[#allocation3 + $0xc5] sm:$0x1] %v2512_v51  ;;  %v2725_v21 = vpop.permute.xlu1 %2724 }
 0x6f5   : > { %9478 = vmatprep.mubr.msk.bf16.mxu1 %vm10974_vm0, %v14579_v58  ;;  %v2727_v50 = vmul.f32 %v2725_v21, %v12158_v13 }
 0x6f6   : > { %2737 = vmatpush1.bf16.msra.mxu0 %v11914_v18  ;;  %2530 = vst [vmem:[#allocation3 + $0xe5] sm:$0x1] %v2514_v59 }
 0x6f7   : > { %9465 = vmatpush3.bf16.msra.mxu1 %v12049_v1  ;;  %2738 = vmatprep.subr.bf16.mxu0 %v11918_v34 }
 0x6f8   : > { %9466 = vmatprep.subr.bf16.mxu1 %v14579_v58 }
 0x6fa   : > { %2739 = vmatpush1.bf16.msra.mxu0 %v11922_v26 }
 0x6fb   : > { %9467 = vmatpush3.bf16.msra.mxu1 %v12055_v35  ;;  %2740 = vmatprep.subr.bf16.mxu0 %v11926_v60 }
 0x6fc   : > { %9468 = vmatprep.subr.bf16.mxu1 %v14579_v58 }
 0x6fe   : > { %2741 = vmatpush1.bf16.msra.mxu0 %v11930_v6 }
 0x6ff   : > { %9469 = vmatpush3.bf16.msra.mxu1 %v12061_v4  ;;  %2742 = vmatprep.subr.bf16.mxu0 %v11934_v19 }
 0x700   : > { %9470 = vmatprep.subr.bf16.mxu1 %v14579_v58 }
 0x702   : > { %2743 = vmatpush1.bf16.msra.mxu0 %v11938_v61 }
 0x703   : > { %9471 = vmatpush3.bf16.msra.mxu1 %v12067_v32  ;;  %2744 = vmatprep.subr.bf16.mxu0 %v11942_v52 }
 0x704   : > { %9472 = vmatprep.subr.bf16.mxu1 %v14579_v58 }
 0x706   : > { %2745 = vmatpush1.bf16.msra.mxu0 %v11946_v30 }
 0x707   : > { %9473 = vmatpush3.bf16.msra.mxu1 %v12073_v0  ;;  %2746 = vmatprep.subr.bf16.mxu0 %v11950_v29 }
 0x708   : > { %9474 = vmatprep.subr.bf16.mxu1 %v14579_v58 }
 0x70a   : > { %2747 = vmatpush1.bf16.msra.mxu0 %v11954_v24 }
 0x70b   : > { %9475 = vmatpush3.bf16.msra.mxu1 %v12079_v42  ;;  %2748 = vmatprep.subr.bf16.mxu0 %v11958_v63 }
 0x70c   : > { %9476 = vmatprep.subr.bf16.mxu1 %v14579_v58 }
 0x70e   : > { %2749 = vmatpush1.bf16.msra.mxu0 %v11962_v7 }
 0x70f   : > { %9477 = vmatpush3.bf16.msra.mxu1 %v12085_v37  ;;  %2924 = vmatprep.subr.bf16.mxu0 %v11838_v27 }
 0x710   : > { %9482 = vmatprep.subr.bf16.mxu1 %v14579_v58 }
 0x7b1   : > { %v2578_v12 = vpop.f32.mrf.mxu0  ;;  %v2619_v23 = vpop.f32.mrf.mxu1 }
 0x7b2   : > { %v2625_v53 = vadd.f32 %v2578_v12, %v848_v62  ;;  %v2639_v15 = vadd.f32 %v12150_v39, %v2619_v23 }
 0x7b3   : > { %v2580_v54 = vpop.f32.mrf.mxu0  ;;  %v9460_v45 = vpop.f32.mrf.mxu1 }
 0x7b4   : > { %v8754_v47 = vmul.f32 -1.442695, %v2625_v53  ;;  %v2632_v36 = vadd.f32 %v2580_v54, %v850_v33  ;;  %v12219_v33 = vld [vmem:[#allocation4 + $0xa8] ss:$12 sps:$4 sm:$0xff]  }
 0x7b5   : > { %v2582_v2 = vpop.f32.mrf.mxu0  ;;  %v2622_v5 = vpop.f32.mrf.mxu1 }
 0x7b6   : > { %10248 = vpow2.f32 %v8754_v47  ;;  %v8755_v49 = vmul.f32 -1.442695, %v2632_v36 }
 0x7b7   : > { %v2583_v9 = vpop.f32.mrf.mxu0  ;;  %v9461_v27 = vpop.f32.mrf.mxu1 }
 0x7b8   : > { %10250 = vpow2.f32 %v8755_v49  ;;  %v12224_v27 = vld [vmem:[#allocation4 + $0x94] ss:$12 sps:$4 sm:$0xff]  }
 0x7c3   : > { %v10249_v17 = vpop.eup %10248 }
 0x7c4   : > { %v2629_v10 = vadd.f32 1.0, %v10249_v17 }
 0x7c5   : > { %v10251_v55 = vpop.eup %10250 }
 0x7c6   : > { %10252 = vrcp.f32 %v2629_v10  ;;  %v2636_v40 = vadd.f32 1.0, %v10251_v55 }
 0x7c8   : > { %10254 = vrcp.f32 %v2636_v40 }
 0x7d3   : > { %v10253_v11 = vpop.eup %10252 }
 0x7d4   : > { %v2640_v31 = vmul.f32 %v10253_v11, %v2639_v15 }
 0x7d5   : > { %v10255_v57 = vpop.eup %10254 }
 0x7d6   : > { %v2641_v38 = vadd.f32 %v2640_v31, %v11688_v28  ;;  %v2643_v41 = vsub.f32 1.0, %v10255_v57  ;;  %v2645_v46 = vmul.f32 %v10255_v57, %v12158_v13 }
 0x7d8   : > { %10256 = vtanh.f32 %v2641_v38 }
 0x7e5   : > { %v10257_v43 = vpop.eup %10256 }
 0x7e6   : > { %v2644_v44 = vmul.f32 %v10257_v43, %v2643_v41  ;;  %v14595_v41 = vld [vmem:[#allocation60_spill] sm:$0xff] }
 0x7e8   : > { %v2646_v14 = vadd.f32 %v2645_v46, %v2644_v44 }
 0x7ea   : > { %v2654_v51 = vmul.f32 %v2652_v25, %v2646_v14 }
 0x7ec   : > { %v2656_v59 = vcombine.high %v2654_v51, %v2654_v51  ;;  %v2663_v62 = vrot.slane %v2654_v51, %v11788_v8  ;;  %v12211_v12 = vadd.f32 %v2727_v50, %v2654_v51  ;;  %v2842_v50 = vpop.permute.xlu0 %2841 }
 0x7ee   : > { %v2670_v28 = vrot.slane %v2656_v59, %v11788_v8  ;;  %v2671_v53 = vcombine.high %v2663_v62, %v2663_v62  ;;  %v2679_v23 = vrot.slane %v2663_v62, %v11788_v8  ;;  %8757 = vst.sshfl [vmem:[#allocation3 + $0x6] sm:$0x1 pattern:$0x73625140] %v2663_v62  ;;  %v2733_v54 = vpack.c.bf16 %v12211_v12, %v12211_v12  ;;  %v2915_v59 = vpop.permute.xlu1 %2914 }
 0x7f0   : > { %v2672_v47 = vcombine.high %v2670_v28, %v2670_v28  ;;  %v2686_v45 = vrot.slane %v2670_v28, %v11788_v8  ;;  %v2693_v2 = vrot.slane %v2671_v53, %v11788_v8  ;;  %v2701_v13 = vcombine.high %v2679_v23, %v2679_v23  ;;  %8758 = vst.sshfl [vmem:[#allocation3 + $0x26] sm:$0x1 pattern:$0x73625140] %v2671_v53 }
 0x7f1   : > { %8759 = vst.sshfl [vmem:[#allocation3 + $0x86] sm:$0x1 pattern:$0x73625140] %v2670_v28  ;;  %2767 = vmatmul.mubr.bf16.vlgmr.msra.gmra.mxu0 %v2733_v54  ;;  %9479 = vmatmul.mubr.bf16.vlgmr.msra.gmra.mxu1 %v2733_v54  ;;  %v2917_v28 = vmul.f32 %v2915_v59, %v12211_v12 }
 0x7f2   : > { %2925 = vmatpush1.bf16.msra.mxu0 %v12219_v33  ;;  %v2700_v5 = vrot.slane %v2672_v47, %v11788_v8  ;;  %v2702_v9 = vcombine.high %v2686_v45, %v2686_v45  ;;  %v2703_v36 = vcombine.high %v2693_v2, %v2693_v2  ;;  %2715 = vst [vmem:[#allocation3 + $0x46] sm:$0x1] %v2701_v13  ;;  %8760 = vst.sshfl [vmem:[#allocation3 + $0xa6] sm:$0x1 pattern:$0x73625140] %v2672_v47 }
 0x7f3   : > { %9483 = vmatpush3.bf16.msra.mxu1 %v12040_v16  ;;  %2926 = vmatprep.subr.bf16.mxu0 %v12224_v27 }
 0x7f4   : > { %9484 = vmatprep.subr.bf16.mxu1 %v14579_v58  ;;  %2956 = vmatprep.mubr.bf16.mxu0 %v14580_v20  ;;  %v2704_v49 = vcombine.high %v2700_v5, %v2700_v5  ;;  %2716 = vst [vmem:[#allocation3 + $0x66] sm:$0x1] %v2703_v36  ;;  %2719 = vst [vmem:[#allocation3 + $0xc6] sm:$0x1] %v2702_v9 }
 0x7f5   : > { %9498 = vmatprep.mubr.msk.bf16.mxu1 %vm10974_vm0, %v14579_v58 }
 0x7f6   : > { %2927 = vmatpush1.bf16.msra.mxu0 %v11914_v18  ;;  %2720 = vst [vmem:[#allocation3 + $0xe6] sm:$0x1] %v2704_v49  ;;  %v12257_v18 = vld [vmem:[#allocation4 + $0xac] ss:$12 sps:$4 sm:$0xff]  }
 0x7f7   : > { %9485 = vmatpush3.bf16.msra.mxu1 %v12049_v1  ;;  %2928 = vmatprep.subr.bf16.mxu0 %v11918_v34  ;;  %v852_v34 = vadd.f32 %v11862_v3, %v11760_v48 }
 0x7f8   : > { %9486 = vmatprep.subr.bf16.mxu1 %v14579_v58 }
 0x7fa   : > { %2929 = vmatpush1.bf16.msra.mxu0 %v11922_v26 }
 0x7fb   : > { %9487 = vmatpush3.bf16.msra.mxu1 %v12055_v35  ;;  %2930 = vmatprep.subr.bf16.mxu0 %v11926_v60 }
 0x7fc   : > { %9488 = vmatprep.subr.bf16.mxu1 %v14579_v58 }
 0x7fe   : > { %2931 = vmatpush1.bf16.msra.mxu0 %v11930_v6 }
 0x7ff   : > { %9489 = vmatpush3.bf16.msra.mxu1 %v12061_v4  ;;  %2932 = vmatprep.subr.bf16.mxu0 %v11934_v19 }
 0x800   : > { %9490 = vmatprep.subr.bf16.mxu1 %v14579_v58 }
 0x802   : > { %2933 = vmatpush1.bf16.msra.mxu0 %v11938_v61 }
 0x803   : > { %9491 = vmatpush3.bf16.msra.mxu1 %v12067_v32  ;;  %2934 = vmatprep.subr.bf16.mxu0 %v11942_v52 }
 0x804   : > { %9492 = vmatprep.subr.bf16.mxu1 %v14579_v58 }
 0x806   : > { %2935 = vmatpush1.bf16.msra.mxu0 %v11946_v30 }
 0x807   : > { %9493 = vmatpush3.bf16.msra.mxu1 %v12073_v0  ;;  %2936 = vmatprep.subr.bf16.mxu0 %v11950_v29  ;;  %v14594_v29 = vld [vmem:[#allocation85_spill] sm:$0xff] }
 0x808   : > { %9494 = vmatprep.subr.bf16.mxu1 %v14579_v58 }
 0x80a   : > { %2937 = vmatpush1.bf16.msra.mxu0 %v11954_v24  ;;  %v854_v24 = vadd.f32 %v14594_v29, %v11775_v56  ;;  %v12306_v29 = vld [vmem:[#allocation4 + $0x4c] ss:$12 sps:$4 sm:$0xff]  }
 0x80b   : > { %9495 = vmatpush3.bf16.msra.mxu1 %v12079_v42  ;;  %2938 = vmatprep.subr.bf16.mxu0 %v11958_v63 }
 0x80c   : > { %9496 = vmatprep.subr.bf16.mxu1 %v14579_v58 }
 0x80e   : > { %2939 = vmatpush1.bf16.msra.mxu0 %v11962_v7 }
 0x80f   : > { %9497 = vmatpush3.bf16.msra.mxu1 %v12085_v37  ;;  %3114 = vmatprep.subr.bf16.mxu0 %v12257_v18 }
 0x810   : > { %9502 = vmatprep.subr.bf16.mxu1 %v14579_v58 }
 0x8b1   : > { %v2768_v26 = vpop.f32.mrf.mxu0  ;;  %v2809_v6 = vpop.f32.mrf.mxu1 }
 0x8b2   : > { %v2815_v60 = vadd.f32 %v2768_v26, %v852_v34  ;;  %v2829_v31 = vadd.f32 %v12150_v39, %v2809_v6  ;;  %v12286_v6 = vld [vmem:[#allocation4 + $0x90] ss:$12 sps:$4 sm:$0xff]  }
 0x8b3   : > { %v2770_v19 = vpop.f32.mrf.mxu0  ;;  %v9480_v52 = vpop.f32.mrf.mxu1 }
 0x8b4   : > { %v8761_v61 = vmul.f32 -1.442695, %v2815_v60  ;;  %v2822_v17 = vadd.f32 %v2770_v19, %v854_v24  ;;  %v12290_v19 = vld [vmem:[#allocation4 + $0x7c] ss:$12 sps:$4 sm:$0xff]   ;;  %v12298_v52 = vld [vmem:[#allocation4 + $0x64] ss:$12 sps:$4 sm:$0xff]  }
 0x8b5   : > { %v2772_v30 = vpop.f32.mrf.mxu0  ;;  %v2812_v63 = vpop.f32.mrf.mxu1  ;;  %v12310_v24 = vld [vmem:[#allocation4 + $0x48] ss:$12 sps:$4 sm:$0xff]  }
 0x8b6   : > { %10258 = vpow2.f32 %v8761_v61  ;;  %v8762_v55 = vmul.f32 -1.442695, %v2822_v17  ;;  %v12294_v61 = vld [vmem:[#allocation4 + $0x78] ss:$12 sps:$4 sm:$0xff]   ;;  %v12302_v30 = vld [vmem:[#allocation4 + $0x60] ss:$12 sps:$4 sm:$0xff]  }
 0x8b7   : > { %v2773_v7 = vpop.f32.mrf.mxu0  ;;  %v9481_v10 = vpop.f32.mrf.mxu1  ;;  %v12314_v63 = vld [vmem:[#allocation4 + $0x34] ss:$12 sps:$4 sm:$0xff]   ;;  %v12322_v17 = vld [vmem:[#allocation4 + $0x1c] ss:$12 sps:$4 sm:$0xff]  }
 0x8b8   : > { %10260 = vpow2.f32 %v8762_v55  ;;  %v12318_v7 = vld [vmem:[#allocation4 + $0x30] ss:$12 sps:$4 sm:$0xff]   ;;  %v12326_v10 = vld [vmem:[#allocation4 + $0x18] ss:$12 sps:$4 sm:$0xff]  }
 0x8b9   : > { %v12330_v55 = vld [vmem:[#allocation4 + $0x4] ss:$12 sps:$4 sm:$0xff]  }
 0x8c3   : > { %v10259_v40 = vpop.eup %10258 }
 0x8c4   : > { %v2819_v15 = vadd.f32 1.0, %v10259_v40  ;;  %v12334_v40 = vld [vmem:[#allocation4] ss:$12 sps:$4 sm:$0xff]  }
 0x8c5   : > { %v10261_v3 = vpop.eup %10260 }
 0x8c6   : > { %10262 = vrcp.f32 %v2819_v15  ;;  %v2826_v11 = vadd.f32 1.0, %v10261_v3  ;;  %v14596_v15 = vld [vmem:[#allocation86_spill] sm:$0xff] }
 0x8c7   : > { %v858_v3 = vadd.f32 %v14596_v15, %v11760_v48  ;;  %v3105_v15 = vpop.permute.xlu1 %3104 }
 0x8c8   : > { %10264 = vrcp.f32 %v2826_v11 }
 0x8d3   : > { %v10263_v38 = vpop.eup %10262 }
 0x8d4   : > { %v2830_v57 = vmul.f32 %v10263_v38, %v2829_v31 }
 0x8d5   : > { %v10265_v46 = vpop.eup %10264 }
 0x8d6   : > { %v2831_v43 = vadd.f32 %v2830_v57, %v14595_v41  ;;  %v2833_v44 = vsub.f32 1.0, %v10265_v46  ;;  %v2835_v25 = vmul.f32 %v10265_v46, %v12211_v12 }
 0x8d8   : > { %10266 = vtanh.f32 %v2831_v43 }
 0x8e5   : > { %v10267_v14 = vpop.eup %10266 }
 0x8e6   : > { %v2834_v21 = vmul.f32 %v10267_v14, %v2833_v44  ;;  %v14597_v44 = vld [vmem:[#allocation87_spill] sm:$0xff] }
 0x8e7   : > { %v860_v14 = vadd.f32 %v14597_v44, %v11775_v56 }
 0x8e8   : > { %v2836_v51 = vadd.f32 %v2835_v25, %v2834_v21 }
 0x8ea   : > { %v2844_v62 = vmul.f32 %v2842_v50, %v2836_v51 }
 0x8ec   : > { %v2846_v53 = vcombine.high %v2844_v62, %v2844_v62  ;;  %v2853_v23 = vrot.slane %v2844_v62, %v11788_v8  ;;  %v12270_v54 = vadd.f32 %v2917_v28, %v2844_v62 }
 0x8ee   : > { %v2860_v47 = vrot.slane %v2846_v53, %v11788_v8  ;;  %v2861_v45 = vcombine.high %v2853_v23, %v2853_v23  ;;  %v2869_v2 = vrot.slane %v2853_v23, %v11788_v8  ;;  %8764 = vst.sshfl [vmem:[#allocation3 + $0x7] sm:$0x1 pattern:$0x73625140] %v2853_v23  ;;  %v2923_v13 = vpack.c.bf16 %v12270_v54, %v12270_v54 }
 0x8f0   : > { %v2862_v5 = vcombine.high %v2860_v47, %v2860_v47  ;;  %v2876_v9 = vrot.slane %v2860_v47, %v11788_v8  ;;  %v2883_v36 = vrot.slane %v2861_v45, %v11788_v8  ;;  %v2891_v12 = vcombine.high %v2869_v2, %v2869_v2  ;;  %8765 = vst.sshfl [vmem:[#allocation3 + $0x27] sm:$0x1 pattern:$0x73625140] %v2861_v45 }
 0x8f1   : > { %8766 = vst.sshfl [vmem:[#allocation3 + $0x87] sm:$0x1 pattern:$0x73625140] %v2860_v47  ;;  %2957 = vmatmul.mubr.bf16.vlgmr.msra.gmra.mxu0 %v2923_v13  ;;  %9499 = vmatmul.mubr.bf16.vlgmr.msra.gmra.mxu1 %v2923_v13  ;;  %v14598_v13 = vld [vmem:[#allocation62_spill] sm:$0xff] }
 0x8f2   : > { %3115 = vmatpush1.bf16.msra.mxu0 %v12219_v33  ;;  %v2890_v49 = vrot.slane %v2862_v5, %v11788_v8  ;;  %v2892_v34 = vcombine.high %v2876_v9, %v2876_v9  ;;  %v2893_v26 = vcombine.high %v2883_v36, %v2883_v36  ;;  %2905 = vst [vmem:[#allocation3 + $0x47] sm:$0x1] %v2891_v12  ;;  %8767 = vst.sshfl [vmem:[#allocation3 + $0xa7] sm:$0x1 pattern:$0x73625140] %v2862_v5 }
 0x8f3   : > { %9503 = vmatpush3.bf16.msra.mxu1 %v12040_v16  ;;  %3116 = vmatprep.subr.bf16.mxu0 %v12224_v27 }
 0x8f4   : > { %9504 = vmatprep.subr.bf16.mxu1 %v14579_v58  ;;  %3146 = vmatprep.mubr.bf16.mxu0 %v14580_v20  ;;  %v2894_v60 = vcombine.high %v2890_v49, %v2890_v49  ;;  %2906 = vst [vmem:[#allocation3 + $0x67] sm:$0x1] %v2893_v26  ;;  %2909 = vst [vmem:[#allocation3 + $0xc7] sm:$0x1] %v2892_v34 }
 0x8f5   : > { %9518 = vmatprep.mubr.msk.bf16.mxu1 %vm10974_vm0, %v14579_v58 }
 0x8f6   : > { %3117 = vmatpush1.bf16.msra.mxu0 %v12286_v6  ;;  %2910 = vst [vmem:[#allocation3 + $0xe7] sm:$0x1] %v2894_v60  ;;  %v3032_v60 = vpop.permute.xlu0 %3031 }
 0x8f7   : > { %9505 = vmatpush3.bf16.msra.mxu1 %v12049_v1  ;;  %3118 = vmatprep.subr.bf16.mxu0 %v12290_v19 }
 0x8f8   : > { %9506 = vmatprep.subr.bf16.mxu1 %v14579_v58 }
 0x8fa   : > { %3119 = vmatpush1.bf16.msra.mxu0 %v12294_v61 }
 0x8fb   : > { %9507 = vmatpush3.bf16.msra.mxu1 %v12055_v35  ;;  %3120 = vmatprep.subr.bf16.mxu0 %v12298_v52 }
 0x8fc   : > { %9508 = vmatprep.subr.bf16.mxu1 %v14579_v58 }
 0x8fe   : > { %3121 = vmatpush1.bf16.msra.mxu0 %v12302_v30 }
 0x8ff   : > { %9509 = vmatpush3.bf16.msra.mxu1 %v12061_v4  ;;  %3122 = vmatprep.subr.bf16.mxu0 %v12306_v29 }
 0x900   : > { %9510 = vmatprep.subr.bf16.mxu1 %v14579_v58 }
 0x902   : > { %3123 = vmatpush1.bf16.msra.mxu0 %v12310_v24 }
 0x903   : > { %9511 = vmatpush3.bf16.msra.mxu1 %v12067_v32  ;;  %3124 = vmatprep.subr.bf16.mxu0 %v12314_v63 }
 0x904   : > { %9512 = vmatprep.subr.bf16.mxu1 %v14579_v58 }
 0x906   : > { %3125 = vmatpush1.bf16.msra.mxu0 %v12318_v7 }
 0x907   : > { %9513 = vmatpush3.bf16.msra.mxu1 %v12073_v0  ;;  %3126 = vmatprep.subr.bf16.mxu0 %v12322_v17 }
 0x908   : > { %9514 = vmatprep.subr.bf16.mxu1 %v14579_v58 }
 0x90a   : > { %3127 = vmatpush1.bf16.msra.mxu0 %v12326_v10 }
 0x90b   : > { %9515 = vmatpush3.bf16.msra.mxu1 %v12079_v42  ;;  %3128 = vmatprep.subr.bf16.mxu0 %v12330_v55 }
 0x90c   : > { %9516 = vmatprep.subr.bf16.mxu1 %v14579_v58 }
 0x90e   : > { %3129 = vmatpush1.bf16.msra.mxu0 %v12334_v40 }
 0x90f   : > { %9517 = vmatpush3.bf16.msra.mxu1 %v12085_v37  ;;  %3304 = vmatprep.subr.bf16.mxu0 %v12257_v18 }
 0x910   : > { %9522 = vmatprep.subr.bf16.mxu1 %v14579_v58 }
 0x9b1   : > { %v2958_v11 = vpop.f32.mrf.mxu0  ;;  %v2999_v38 = vpop.f32.mrf.mxu1 }
 0x9b2   : > { %v3005_v31 = vadd.f32 %v2958_v11, %v858_v3  ;;  %v3019_v47 = vadd.f32 %v12150_v39, %v2999_v38  ;;  %v3107_v11 = vmul.f32 %v3105_v15, %v12270_v54 }
 0x9b3   : > { %v2960_v57 = vpop.f32.mrf.mxu0  ;;  %v9500_v43 = vpop.f32.mrf.mxu1 }
 0x9b4   : > { %v8768_v41 = vmul.f32 -1.442695, %v3005_v31  ;;  %v3012_v51 = vadd.f32 %v2960_v57, %v860_v14 }
 0x9b5   : > { %v2962_v46 = vpop.f32.mrf.mxu0  ;;  %v3002_v25 = vpop.f32.mrf.mxu1 }
 0x9b6   : > { %10268 = vpow2.f32 %v8768_v41  ;;  %v8769_v59 = vmul.f32 -1.442695, %v3012_v51 }
 0x9b7   : > { %v2963_v21 = vpop.f32.mrf.mxu0  ;;  %v9501_v50 = vpop.f32.mrf.mxu1 }
 0x9b8   : > { %10270 = vpow2.f32 %v8769_v59 }
 0x9c3   : > { %v10269_v62 = vpop.eup %10268 }
 0x9c4   : > { %v3009_v28 = vadd.f32 1.0, %v10269_v62 }
 0x9c5   : > { %v10271_v53 = vpop.eup %10270 }
 0x9c6   : > { %10272 = vrcp.f32 %v3009_v28  ;;  %v3016_v23 = vadd.f32 1.0, %v10271_v53 }
 0x9c8   : > { %10274 = vrcp.f32 %v3016_v23  ;;  %v14600_v23 = vld [vmem:[#allocation89_spill] sm:$0xff] }
 0x9d3   : > { %v10273_v45 = vpop.eup %10272 }
 0x9d4   : > { %v3020_v2 = vmul.f32 %v10273_v45, %v3019_v47  ;;  %v864_v47 = vadd.f32 %v14600_v23, %v11775_v56  ;;  %v12413_v23 = vld [vmem:[#allocation4 + $0xb0] ss:$12 sps:$4 sm:$0xff]  }
 0x9d5   : > { %v10275_v9 = vpop.eup %10274 }
 0x9d6   : > { %v3021_v5 = vadd.f32 %v3020_v2, %v14598_v13  ;;  %v3023_v36 = vsub.f32 1.0, %v10275_v9  ;;  %v3025_v49 = vmul.f32 %v10275_v9, %v12270_v54 }
 0x9d8   : > { %10276 = vtanh.f32 %v3021_v5 }
 0x9e5   : > { %v10277_v12 = vpop.eup %10276 }
 0x9e6   : > { %v3024_v34 = vmul.f32 %v10277_v12, %v3023_v36 }
 0x9e8   : > { %v3026_v26 = vadd.f32 %v3025_v49, %v3024_v34 }
 0x9ea   : > { %v3034_v3 = vmul.f32 %v3032_v60, %v3026_v26  ;;  %v14601_v60 = vld [vmem:[#allocation64_spill] sm:$0xff] }
 0x9eb   : > { %v1046_v15 = vadd.f32 %v14601_v60, %v11673_v22 }
 0x9ec   : > { %v3036_v31 = vcombine.high %v3034_v3, %v3034_v3  ;;  %v3043_v38 = vrot.slane %v3034_v3, %v11788_v8  ;;  %v12349_v57 = vadd.f32 %v3107_v11, %v3034_v3 }
 0x9ee   : > { %v3050_v41 = vrot.slane %v3036_v31, %v11788_v8  ;;  %v3051_v43 = vcombine.high %v3043_v38, %v3043_v38  ;;  %v3059_v46 = vrot.slane %v3043_v38, %v11788_v8  ;;  %8771 = vst.sshfl [vmem:[#allocation3 + $0x8] sm:$0x1 pattern:$0x73625140] %v3043_v38  ;;  %v3113_v44 = vpack.c.bf16 %v12349_v57, %v12349_v57 }
 0x9f0   : > { %v3052_v14 = vcombine.high %v3050_v41, %v3050_v41  ;;  %v3066_v25 = vrot.slane %v3050_v41, %v11788_v8  ;;  %v3073_v21 = vrot.slane %v3051_v43, %v11788_v8  ;;  %v3081_v54 = vcombine.high %v3059_v46, %v3059_v46  ;;  %8772 = vst.sshfl [vmem:[#allocation3 + $0x28] sm:$0x1 pattern:$0x73625140] %v3051_v43 }
 0x9f1   : > { %8773 = vst.sshfl [vmem:[#allocation3 + $0x88] sm:$0x1 pattern:$0x73625140] %v3050_v41  ;;  %3147 = vmatmul.mubr.bf16.vlgmr.msra.gmra.mxu0 %v3113_v44  ;;  %9519 = vmatmul.mubr.bf16.vlgmr.msra.gmra.mxu1 %v3113_v44 }
 0x9f2   : > { %3305 = vmatpush1.bf16.msra.mxu0 %v12219_v33  ;;  %v3080_v51 = vrot.slane %v3052_v14, %v11788_v8  ;;  %v3082_v50 = vcombine.high %v3066_v25, %v3066_v25  ;;  %v3083_v59 = vcombine.high %v3073_v21, %v3073_v21  ;;  %3095 = vst [vmem:[#allocation3 + $0x48] sm:$0x1] %v3081_v54  ;;  %8774 = vst.sshfl [vmem:[#allocation3 + $0xa8] sm:$0x1 pattern:$0x73625140] %v3052_v14  ;;  %v3222_v14 = vpop.permute.xlu0 %3221  ;;  %v3295_v25 = vpop.permute.xlu1 %3294 }
 0x9f3   : > { %9523 = vmatpush3.bf16.msra.mxu1 %v12040_v16  ;;  %3306 = vmatprep.subr.bf16.mxu0 %v12224_v27  ;;  %v14599_v16 = vld [vmem:[#allocation88_spill] sm:$0xff]  ;;  %v3297_v54 = vmul.f32 %v3295_v25, %v12349_v57 }
 0x9f4   : > { %9524 = vmatprep.subr.bf16.mxu1 %v14579_v58  ;;  %3336 = vmatprep.mubr.bf16.mxu0 %v14580_v20  ;;  %v3084_v62 = vcombine.high %v3080_v51, %v3080_v51  ;;  %3096 = vst [vmem:[#allocation3 + $0x68] sm:$0x1] %v3083_v59  ;;  %3099 = vst [vmem:[#allocation3 + $0xc8] sm:$0x1] %v3082_v50 }
 0x9f5   : > { %9538 = vmatprep.mubr.msk.bf16.mxu1 %vm10974_vm0, %v14579_v58 }
 0x9f6   : > { %3307 = vmatpush1.bf16.msra.mxu0 %v12286_v6  ;;  %3100 = vst [vmem:[#allocation3 + $0xe8] sm:$0x1] %v3084_v62 }
 0x9f7   : > { %9525 = vmatpush3.bf16.msra.mxu1 %v12049_v1  ;;  %3308 = vmatprep.subr.bf16.mxu0 %v12290_v19  ;;  %v862_v1 = vadd.f32 %v14599_v16, %v11760_v48 }
 0x9f8   : > { %9526 = vmatprep.subr.bf16.mxu1 %v14579_v58 }
 0x9fa   : > { %3309 = vmatpush1.bf16.msra.mxu0 %v12294_v61 }
 0x9fb   : > { %9527 = vmatpush3.bf16.msra.mxu1 %v12055_v35  ;;  %3310 = vmatprep.subr.bf16.mxu0 %v12298_v52 }
 0x9fc   : > { %9528 = vmatprep.subr.bf16.mxu1 %v14579_v58 }
 0x9fe   : > { %3311 = vmatpush1.bf16.msra.mxu0 %v12302_v30 }
 0x9ff   : > { %9529 = vmatpush3.bf16.msra.mxu1 %v12061_v4  ;;  %3312 = vmatprep.subr.bf16.mxu0 %v12306_v29 }
 0xa00   : > { %9530 = vmatprep.subr.bf16.mxu1 %v14579_v58 }
 0xa02   : > { %3313 = vmatpush1.bf16.msra.mxu0 %v12310_v24 }
 0xa03   : > { %9531 = vmatpush3.bf16.msra.mxu1 %v12067_v32  ;;  %3314 = vmatprep.subr.bf16.mxu0 %v12314_v63 }
 0xa04   : > { %9532 = vmatprep.subr.bf16.mxu1 %v14579_v58 }
 0xa06   : > { %3315 = vmatpush1.bf16.msra.mxu0 %v12318_v7 }
 0xa07   : > { %9533 = vmatpush3.bf16.msra.mxu1 %v12073_v0  ;;  %3316 = vmatprep.subr.bf16.mxu0 %v12322_v17 }
 0xa08   : > { %9534 = vmatprep.subr.bf16.mxu1 %v14579_v58 }
 0xa0a   : > { %3317 = vmatpush1.bf16.msra.mxu0 %v12326_v10 }
 0xa0b   : > { %9535 = vmatpush3.bf16.msra.mxu1 %v12079_v42  ;;  %3318 = vmatprep.subr.bf16.mxu0 %v12330_v55 }
 0xa0c   : > { %9536 = vmatprep.subr.bf16.mxu1 %v14579_v58 }
 0xa0e   : > { %3319 = vmatpush1.bf16.msra.mxu0 %v12334_v40 }
 0xa0f   : > { %9537 = vmatpush3.bf16.msra.mxu1 %v12085_v37  ;;  %3494 = vmatprep.subr.bf16.mxu0 %v12257_v18 }
 0xa10   : > { %9542 = vmatprep.subr.bf16.mxu1 %v14579_v58 }
 0xab1   : > { %v3148_v35 = vpop.f32.mrf.mxu0  ;;  %v3189_v32 = vpop.f32.mrf.mxu1 }
 0xab2   : > { %v3195_v4 = vadd.f32 %v3148_v35, %v862_v1  ;;  %v3209_v34 = vadd.f32 %v12150_v39, %v3189_v32 }
 0xab3   : > { %v3150_v0 = vpop.f32.mrf.mxu0  ;;  %v9520_v28 = vpop.f32.mrf.mxu1 }
 0xab4   : > { %v8775_v42 = vmul.f32 -1.442695, %v3195_v4  ;;  %v3202_v2 = vadd.f32 %v3150_v0, %v864_v47 }
 0xab5   : > { %v3152_v53 = vpop.f32.mrf.mxu0  ;;  %v3192_v45 = vpop.f32.mrf.mxu1 }
 0xab6   : > { %10278 = vpow2.f32 %v8775_v42  ;;  %v8776_v5 = vmul.f32 -1.442695, %v3202_v2  ;;  %v12422_v45 = vld [vmem:[#allocation4 + $0x98] ss:$12 sps:$4 sm:$0xff]   ;;  %v12434_v2 = vld [vmem:[#allocation4 + $0x68] ss:$12 sps:$4 sm:$0xff]  }
 0xab7   : > { %v3153_v37 = vpop.f32.mrf.mxu0  ;;  %v9521_v13 = vpop.f32.mrf.mxu1 }
 0xab8   : > { %10280 = vpow2.f32 %v8776_v5  ;;  %v12428_v37 = vld [vmem:[#allocation4 + $0x80] ss:$12 sps:$4 sm:$0xff]   ;;  %v12440_v13 = vld [vmem:[#allocation4 + $0x50] ss:$12 sps:$4 sm:$0xff]   ;;  %v12446_v5 = vld [vmem:[#allocation4 + $0x38] ss:$12 sps:$4 sm:$0xff]  }
 0xac3   : > { %v10279_v9 = vpop.eup %10278 }
 0xac4   : > { %v3199_v36 = vadd.f32 1.0, %v10279_v9  ;;  %v12452_v9 = vld [vmem:[#allocation4 + $0x20] ss:$12 sps:$4 sm:$0xff]  }
 0xac5   : > { %v10281_v12 = vpop.eup %10280 }
 0xac6   : > { %10282 = vrcp.f32 %v3199_v36  ;;  %v3206_v49 = vadd.f32 1.0, %v10281_v12  ;;  %v12458_v36 = vld [vmem:[#allocation4 + $0x8] ss:$12 sps:$4 sm:$0xff]   ;;  %v14602_v12 = vld [vmem:[#allocation90_spill] sm:$0xff] }
 0xac8   : > { %10284 = vrcp.f32 %v3206_v49  ;;  %v868_v49 = vadd.f32 %v14602_v12, %v11760_v48  ;;  %v3485_v12 = vpop.permute.xlu1 %3484 }
 0xad3   : > { %v10283_v26 = vpop.eup %10282 }
 0xad4   : > { %v3210_v3 = vmul.f32 %v10283_v26, %v3209_v34 }
 0xad5   : > { %v10285_v31 = vpop.eup %10284 }
 0xad6   : > { %v3211_v11 = vadd.f32 %v3210_v3, %v1046_v15  ;;  %v3213_v38 = vsub.f32 1.0, %v10285_v31  ;;  %v3215_v43 = vmul.f32 %v10285_v31, %v12349_v57 }
 0xad8   : > { %10286 = vtanh.f32 %v3211_v11 }
 0xae5   : > { %v10287_v41 = vpop.eup %10286 }
 0xae6   : > { %v3214_v46 = vmul.f32 %v10287_v41, %v3213_v38  ;;  %v14603_v38 = vld [vmem:[#allocation91_spill] sm:$0xff] }
 0xae7   : > { %v870_v41 = vadd.f32 %v14603_v38, %v11775_v56 }
 0xae8   : > { %v3216_v44 = vadd.f32 %v3215_v43, %v3214_v46 }
 0xaea   : > { %v3224_v21 = vmul.f32 %v3222_v14, %v3216_v44 }
 0xaec   : > { %v3226_v51 = vcombine.high %v3224_v21, %v3224_v21  ;;  %v3233_v50 = vrot.slane %v3224_v21, %v11788_v8  ;;  %v12403_v59 = vadd.f32 %v3297_v54, %v3224_v21 }
 0xaee   : > { %v3240_v62 = vrot.slane %v3226_v51, %v11788_v8  ;;  %v3241_v16 = vcombine.high %v3233_v50, %v3233_v50  ;;  %v3249_v1 = vrot.slane %v3233_v50, %v11788_v8  ;;  %8778 = vst.sshfl [vmem:[#allocation3 + $0x9] sm:$0x1 pattern:$0x73625140] %v3233_v50  ;;  %v3303_v35 = vpack.c.bf16 %v12403_v59, %v12403_v59 }
 0xaf0   : > { %v3242_v4 = vcombine.high %v3240_v62, %v3240_v62  ;;  %v3256_v32 = vrot.slane %v3240_v62, %v11788_v8  ;;  %v3263_v0 = vrot.slane %v3241_v16, %v11788_v8  ;;  %v3271_v57 = vcombine.high %v3249_v1, %v3249_v1  ;;  %8779 = vst.sshfl [vmem:[#allocation3 + $0x29] sm:$0x1 pattern:$0x73625140] %v3241_v16 }
 0xaf1   : > { %8780 = vst.sshfl [vmem:[#allocation3 + $0x89] sm:$0x1 pattern:$0x73625140] %v3240_v62  ;;  %3337 = vmatmul.mubr.bf16.vlgmr.msra.gmra.mxu0 %v3303_v35  ;;  %9539 = vmatmul.mubr.bf16.vlgmr.msra.gmra.mxu1 %v3303_v35  ;;  %v14604_v35 = vld [vmem:[#allocation61_spill] sm:$0xff] }
 0xaf2   : > { %3495 = vmatpush1.bf16.msra.mxu0 %v12219_v33  ;;  %v3270_v42 = vrot.slane %v3242_v4, %v11788_v8  ;;  %v3272_v28 = vcombine.high %v3256_v32, %v3256_v32  ;;  %v3273_v53 = vcombine.high %v3263_v0, %v3263_v0  ;;  %3285 = vst [vmem:[#allocation3 + $0x49] sm:$0x1] %v3271_v57  ;;  %8781 = vst.sshfl [vmem:[#allocation3 + $0xa9] sm:$0x1 pattern:$0x73625140] %v3242_v4 }
 0xaf3   : > { %9543 = vmatpush3.bf16.msra.mxu1 %v12413_v23  ;;  %3496 = vmatprep.subr.bf16.mxu0 %v12224_v27 }
 0xaf4   : > { %9544 = vmatprep.subr.bf16.mxu1 %v14579_v58  ;;  %3526 = vmatprep.mubr.bf16.mxu0 %v14580_v20  ;;  %v3274_v47 = vcombine.high %v3270_v42, %v3270_v42  ;;  %3286 = vst [vmem:[#allocation3 + $0x69] sm:$0x1] %v3273_v53  ;;  %3289 = vst [vmem:[#allocation3 + $0xc9] sm:$0x1] %v3272_v28 }
 0xaf5   : > { %9558 = vmatprep.mubr.msk.bf16.mxu1 %vm10974_vm0, %v14579_v58 }
 0xaf6   : > { %3497 = vmatpush1.bf16.msra.mxu0 %v12286_v6  ;;  %3290 = vst [vmem:[#allocation3 + $0xe9] sm:$0x1] %v3274_v47  ;;  %v3412_v47 = vpop.permute.xlu0 %3411 }
 0xaf7   : > { %9545 = vmatpush3.bf16.msra.mxu1 %v12422_v45  ;;  %3498 = vmatprep.subr.bf16.mxu0 %v12290_v19 }
 0xaf8   : > { %9546 = vmatprep.subr.bf16.mxu1 %v14579_v58 }
 0xafa   : > { %3499 = vmatpush1.bf16.msra.mxu0 %v12294_v61 }
 0xafb   : > { %9547 = vmatpush3.bf16.msra.mxu1 %v12428_v37  ;;  %3500 = vmatprep.subr.bf16.mxu0 %v12298_v52 }
 0xafc   : > { %9548 = vmatprep.subr.bf16.mxu1 %v14579_v58 }
 0xafe   : > { %3501 = vmatpush1.bf16.msra.mxu0 %v12302_v30 }
 0xaff   : > { %9549 = vmatpush3.bf16.msra.mxu1 %v12434_v2  ;;  %3502 = vmatprep.subr.bf16.mxu0 %v12306_v29 }
 0xb00   : > { %9550 = vmatprep.subr.bf16.mxu1 %v14579_v58 }
 0xb02   : > { %3503 = vmatpush1.bf16.msra.mxu0 %v12310_v24 }
 0xb03   : > { %9551 = vmatpush3.bf16.msra.mxu1 %v12440_v13  ;;  %3504 = vmatprep.subr.bf16.mxu0 %v12314_v63 }
 0xb04   : > { %9552 = vmatprep.subr.bf16.mxu1 %v14579_v58 }
 0xb06   : > { %3505 = vmatpush1.bf16.msra.mxu0 %v12318_v7 }
 0xb07   : > { %9553 = vmatpush3.bf16.msra.mxu1 %v12446_v5  ;;  %3506 = vmatprep.subr.bf16.mxu0 %v12322_v17 }
 0xb08   : > { %9554 = vmatprep.subr.bf16.mxu1 %v14579_v58 }
 0xb0a   : > { %3507 = vmatpush1.bf16.msra.mxu0 %v12326_v10 }
 0xb0b   : > { %9555 = vmatpush3.bf16.msra.mxu1 %v12452_v9  ;;  %3508 = vmatprep.subr.bf16.mxu0 %v12330_v55 }
 0xb0c   : > { %9556 = vmatprep.subr.bf16.mxu1 %v14579_v58 }
 0xb0e   : > { %3509 = vmatpush1.bf16.msra.mxu0 %v12334_v40 }
 0xb0f   : > { %9557 = vmatpush3.bf16.msra.mxu1 %v12458_v36  ;;  %3684 = vmatprep.subr.bf16.mxu0 %v12257_v18 }
 0xb10   : > { %9562 = vmatprep.subr.bf16.mxu1 %v14579_v58 }
 0xbb1   : > { %v3338_v34 = vpop.f32.mrf.mxu0  ;;  %v3379_v60 = vpop.f32.mrf.mxu1 }
 0xbb2   : > { %v3385_v26 = vadd.f32 %v3338_v34, %v868_v49  ;;  %v3399_v62 = vadd.f32 %v12150_v39, %v3379_v60  ;;  %v3487_v34 = vmul.f32 %v3485_v12, %v12403_v59 }
 0xbb3   : > { %v3340_v15 = vpop.f32.mrf.mxu0  ;;  %v9540_v11 = vpop.f32.mrf.mxu1 }
 0xbb4   : > { %v8782_v3 = vmul.f32 -1.442695, %v3385_v26  ;;  %v3392_v44 = vadd.f32 %v3340_v15, %v870_v41 }
 0xbb5   : > { %v3342_v31 = vpop.f32.mrf.mxu0  ;;  %v3382_v43 = vpop.f32.mrf.mxu1 }
 0xbb6   : > { %10288 = vpow2.f32 %v8782_v3  ;;  %v8783_v25 = vmul.f32 -1.442695, %v3392_v44 }
 0xbb7   : > { %v3343_v46 = vpop.f32.mrf.mxu0  ;;  %v9541_v14 = vpop.f32.mrf.mxu1 }
 0xbb8   : > { %10290 = vpow2.f32 %v8783_v25 }
 0xbc3   : > { %v10289_v21 = vpop.eup %10288 }
 0xbc4   : > { %v3389_v54 = vadd.f32 1.0, %v10289_v21  ;;  %v14605_v21 = vld [vmem:[#allocation92_spill] sm:$0xff] }
 0xbc5   : > { %v10291_v51 = vpop.eup %10290 }
 0xbc6   : > { %10292 = vrcp.f32 %v3389_v54  ;;  %v3396_v50 = vadd.f32 1.0, %v10291_v51  ;;  %v872_v54 = vadd.f32 %v14605_v21, %v11760_v48  ;;  %v3675_v21 = vpop.permute.xlu1 %3674 }
 0xbc8   : > { %10294 = vrcp.f32 %v3396_v50 }
 0xbd3   : > { %v10293_v16 = vpop.eup %10292 }
 0xbd4   : > { %v3400_v1 = vmul.f32 %v10293_v16, %v3399_v62 }
 0xbd5   : > { %v10295_v32 = vpop.eup %10294 }
 0xbd6   : > { %v3401_v4 = vadd.f32 %v3400_v1, %v14604_v35  ;;  %v3403_v0 = vsub.f32 1.0, %v10295_v32  ;;  %v3405_v42 = vmul.f32 %v10295_v32, %v12403_v59  ;;  %v14606_v32 = vld [vmem:[#allocation93_spill] sm:$0xff] }
 0xbd8   : > { %10296 = vtanh.f32 %v3401_v4 }
 0xbe5   : > { %v10297_v57 = vpop.eup %10296 }
 0xbe6   : > { %v3404_v28 = vmul.f32 %v10297_v57, %v3403_v0  ;;  %v874_v0 = vadd.f32 %v14606_v32, %v11775_v56 }
 0xbe8   : > { %v3406_v53 = vadd.f32 %v3405_v42, %v3404_v28 }
 0xbea   : > { %v3414_v49 = vmul.f32 %v3412_v47, %v3406_v53 }
 0xbec   : > { %v3416_v26 = vcombine.high %v3414_v49, %v3414_v49  ;;  %v3423_v39 = vrot.slane %v3414_v49, %v11788_v8  ;;  %v12472_v60 = vadd.f32 %v3487_v34, %v3414_v49 }
 0xbee   : > { %v3430_v15 = vrot.slane %v3416_v26, %v11788_v8  ;;  %v3431_v3 = vcombine.high %v3423_v39, %v3423_v39  ;;  %v3439_v11 = vrot.slane %v3423_v39, %v11788_v8  ;;  %8785 = vst.sshfl [vmem:[#allocation3 + $0xa] sm:$0x1 pattern:$0x73625140] %v3423_v39  ;;  %v3493_v31 = vpack.c.bf16 %v12472_v60, %v12472_v60  ;;  %v12523_v39 = vld [vmem:[%s14424_s6] ss:$0 sm:$0xff] }
 0xbf0   : > { %v3432_v38 = vcombine.high %v3430_v15, %v3430_v15  ;;  %v3446_v41 = vrot.slane %v3430_v15, %v11788_v8  ;;  %v3453_v43 = vrot.slane %v3431_v3, %v11788_v8  ;;  %v3461_v59 = vcombine.high %v3439_v11, %v3439_v11  ;;  %8786 = vst.sshfl [vmem:[#allocation3 + $0x2a] sm:$0x1 pattern:$0x73625140] %v3431_v3 }
 0xbf1   : > { %8787 = vst.sshfl [vmem:[#allocation3 + $0x8a] sm:$0x1 pattern:$0x73625140] %v3430_v15  ;;  %3527 = vmatmul.mubr.bf16.vlgmr.msra.gmra.mxu0 %v3493_v31  ;;  %9559 = vmatmul.mubr.bf16.vlgmr.msra.gmra.mxu1 %v3493_v31  ;;  %v14607_v31 = vld [vmem:[#allocation63_spill] sm:$0xff] }
 0xbf2   : > { %3685 = vmatpush1.bf16.msra.mxu0 %v12219_v33  ;;  %v3460_v46 = vrot.slane %v3432_v38, %v11788_v8  ;;  %v3462_v44 = vcombine.high %v3446_v41, %v3446_v41  ;;  %v3463_v14 = vcombine.high %v3453_v43, %v3453_v43  ;;  %3475 = vst [vmem:[#allocation3 + $0x4a] sm:$0x1] %v3461_v59  ;;  %8788 = vst.sshfl [vmem:[#allocation3 + $0xaa] sm:$0x1 pattern:$0x73625140] %v3432_v38 }
 0xbf3   : > { %9563 = vmatpush3.bf16.msra.mxu1 %v12413_v23  ;;  %3686 = vmatprep.subr.bf16.mxu0 %v12224_v27 }
 0xbf4   : > { %9564 = vmatprep.subr.bf16.mxu1 %v14579_v58  ;;  %3716 = vmatprep.mubr.bf16.mxu0 %v14580_v20  ;;  %v3464_v25 = vcombine.high %v3460_v46, %v3460_v46  ;;  %3476 = vst [vmem:[#allocation3 + $0x6a] sm:$0x1] %v3463_v14  ;;  %3479 = vst [vmem:[#allocation3 + $0xca] sm:$0x1] %v3462_v44 }
 0xbf5   : > { %9578 = vmatprep.mubr.msk.bf16.mxu1 %vm10974_vm0, %v14579_v58 }
 0xbf6   : > { %3687 = vmatpush1.bf16.msra.mxu0 %v12286_v6  ;;  %3480 = vst [vmem:[#allocation3 + $0xea] sm:$0x1] %v3464_v25  ;;  %v3602_v25 = vpop.permute.xlu0 %3601 }
 0xbf7   : > { %9565 = vmatpush3.bf16.msra.mxu1 %v12422_v45  ;;  %3688 = vmatprep.subr.bf16.mxu0 %v12290_v19 }
 0xbf8   : > { %9566 = vmatprep.subr.bf16.mxu1 %v14579_v58 }
 0xbfa   : > { %3689 = vmatpush1.bf16.msra.mxu0 %v12294_v61 }
 0xbfb   : > { %9567 = vmatpush3.bf16.msra.mxu1 %v12428_v37  ;;  %3690 = vmatprep.subr.bf16.mxu0 %v12298_v52 }
 0xbfc   : > { %9568 = vmatprep.subr.bf16.mxu1 %v14579_v58 }
 0xbfe   : > { %3691 = vmatpush1.bf16.msra.mxu0 %v12302_v30 }
 0xbff   : > { %9569 = vmatpush3.bf16.msra.mxu1 %v12434_v2  ;;  %3692 = vmatprep.subr.bf16.mxu0 %v12306_v29 }
 0xc00   : > { %9570 = vmatprep.subr.bf16.mxu1 %v14579_v58 }
 0xc02   : > { %3693 = vmatpush1.bf16.msra.mxu0 %v12310_v24 }
 0xc03   : > { %9571 = vmatpush3.bf16.msra.mxu1 %v12440_v13  ;;  %3694 = vmatprep.subr.bf16.mxu0 %v12314_v63 }
 0xc04   : > { %9572 = vmatprep.subr.bf16.mxu1 %v14579_v58 }
 0xc06   : > { %3695 = vmatpush1.bf16.msra.mxu0 %v12318_v7 }
 0xc07   : > { %9573 = vmatpush3.bf16.msra.mxu1 %v12446_v5  ;;  %3696 = vmatprep.subr.bf16.mxu0 %v12322_v17 }
 0xc08   : > { %9574 = vmatprep.subr.bf16.mxu1 %v14579_v58 }
 0xc0a   : > { %3697 = vmatpush1.bf16.msra.mxu0 %v12326_v10 }
 0xc0b   : > { %9575 = vmatpush3.bf16.msra.mxu1 %v12452_v9  ;;  %3698 = vmatprep.subr.bf16.mxu0 %v12330_v55 }
 0xc0c   : > { %9576 = vmatprep.subr.bf16.mxu1 %v14579_v58 }
 0xc0e   : > { %3699 = vmatpush1.bf16.msra.mxu0 %v12334_v40 }
 0xc0f   : > { %9577 = vmatpush3.bf16.msra.mxu1 %v12458_v36  ;;  %3874 = vmatprep.subr.bf16.mxu0 %v12257_v18 }
 0xc10   : > { %9582 = vmatprep.subr.bf16.mxu1 %v14579_v58 }
 0xcb1   : > { %v3528_v51 = vpop.f32.mrf.mxu0  ;;  %v3569_v62 = vpop.f32.mrf.mxu1 }
 0xcb2   : > { %v3575_v50 = vadd.f32 %v3528_v51, %v872_v54  ;;  %v3589_v15 = vadd.f32 %v12523_v39, %v3569_v62  ;;  %v3677_v51 = vmul.f32 %v3675_v21, %v12472_v60 }
 0xcb3   : > { %v3530_v16 = vpop.f32.mrf.mxu0  ;;  %v9560_v35 = vpop.f32.mrf.mxu1 }
 0xcb4   : > { %v8789_v1 = vmul.f32 -1.442695, %v3575_v50  ;;  %v3582_v28 = vadd.f32 %v3530_v16, %v874_v0 }
 0xcb5   : > { %v3532_v4 = vpop.f32.mrf.mxu0  ;;  %v3572_v57 = vpop.f32.mrf.mxu1 }
 0xcb6   : > { %10298 = vpow2.f32 %v8789_v1  ;;  %v8790_v47 = vmul.f32 -1.442695, %v3582_v28 }
 0xcb7   : > { %v3533_v42 = vpop.f32.mrf.mxu0  ;;  %v9561_v53 = vpop.f32.mrf.mxu1 }
 0xcb8   : > { %10300 = vpow2.f32 %v8790_v47 }
 0xcc3   : > { %v10299_v12 = vpop.eup %10298 }
 0xcc4   : > { %v3579_v49 = vadd.f32 1.0, %v10299_v12 }
 0xcc5   : > { %v10301_v34 = vpop.eup %10300 }
 0xcc6   : > { %10302 = vrcp.f32 %v3579_v49  ;;  %v3586_v26 = vadd.f32 1.0, %v10301_v34 }
 0xcc8   : > { %10304 = vrcp.f32 %v3586_v26 }
 0xcd3   : > { %v10303_v3 = vpop.eup %10302 }
 0xcd4   : > { %v3590_v11 = vmul.f32 %v10303_v3, %v3589_v15 }
 0xcd5   : > { %v10305_v41 = vpop.eup %10304 }
 0xcd6   : > { %v3591_v38 = vadd.f32 %v3590_v11, %v14607_v31  ;;  %v3593_v43 = vsub.f32 1.0, %v10305_v41  ;;  %v3595_v46 = vmul.f32 %v10305_v41, %v12472_v60 }
 0xcd8   : > { %10306 = vtanh.f32 %v3591_v38  ;;  %v14609_v38 = vld [vmem:[#allocation95_spill] sm:$0xff] }
 0xcd9   : > { %v880_v41 = vadd.f32 %v14609_v38, %v11775_v56 }
 0xce5   : > { %v10307_v59 = vpop.eup %10306 }
 0xce6   : > { %v3594_v44 = vmul.f32 %v10307_v59, %v3593_v43 }
 0xce8   : > { %v3596_v14 = vadd.f32 %v3595_v46, %v3594_v44 }
 0xcea   : > { %v3604_v54 = vmul.f32 %v3602_v25, %v3596_v14 }
 0xcec   : > { %v3606_v50 = vcombine.high %v3604_v54, %v3604_v54  ;;  %v3613_v62 = vrot.slane %v3604_v54, %v11788_v8  ;;  %v12530_v16 = vadd.f32 %v3677_v51, %v3604_v54 }
 0xcee   : > { %v3620_v1 = vrot.slane %v3606_v50, %v11788_v8  ;;  %v3621_v35 = vcombine.high %v3613_v62, %v3613_v62  ;;  %v3629_v4 = vrot.slane %v3613_v62, %v11788_v8  ;;  %8792 = vst.sshfl [vmem:[#allocation3 + $0xb] sm:$0x1 pattern:$0x73625140] %v3613_v62  ;;  %v3683_v32 = vpack.c.bf16 %v12530_v16, %v12530_v16 }
 0xcf0   : > { %v3622_v0 = vcombine.high %v3620_v1, %v3620_v1  ;;  %v3636_v57 = vrot.slane %v3620_v1, %v11788_v8  ;;  %v3643_v42 = vrot.slane %v3621_v35, %v11788_v8  ;;  %v3651_v60 = vcombine.high %v3629_v4, %v3629_v4  ;;  %8793 = vst.sshfl [vmem:[#allocation3 + $0x2b] sm:$0x1 pattern:$0x73625140] %v3621_v35 }
 0xcf1   : > { %8794 = vst.sshfl [vmem:[#allocation3 + $0x8b] sm:$0x1 pattern:$0x73625140] %v3620_v1  ;;  %3717 = vmatmul.mubr.bf16.vlgmr.msra.gmra.mxu0 %v3683_v32  ;;  %9579 = vmatmul.mubr.bf16.vlgmr.msra.gmra.mxu1 %v3683_v32  ;;  %v14610_v1 = vld [vmem:[#allocation66_spill] sm:$0xff] }
 0xcf2   : > { %3875 = vmatpush1.bf16.msra.mxu0 %v12219_v33  ;;  %v3650_v28 = vrot.slane %v3622_v0, %v11788_v8  ;;  %v3652_v53 = vcombine.high %v3636_v57, %v3636_v57  ;;  %v3653_v47 = vcombine.high %v3643_v42, %v3643_v42  ;;  %3665 = vst [vmem:[#allocation3 + $0x4b] sm:$0x1] %v3651_v60  ;;  %8795 = vst.sshfl [vmem:[#allocation3 + $0xab] sm:$0x1 pattern:$0x73625140] %v3622_v0 }
 0xcf3   : > { %9583 = vmatpush3.bf16.msra.mxu1 %v12413_v23  ;;  %3876 = vmatprep.subr.bf16.mxu0 %v12224_v27  ;;  %v14608_v33 = vld [vmem:[#allocation94_spill] sm:$0xff] }
 0xcf4   : > { %9584 = vmatprep.subr.bf16.mxu1 %v14579_v58  ;;  %3906 = vmatprep.mubr.bf16.mxu0 %v14580_v20  ;;  %v3654_v12 = vcombine.high %v3650_v28, %v3650_v28  ;;  %3666 = vst [vmem:[#allocation3 + $0x6b] sm:$0x1] %v3653_v47  ;;  %3669 = vst [vmem:[#allocation3 + $0xcb] sm:$0x1] %v3652_v53  ;;  %v878_v27 = vadd.f32 %v14608_v33, %v11760_v48  ;;  %v3792_v28 = vpop.permute.xlu0 %3791  ;;  %v3865_v53 = vpop.permute.xlu1 %3864 }
 0xcf5   : > { %9598 = vmatprep.mubr.msk.bf16.mxu1 %vm10974_vm0, %v14579_v58 }
 0xcf6   : > { %3877 = vmatpush1.bf16.msra.mxu0 %v12286_v6  ;;  %3670 = vst [vmem:[#allocation3 + $0xeb] sm:$0x1] %v3654_v12  ;;  %v3867_v12 = vmul.f32 %v3865_v53, %v12530_v16 }
 0xcf7   : > { %9585 = vmatpush3.bf16.msra.mxu1 %v12422_v45  ;;  %3878 = vmatprep.subr.bf16.mxu0 %v12290_v19 }
 0xcf8   : > { %9586 = vmatprep.subr.bf16.mxu1 %v14579_v58 }
 0xcfa   : > { %3879 = vmatpush1.bf16.msra.mxu0 %v12294_v61 }
 0xcfb   : > { %9587 = vmatpush3.bf16.msra.mxu1 %v12428_v37  ;;  %3880 = vmatprep.subr.bf16.mxu0 %v12298_v52 }
 0xcfc   : > { %9588 = vmatprep.subr.bf16.mxu1 %v14579_v58 }
 0xcfe   : > { %3881 = vmatpush1.bf16.msra.mxu0 %v12302_v30 }
 0xcff   : > { %9589 = vmatpush3.bf16.msra.mxu1 %v12434_v2  ;;  %3882 = vmatprep.subr.bf16.mxu0 %v12306_v29 }
 0xd00   : > { %9590 = vmatprep.subr.bf16.mxu1 %v14579_v58 }
 0xd02   : > { %3883 = vmatpush1.bf16.msra.mxu0 %v12310_v24 }
 0xd03   : > { %9591 = vmatpush3.bf16.msra.mxu1 %v12440_v13  ;;  %3884 = vmatprep.subr.bf16.mxu0 %v12314_v63 }
 0xd04   : > { %9592 = vmatprep.subr.bf16.mxu1 %v14579_v58 }
 0xd06   : > { %3885 = vmatpush1.bf16.msra.mxu0 %v12318_v7 }
 0xd07   : > { %9593 = vmatpush3.bf16.msra.mxu1 %v12446_v5  ;;  %3886 = vmatprep.subr.bf16.mxu0 %v12322_v17 }
 0xd08   : > { %9594 = vmatprep.subr.bf16.mxu1 %v14579_v58 }
 0xd0a   : > { %3887 = vmatpush1.bf16.msra.mxu0 %v12326_v10 }
 0xd0b   : > { %9595 = vmatpush3.bf16.msra.mxu1 %v12452_v9  ;;  %3888 = vmatprep.subr.bf16.mxu0 %v12330_v55 }
 0xd0c   : > { %9596 = vmatprep.subr.bf16.mxu1 %v14579_v58 }
 0xd0e   : > { %3889 = vmatpush1.bf16.msra.mxu0 %v12334_v40 }
 0xd0f   : > { %9597 = vmatpush3.bf16.msra.mxu1 %v12458_v36  ;;  %4064 = vmatprep.subr.bf16.mxu0 %v12257_v18 }
 0xd10   : > { %9602 = vmatprep.subr.bf16.mxu1 %v14579_v58 }
 0xdb1   : > { %v3718_v49 = vpop.f32.mrf.mxu0  ;;  %v3759_v26 = vpop.f32.mrf.mxu1 }
 0xdb2   : > { %v3765_v34 = vadd.f32 %v3718_v49, %v878_v27  ;;  %v3779_v51 = vadd.f32 %v12523_v39, %v3759_v26 }
 0xdb3   : > { %v3720_v15 = vpop.f32.mrf.mxu0  ;;  %v9580_v11 = vpop.f32.mrf.mxu1 }
 0xdb4   : > { %v8796_v3 = vmul.f32 -1.442695, %v3765_v34  ;;  %v3772_v46 = vadd.f32 %v3720_v15, %v880_v41  ;;  %v12591_v41 = vld [vmem:[#allocation4 + $0xa8] ss:$12 sps:$4 sm:$0xff]  }
 0xdb5   : > { %v3722_v31 = vpop.f32.mrf.mxu0  ;;  %v3762_v43 = vpop.f32.mrf.mxu1 }
 0xdb6   : > { %10308 = vpow2.f32 %v8796_v3  ;;  %v8797_v44 = vmul.f32 -1.442695, %v3772_v46 }
 0xdb7   : > { %v3723_v59 = vpop.f32.mrf.mxu0  ;;  %v9581_v18 = vpop.f32.mrf.mxu1 }
 0xdb8   : > { %10310 = vpow2.f32 %v8797_v44  ;;  %v12596_v18 = vld [vmem:[#allocation4 + $0x94] ss:$12 sps:$4 sm:$0xff]  }
 0xdc3   : > { %v10309_v14 = vpop.eup %10308 }
 0xdc4   : > { %v3769_v25 = vadd.f32 1.0, %v10309_v14 }
 0xdc5   : > { %v10311_v21 = vpop.eup %10310 }
 0xdc6   : > { %10312 = vrcp.f32 %v3769_v25  ;;  %v3776_v54 = vadd.f32 1.0, %v10311_v21 }
 0xdc8   : > { %10314 = vrcp.f32 %v3776_v54 }
 0xdd3   : > { %v10313_v50 = vpop.eup %10312 }
 0xdd4   : > { %v3780_v62 = vmul.f32 %v10313_v50, %v3779_v51 }
 0xdd5   : > { %v10315_v4 = vpop.eup %10314 }
 0xdd6   : > { %v3781_v35 = vadd.f32 %v3780_v62, %v14610_v1  ;;  %v3783_v32 = vsub.f32 1.0, %v10315_v4  ;;  %v3785_v57 = vmul.f32 %v10315_v4, %v12530_v16 }
 0xdd8   : > { %10316 = vtanh.f32 %v3781_v35 }
 0xde5   : > { %v10317_v0 = vpop.eup %10316 }
 0xde6   : > { %v3784_v42 = vmul.f32 %v10317_v0, %v3783_v32  ;;  %v14613_v32 = vld [vmem:[#allocation68_spill] sm:$0xff] }
 0xde7   : > { %v1062_v0 = vadd.f32 %v14613_v32, %v11673_v22 }
 0xde8   : > { %v3786_v60 = vadd.f32 %v3785_v57, %v3784_v42 }
 0xdea   : > { %v3794_v47 = vmul.f32 %v3792_v28, %v3786_v60 }
 0xdec   : > { %v3796_v33 = vcombine.high %v3794_v47, %v3794_v47  ;;  %v3803_v27 = vrot.slane %v3794_v47, %v11788_v8  ;;  %v12583_v49 = vadd.f32 %v3867_v12, %v3794_v47 }
 0xdee   : > { %v3810_v34 = vrot.slane %v3796_v33, %v11788_v8  ;;  %v3811_v26 = vcombine.high %v3803_v27, %v3803_v27  ;;  %v3819_v15 = vrot.slane %v3803_v27, %v11788_v8  ;;  %8799 = vst.sshfl [vmem:[#allocation3 + $0xc] sm:$0x1 pattern:$0x73625140] %v3803_v27  ;;  %v3873_v3 = vpack.c.bf16 %v12583_v49, %v12583_v49  ;;  %v3982_v27 = vpop.permute.xlu0 %3981 }
 0xdf0   : > { %v3812_v11 = vcombine.high %v3810_v34, %v3810_v34  ;;  %v3826_v31 = vrot.slane %v3810_v34, %v11788_v8  ;;  %v3833_v38 = vrot.slane %v3811_v26, %v11788_v8  ;;  %v3841_v16 = vcombine.high %v3819_v15, %v3819_v15  ;;  %8800 = vst.sshfl [vmem:[#allocation3 + $0x2c] sm:$0x1 pattern:$0x73625140] %v3811_v26 }
 0xdf1   : > { %8801 = vst.sshfl [vmem:[#allocation3 + $0x8c] sm:$0x1 pattern:$0x73625140] %v3810_v34  ;;  %3907 = vmatmul.mubr.bf16.vlgmr.msra.gmra.mxu0 %v3873_v3  ;;  %9599 = vmatmul.mubr.bf16.vlgmr.msra.gmra.mxu1 %v3873_v3  ;;  %v4055_v34 = vpop.permute.xlu1 %4054 }
 0xdf2   : > { %4065 = vmatpush1.bf16.msra.mxu0 %v12591_v41  ;;  %v3840_v43 = vrot.slane %v3812_v11, %v11788_v8  ;;  %v3842_v59 = vcombine.high %v3826_v31, %v3826_v31  ;;  %v3843_v46 = vcombine.high %v3833_v38, %v3833_v38  ;;  %3855 = vst [vmem:[#allocation3 + $0x4c] sm:$0x1] %v3841_v16  ;;  %8802 = vst.sshfl [vmem:[#allocation3 + $0xac] sm:$0x1 pattern:$0x73625140] %v3812_v11 }
 0xdf3   : > { %9603 = vmatpush3.bf16.msra.mxu1 %v12413_v23  ;;  %4066 = vmatprep.subr.bf16.mxu0 %v12596_v18  ;;  %v4057_v15 = vmul.f32 %v4055_v34, %v12583_v49 }
 0xdf4   : > { %9604 = vmatprep.subr.bf16.mxu1 %v14579_v58  ;;  %4096 = vmatprep.mubr.bf16.mxu0 %v14580_v20  ;;  %v3844_v44 = vcombine.high %v3840_v43, %v3840_v43  ;;  %3856 = vst [vmem:[#allocation3 + $0x6c] sm:$0x1] %v3843_v46  ;;  %3859 = vst [vmem:[#allocation3 + $0xcc] sm:$0x1] %v3842_v59 }
 0xdf5   : > { %9618 = vmatprep.mubr.msk.bf16.mxu1 %vm10974_vm0, %v14579_v58 }
 0xdf6   : > { %4067 = vmatpush1.bf16.msra.mxu0 %v12286_v6  ;;  %3860 = vst [vmem:[#allocation3 + $0xec] sm:$0x1] %v3844_v44  ;;  %v12629_v6 = vld [vmem:[#allocation4 + $0xac] ss:$12 sps:$4 sm:$0xff]  }
 0xdf7   : > { %9605 = vmatpush3.bf16.msra.mxu1 %v12422_v45  ;;  %4068 = vmatprep.subr.bf16.mxu0 %v12290_v19  ;;  %v14611_v19 = vld [vmem:[#allocation96_spill] sm:$0xff] }
 0xdf8   : > { %9606 = vmatprep.subr.bf16.mxu1 %v14579_v58 }
 0xdfa   : > { %4069 = vmatpush1.bf16.msra.mxu0 %v12294_v61  ;;  %v882_v61 = vadd.f32 %v14611_v19, %v11760_v48 }
 0xdfb   : > { %9607 = vmatpush3.bf16.msra.mxu1 %v12428_v37  ;;  %4070 = vmatprep.subr.bf16.mxu0 %v12298_v52 }
 0xdfc   : > { %9608 = vmatprep.subr.bf16.mxu1 %v14579_v58 }
 0xdfe   : > { %4071 = vmatpush1.bf16.msra.mxu0 %v12302_v30 }
 0xdff   : > { %9609 = vmatpush3.bf16.msra.mxu1 %v12434_v2  ;;  %4072 = vmatprep.subr.bf16.mxu0 %v12306_v29 }
 0xe00   : > { %9610 = vmatprep.subr.bf16.mxu1 %v14579_v58 }
 0xe02   : > { %4073 = vmatpush1.bf16.msra.mxu0 %v12310_v24 }
 0xe03   : > { %9611 = vmatpush3.bf16.msra.mxu1 %v12440_v13  ;;  %4074 = vmatprep.subr.bf16.mxu0 %v12314_v63 }
 0xe04   : > { %9612 = vmatprep.subr.bf16.mxu1 %v14579_v58 }
 0xe06   : > { %4075 = vmatpush1.bf16.msra.mxu0 %v12318_v7 }
 0xe07   : > { %9613 = vmatpush3.bf16.msra.mxu1 %v12446_v5  ;;  %4076 = vmatprep.subr.bf16.mxu0 %v12322_v17 }
 0xe08   : > { %9614 = vmatprep.subr.bf16.mxu1 %v14579_v58 }
 0xe0a   : > { %4077 = vmatpush1.bf16.msra.mxu0 %v12326_v10  ;;  %v14612_v10 = vld [vmem:[#allocation97_spill] sm:$0xff] }
 0xe0b   : > { %9615 = vmatpush3.bf16.msra.mxu1 %v12452_v9  ;;  %4078 = vmatprep.subr.bf16.mxu0 %v12330_v55  ;;  %v884_v55 = vadd.f32 %v14612_v10, %v11775_v56  ;;  %v12675_v10 = vld [vmem:[#allocation4 + $0x60] ss:$12 sps:$4 sm:$0xff]  }
 0xe0c   : > { %9616 = vmatprep.subr.bf16.mxu1 %v14579_v58 }
 0xe0e   : > { %4079 = vmatpush1.bf16.msra.mxu0 %v12334_v40 }
 0xe0f   : > { %9617 = vmatpush3.bf16.msra.mxu1 %v12458_v36  ;;  %4254 = vmatprep.subr.bf16.mxu0 %v12629_v6 }
 0xe10   : > { %9622 = vmatprep.subr.bf16.mxu1 %v14579_v58 }
 0xeb1   : > { %v3908_v52 = vpop.f32.mrf.mxu0  ;;  %v3949_v29 = vpop.f32.mrf.mxu1 }
 0xeb2   : > { %v3955_v30 = vadd.f32 %v3908_v52, %v882_v61  ;;  %v3969_v35 = vadd.f32 %v12523_v39, %v3949_v29 }
 0xeb3   : > { %v3910_v24 = vpop.f32.mrf.mxu0  ;;  %v9600_v7 = vpop.f32.mrf.mxu1 }
 0xeb4   : > { %v8803_v63 = vmul.f32 -1.442695, %v3955_v30  ;;  %v3962_v25 = vadd.f32 %v3910_v24, %v884_v55  ;;  %v12659_v24 = vld [vmem:[#allocation4 + $0x90] ss:$12 sps:$4 sm:$0xff]   ;;  %v12667_v7 = vld [vmem:[#allocation4 + $0x78] ss:$12 sps:$4 sm:$0xff]  }
 0xeb5   : > { %v3912_v17 = vpop.f32.mrf.mxu0  ;;  %v3952_v40 = vpop.f32.mrf.mxu1  ;;  %v12679_v55 = vld [vmem:[#allocation4 + $0x4c] ss:$12 sps:$4 sm:$0xff]  }
 0xeb6   : > { %10318 = vpow2.f32 %v8803_v63  ;;  %v8804_v54 = vmul.f32 -1.442695, %v3962_v25  ;;  %v12663_v63 = vld [vmem:[#allocation4 + $0x7c] ss:$12 sps:$4 sm:$0xff]   ;;  %v12671_v17 = vld [vmem:[#allocation4 + $0x64] ss:$12 sps:$4 sm:$0xff]  }
 0xeb7   : > { %v3913_v14 = vpop.f32.mrf.mxu0  ;;  %v9601_v21 = vpop.f32.mrf.mxu1  ;;  %v12683_v40 = vld [vmem:[#allocation4 + $0x48] ss:$12 sps:$4 sm:$0xff]   ;;  %v12691_v25 = vld [vmem:[#allocation4 + $0x30] ss:$12 sps:$4 sm:$0xff]  }
 0xeb8   : > { %10320 = vpow2.f32 %v8804_v54  ;;  %v12687_v14 = vld [vmem:[#allocation4 + $0x34] ss:$12 sps:$4 sm:$0xff]   ;;  %v12695_v21 = vld [vmem:[#allocation4 + $0x1c] ss:$12 sps:$4 sm:$0xff]   ;;  %v12699_v54 = vld [vmem:[#allocation4 + $0x18] ss:$12 sps:$4 sm:$0xff]  }
 0xec3   : > { %v10319_v51 = vpop.eup %10318 }
 0xec4   : > { %v3959_v50 = vadd.f32 1.0, %v10319_v51  ;;  %v12703_v51 = vld [vmem:[#allocation4 + $0x4] ss:$12 sps:$4 sm:$0xff]  }
 0xec5   : > { %v10321_v62 = vpop.eup %10320 }
 0xec6   : > { %10322 = vrcp.f32 %v3959_v50  ;;  %v3966_v1 = vadd.f32 1.0, %v10321_v62  ;;  %v12707_v50 = vld [vmem:[#allocation4] ss:$12 sps:$4 sm:$0xff]  }
 0xec7   : > { %v14614_v62 = vld [vmem:[#allocation23_spill] sm:$0xff] }
 0xec8   : > { %10324 = vrcp.f32 %v3966_v1  ;;  %v888_v1 = vadd.f32 %v14614_v62, %v11760_v48  ;;  %v4245_v62 = vpop.permute.xlu1 %4244 }
 0xed3   : > { %v10323_v4 = vpop.eup %10322 }
 0xed4   : > { %v3970_v57 = vmul.f32 %v10323_v4, %v3969_v35 }
 0xed5   : > { %v10325_v60 = vpop.eup %10324 }
 0xed6   : > { %v3971_v42 = vadd.f32 %v3970_v57, %v1062_v0  ;;  %v3973_v28 = vsub.f32 1.0, %v10325_v60  ;;  %v3975_v47 = vmul.f32 %v10325_v60, %v12583_v49 }
 0xed8   : > { %10326 = vtanh.f32 %v3971_v42 }
 0xee5   : > { %v10327_v53 = vpop.eup %10326 }
 0xee6   : > { %v3974_v12 = vmul.f32 %v10327_v53, %v3973_v28  ;;  %v14615_v28 = vld [vmem:[#allocation24_spill] sm:$0xff] }
 0xee7   : > { %v890_v53 = vadd.f32 %v14615_v28, %v11775_v56 }
 0xee8   : > { %v3976_v33 = vadd.f32 %v3975_v47, %v3974_v12 }
 0xeea   : > { %v3984_v26 = vmul.f32 %v3982_v27, %v3976_v33 }
 0xeec   : > { %v3986_v3 = vcombine.high %v3984_v26, %v3984_v26  ;;  %v3993_v11 = vrot.slane %v3984_v26, %v11788_v8  ;;  %v12643_v31 = vadd.f32 %v4057_v15, %v3984_v26 }
 0xeee   : > { %v4000_v38 = vrot.slane %v3986_v3, %v11788_v8  ;;  %v4001_v16 = vcombine.high %v3993_v11, %v3993_v11  ;;  %v4009_v43 = vrot.slane %v3993_v11, %v11788_v8  ;;  %8806 = vst.sshfl [vmem:[#allocation3 + $0xd] sm:$0x1 pattern:$0x73625140] %v3993_v11  ;;  %v4063_v59 = vpack.c.bf16 %v12643_v31, %v12643_v31 }
 0xef0   : > { %v4002_v46 = vcombine.high %v4000_v38, %v4000_v38  ;;  %v4016_v44 = vrot.slane %v4000_v38, %v11788_v8  ;;  %v4023_v19 = vrot.slane %v4001_v16, %v11788_v8  ;;  %v4031_v49 = vcombine.high %v4009_v43, %v4009_v43  ;;  %8807 = vst.sshfl [vmem:[#allocation3 + $0x2d] sm:$0x1 pattern:$0x73625140] %v4001_v16 }
 0xef1   : > { %8808 = vst.sshfl [vmem:[#allocation3 + $0x8d] sm:$0x1 pattern:$0x73625140] %v4000_v38  ;;  %4097 = vmatmul.mubr.bf16.vlgmr.msra.gmra.mxu0 %v4063_v59  ;;  %9619 = vmatmul.mubr.bf16.vlgmr.msra.gmra.mxu1 %v4063_v59  ;;  %v14616_v59 = vld [vmem:[#allocation65_spill] sm:$0xff] }
 0xef2   : > { %4255 = vmatpush1.bf16.msra.mxu0 %v12591_v41  ;;  %v4030_v61 = vrot.slane %v4002_v46, %v11788_v8  ;;  %v4032_v52 = vcombine.high %v4016_v44, %v4016_v44  ;;  %v4033_v30 = vcombine.high %v4023_v19, %v4023_v19  ;;  %4045 = vst [vmem:[#allocation3 + $0x4d] sm:$0x1] %v4031_v49  ;;  %8809 = vst.sshfl [vmem:[#allocation3 + $0xad] sm:$0x1 pattern:$0x73625140] %v4002_v46 }
 0xef3   : > { %9623 = vmatpush3.bf16.msra.mxu1 %v12413_v23  ;;  %4256 = vmatprep.subr.bf16.mxu0 %v12596_v18 }
 0xef4   : > { %9624 = vmatprep.subr.bf16.mxu1 %v14579_v58  ;;  %4286 = vmatprep.mubr.bf16.mxu0 %v14580_v20  ;;  %v4034_v29 = vcombine.high %v4030_v61, %v4030_v61  ;;  %4046 = vst [vmem:[#allocation3 + $0x6d] sm:$0x1] %v4033_v30  ;;  %4049 = vst [vmem:[#allocation3 + $0xcd] sm:$0x1] %v4032_v52 }
 0xef5   : > { %9638 = vmatprep.mubr.msk.bf16.mxu1 %vm10974_vm0, %v14579_v58 }
 0xef6   : > { %4257 = vmatpush1.bf16.msra.mxu0 %v12659_v24  ;;  %4050 = vst [vmem:[#allocation3 + $0xed] sm:$0x1] %v4034_v29  ;;  %v4172_v29 = vpop.permute.xlu0 %4171 }
 0xef7   : > { %9625 = vmatpush3.bf16.msra.mxu1 %v12422_v45  ;;  %4258 = vmatprep.subr.bf16.mxu0 %v12663_v63 }
 0xef8   : > { %9626 = vmatprep.subr.bf16.mxu1 %v14579_v58 }
 0xefa   : > { %4259 = vmatpush1.bf16.msra.mxu0 %v12667_v7 }
 0xefb   : > { %9627 = vmatpush3.bf16.msra.mxu1 %v12428_v37  ;;  %4260 = vmatprep.subr.bf16.mxu0 %v12671_v17 }
 0xefc   : > { %9628 = vmatprep.subr.bf16.mxu1 %v14579_v58 }
 0xefe   : > { %4261 = vmatpush1.bf16.msra.mxu0 %v12675_v10 }
 0xeff   : > { %9629 = vmatpush3.bf16.msra.mxu1 %v12434_v2  ;;  %4262 = vmatprep.subr.bf16.mxu0 %v12679_v55 }
 0xf00   : > { %9630 = vmatprep.subr.bf16.mxu1 %v14579_v58 }
 0xf02   : > { %4263 = vmatpush1.bf16.msra.mxu0 %v12683_v40 }
 0xf03   : > { %9631 = vmatpush3.bf16.msra.mxu1 %v12440_v13  ;;  %4264 = vmatprep.subr.bf16.mxu0 %v12687_v14 }
 0xf04   : > { %9632 = vmatprep.subr.bf16.mxu1 %v14579_v58 }
 0xf06   : > { %4265 = vmatpush1.bf16.msra.mxu0 %v12691_v25 }
 0xf07   : > { %9633 = vmatpush3.bf16.msra.mxu1 %v12446_v5  ;;  %4266 = vmatprep.subr.bf16.mxu0 %v12695_v21 }
 0xf08   : > { %9634 = vmatprep.subr.bf16.mxu1 %v14579_v58 }
 0xf0a   : > { %4267 = vmatpush1.bf16.msra.mxu0 %v12699_v54 }
 0xf0b   : > { %9635 = vmatpush3.bf16.msra.mxu1 %v12452_v9  ;;  %4268 = vmatprep.subr.bf16.mxu0 %v12703_v51 }
 0xf0c   : > { %9636 = vmatprep.subr.bf16.mxu1 %v14579_v58 }
 0xf0e   : > { %4269 = vmatpush1.bf16.msra.mxu0 %v12707_v50 }
 0xf0f   : > { %9637 = vmatpush3.bf16.msra.mxu1 %v12458_v36  ;;  %4444 = vmatprep.subr.bf16.mxu0 %v12629_v6 }
 0xf10   : > { %9642 = vmatprep.subr.bf16.mxu1 %v14579_v58 }
 0xfb1   : > { %v4098_v35 = vpop.f32.mrf.mxu0  ;;  %v4139_v32 = vpop.f32.mrf.mxu1 }
 0xfb2   : > { %v4145_v4 = vadd.f32 %v4098_v35, %v888_v1  ;;  %v4159_v38 = vadd.f32 %v12523_v39, %v4139_v32  ;;  %v4247_v35 = vmul.f32 %v4245_v62, %v12643_v31  ;;  %v14619_v62 = vld [vmem:[#allocation67_spill] sm:$0xff] }
 0xfb3   : > { %v4100_v0 = vpop.f32.mrf.mxu0  ;;  %v9620_v42 = vpop.f32.mrf.mxu1 }
 0xfb4   : > { %v8810_v57 = vmul.f32 -1.442695, %v4145_v4  ;;  %v4152_v33 = vadd.f32 %v4100_v0, %v890_v53 }
 0xfb5   : > { %v4102_v60 = vpop.f32.mrf.mxu0  ;;  %v4142_v47 = vpop.f32.mrf.mxu1 }
 0xfb6   : > { %10328 = vpow2.f32 %v8810_v57  ;;  %v8811_v34 = vmul.f32 -1.442695, %v4152_v33 }
 0xfb7   : > { %v4103_v12 = vpop.f32.mrf.mxu0  ;;  %v9621_v27 = vpop.f32.mrf.mxu1 }
 0xfb8   : > { %10330 = vpow2.f32 %v8811_v34 }
 0xfc3   : > { %v10329_v26 = vpop.eup %10328 }
 0xfc4   : > { %v4149_v15 = vadd.f32 1.0, %v10329_v26 }
 0xfc5   : > { %v10331_v3 = vpop.eup %10330 }
 0xfc6   : > { %10332 = vrcp.f32 %v4149_v15  ;;  %v4156_v11 = vadd.f32 1.0, %v10331_v3 }
 0xfc8   : > { %10334 = vrcp.f32 %v4156_v11  ;;  %v14618_v11 = vld [vmem:[#allocation26_spill] sm:$0xff] }
 0xfd3   : > { %v10333_v16 = vpop.eup %10332 }
 0xfd4   : > { %v4160_v43 = vmul.f32 %v10333_v16, %v4159_v38  ;;  %v894_v38 = vadd.f32 %v14618_v11, %v11775_v56 }
 0xfd5   : > { %v10335_v44 = vpop.eup %10334 }
 0xfd6   : > { %v4161_v46 = vadd.f32 %v4160_v43, %v14616_v59  ;;  %v4163_v19 = vsub.f32 1.0, %v10335_v44  ;;  %v4165_v61 = vmul.f32 %v10335_v44, %v12643_v31 }
 0xfd8   : > { %10336 = vtanh.f32 %v4161_v46 }
 0xfe5   : > { %v10337_v49 = vpop.eup %10336 }
 0xfe6   : > { %v4164_v52 = vmul.f32 %v10337_v49, %v4163_v19 }
 0xfe8   : > { %v4166_v30 = vadd.f32 %v4165_v61, %v4164_v52 }
 0xfea   : > { %v4174_v1 = vmul.f32 %v4172_v29, %v4166_v30 }
 0xfec   : > { %v4176_v4 = vcombine.high %v4174_v1, %v4174_v1  ;;  %v4183_v32 = vrot.slane %v4174_v1, %v11788_v8  ;;  %v12722_v0 = vadd.f32 %v4247_v35, %v4174_v1 }
 0xfee   : > { %v4190_v57 = vrot.slane %v4176_v4, %v11788_v8  ;;  %v4191_v42 = vcombine.high %v4183_v32, %v4183_v32  ;;  %v4199_v60 = vrot.slane %v4183_v32, %v11788_v8  ;;  %8813 = vst.sshfl [vmem:[#allocation3 + $0xe] sm:$0x1 pattern:$0x73625140] %v4183_v32  ;;  %v4253_v28 = vpack.c.bf16 %v12722_v0, %v12722_v0 }
 0xff0   : > { %v4192_v53 = vcombine.high %v4190_v57, %v4190_v57  ;;  %v4206_v47 = vrot.slane %v4190_v57, %v11788_v8  ;;  %v4213_v12 = vrot.slane %v4191_v42, %v11788_v8  ;;  %v4221_v31 = vcombine.high %v4199_v60, %v4199_v60  ;;  %8814 = vst.sshfl [vmem:[#allocation3 + $0x2e] sm:$0x1 pattern:$0x73625140] %v4191_v42 }
 0xff1   : > { %8815 = vst.sshfl [vmem:[#allocation3 + $0x8e] sm:$0x1 pattern:$0x73625140] %v4190_v57  ;;  %4287 = vmatmul.mubr.bf16.vlgmr.msra.gmra.mxu0 %v4253_v28  ;;  %9639 = vmatmul.mubr.bf16.vlgmr.msra.gmra.mxu1 %v4253_v28  ;;  %v4362_v28 = vpop.permute.xlu0 %4361 }
 0xff2   : > { %4445 = vmatpush1.bf16.msra.mxu0 %v12591_v41  ;;  %v4220_v33 = vrot.slane %v4192_v53, %v11788_v8  ;;  %v4222_v27 = vcombine.high %v4206_v47, %v4206_v47  ;;  %v4223_v34 = vcombine.high %v4213_v12, %v4213_v12  ;;  %4235 = vst [vmem:[#allocation3 + $0x4e] sm:$0x1] %v4221_v31  ;;  %8816 = vst.sshfl [vmem:[#allocation3 + $0xae] sm:$0x1 pattern:$0x73625140] %v4192_v53  ;;  %v4435_v53 = vpop.permute.xlu1 %4434 }
 0xff3   : > { %9643 = vmatpush3.bf16.msra.mxu1 %v12413_v23  ;;  %4446 = vmatprep.subr.bf16.mxu0 %v12596_v18  ;;  %v14617_v23 = vld [vmem:[#allocation25_spill] sm:$0xff]  ;;  %v4437_v12 = vmul.f32 %v4435_v53, %v12722_v0 }
 0xff4   : > { %9644 = vmatprep.subr.bf16.mxu1 %v14579_v58  ;;  %4476 = vmatprep.mubr.bf16.mxu0 %v14580_v20  ;;  %v4224_v26 = vcombine.high %v4220_v33, %v4220_v33  ;;  %4236 = vst [vmem:[#allocation3 + $0x6e] sm:$0x1] %v4223_v34  ;;  %4239 = vst [vmem:[#allocation3 + $0xce] sm:$0x1] %v4222_v27 }
 0xff5   : > { %9658 = vmatprep.mubr.msk.bf16.mxu1 %vm10974_vm0, %v14579_v58 }
 0xff6   : > { %4447 = vmatpush1.bf16.msra.mxu0 %v12659_v24  ;;  %4240 = vst [vmem:[#allocation3 + $0xee] sm:$0x1] %v4224_v26 }
 0xff7   : > { %9645 = vmatpush3.bf16.msra.mxu1 %v12422_v45  ;;  %4448 = vmatprep.subr.bf16.mxu0 %v12663_v63  ;;  %v892_v45 = vadd.f32 %v14617_v23, %v11760_v48 }
 0xff8   : > { %9646 = vmatprep.subr.bf16.mxu1 %v14579_v58 }
 0xffa   : > { %4449 = vmatpush1.bf16.msra.mxu0 %v12667_v7 }
 0xffb   : > { %9647 = vmatpush3.bf16.msra.mxu1 %v12428_v37  ;;  %4450 = vmatprep.subr.bf16.mxu0 %v12671_v17 }
 0xffc   : > { %9648 = vmatprep.subr.bf16.mxu1 %v14579_v58 }
 0xffe   : > { %4451 = vmatpush1.bf16.msra.mxu0 %v12675_v10 }
 0xfff   : > { %9649 = vmatpush3.bf16.msra.mxu1 %v12434_v2  ;;  %4452 = vmatprep.subr.bf16.mxu0 %v12679_v55 }
0x1000   : > { %9650 = vmatprep.subr.bf16.mxu1 %v14579_v58 }
0x1002   : > { %4453 = vmatpush1.bf16.msra.mxu0 %v12683_v40 }
0x1003   : > { %9651 = vmatpush3.bf16.msra.mxu1 %v12440_v13  ;;  %4454 = vmatprep.subr.bf16.mxu0 %v12687_v14 }
0x1004   : > { %9652 = vmatprep.subr.bf16.mxu1 %v14579_v58 }
0x1006   : > { %4455 = vmatpush1.bf16.msra.mxu0 %v12691_v25 }
0x1007   : > { %9653 = vmatpush3.bf16.msra.mxu1 %v12446_v5  ;;  %4456 = vmatprep.subr.bf16.mxu0 %v12695_v21 }
0x1008   : > { %9654 = vmatprep.subr.bf16.mxu1 %v14579_v58 }
0x100a   : > { %4457 = vmatpush1.bf16.msra.mxu0 %v12699_v54 }
0x100b   : > { %9655 = vmatpush3.bf16.msra.mxu1 %v12452_v9  ;;  %4458 = vmatprep.subr.bf16.mxu0 %v12703_v51 }
0x100c   : > { %9656 = vmatprep.subr.bf16.mxu1 %v14579_v58 }
0x100e   : > { %4459 = vmatpush1.bf16.msra.mxu0 %v12707_v50 }
0x100f   : > { %9657 = vmatpush3.bf16.msra.mxu1 %v12458_v36  ;;  %4634 = vmatprep.subr.bf16.mxu0 %v12629_v6 }
0x1010   : > { %9662 = vmatprep.subr.bf16.mxu1 %v14579_v58 }
0x10b1   : > { %v4288_v37 = vpop.f32.mrf.mxu0  ;;  %v4329_v13 = vpop.f32.mrf.mxu1 }
0x10b2   : > { %v4335_v2 = vadd.f32 %v4288_v37, %v892_v45  ;;  %v4349_v52 = vadd.f32 %v12523_v39, %v4329_v13 }
0x10b3   : > { %v4290_v5 = vpop.f32.mrf.mxu0  ;;  %v9640_v15 = vpop.f32.mrf.mxu1 }
0x10b4   : > { %v8817_v9 = vmul.f32 -1.442695, %v4335_v2  ;;  %v4342_v43 = vadd.f32 %v4290_v5, %v894_v38  ;;  %v12794_v38 = vld [vmem:[#allocation4 + $0x98] ss:$12 sps:$4 sm:$0xff]  }
0x10b5   : > { %v4292_v3 = vpop.f32.mrf.mxu0  ;;  %v4332_v16 = vpop.f32.mrf.mxu1 }
0x10b6   : > { %10338 = vpow2.f32 %v8817_v9  ;;  %v8818_v46 = vmul.f32 -1.442695, %v4342_v43  ;;  %v12785_v3 = vld [vmem:[#allocation4 + $0xb0] ss:$12 sps:$4 sm:$0xff]   ;;  %v12800_v16 = vld [vmem:[#allocation4 + $0x80] ss:$12 sps:$4 sm:$0xff]  }
0x10b7   : > { %v4293_v36 = vpop.f32.mrf.mxu0  ;;  %v9641_v59 = vpop.f32.mrf.mxu1  ;;  %v12812_v43 = vld [vmem:[#allocation4 + $0x50] ss:$12 sps:$4 sm:$0xff]  }
0x10b8   : > { %10340 = vpow2.f32 %v8818_v46  ;;  %v12806_v36 = vld [vmem:[#allocation4 + $0x68] ss:$12 sps:$4 sm:$0xff]   ;;  %v12818_v59 = vld [vmem:[#allocation4 + $0x38] ss:$12 sps:$4 sm:$0xff]   ;;  %v12824_v46 = vld [vmem:[#allocation4 + $0x20] ss:$12 sps:$4 sm:$0xff]  }
0x10c3   : > { %v10339_v44 = vpop.eup %10338 }
0x10c4   : > { %v4339_v19 = vadd.f32 1.0, %v10339_v44  ;;  %v12830_v44 = vld [vmem:[#allocation4 + $0x8] ss:$12 sps:$4 sm:$0xff]  }
0x10c5   : > { %v10341_v49 = vpop.eup %10340 }
0x10c6   : > { %10342 = vrcp.f32 %v4339_v19  ;;  %v4346_v61 = vadd.f32 1.0, %v10341_v49  ;;  %v14620_v19 = vld [vmem:[#allocation27_spill] sm:$0xff] }
0x10c7   : > { %v898_v49 = vadd.f32 %v14620_v19, %v11760_v48  ;;  %v4625_v19 = vpop.permute.xlu1 %4624 }
0x10c8   : > { %10344 = vrcp.f32 %v4346_v61 }
0x10d3   : > { %v10343_v30 = vpop.eup %10342 }
0x10d4   : > { %v4350_v29 = vmul.f32 %v10343_v30, %v4349_v52 }
0x10d5   : > { %v10345_v35 = vpop.eup %10344 }
0x10d6   : > { %v4351_v1 = vadd.f32 %v4350_v29, %v14619_v62  ;;  %v4353_v4 = vsub.f32 1.0, %v10345_v35  ;;  %v4355_v57 = vmul.f32 %v10345_v35, %v12722_v0 }
0x10d8   : > { %10346 = vtanh.f32 %v4351_v1 }
0x10e5   : > { %v10347_v32 = vpop.eup %10346 }
0x10e6   : > { %v4354_v42 = vmul.f32 %v10347_v32, %v4353_v4  ;;  %v14621_v4 = vld [vmem:[#allocation28_spill] sm:$0xff] }
0x10e7   : > { %v900_v32 = vadd.f32 %v14621_v4, %v11775_v56 }
0x10e8   : > { %v4356_v60 = vadd.f32 %v4355_v57, %v4354_v42 }
0x10ea   : > { %v4364_v47 = vmul.f32 %v4362_v28, %v4356_v60 }
0x10ec   : > { %v4366_v31 = vcombine.high %v4364_v47, %v4364_v47  ;;  %v4373_v33 = vrot.slane %v4364_v47, %v11788_v8  ;;  %v12775_v27 = vadd.f32 %v4437_v12, %v4364_v47 }
0x10ee   : > { %v4380_v34 = vrot.slane %v4366_v31, %v11788_v8  ;;  %v4381_v26 = vcombine.high %v4373_v33, %v4373_v33  ;;  %v4389_v23 = vrot.slane %v4373_v33, %v11788_v8  ;;  %8820 = vst.sshfl [vmem:[#allocation3 + $0xf] sm:$0x1 pattern:$0x73625140] %v4373_v33  ;;  %v4443_v45 = vpack.c.bf16 %v12775_v27, %v12775_v27 }
0x10f0   : > { %v4382_v37 = vcombine.high %v4380_v34, %v4380_v34  ;;  %v4396_v2 = vrot.slane %v4380_v34, %v11788_v8  ;;  %v4403_v13 = vrot.slane %v4381_v26, %v11788_v8  ;;  %v4411_v0 = vcombine.high %v4389_v23, %v4389_v23  ;;  %8821 = vst.sshfl [vmem:[#allocation3 + $0x2f] sm:$0x1 pattern:$0x73625140] %v4381_v26 }
0x10f1   : > { %8822 = vst.sshfl [vmem:[#allocation3 + $0x8f] sm:$0x1 pattern:$0x73625140] %v4380_v34  ;;  %4477 = vmatmul.mubr.bf16.vlgmr.msra.gmra.mxu0 %v4443_v45  ;;  %9659 = vmatmul.mubr.bf16.vlgmr.msra.gmra.mxu1 %v4443_v45  ;;  %v14622_v45 = vld [vmem:[#allocation70_spill] sm:$0xff] }
0x10f2   : > { %4635 = vmatpush1.bf16.msra.mxu0 %v12591_v41  ;;  %v4410_v5 = vrot.slane %v4382_v37, %v11788_v8  ;;  %v4412_v9 = vcombine.high %v4396_v2, %v4396_v2  ;;  %v4413_v15 = vcombine.high %v4403_v13, %v4403_v13  ;;  %4425 = vst [vmem:[#allocation3 + $0x4f] sm:$0x1] %v4411_v0  ;;  %8823 = vst.sshfl [vmem:[#allocation3 + $0xaf] sm:$0x1 pattern:$0x73625140] %v4382_v37 }
0x10f3   : > { %9663 = vmatpush3.bf16.msra.mxu1 %v12785_v3  ;;  %4636 = vmatprep.subr.bf16.mxu0 %v12596_v18 }
0x10f4   : > { %9664 = vmatprep.subr.bf16.mxu1 %v14579_v58  ;;  %4666 = vmatprep.mubr.bf16.mxu0 %v14580_v20  ;;  %v4414_v11 = vcombine.high %v4410_v5, %v4410_v5  ;;  %4426 = vst [vmem:[#allocation3 + $0x6f] sm:$0x1] %v4413_v15  ;;  %4429 = vst [vmem:[#allocation3 + $0xcf] sm:$0x1] %v4412_v9 }
0x10f5   : > { %9678 = vmatprep.mubr.msk.bf16.mxu1 %vm10974_vm0, %v14579_v58 }
0x10f6   : > { %4637 = vmatpush1.bf16.msra.mxu0 %v12659_v24  ;;  %4430 = vst [vmem:[#allocation3 + $0xef] sm:$0x1] %v4414_v11  ;;  %v4552_v11 = vpop.permute.xlu0 %4551 }
0x10f7   : > { %9665 = vmatpush3.bf16.msra.mxu1 %v12794_v38  ;;  %4638 = vmatprep.subr.bf16.mxu0 %v12663_v63 }
0x10f8   : > { %9666 = vmatprep.subr.bf16.mxu1 %v14579_v58 }
0x10fa   : > { %4639 = vmatpush1.bf16.msra.mxu0 %v12667_v7 }
0x10fb   : > { %9667 = vmatpush3.bf16.msra.mxu1 %v12800_v16  ;;  %4640 = vmatprep.subr.bf16.mxu0 %v12671_v17 }
0x10fc   : > { %9668 = vmatprep.subr.bf16.mxu1 %v14579_v58 }
0x10fe   : > { %4641 = vmatpush1.bf16.msra.mxu0 %v12675_v10 }
0x10ff   : > { %9669 = vmatpush3.bf16.msra.mxu1 %v12806_v36  ;;  %4642 = vmatprep.subr.bf16.mxu0 %v12679_v55 }
0x1100   : > { %9670 = vmatprep.subr.bf16.mxu1 %v14579_v58 }
0x1102   : > { %4643 = vmatpush1.bf16.msra.mxu0 %v12683_v40 }
0x1103   : > { %9671 = vmatpush3.bf16.msra.mxu1 %v12812_v43  ;;  %4644 = vmatprep.subr.bf16.mxu0 %v12687_v14 }
0x1104   : > { %9672 = vmatprep.subr.bf16.mxu1 %v14579_v58 }
0x1106   : > { %4645 = vmatpush1.bf16.msra.mxu0 %v12691_v25 }
0x1107   : > { %9673 = vmatpush3.bf16.msra.mxu1 %v12818_v59  ;;  %4646 = vmatprep.subr.bf16.mxu0 %v12695_v21 }
0x1108   : > { %9674 = vmatprep.subr.bf16.mxu1 %v14579_v58 }
0x110a   : > { %4647 = vmatpush1.bf16.msra.mxu0 %v12699_v54 }
0x110b   : > { %9675 = vmatpush3.bf16.msra.mxu1 %v12824_v46  ;;  %4648 = vmatprep.subr.bf16.mxu0 %v12703_v51 }
0x110c   : > { %9676 = vmatprep.subr.bf16.mxu1 %v14579_v58 }
0x110e   : > { %4649 = vmatpush1.bf16.msra.mxu0 %v12707_v50 }
0x110f   : > { %9677 = vmatpush3.bf16.msra.mxu1 %v12830_v44  ;;  %4824 = vmatprep.subr.bf16.mxu0 %v12629_v6 }
0x1110   : > { %9682 = vmatprep.subr.bf16.mxu1 %v14579_v58 }
0x11b1   : > { %v4478_v61 = vpop.f32.mrf.mxu0  ;;  %v4519_v30 = vpop.f32.mrf.mxu1 }
0x11b2   : > { %v4525_v52 = vadd.f32 %v4478_v61, %v898_v49  ;;  %v4539_v34 = vadd.f32 %v12523_v39, %v4519_v30  ;;  %v4627_v61 = vmul.f32 %v4625_v19, %v12775_v27 }
0x11b3   : > { %v4480_v29 = vpop.f32.mrf.mxu0  ;;  %v9660_v1 = vpop.f32.mrf.mxu1 }
0x11b4   : > { %v8824_v62 = vmul.f32 -1.442695, %v4525_v52  ;;  %v4532_v60 = vadd.f32 %v4480_v29, %v900_v32 }
0x11b5   : > { %v4482_v35 = vpop.f32.mrf.mxu0  ;;  %v4522_v57 = vpop.f32.mrf.mxu1 }
0x11b6   : > { %10348 = vpow2.f32 %v8824_v62  ;;  %v8825_v53 = vmul.f32 -1.442695, %v4532_v60 }
0x11b7   : > { %v4483_v42 = vpop.f32.mrf.mxu0  ;;  %v9661_v28 = vpop.f32.mrf.mxu1 }
0x11b8   : > { %10350 = vpow2.f32 %v8825_v53 }
0x11c3   : > { %v10349_v47 = vpop.eup %10348 }
0x11c4   : > { %v4529_v12 = vadd.f32 1.0, %v10349_v47  ;;  %v14623_v47 = vld [vmem:[#allocation29_spill] sm:$0xff] }
0x11c5   : > { %v10351_v31 = vpop.eup %10350 }
0x11c6   : > { %10352 = vrcp.f32 %v4529_v12  ;;  %v4536_v33 = vadd.f32 1.0, %v10351_v31  ;;  %v902_v12 = vadd.f32 %v14623_v47, %v11760_v48  ;;  %v4742_v47 = vpop.permute.xlu0 %4741 }
0x11c8   : > { %10354 = vrcp.f32 %v4536_v33 }
0x11d3   : > { %v10353_v26 = vpop.eup %10352 }
0x11d4   : > { %v4540_v23 = vmul.f32 %v10353_v26, %v4539_v34 }
0x11d5   : > { %v10355_v2 = vpop.eup %10354 }
0x11d6   : > { %v4541_v37 = vadd.f32 %v4540_v23, %v14622_v45  ;;  %v4543_v13 = vsub.f32 1.0, %v10355_v2  ;;  %v4545_v5 = vmul.f32 %v10355_v2, %v12775_v27  ;;  %v14624_v2 = vld [vmem:[#allocation30_spill] sm:$0xff] }
0x11d8   : > { %10356 = vtanh.f32 %v4541_v37 }
0x11e5   : > { %v10357_v0 = vpop.eup %10356 }
0x11e6   : > { %v4544_v9 = vmul.f32 %v10357_v0, %v4543_v13  ;;  %v904_v13 = vadd.f32 %v14624_v2, %v11775_v56 }
0x11e8   : > { %v4546_v15 = vadd.f32 %v4545_v5, %v4544_v9 }
0x11ea   : > { %v4554_v49 = vmul.f32 %v4552_v11, %v4546_v15 }
0x11ec   : > { %v4556_v52 = vcombine.high %v4554_v49, %v4554_v49  ;;  %v4563_v39 = vrot.slane %v4554_v49, %v11788_v8  ;;  %v12844_v30 = vadd.f32 %v4627_v61, %v4554_v49 }
0x11ee   : > { %v4570_v29 = vrot.slane %v4556_v52, %v11788_v8  ;;  %v4571_v62 = vcombine.high %v4563_v39, %v4563_v39  ;;  %v4579_v1 = vrot.slane %v4563_v39, %v11788_v8  ;;  %8827 = vst.sshfl [vmem:[#allocation3 + $0x10] sm:$0x1 pattern:$0x73625140] %v4563_v39  ;;  %v4633_v35 = vpack.c.bf16 %v12844_v30, %v12844_v30  ;;  %v12895_v39 = vld [vmem:[%s14424_s6] ss:$0 sm:$0xff] }
0x11f0   : > { %v4572_v4 = vcombine.high %v4570_v29, %v4570_v29  ;;  %v4586_v32 = vrot.slane %v4570_v29, %v11788_v8  ;;  %v4593_v57 = vrot.slane %v4571_v62, %v11788_v8  ;;  %v4601_v27 = vcombine.high %v4579_v1, %v4579_v1  ;;  %8828 = vst.sshfl [vmem:[#allocation3 + $0x30] sm:$0x1 pattern:$0x73625140] %v4571_v62  ;;  %v14625_v1 = vld [vmem:[#allocation72_spill] sm:$0xff] }
0x11f1   : > { %8829 = vst.sshfl [vmem:[#allocation3 + $0x90] sm:$0x1 pattern:$0x73625140] %v4570_v29  ;;  %4667 = vmatmul.mubr.bf16.vlgmr.msra.gmra.mxu0 %v4633_v35  ;;  %9679 = vmatmul.mubr.bf16.vlgmr.msra.gmra.mxu1 %v4633_v35  ;;  %v1078_v35 = vadd.f32 %v14625_v1, %v11673_v22 }
0x11f2   : > { %4825 = vmatpush1.bf16.msra.mxu0 %v12591_v41  ;;  %v4600_v42 = vrot.slane %v4572_v4, %v11788_v8  ;;  %v4602_v60 = vcombine.high %v4586_v32, %v4586_v32  ;;  %v4603_v28 = vcombine.high %v4593_v57, %v4593_v57  ;;  %4615 = vst [vmem:[#allocation3 + $0x50] sm:$0x1] %v4601_v27  ;;  %8830 = vst.sshfl [vmem:[#allocation3 + $0xb0] sm:$0x1 pattern:$0x73625140] %v4572_v4 }
0x11f3   : > { %9683 = vmatpush3.bf16.msra.mxu1 %v12785_v3  ;;  %4826 = vmatprep.subr.bf16.mxu0 %v12596_v18 }
0x11f4   : > { %9684 = vmatprep.subr.bf16.mxu1 %v14579_v58  ;;  %4856 = vmatprep.mubr.bf16.mxu0 %v14580_v20  ;;  %v4604_v53 = vcombine.high %v4600_v42, %v4600_v42  ;;  %4616 = vst [vmem:[#allocation3 + $0x70] sm:$0x1] %v4603_v28  ;;  %4619 = vst [vmem:[#allocation3 + $0xd0] sm:$0x1] %v4602_v60 }
0x11f5   : > { %9698 = vmatprep.mubr.msk.bf16.mxu1 %vm10974_vm0, %v14579_v58 }
0x11f6   : > { %4827 = vmatpush1.bf16.msra.mxu0 %v12659_v24  ;;  %4620 = vst [vmem:[#allocation3 + $0xf0] sm:$0x1] %v4604_v53 }
0x11f7   : > { %9685 = vmatpush3.bf16.msra.mxu1 %v12794_v38  ;;  %4828 = vmatprep.subr.bf16.mxu0 %v12663_v63 }
0x11f8   : > { %9686 = vmatprep.subr.bf16.mxu1 %v14579_v58 }
0x11fa   : > { %4829 = vmatpush1.bf16.msra.mxu0 %v12667_v7 }
0x11fb   : > { %9687 = vmatpush3.bf16.msra.mxu1 %v12800_v16  ;;  %4830 = vmatprep.subr.bf16.mxu0 %v12671_v17 }
0x11fc   : > { %9688 = vmatprep.subr.bf16.mxu1 %v14579_v58 }
0x11fe   : > { %4831 = vmatpush1.bf16.msra.mxu0 %v12675_v10 }
0x11ff   : > { %9689 = vmatpush3.bf16.msra.mxu1 %v12806_v36  ;;  %4832 = vmatprep.subr.bf16.mxu0 %v12679_v55 }
0x1200   : > { %9690 = vmatprep.subr.bf16.mxu1 %v14579_v58 }
0x1202   : > { %4833 = vmatpush1.bf16.msra.mxu0 %v12683_v40 }
0x1203   : > { %9691 = vmatpush3.bf16.msra.mxu1 %v12812_v43  ;;  %4834 = vmatprep.subr.bf16.mxu0 %v12687_v14 }
0x1204   : > { %9692 = vmatprep.subr.bf16.mxu1 %v14579_v58 }
0x1206   : > { %4835 = vmatpush1.bf16.msra.mxu0 %v12691_v25 }
0x1207   : > { %9693 = vmatpush3.bf16.msra.mxu1 %v12818_v59  ;;  %4836 = vmatprep.subr.bf16.mxu0 %v12695_v21 }
0x1208   : > { %9694 = vmatprep.subr.bf16.mxu1 %v14579_v58 }
0x120a   : > { %4837 = vmatpush1.bf16.msra.mxu0 %v12699_v54 }
0x120b   : > { %9695 = vmatpush3.bf16.msra.mxu1 %v12824_v46  ;;  %4838 = vmatprep.subr.bf16.mxu0 %v12703_v51 }
0x120c   : > { %9696 = vmatprep.subr.bf16.mxu1 %v14579_v58 }
0x120e   : > { %4839 = vmatpush1.bf16.msra.mxu0 %v12707_v50 }
0x120f   : > { %9697 = vmatpush3.bf16.msra.mxu1 %v12830_v44  ;;  %5014 = vmatprep.subr.bf16.mxu0 %v12629_v6 }
0x1210   : > { %9702 = vmatprep.subr.bf16.mxu1 %v14579_v58 }
0x12b1   : > { %v4668_v31 = vpop.f32.mrf.mxu0  ;;  %v4709_v34 = vpop.f32.mrf.mxu1 }
0x12b2   : > { %v4715_v33 = vadd.f32 %v4668_v31, %v902_v12  ;;  %v4729_v29 = vadd.f32 %v12895_v39, %v4709_v34  ;;  %v4815_v12 = vpop.permute.xlu1 %4814 }
0x12b3   : > { %v4670_v26 = vpop.f32.mrf.mxu0  ;;  %v9680_v45 = vpop.f32.mrf.mxu1 }
0x12b4   : > { %v8831_v23 = vmul.f32 -1.442695, %v4715_v33  ;;  %v4722_v9 = vadd.f32 %v4670_v26, %v904_v13  ;;  %v4817_v33 = vmul.f32 %v4815_v12, %v12844_v30 }
0x12b5   : > { %v4672_v37 = vpop.f32.mrf.mxu0  ;;  %v4712_v0 = vpop.f32.mrf.mxu1 }
0x12b6   : > { %10358 = vpow2.f32 %v8831_v23  ;;  %v8832_v11 = vmul.f32 -1.442695, %v4722_v9 }
0x12b7   : > { %v4673_v5 = vpop.f32.mrf.mxu0  ;;  %v9681_v15 = vpop.f32.mrf.mxu1 }
0x12b8   : > { %10360 = vpow2.f32 %v8832_v11 }
0x12c3   : > { %v10359_v19 = vpop.eup %10358 }
0x12c4   : > { %v4719_v49 = vadd.f32 1.0, %v10359_v19 }
0x12c5   : > { %v10361_v61 = vpop.eup %10360 }
0x12c6   : > { %10362 = vrcp.f32 %v4719_v49  ;;  %v4726_v52 = vadd.f32 1.0, %v10361_v61 }
0x12c8   : > { %10364 = vrcp.f32 %v4726_v52 }
0x12d3   : > { %v10363_v62 = vpop.eup %10362 }
0x12d4   : > { %v4730_v4 = vmul.f32 %v10363_v62, %v4729_v29 }
0x12d5   : > { %v10365_v57 = vpop.eup %10364 }
0x12d6   : > { %v4731_v32 = vadd.f32 %v4730_v4, %v1078_v35  ;;  %v4733_v27 = vsub.f32 1.0, %v10365_v57  ;;  %v4735_v60 = vmul.f32 %v10365_v57, %v12844_v30 }
0x12d8   : > { %10366 = vtanh.f32 %v4731_v32  ;;  %v14627_v32 = vld [vmem:[#allocation32_spill] sm:$0xff] }
0x12d9   : > { %v910_v57 = vadd.f32 %v14627_v32, %v11775_v56 }
0x12e5   : > { %v10367_v42 = vpop.eup %10366 }
0x12e6   : > { %v4734_v28 = vmul.f32 %v10367_v42, %v4733_v27 }
0x12e8   : > { %v4736_v53 = vadd.f32 %v4735_v60, %v4734_v28 }
0x12ea   : > { %v4744_v31 = vmul.f32 %v4742_v47, %v4736_v53 }
0x12ec   : > { %v4746_v34 = vcombine.high %v4744_v31, %v4744_v31  ;;  %v4753_v26 = vrot.slane %v4744_v31, %v11788_v8  ;;  %v12903_v23 = vadd.f32 %v4817_v33, %v4744_v31 }
0x12ee   : > { %v4760_v45 = vrot.slane %v4746_v34, %v11788_v8  ;;  %v4761_v37 = vcombine.high %v4753_v26, %v4753_v26  ;;  %v4769_v2 = vrot.slane %v4753_v26, %v11788_v8  ;;  %8834 = vst.sshfl [vmem:[#allocation3 + $0x11] sm:$0x1 pattern:$0x73625140] %v4753_v26  ;;  %v4823_v13 = vpack.c.bf16 %v12903_v23, %v12903_v23 }
0x12f0   : > { %v4762_v0 = vcombine.high %v4760_v45, %v4760_v45  ;;  %v4776_v5 = vrot.slane %v4760_v45, %v11788_v8  ;;  %v4783_v9 = vrot.slane %v4761_v37, %v11788_v8  ;;  %v4791_v30 = vcombine.high %v4769_v2, %v4769_v2  ;;  %8835 = vst.sshfl [vmem:[#allocation3 + $0x31] sm:$0x1 pattern:$0x73625140] %v4761_v37 }
0x12f1   : > { %8836 = vst.sshfl [vmem:[#allocation3 + $0x91] sm:$0x1 pattern:$0x73625140] %v4760_v45  ;;  %4857 = vmatmul.mubr.bf16.vlgmr.msra.gmra.mxu0 %v4823_v13  ;;  %9699 = vmatmul.mubr.bf16.vlgmr.msra.gmra.mxu1 %v4823_v13  ;;  %v14628_v45 = vld [vmem:[#allocation69_spill] sm:$0xff] }
0x12f2   : > { %5015 = vmatpush1.bf16.msra.mxu0 %v12591_v41  ;;  %v4790_v15 = vrot.slane %v4762_v0, %v11788_v8  ;;  %v4792_v11 = vcombine.high %v4776_v5, %v4776_v5  ;;  %v4793_v19 = vcombine.high %v4783_v9, %v4783_v9  ;;  %4805 = vst [vmem:[#allocation3 + $0x51] sm:$0x1] %v4791_v30  ;;  %8837 = vst.sshfl [vmem:[#allocation3 + $0xb1] sm:$0x1 pattern:$0x73625140] %v4762_v0 }
0x12f3   : > { %9703 = vmatpush3.bf16.msra.mxu1 %v12785_v3  ;;  %5016 = vmatprep.subr.bf16.mxu0 %v12596_v18  ;;  %v14626_v41 = vld [vmem:[#allocation31_spill] sm:$0xff] }
0x12f4   : > { %9704 = vmatprep.subr.bf16.mxu1 %v14579_v58  ;;  %5046 = vmatprep.mubr.bf16.mxu0 %v14580_v20  ;;  %v4794_v49 = vcombine.high %v4790_v15, %v4790_v15  ;;  %4806 = vst [vmem:[#allocation3 + $0x71] sm:$0x1] %v4793_v19  ;;  %4809 = vst [vmem:[#allocation3 + $0xd1] sm:$0x1] %v4792_v11  ;;  %v908_v18 = vadd.f32 %v14626_v41, %v11760_v48  ;;  %v4932_v15 = vpop.permute.xlu0 %4931  ;;  %v5005_v11 = vpop.permute.xlu1 %5004 }
0x12f5   : > { %9718 = vmatprep.mubr.msk.bf16.mxu1 %vm10974_vm0, %v14579_v58 }
0x12f6   : > { %5017 = vmatpush1.bf16.msra.mxu0 %v12659_v24  ;;  %4810 = vst [vmem:[#allocation3 + $0xf1] sm:$0x1] %v4794_v49  ;;  %v5007_v49 = vmul.f32 %v5005_v11, %v12903_v23 }
0x12f7   : > { %9705 = vmatpush3.bf16.msra.mxu1 %v12794_v38  ;;  %5018 = vmatprep.subr.bf16.mxu0 %v12663_v63 }
0x12f8   : > { %9706 = vmatprep.subr.bf16.mxu1 %v14579_v58 }
0x12fa   : > { %5019 = vmatpush1.bf16.msra.mxu0 %v12667_v7 }
0x12fb   : > { %9707 = vmatpush3.bf16.msra.mxu1 %v12800_v16  ;;  %5020 = vmatprep.subr.bf16.mxu0 %v12671_v17 }
0x12fc   : > { %9708 = vmatprep.subr.bf16.mxu1 %v14579_v58 }
0x12fe   : > { %5021 = vmatpush1.bf16.msra.mxu0 %v12675_v10 }
0x12ff   : > { %9709 = vmatpush3.bf16.msra.mxu1 %v12806_v36  ;;  %5022 = vmatprep.subr.bf16.mxu0 %v12679_v55 }
0x1300   : > { %9710 = vmatprep.subr.bf16.mxu1 %v14579_v58 }
0x1302   : > { %5023 = vmatpush1.bf16.msra.mxu0 %v12683_v40 }
0x1303   : > { %9711 = vmatpush3.bf16.msra.mxu1 %v12812_v43  ;;  %5024 = vmatprep.subr.bf16.mxu0 %v12687_v14 }
0x1304   : > { %9712 = vmatprep.subr.bf16.mxu1 %v14579_v58 }
0x1306   : > { %5025 = vmatpush1.bf16.msra.mxu0 %v12691_v25 }
0x1307   : > { %9713 = vmatpush3.bf16.msra.mxu1 %v12818_v59  ;;  %5026 = vmatprep.subr.bf16.mxu0 %v12695_v21 }
0x1308   : > { %9714 = vmatprep.subr.bf16.mxu1 %v14579_v58 }
0x130a   : > { %5027 = vmatpush1.bf16.msra.mxu0 %v12699_v54 }
0x130b   : > { %9715 = vmatpush3.bf16.msra.mxu1 %v12824_v46  ;;  %5028 = vmatprep.subr.bf16.mxu0 %v12703_v51 }
0x130c   : > { %9716 = vmatprep.subr.bf16.mxu1 %v14579_v58 }
0x130e   : > { %5029 = vmatpush1.bf16.msra.mxu0 %v12707_v50 }
0x130f   : > { %9717 = vmatpush3.bf16.msra.mxu1 %v12830_v44  ;;  %5204 = vmatprep.subr.bf16.mxu0 %v12629_v6 }
0x1310   : > { %9722 = vmatprep.subr.bf16.mxu1 %v14579_v58 }
0x13b1   : > { %v4858_v61 = vpop.f32.mrf.mxu0  ;;  %v4899_v29 = vpop.f32.mrf.mxu1 }
0x13b2   : > { %v4905_v52 = vadd.f32 %v4858_v61, %v908_v18  ;;  %v4919_v33 = vadd.f32 %v12895_v39, %v4899_v29 }
0x13b3   : > { %v4860_v62 = vpop.f32.mrf.mxu0  ;;  %v9700_v35 = vpop.f32.mrf.mxu1 }
0x13b4   : > { %v8838_v1 = vmul.f32 -1.442695, %v4905_v52  ;;  %v4912_v60 = vadd.f32 %v4860_v62, %v910_v57  ;;  %v12964_v57 = vld [vmem:[#allocation4 + $0xa8] ss:$12 sps:$4 sm:$0xff]  }
0x13b5   : > { %v4862_v4 = vpop.f32.mrf.mxu0  ;;  %v4902_v27 = vpop.f32.mrf.mxu1 }
0x13b6   : > { %10368 = vpow2.f32 %v8838_v1  ;;  %v8839_v28 = vmul.f32 -1.442695, %v4912_v60 }
0x13b7   : > { %v4863_v42 = vpop.f32.mrf.mxu0  ;;  %v9701_v6 = vpop.f32.mrf.mxu1 }
0x13b8   : > { %10370 = vpow2.f32 %v8839_v28  ;;  %v12969_v6 = vld [vmem:[#allocation4 + $0x94] ss:$12 sps:$4 sm:$0xff]  }
0x13c3   : > { %v10369_v53 = vpop.eup %10368 }
0x13c4   : > { %v4909_v47 = vadd.f32 1.0, %v10369_v53 }
0x13c5   : > { %v10371_v12 = vpop.eup %10370 }
0x13c6   : > { %10372 = vrcp.f32 %v4909_v47  ;;  %v4916_v31 = vadd.f32 1.0, %v10371_v12 }
0x13c8   : > { %10374 = vrcp.f32 %v4916_v31 }
0x13d3   : > { %v10373_v34 = vpop.eup %10372 }
0x13d4   : > { %v4920_v26 = vmul.f32 %v10373_v34, %v4919_v33 }
0x13d5   : > { %v10375_v2 = vpop.eup %10374 }
0x13d6   : > { %v4921_v37 = vadd.f32 %v4920_v26, %v14628_v45  ;;  %v4923_v13 = vsub.f32 1.0, %v10375_v2  ;;  %v4925_v5 = vmul.f32 %v10375_v2, %v12903_v23 }
0x13d8   : > { %10376 = vtanh.f32 %v4921_v37 }
0x13e5   : > { %v10377_v0 = vpop.eup %10376 }
0x13e6   : > { %v4924_v9 = vmul.f32 %v10377_v0, %v4923_v13  ;;  %v14631_v0 = vld [vmem:[#allocation71_spill] sm:$0xff] }
0x13e8   : > { %v4926_v30 = vadd.f32 %v4925_v5, %v4924_v9 }
0x13ea   : > { %v4934_v19 = vmul.f32 %v4932_v15, %v4926_v30 }
0x13ec   : > { %v4936_v41 = vcombine.high %v4934_v19, %v4934_v19  ;;  %v4943_v18 = vrot.slane %v4934_v19, %v11788_v8  ;;  %v12956_v61 = vadd.f32 %v5007_v49, %v4934_v19 }
0x13ee   : > { %v4950_v52 = vrot.slane %v4936_v41, %v11788_v8  ;;  %v4951_v29 = vcombine.high %v4943_v18, %v4943_v18  ;;  %v4959_v62 = vrot.slane %v4943_v18, %v11788_v8  ;;  %8841 = vst.sshfl [vmem:[#allocation3 + $0x12] sm:$0x1 pattern:$0x73625140] %v4943_v18  ;;  %v5013_v1 = vpack.c.bf16 %v12956_v61, %v12956_v61  ;;  %v5122_v41 = vpop.permute.xlu0 %5121  ;;  %v5195_v18 = vpop.permute.xlu1 %5194 }
0x13f0   : > { %v4952_v35 = vcombine.high %v4950_v52, %v4950_v52  ;;  %v4966_v4 = vrot.slane %v4950_v52, %v11788_v8  ;;  %v4973_v32 = vrot.slane %v4951_v29, %v11788_v8  ;;  %v4981_v23 = vcombine.high %v4959_v62, %v4959_v62  ;;  %8842 = vst.sshfl [vmem:[#allocation3 + $0x32] sm:$0x1 pattern:$0x73625140] %v4951_v29 }
0x13f1   : > { %8843 = vst.sshfl [vmem:[#allocation3 + $0x92] sm:$0x1 pattern:$0x73625140] %v4950_v52  ;;  %5047 = vmatmul.mubr.bf16.vlgmr.msra.gmra.mxu0 %v5013_v1  ;;  %9719 = vmatmul.mubr.bf16.vlgmr.msra.gmra.mxu1 %v5013_v1  ;;  %v5197_v29 = vmul.f32 %v5195_v18, %v12956_v61 }
0x13f2   : > { %5205 = vmatpush1.bf16.msra.mxu0 %v12964_v57  ;;  %v4980_v27 = vrot.slane %v4952_v35, %v11788_v8  ;;  %v4982_v42 = vcombine.high %v4966_v4, %v4966_v4  ;;  %v4983_v60 = vcombine.high %v4973_v32, %v4973_v32  ;;  %4995 = vst [vmem:[#allocation3 + $0x52] sm:$0x1] %v4981_v23  ;;  %8844 = vst.sshfl [vmem:[#allocation3 + $0xb2] sm:$0x1 pattern:$0x73625140] %v4952_v35 }
0x13f3   : > { %9723 = vmatpush3.bf16.msra.mxu1 %v12785_v3  ;;  %5206 = vmatprep.subr.bf16.mxu0 %v12969_v6 }
0x13f4   : > { %9724 = vmatprep.subr.bf16.mxu1 %v14579_v58  ;;  %5236 = vmatprep.mubr.bf16.mxu0 %v14580_v20  ;;  %v4984_v28 = vcombine.high %v4980_v27, %v4980_v27  ;;  %4996 = vst [vmem:[#allocation3 + $0x72] sm:$0x1] %v4983_v60  ;;  %4999 = vst [vmem:[#allocation3 + $0xd2] sm:$0x1] %v4982_v42 }
0x13f5   : > { %9738 = vmatprep.mubr.msk.bf16.mxu1 %vm10974_vm0, %v14579_v58 }
0x13f6   : > { %5207 = vmatpush1.bf16.msra.mxu0 %v12659_v24  ;;  %5000 = vst [vmem:[#allocation3 + $0xf2] sm:$0x1] %v4984_v28  ;;  %v13002_v24 = vld [vmem:[#allocation4 + $0xac] ss:$12 sps:$4 sm:$0xff]  }
0x13f7   : > { %9725 = vmatpush3.bf16.msra.mxu1 %v12794_v38  ;;  %5208 = vmatprep.subr.bf16.mxu0 %v12663_v63  ;;  %v14629_v63 = vld [vmem:[#allocation33_spill] sm:$0xff] }
0x13f8   : > { %9726 = vmatprep.subr.bf16.mxu1 %v14579_v58 }
0x13fa   : > { %5209 = vmatpush1.bf16.msra.mxu0 %v12667_v7  ;;  %v912_v7 = vadd.f32 %v14629_v63, %v11760_v48 }
0x13fb   : > { %9727 = vmatpush3.bf16.msra.mxu1 %v12800_v16  ;;  %5210 = vmatprep.subr.bf16.mxu0 %v12671_v17 }
0x13fc   : > { %9728 = vmatprep.subr.bf16.mxu1 %v14579_v58 }
0x13fe   : > { %5211 = vmatpush1.bf16.msra.mxu0 %v12675_v10 }
0x13ff   : > { %9729 = vmatpush3.bf16.msra.mxu1 %v12806_v36  ;;  %5212 = vmatprep.subr.bf16.mxu0 %v12679_v55 }
0x1400   : > { %9730 = vmatprep.subr.bf16.mxu1 %v14579_v58 }
0x1402   : > { %5213 = vmatpush1.bf16.msra.mxu0 %v12683_v40 }
0x1403   : > { %9731 = vmatpush3.bf16.msra.mxu1 %v12812_v43  ;;  %5214 = vmatprep.subr.bf16.mxu0 %v12687_v14 }
0x1404   : > { %9732 = vmatprep.subr.bf16.mxu1 %v14579_v58 }
0x1406   : > { %5215 = vmatpush1.bf16.msra.mxu0 %v12691_v25 }
0x1407   : > { %9733 = vmatpush3.bf16.msra.mxu1 %v12818_v59  ;;  %5216 = vmatprep.subr.bf16.mxu0 %v12695_v21 }
0x1408   : > { %9734 = vmatprep.subr.bf16.mxu1 %v14579_v58 }
0x140a   : > { %5217 = vmatpush1.bf16.msra.mxu0 %v12699_v54  ;;  %v14630_v54 = vld [vmem:[#allocation34_spill] sm:$0xff] }
0x140b   : > { %9735 = vmatpush3.bf16.msra.mxu1 %v12824_v46  ;;  %5218 = vmatprep.subr.bf16.mxu0 %v12703_v51  ;;  %v914_v51 = vadd.f32 %v14630_v54, %v11775_v56  ;;  %v13051_v54 = vld [vmem:[#allocation4 + $0x4c] ss:$12 sps:$4 sm:$0xff]  }
0x140c   : > { %9736 = vmatprep.subr.bf16.mxu1 %v14579_v58 }
0x140e   : > { %5219 = vmatpush1.bf16.msra.mxu0 %v12707_v50 }
0x140f   : > { %9737 = vmatpush3.bf16.msra.mxu1 %v12830_v44  ;;  %5394 = vmatprep.subr.bf16.mxu0 %v13002_v24 }
0x1410   : > { %9742 = vmatprep.subr.bf16.mxu1 %v14579_v58 }
0x14b1   : > { %v5048_v17 = vpop.f32.mrf.mxu0  ;;  %v5089_v55 = vpop.f32.mrf.mxu1 }
0x14b2   : > { %v5095_v10 = vadd.f32 %v5048_v17, %v912_v7  ;;  %v5109_v37 = vadd.f32 %v12895_v39, %v5089_v55  ;;  %v13031_v55 = vld [vmem:[#allocation4 + $0x90] ss:$12 sps:$4 sm:$0xff]  }
0x14b3   : > { %v5050_v40 = vpop.f32.mrf.mxu0  ;;  %v9720_v25 = vpop.f32.mrf.mxu1 }
0x14b4   : > { %v8845_v14 = vmul.f32 -1.442695, %v5095_v10  ;;  %v5102_v47 = vadd.f32 %v5050_v40, %v914_v51  ;;  %v13035_v40 = vld [vmem:[#allocation4 + $0x7c] ss:$12 sps:$4 sm:$0xff]   ;;  %v13043_v25 = vld [vmem:[#allocation4 + $0x64] ss:$12 sps:$4 sm:$0xff]  }
0x14b5   : > { %v5052_v21 = vpop.f32.mrf.mxu0  ;;  %v5092_v50 = vpop.f32.mrf.mxu1  ;;  %v13055_v51 = vld [vmem:[#allocation4 + $0x48] ss:$12 sps:$4 sm:$0xff]  }
0x14b6   : > { %10378 = vpow2.f32 %v8845_v14  ;;  %v8846_v31 = vmul.f32 -1.442695, %v5102_v47  ;;  %v13039_v14 = vld [vmem:[#allocation4 + $0x78] ss:$12 sps:$4 sm:$0xff]   ;;  %v13047_v21 = vld [vmem:[#allocation4 + $0x60] ss:$12 sps:$4 sm:$0xff]  }
0x14b7   : > { %v5053_v53 = vpop.f32.mrf.mxu0  ;;  %v9721_v12 = vpop.f32.mrf.mxu1  ;;  %v13059_v50 = vld [vmem:[#allocation4 + $0x34] ss:$12 sps:$4 sm:$0xff]   ;;  %v13067_v47 = vld [vmem:[#allocation4 + $0x1c] ss:$12 sps:$4 sm:$0xff]  }
0x14b8   : > { %10380 = vpow2.f32 %v8846_v31  ;;  %v13063_v53 = vld [vmem:[#allocation4 + $0x30] ss:$12 sps:$4 sm:$0xff]   ;;  %v13071_v12 = vld [vmem:[#allocation4 + $0x18] ss:$12 sps:$4 sm:$0xff]  }
0x14b9   : > { %v13075_v31 = vld [vmem:[#allocation4 + $0x4] ss:$12 sps:$4 sm:$0xff]  }
0x14c3   : > { %v10379_v33 = vpop.eup %10378 }
0x14c4   : > { %v5099_v34 = vadd.f32 1.0, %v10379_v33  ;;  %v13079_v33 = vld [vmem:[#allocation4] ss:$12 sps:$4 sm:$0xff]  }
0x14c5   : > { %v10381_v26 = vpop.eup %10380 }
0x14c6   : > { %10382 = vrcp.f32 %v5099_v34  ;;  %v5106_v45 = vadd.f32 1.0, %v10381_v26  ;;  %v14632_v34 = vld [vmem:[#allocation35_spill] sm:$0xff] }
0x14c7   : > { %v918_v26 = vadd.f32 %v14632_v34, %v11760_v48  ;;  %v5385_v34 = vpop.permute.xlu1 %5384 }
0x14c8   : > { %10384 = vrcp.f32 %v5106_v45 }
0x14d3   : > { %v10383_v2 = vpop.eup %10382 }
0x14d4   : > { %v5110_v13 = vmul.f32 %v10383_v2, %v5109_v37 }
0x14d5   : > { %v10385_v9 = vpop.eup %10384 }
0x14d6   : > { %v5111_v5 = vadd.f32 %v5110_v13, %v14631_v0  ;;  %v5113_v30 = vsub.f32 1.0, %v10385_v9  ;;  %v5115_v11 = vmul.f32 %v10385_v9, %v12956_v61 }
0x14d8   : > { %10386 = vtanh.f32 %v5111_v5 }
0x14e5   : > { %v10387_v15 = vpop.eup %10386 }
0x14e6   : > { %v5114_v19 = vmul.f32 %v10387_v15, %v5113_v30  ;;  %v14633_v30 = vld [vmem:[#allocation36_spill] sm:$0xff] }
0x14e7   : > { %v920_v15 = vadd.f32 %v14633_v30, %v11775_v56 }
0x14e8   : > { %v5116_v49 = vadd.f32 %v5115_v11, %v5114_v19 }
0x14ea   : > { %v5124_v52 = vmul.f32 %v5122_v41, %v5116_v49 }
0x14ec   : > { %v5126_v62 = vcombine.high %v5124_v52, %v5124_v52  ;;  %v5133_v1 = vrot.slane %v5124_v52, %v11788_v8  ;;  %v13015_v35 = vadd.f32 %v5197_v29, %v5124_v52 }
0x14ee   : > { %v5140_v4 = vrot.slane %v5126_v62, %v11788_v8  ;;  %v5141_v32 = vcombine.high %v5133_v1, %v5133_v1  ;;  %v5149_v23 = vrot.slane %v5133_v1, %v11788_v8  ;;  %8848 = vst.sshfl [vmem:[#allocation3 + $0x13] sm:$0x1 pattern:$0x73625140] %v5133_v1  ;;  %v5203_v27 = vpack.c.bf16 %v13015_v35, %v13015_v35 }
0x14f0   : > { %v5142_v42 = vcombine.high %v5140_v4, %v5140_v4  ;;  %v5156_v60 = vrot.slane %v5140_v4, %v11788_v8  ;;  %v5163_v28 = vrot.slane %v5141_v32, %v11788_v8  ;;  %v5171_v61 = vcombine.high %v5149_v23, %v5149_v23  ;;  %8849 = vst.sshfl [vmem:[#allocation3 + $0x33] sm:$0x1 pattern:$0x73625140] %v5141_v32 }
0x14f1   : > { %8850 = vst.sshfl [vmem:[#allocation3 + $0x93] sm:$0x1 pattern:$0x73625140] %v5140_v4  ;;  %5237 = vmatmul.mubr.bf16.vlgmr.msra.gmra.mxu0 %v5203_v27  ;;  %9739 = vmatmul.mubr.bf16.vlgmr.msra.gmra.mxu1 %v5203_v27  ;;  %v14634_v27 = vld [vmem:[#allocation74_spill] sm:$0xff] }
0x14f2   : > { %5395 = vmatpush1.bf16.msra.mxu0 %v12964_v57  ;;  %v5170_v63 = vrot.slane %v5142_v42, %v11788_v8  ;;  %v5172_v7 = vcombine.high %v5156_v60, %v5156_v60  ;;  %v5173_v17 = vcombine.high %v5163_v28, %v5163_v28  ;;  %5185 = vst [vmem:[#allocation3 + $0x53] sm:$0x1] %v5171_v61  ;;  %8851 = vst.sshfl [vmem:[#allocation3 + $0xb3] sm:$0x1 pattern:$0x73625140] %v5142_v42 }
0x14f3   : > { %9743 = vmatpush3.bf16.msra.mxu1 %v12785_v3  ;;  %5396 = vmatprep.subr.bf16.mxu0 %v12969_v6 }
0x14f4   : > { %9744 = vmatprep.subr.bf16.mxu1 %v14579_v58  ;;  %5426 = vmatprep.mubr.bf16.mxu0 %v14580_v20  ;;  %v5174_v10 = vcombine.high %v5170_v63, %v5170_v63  ;;  %5186 = vst [vmem:[#allocation3 + $0x73] sm:$0x1] %v5173_v17  ;;  %5189 = vst [vmem:[#allocation3 + $0xd3] sm:$0x1] %v5172_v7 }
0x14f5   : > { %9758 = vmatprep.mubr.msk.bf16.mxu1 %vm10974_vm0, %v14579_v58 }
0x14f6   : > { %5397 = vmatpush1.bf16.msra.mxu0 %v13031_v55  ;;  %5190 = vst [vmem:[#allocation3 + $0xf3] sm:$0x1] %v5174_v10  ;;  %v5312_v10 = vpop.permute.xlu0 %5311 }
0x14f7   : > { %9745 = vmatpush3.bf16.msra.mxu1 %v12794_v38  ;;  %5398 = vmatprep.subr.bf16.mxu0 %v13035_v40 }
0x14f8   : > { %9746 = vmatprep.subr.bf16.mxu1 %v14579_v58 }
0x14fa   : > { %5399 = vmatpush1.bf16.msra.mxu0 %v13039_v14 }
0x14fb   : > { %9747 = vmatpush3.bf16.msra.mxu1 %v12800_v16  ;;  %5400 = vmatprep.subr.bf16.mxu0 %v13043_v25 }
0x14fc   : > { %9748 = vmatprep.subr.bf16.mxu1 %v14579_v58 }
0x14fe   : > { %5401 = vmatpush1.bf16.msra.mxu0 %v13047_v21 }
0x14ff   : > { %9749 = vmatpush3.bf16.msra.mxu1 %v12806_v36  ;;  %5402 = vmatprep.subr.bf16.mxu0 %v13051_v54 }
0x1500   : > { %9750 = vmatprep.subr.bf16.mxu1 %v14579_v58 }
0x1502   : > { %5403 = vmatpush1.bf16.msra.mxu0 %v13055_v51 }
0x1503   : > { %9751 = vmatpush3.bf16.msra.mxu1 %v12812_v43  ;;  %5404 = vmatprep.subr.bf16.mxu0 %v13059_v50 }
0x1504   : > { %9752 = vmatprep.subr.bf16.mxu1 %v14579_v58 }
0x1506   : > { %5405 = vmatpush1.bf16.msra.mxu0 %v13063_v53 }
0x1507   : > { %9753 = vmatpush3.bf16.msra.mxu1 %v12818_v59  ;;  %5406 = vmatprep.subr.bf16.mxu0 %v13067_v47 }
0x1508   : > { %9754 = vmatprep.subr.bf16.mxu1 %v14579_v58 }
0x150a   : > { %5407 = vmatpush1.bf16.msra.mxu0 %v13071_v12 }
0x150b   : > { %9755 = vmatpush3.bf16.msra.mxu1 %v12824_v46  ;;  %5408 = vmatprep.subr.bf16.mxu0 %v13075_v31 }
0x150c   : > { %9756 = vmatprep.subr.bf16.mxu1 %v14579_v58 }
0x150e   : > { %5409 = vmatpush1.bf16.msra.mxu0 %v13079_v33 }
0x150f   : > { %9757 = vmatpush3.bf16.msra.mxu1 %v12830_v44  ;;  %5584 = vmatprep.subr.bf16.mxu0 %v13002_v24 }
0x1510   : > { %9762 = vmatprep.subr.bf16.mxu1 %v14579_v58 }
0x15b1   : > { %v5238_v45 = vpop.f32.mrf.mxu0  ;;  %v5279_v2 = vpop.f32.mrf.mxu1 }
0x15b2   : > { %v5285_v37 = vadd.f32 %v5238_v45, %v918_v26  ;;  %v5299_v4 = vadd.f32 %v12895_v39, %v5279_v2  ;;  %v5387_v45 = vmul.f32 %v5385_v34, %v13015_v35 }
0x15b3   : > { %v5240_v13 = vpop.f32.mrf.mxu0  ;;  %v9740_v5 = vpop.f32.mrf.mxu1 }
0x15b4   : > { %v8852_v0 = vmul.f32 -1.442695, %v5285_v37  ;;  %v5292_v49 = vadd.f32 %v5240_v13, %v920_v15 }
0x15b5   : > { %v5242_v9 = vpop.f32.mrf.mxu0  ;;  %v5282_v11 = vpop.f32.mrf.mxu1 }
0x15b6   : > { %10388 = vpow2.f32 %v8852_v0  ;;  %v8853_v18 = vmul.f32 -1.442695, %v5292_v49 }
0x15b7   : > { %v5243_v19 = vpop.f32.mrf.mxu0  ;;  %v9741_v41 = vpop.f32.mrf.mxu1 }
0x15b8   : > { %10390 = vpow2.f32 %v8853_v18 }
0x15c3   : > { %v10389_v52 = vpop.eup %10388 }
0x15c4   : > { %v5289_v29 = vadd.f32 1.0, %v10389_v52 }
0x15c5   : > { %v10391_v62 = vpop.eup %10390 }
0x15c6   : > { %10392 = vrcp.f32 %v5289_v29  ;;  %v5296_v1 = vadd.f32 1.0, %v10391_v62 }
0x15c8   : > { %10394 = vrcp.f32 %v5296_v1  ;;  %v14636_v1 = vld [vmem:[#allocation38_spill] sm:$0xff] }
0x15d3   : > { %v10393_v32 = vpop.eup %10392 }
0x15d4   : > { %v5300_v23 = vmul.f32 %v10393_v32, %v5299_v4  ;;  %v924_v4 = vadd.f32 %v14636_v1, %v11775_v56  ;;  %v13158_v1 = vld [vmem:[#allocation4 + $0xb0] ss:$12 sps:$4 sm:$0xff]  }
0x15d5   : > { %v10395_v60 = vpop.eup %10394 }
0x15d6   : > { %v5301_v42 = vadd.f32 %v5300_v23, %v14634_v27  ;;  %v5303_v28 = vsub.f32 1.0, %v10395_v60  ;;  %v5305_v63 = vmul.f32 %v10395_v60, %v13015_v35 }
0x15d8   : > { %10396 = vtanh.f32 %v5301_v42 }
0x15e5   : > { %v10397_v61 = vpop.eup %10396 }
0x15e6   : > { %v5304_v7 = vmul.f32 %v10397_v61, %v5303_v28 }
0x15e8   : > { %v5306_v17 = vadd.f32 %v5305_v63, %v5304_v7 }
0x15ea   : > { %v5314_v26 = vmul.f32 %v5312_v10, %v5306_v17  ;;  %v14637_v10 = vld [vmem:[#allocation76_spill] sm:$0xff] }
0x15eb   : > { %v1094_v34 = vadd.f32 %v14637_v10, %v11673_v22 }
0x15ec   : > { %v5316_v37 = vcombine.high %v5314_v26, %v5314_v26  ;;  %v5323_v2 = vrot.slane %v5314_v26, %v11788_v8  ;;  %v13094_v13 = vadd.f32 %v5387_v45, %v5314_v26 }
0x15ee   : > { %v5330_v0 = vrot.slane %v5316_v37, %v11788_v8  ;;  %v5331_v5 = vcombine.high %v5323_v2, %v5323_v2  ;;  %v5339_v9 = vrot.slane %v5323_v2, %v11788_v8  ;;  %8855 = vst.sshfl [vmem:[#allocation3 + $0x14] sm:$0x1 pattern:$0x73625140] %v5323_v2  ;;  %v5393_v30 = vpack.c.bf16 %v13094_v13, %v13094_v13 }
0x15f0   : > { %v5332_v15 = vcombine.high %v5330_v0, %v5330_v0  ;;  %v5346_v11 = vrot.slane %v5330_v0, %v11788_v8  ;;  %v5353_v19 = vrot.slane %v5331_v5, %v11788_v8  ;;  %v5361_v35 = vcombine.high %v5339_v9, %v5339_v9  ;;  %8856 = vst.sshfl [vmem:[#allocation3 + $0x34] sm:$0x1 pattern:$0x73625140] %v5331_v5 }
0x15f1   : > { %8857 = vst.sshfl [vmem:[#allocation3 + $0x94] sm:$0x1 pattern:$0x73625140] %v5330_v0  ;;  %5427 = vmatmul.mubr.bf16.vlgmr.msra.gmra.mxu0 %v5393_v30  ;;  %9759 = vmatmul.mubr.bf16.vlgmr.msra.gmra.mxu1 %v5393_v30 }
0x15f2   : > { %5585 = vmatpush1.bf16.msra.mxu0 %v12964_v57  ;;  %v5360_v49 = vrot.slane %v5332_v15, %v11788_v8  ;;  %v5362_v41 = vcombine.high %v5346_v11, %v5346_v11  ;;  %v5363_v18 = vcombine.high %v5353_v19, %v5353_v19  ;;  %5375 = vst [vmem:[#allocation3 + $0x54] sm:$0x1] %v5361_v35  ;;  %8858 = vst.sshfl [vmem:[#allocation3 + $0xb4] sm:$0x1 pattern:$0x73625140] %v5332_v15  ;;  %v5502_v15 = vpop.permute.xlu0 %5501  ;;  %v5575_v11 = vpop.permute.xlu1 %5574 }
0x15f3   : > { %9763 = vmatpush3.bf16.msra.mxu1 %v12785_v3  ;;  %5586 = vmatprep.subr.bf16.mxu0 %v12969_v6  ;;  %v14635_v3 = vld [vmem:[#allocation37_spill] sm:$0xff]  ;;  %v5577_v19 = vmul.f32 %v5575_v11, %v13094_v13 }
0x15f4   : > { %9764 = vmatprep.subr.bf16.mxu1 %v14579_v58  ;;  %5616 = vmatprep.mubr.bf16.mxu0 %v14580_v20  ;;  %v5364_v52 = vcombine.high %v5360_v49, %v5360_v49  ;;  %5376 = vst [vmem:[#allocation3 + $0x74] sm:$0x1] %v5363_v18  ;;  %5379 = vst [vmem:[#allocation3 + $0xd4] sm:$0x1] %v5362_v41 }
0x15f5   : > { %9778 = vmatprep.mubr.msk.bf16.mxu1 %vm10974_vm0, %v14579_v58 }
0x15f6   : > { %5587 = vmatpush1.bf16.msra.mxu0 %v13031_v55  ;;  %5380 = vst [vmem:[#allocation3 + $0xf4] sm:$0x1] %v5364_v52 }
0x15f7   : > { %9765 = vmatpush3.bf16.msra.mxu1 %v12794_v38  ;;  %5588 = vmatprep.subr.bf16.mxu0 %v13035_v40  ;;  %v922_v38 = vadd.f32 %v14635_v3, %v11760_v48 }
0x15f8   : > { %9766 = vmatprep.subr.bf16.mxu1 %v14579_v58 }
0x15fa   : > { %5589 = vmatpush1.bf16.msra.mxu0 %v13039_v14 }
0x15fb   : > { %9767 = vmatpush3.bf16.msra.mxu1 %v12800_v16  ;;  %5590 = vmatprep.subr.bf16.mxu0 %v13043_v25 }
0x15fc   : > { %9768 = vmatprep.subr.bf16.mxu1 %v14579_v58 }
0x15fe   : > { %5591 = vmatpush1.bf16.msra.mxu0 %v13047_v21 }
0x15ff   : > { %9769 = vmatpush3.bf16.msra.mxu1 %v12806_v36  ;;  %5592 = vmatprep.subr.bf16.mxu0 %v13051_v54 }
0x1600   : > { %9770 = vmatprep.subr.bf16.mxu1 %v14579_v58 }
0x1602   : > { %5593 = vmatpush1.bf16.msra.mxu0 %v13055_v51 }
0x1603   : > { %9771 = vmatpush3.bf16.msra.mxu1 %v12812_v43  ;;  %5594 = vmatprep.subr.bf16.mxu0 %v13059_v50 }
0x1604   : > { %9772 = vmatprep.subr.bf16.mxu1 %v14579_v58 }
0x1606   : > { %5595 = vmatpush1.bf16.msra.mxu0 %v13063_v53 }
0x1607   : > { %9773 = vmatpush3.bf16.msra.mxu1 %v12818_v59  ;;  %5596 = vmatprep.subr.bf16.mxu0 %v13067_v47 }
0x1608   : > { %9774 = vmatprep.subr.bf16.mxu1 %v14579_v58 }
0x160a   : > { %5597 = vmatpush1.bf16.msra.mxu0 %v13071_v12 }
0x160b   : > { %9775 = vmatpush3.bf16.msra.mxu1 %v12824_v46  ;;  %5598 = vmatprep.subr.bf16.mxu0 %v13075_v31 }
0x160c   : > { %9776 = vmatprep.subr.bf16.mxu1 %v14579_v58 }
0x160e   : > { %5599 = vmatpush1.bf16.msra.mxu0 %v13079_v33 }
0x160f   : > { %9777 = vmatpush3.bf16.msra.mxu1 %v12830_v44  ;;  %5774 = vmatprep.subr.bf16.mxu0 %v13002_v24 }
0x1610   : > { %9782 = vmatprep.subr.bf16.mxu1 %v14579_v58 }
0x16b1   : > { %v5428_v16 = vpop.f32.mrf.mxu0  ;;  %v5469_v43 = vpop.f32.mrf.mxu1 }
0x16b2   : > { %v5475_v36 = vadd.f32 %v5428_v16, %v922_v38  ;;  %v5489_v7 = vadd.f32 %v12895_v39, %v5469_v43 }
0x16b3   : > { %v5430_v59 = vpop.f32.mrf.mxu0  ;;  %v9760_v29 = vpop.f32.mrf.mxu1 }
0x16b4   : > { %v8859_v46 = vmul.f32 -1.442695, %v5475_v36  ;;  %v5482_v23 = vadd.f32 %v5430_v59, %v924_v4 }
0x16b5   : > { %v5432_v62 = vpop.f32.mrf.mxu0  ;;  %v5472_v32 = vpop.f32.mrf.mxu1 }
0x16b6   : > { %10398 = vpow2.f32 %v8859_v46  ;;  %v8860_v42 = vmul.f32 -1.442695, %v5482_v23  ;;  %v13167_v32 = vld [vmem:[#allocation4 + $0x98] ss:$12 sps:$4 sm:$0xff]   ;;  %v13179_v23 = vld [vmem:[#allocation4 + $0x68] ss:$12 sps:$4 sm:$0xff]  }
0x16b7   : > { %v5433_v44 = vpop.f32.mrf.mxu0  ;;  %v9761_v27 = vpop.f32.mrf.mxu1 }
0x16b8   : > { %10400 = vpow2.f32 %v8860_v42  ;;  %v13173_v44 = vld [vmem:[#allocation4 + $0x80] ss:$12 sps:$4 sm:$0xff]   ;;  %v13185_v27 = vld [vmem:[#allocation4 + $0x50] ss:$12 sps:$4 sm:$0xff]   ;;  %v13191_v42 = vld [vmem:[#allocation4 + $0x38] ss:$12 sps:$4 sm:$0xff]  }
0x16c3   : > { %v10399_v60 = vpop.eup %10398 }
0x16c4   : > { %v5479_v28 = vadd.f32 1.0, %v10399_v60  ;;  %v13197_v60 = vld [vmem:[#allocation4 + $0x20] ss:$12 sps:$4 sm:$0xff]  }
0x16c5   : > { %v10401_v61 = vpop.eup %10400 }
0x16c6   : > { %10402 = vrcp.f32 %v5479_v28  ;;  %v5486_v63 = vadd.f32 1.0, %v10401_v61  ;;  %v13203_v28 = vld [vmem:[#allocation4 + $0x8] ss:$12 sps:$4 sm:$0xff]  }
0x16c7   : > { %v14638_v61 = vld [vmem:[#allocation39_spill] sm:$0xff] }
0x16c8   : > { %10404 = vrcp.f32 %v5486_v63  ;;  %v928_v63 = vadd.f32 %v14638_v61, %v11760_v48  ;;  %v5765_v61 = vpop.permute.xlu1 %5764 }
0x16d3   : > { %v10403_v17 = vpop.eup %10402 }
0x16d4   : > { %v5490_v26 = vmul.f32 %v10403_v17, %v5489_v7 }
0x16d5   : > { %v10405_v37 = vpop.eup %10404 }
0x16d6   : > { %v5491_v45 = vadd.f32 %v5490_v26, %v1094_v34  ;;  %v5493_v2 = vsub.f32 1.0, %v10405_v37  ;;  %v5495_v9 = vmul.f32 %v10405_v37, %v13094_v13 }
0x16d8   : > { %10406 = vtanh.f32 %v5491_v45 }
0x16e5   : > { %v10407_v0 = vpop.eup %10406 }
0x16e6   : > { %v5494_v5 = vmul.f32 %v10407_v0, %v5493_v2  ;;  %v14639_v2 = vld [vmem:[#allocation40_spill] sm:$0xff] }
0x16e7   : > { %v930_v0 = vadd.f32 %v14639_v2, %v11775_v56 }
0x16e8   : > { %v5496_v30 = vadd.f32 %v5495_v9, %v5494_v5 }
0x16ea   : > { %v5504_v35 = vmul.f32 %v5502_v15, %v5496_v30 }
0x16ec   : > { %v5506_v49 = vcombine.high %v5504_v35, %v5504_v35  ;;  %v5513_v41 = vrot.slane %v5504_v35, %v11788_v8  ;;  %v13148_v18 = vadd.f32 %v5577_v19, %v5504_v35 }
0x16ee   : > { %v5520_v52 = vrot.slane %v5506_v49, %v11788_v8  ;;  %v5521_v3 = vcombine.high %v5513_v41, %v5513_v41  ;;  %v5529_v38 = vrot.slane %v5513_v41, %v11788_v8  ;;  %8862 = vst.sshfl [vmem:[#allocation3 + $0x15] sm:$0x1 pattern:$0x73625140] %v5513_v41  ;;  %v5583_v16 = vpack.c.bf16 %v13148_v18, %v13148_v18 }
0x16f0   : > { %v5522_v36 = vcombine.high %v5520_v52, %v5520_v52  ;;  %v5536_v43 = vrot.slane %v5520_v52, %v11788_v8  ;;  %v5543_v13 = vrot.slane %v5521_v3, %v11788_v8  ;;  %v5551_v59 = vcombine.high %v5529_v38, %v5529_v38  ;;  %8863 = vst.sshfl [vmem:[#allocation3 + $0x35] sm:$0x1 pattern:$0x73625140] %v5521_v3 }
0x16f1   : > { %8864 = vst.sshfl [vmem:[#allocation3 + $0x95] sm:$0x1 pattern:$0x73625140] %v5520_v52  ;;  %5617 = vmatmul.mubr.bf16.vlgmr.msra.gmra.mxu0 %v5583_v16  ;;  %9779 = vmatmul.mubr.bf16.vlgmr.msra.gmra.mxu1 %v5583_v16  ;;  %v14640_v16 = vld [vmem:[#allocation73_spill] sm:$0xff] }
0x16f2   : > { %5775 = vmatpush1.bf16.msra.mxu0 %v12964_v57  ;;  %v5550_v46 = vrot.slane %v5522_v36, %v11788_v8  ;;  %v5552_v29 = vcombine.high %v5536_v43, %v5536_v43  ;;  %v5553_v62 = vcombine.high %v5543_v13, %v5543_v13  ;;  %5565 = vst [vmem:[#allocation3 + $0x55] sm:$0x1] %v5551_v59  ;;  %8865 = vst.sshfl [vmem:[#allocation3 + $0xb5] sm:$0x1 pattern:$0x73625140] %v5522_v36 }
0x16f3   : > { %9783 = vmatpush3.bf16.msra.mxu1 %v13158_v1  ;;  %5776 = vmatprep.subr.bf16.mxu0 %v12969_v6 }
0x16f4   : > { %9784 = vmatprep.subr.bf16.mxu1 %v14579_v58  ;;  %5806 = vmatprep.mubr.bf16.mxu0 %v14580_v20  ;;  %v5554_v4 = vcombine.high %v5550_v46, %v5550_v46  ;;  %5566 = vst [vmem:[#allocation3 + $0x75] sm:$0x1] %v5553_v62  ;;  %5569 = vst [vmem:[#allocation3 + $0xd5] sm:$0x1] %v5552_v29 }
0x16f5   : > { %9798 = vmatprep.mubr.msk.bf16.mxu1 %vm10974_vm0, %v14579_v58 }
0x16f6   : > { %5777 = vmatpush1.bf16.msra.mxu0 %v13031_v55  ;;  %5570 = vst [vmem:[#allocation3 + $0xf5] sm:$0x1] %v5554_v4  ;;  %v5692_v4 = vpop.permute.xlu0 %5691 }
0x16f7   : > { %9785 = vmatpush3.bf16.msra.mxu1 %v13167_v32  ;;  %5778 = vmatprep.subr.bf16.mxu0 %v13035_v40 }
0x16f8   : > { %9786 = vmatprep.subr.bf16.mxu1 %v14579_v58 }
0x16fa   : > { %5779 = vmatpush1.bf16.msra.mxu0 %v13039_v14 }
0x16fb   : > { %9787 = vmatpush3.bf16.msra.mxu1 %v13173_v44  ;;  %5780 = vmatprep.subr.bf16.mxu0 %v13043_v25 }
0x16fc   : > { %9788 = vmatprep.subr.bf16.mxu1 %v14579_v58 }
0x16fe   : > { %5781 = vmatpush1.bf16.msra.mxu0 %v13047_v21 }
0x16ff   : > { %9789 = vmatpush3.bf16.msra.mxu1 %v13179_v23  ;;  %5782 = vmatprep.subr.bf16.mxu0 %v13051_v54 }
0x1700   : > { %9790 = vmatprep.subr.bf16.mxu1 %v14579_v58 }
0x1702   : > { %5783 = vmatpush1.bf16.msra.mxu0 %v13055_v51 }
0x1703   : > { %9791 = vmatpush3.bf16.msra.mxu1 %v13185_v27  ;;  %5784 = vmatprep.subr.bf16.mxu0 %v13059_v50 }
0x1704   : > { %9792 = vmatprep.subr.bf16.mxu1 %v14579_v58 }
0x1706   : > { %5785 = vmatpush1.bf16.msra.mxu0 %v13063_v53 }
0x1707   : > { %9793 = vmatpush3.bf16.msra.mxu1 %v13191_v42  ;;  %5786 = vmatprep.subr.bf16.mxu0 %v13067_v47 }
0x1708   : > { %9794 = vmatprep.subr.bf16.mxu1 %v14579_v58 }
0x170a   : > { %5787 = vmatpush1.bf16.msra.mxu0 %v13071_v12 }
0x170b   : > { %9795 = vmatpush3.bf16.msra.mxu1 %v13197_v60  ;;  %5788 = vmatprep.subr.bf16.mxu0 %v13075_v31 }
0x170c   : > { %9796 = vmatprep.subr.bf16.mxu1 %v14579_v58 }
0x170e   : > { %5789 = vmatpush1.bf16.msra.mxu0 %v13079_v33 }
0x170f   : > { %9797 = vmatpush3.bf16.msra.mxu1 %v13203_v28  ;;  %5964 = vmatprep.subr.bf16.mxu0 %v13002_v24 }
0x1710   : > { %9802 = vmatprep.subr.bf16.mxu1 %v14579_v58 }
0x17b1   : > { %v5618_v7 = vpop.f32.mrf.mxu0  ;;  %v5659_v10 = vpop.f32.mrf.mxu1 }
0x17b2   : > { %v5665_v17 = vadd.f32 %v5618_v7, %v928_v63  ;;  %v5679_v52 = vadd.f32 %v12895_v39, %v5659_v10  ;;  %v5767_v7 = vmul.f32 %v5765_v61, %v13148_v18 }
0x17b3   : > { %v5620_v34 = vpop.f32.mrf.mxu0  ;;  %v9780_v45 = vpop.f32.mrf.mxu1 }
0x17b4   : > { %v8866_v26 = vmul.f32 -1.442695, %v5665_v17  ;;  %v5672_v30 = vadd.f32 %v5620_v34, %v930_v0 }
0x17b5   : > { %v5622_v37 = vpop.f32.mrf.mxu0  ;;  %v5662_v5 = vpop.f32.mrf.mxu1 }
0x17b6   : > { %10408 = vpow2.f32 %v8866_v26  ;;  %v8867_v11 = vmul.f32 -1.442695, %v5672_v30 }
0x17b7   : > { %v5623_v9 = vpop.f32.mrf.mxu0  ;;  %v9781_v15 = vpop.f32.mrf.mxu1 }
0x17b8   : > { %10410 = vpow2.f32 %v8867_v11 }
0x17c3   : > { %v10409_v19 = vpop.eup %10408 }
0x17c4   : > { %v5669_v35 = vadd.f32 1.0, %v10409_v19  ;;  %v14641_v19 = vld [vmem:[#allocation41_spill] sm:$0xff] }
0x17c5   : > { %v10411_v49 = vpop.eup %10410 }
0x17c6   : > { %10412 = vrcp.f32 %v5669_v35  ;;  %v5676_v41 = vadd.f32 1.0, %v10411_v49  ;;  %v932_v35 = vadd.f32 %v14641_v19, %v11760_v48  ;;  %v5955_v19 = vpop.permute.xlu1 %5954 }
0x17c8   : > { %10414 = vrcp.f32 %v5676_v41 }
0x17d3   : > { %v10413_v3 = vpop.eup %10412 }
0x17d4   : > { %v5680_v38 = vmul.f32 %v10413_v3, %v5679_v52 }
0x17d5   : > { %v10415_v43 = vpop.eup %10414 }
0x17d6   : > { %v5681_v36 = vadd.f32 %v5680_v38, %v14640_v16  ;;  %v5683_v13 = vsub.f32 1.0, %v10415_v43  ;;  %v5685_v29 = vmul.f32 %v10415_v43, %v13148_v18  ;;  %v14642_v43 = vld [vmem:[#allocation42_spill] sm:$0xff] }
0x17d8   : > { %10416 = vtanh.f32 %v5681_v36 }
0x17e5   : > { %v10417_v59 = vpop.eup %10416 }
0x17e6   : > { %v5684_v46 = vmul.f32 %v10417_v59, %v5683_v13  ;;  %v934_v13 = vadd.f32 %v14642_v43, %v11775_v56 }
0x17e8   : > { %v5686_v62 = vadd.f32 %v5685_v29, %v5684_v46 }
0x17ea   : > { %v5694_v63 = vmul.f32 %v5692_v4, %v5686_v62 }
0x17ec   : > { %v5696_v17 = vcombine.high %v5694_v63, %v5694_v63  ;;  %v5703_v39 = vrot.slane %v5694_v63, %v11788_v8  ;;  %v13217_v10 = vadd.f32 %v5767_v7, %v5694_v63 }
0x17ee   : > { %v5710_v34 = vrot.slane %v5696_v17, %v11788_v8  ;;  %v5711_v26 = vcombine.high %v5703_v39, %v5703_v39  ;;  %v5719_v45 = vrot.slane %v5703_v39, %v11788_v8  ;;  %8869 = vst.sshfl [vmem:[#allocation3 + $0x16] sm:$0x1 pattern:$0x73625140] %v5703_v39  ;;  %v5773_v37 = vpack.c.bf16 %v13217_v10, %v13217_v10  ;;  %v13268_v39 = vld [vmem:[%s14424_s6] ss:$0 sm:$0xff] }
0x17f0   : > { %v5712_v2 = vcombine.high %v5710_v34, %v5710_v34  ;;  %v5726_v0 = vrot.slane %v5710_v34, %v11788_v8  ;;  %v5733_v5 = vrot.slane %v5711_v26, %v11788_v8  ;;  %v5741_v18 = vcombine.high %v5719_v45, %v5719_v45  ;;  %8870 = vst.sshfl [vmem:[#allocation3 + $0x36] sm:$0x1 pattern:$0x73625140] %v5711_v26 }
0x17f1   : > { %8871 = vst.sshfl [vmem:[#allocation3 + $0x96] sm:$0x1 pattern:$0x73625140] %v5710_v34  ;;  %5807 = vmatmul.mubr.bf16.vlgmr.msra.gmra.mxu0 %v5773_v37  ;;  %9799 = vmatmul.mubr.bf16.vlgmr.msra.gmra.mxu1 %v5773_v37  ;;  %v14643_v37 = vld [vmem:[#allocation75_spill] sm:$0xff] }
0x17f2   : > { %5965 = vmatpush1.bf16.msra.mxu0 %v12964_v57  ;;  %v5740_v9 = vrot.slane %v5712_v2, %v11788_v8  ;;  %v5742_v30 = vcombine.high %v5726_v0, %v5726_v0  ;;  %v5743_v15 = vcombine.high %v5733_v5, %v5733_v5  ;;  %5755 = vst [vmem:[#allocation3 + $0x56] sm:$0x1] %v5741_v18  ;;  %8872 = vst.sshfl [vmem:[#allocation3 + $0xb6] sm:$0x1 pattern:$0x73625140] %v5712_v2 }
0x17f3   : > { %9803 = vmatpush3.bf16.msra.mxu1 %v13158_v1  ;;  %5966 = vmatprep.subr.bf16.mxu0 %v12969_v6 }
0x17f4   : > { %9804 = vmatprep.subr.bf16.mxu1 %v14579_v58  ;;  %5996 = vmatprep.mubr.bf16.mxu0 %v14580_v20  ;;  %v5744_v11 = vcombine.high %v5740_v9, %v5740_v9  ;;  %5756 = vst [vmem:[#allocation3 + $0x76] sm:$0x1] %v5743_v15  ;;  %5759 = vst [vmem:[#allocation3 + $0xd6] sm:$0x1] %v5742_v30 }
0x17f5   : > { %9818 = vmatprep.mubr.msk.bf16.mxu1 %vm10974_vm0, %v14579_v58 }
0x17f6   : > { %5967 = vmatpush1.bf16.msra.mxu0 %v13031_v55  ;;  %5760 = vst [vmem:[#allocation3 + $0xf6] sm:$0x1] %v5744_v11  ;;  %v5882_v11 = vpop.permute.xlu0 %5881 }
0x17f7   : > { %9805 = vmatpush3.bf16.msra.mxu1 %v13167_v32  ;;  %5968 = vmatprep.subr.bf16.mxu0 %v13035_v40 }
0x17f8   : > { %9806 = vmatprep.subr.bf16.mxu1 %v14579_v58 }
0x17fa   : > { %5969 = vmatpush1.bf16.msra.mxu0 %v13039_v14 }
0x17fb   : > { %9807 = vmatpush3.bf16.msra.mxu1 %v13173_v44  ;;  %5970 = vmatprep.subr.bf16.mxu0 %v13043_v25 }
0x17fc   : > { %9808 = vmatprep.subr.bf16.mxu1 %v14579_v58 }
0x17fe   : > { %5971 = vmatpush1.bf16.msra.mxu0 %v13047_v21 }
0x17ff   : > { %9809 = vmatpush3.bf16.msra.mxu1 %v13179_v23  ;;  %5972 = vmatprep.subr.bf16.mxu0 %v13051_v54 }
0x1800   : > { %9810 = vmatprep.subr.bf16.mxu1 %v14579_v58 }
0x1802   : > { %5973 = vmatpush1.bf16.msra.mxu0 %v13055_v51 }
0x1803   : > { %9811 = vmatpush3.bf16.msra.mxu1 %v13185_v27  ;;  %5974 = vmatprep.subr.bf16.mxu0 %v13059_v50 }
0x1804   : > { %9812 = vmatprep.subr.bf16.mxu1 %v14579_v58 }
0x1806   : > { %5975 = vmatpush1.bf16.msra.mxu0 %v13063_v53 }
0x1807   : > { %9813 = vmatpush3.bf16.msra.mxu1 %v13191_v42  ;;  %5976 = vmatprep.subr.bf16.mxu0 %v13067_v47 }
0x1808   : > { %9814 = vmatprep.subr.bf16.mxu1 %v14579_v58 }
0x180a   : > { %5977 = vmatpush1.bf16.msra.mxu0 %v13071_v12 }
0x180b   : > { %9815 = vmatpush3.bf16.msra.mxu1 %v13197_v60  ;;  %5978 = vmatprep.subr.bf16.mxu0 %v13075_v31 }
0x180c   : > { %9816 = vmatprep.subr.bf16.mxu1 %v14579_v58 }
0x180e   : > { %5979 = vmatpush1.bf16.msra.mxu0 %v13079_v33 }
0x180f   : > { %9817 = vmatpush3.bf16.msra.mxu1 %v13203_v28  ;;  %6154 = vmatprep.subr.bf16.mxu0 %v13002_v24 }
0x1810   : > { %9822 = vmatprep.subr.bf16.mxu1 %v14579_v58 }
0x18b1   : > { %v5808_v49 = vpop.f32.mrf.mxu0  ;;  %v5849_v52 = vpop.f32.mrf.mxu1 }
0x18b2   : > { %v5855_v41 = vadd.f32 %v5808_v49, %v932_v35  ;;  %v5869_v34 = vadd.f32 %v13268_v39, %v5849_v52  ;;  %v5957_v49 = vmul.f32 %v5955_v19, %v13217_v10 }
0x18b3   : > { %v5810_v3 = vpop.f32.mrf.mxu0  ;;  %v9800_v16 = vpop.f32.mrf.mxu1 }
0x18b4   : > { %v8873_v38 = vmul.f32 -1.442695, %v5855_v41  ;;  %v5862_v29 = vadd.f32 %v5810_v3, %v934_v13 }
0x18b5   : > { %v5812_v36 = vpop.f32.mrf.mxu0  ;;  %v5852_v59 = vpop.f32.mrf.mxu1 }
0x18b6   : > { %10418 = vpow2.f32 %v8873_v38  ;;  %v8874_v4 = vmul.f32 -1.442695, %v5862_v29 }
0x18b7   : > { %v5813_v46 = vpop.f32.mrf.mxu0  ;;  %v9801_v62 = vpop.f32.mrf.mxu1 }
0x18b8   : > { %10420 = vpow2.f32 %v8874_v4 }
0x18c3   : > { %v10419_v61 = vpop.eup %10418 }
0x18c4   : > { %v5859_v63 = vadd.f32 1.0, %v10419_v61 }
0x18c5   : > { %v10421_v7 = vpop.eup %10420 }
0x18c6   : > { %10422 = vrcp.f32 %v5859_v63  ;;  %v5866_v17 = vadd.f32 1.0, %v10421_v7 }
0x18c8   : > { %10424 = vrcp.f32 %v5866_v17 }
0x18d3   : > { %v10423_v26 = vpop.eup %10422 }
0x18d4   : > { %v5870_v45 = vmul.f32 %v10423_v26, %v5869_v34 }
0x18d5   : > { %v10425_v0 = vpop.eup %10424 }
0x18d6   : > { %v5871_v2 = vadd.f32 %v5870_v45, %v14643_v37  ;;  %v5873_v5 = vsub.f32 1.0, %v10425_v0  ;;  %v5875_v30 = vmul.f32 %v10425_v0, %v13217_v10 }
0x18d8   : > { %10426 = vtanh.f32 %v5871_v2  ;;  %v14645_v2 = vld [vmem:[#allocation44_spill] sm:$0xff] }
0x18d9   : > { %v940_v0 = vadd.f32 %v14645_v2, %v11775_v56 }
0x18e5   : > { %v10427_v18 = vpop.eup %10426 }
0x18e6   : > { %v5874_v9 = vmul.f32 %v10427_v18, %v5873_v5 }
0x18e8   : > { %v5876_v15 = vadd.f32 %v5875_v30, %v5874_v9 }
0x18ea   : > { %v5884_v35 = vmul.f32 %v5882_v11, %v5876_v15 }
0x18ec   : > { %v5886_v41 = vcombine.high %v5884_v35, %v5884_v35  ;;  %v5893_v52 = vrot.slane %v5884_v35, %v11788_v8  ;;  %v13275_v3 = vadd.f32 %v5957_v49, %v5884_v35 }
0x18ee   : > { %v5900_v38 = vrot.slane %v5886_v41, %v11788_v8  ;;  %v5901_v16 = vcombine.high %v5893_v52, %v5893_v52  ;;  %v5909_v36 = vrot.slane %v5893_v52, %v11788_v8  ;;  %8876 = vst.sshfl [vmem:[#allocation3 + $0x17] sm:$0x1 pattern:$0x73625140] %v5893_v52  ;;  %v5963_v43 = vpack.c.bf16 %v13275_v3, %v13275_v3 }
0x18f0   : > { %v5902_v13 = vcombine.high %v5900_v38, %v5900_v38  ;;  %v5916_v59 = vrot.slane %v5900_v38, %v11788_v8  ;;  %v5923_v46 = vrot.slane %v5901_v16, %v11788_v8  ;;  %v5931_v10 = vcombine.high %v5909_v36, %v5909_v36  ;;  %8877 = vst.sshfl [vmem:[#allocation3 + $0x37] sm:$0x1 pattern:$0x73625140] %v5901_v16 }
0x18f1   : > { %8878 = vst.sshfl [vmem:[#allocation3 + $0x97] sm:$0x1 pattern:$0x73625140] %v5900_v38  ;;  %5997 = vmatmul.mubr.bf16.vlgmr.msra.gmra.mxu0 %v5963_v43  ;;  %9819 = vmatmul.mubr.bf16.vlgmr.msra.gmra.mxu1 %v5963_v43  ;;  %v14646_v38 = vld [vmem:[#allocation78_spill] sm:$0xff] }
0x18f2   : > { %6155 = vmatpush1.bf16.msra.mxu0 %v12964_v57  ;;  %v5930_v29 = vrot.slane %v5902_v13, %v11788_v8  ;;  %v5932_v62 = vcombine.high %v5916_v59, %v5916_v59  ;;  %v5933_v4 = vcombine.high %v5923_v46, %v5923_v46  ;;  %5945 = vst [vmem:[#allocation3 + $0x57] sm:$0x1] %v5931_v10  ;;  %8879 = vst.sshfl [vmem:[#allocation3 + $0xb7] sm:$0x1 pattern:$0x73625140] %v5902_v13 }
0x18f3   : > { %9823 = vmatpush3.bf16.msra.mxu1 %v13158_v1  ;;  %6156 = vmatprep.subr.bf16.mxu0 %v12969_v6  ;;  %v14644_v57 = vld [vmem:[#allocation43_spill] sm:$0xff] }
0x18f4   : > { %9824 = vmatprep.subr.bf16.mxu1 %v14579_v58  ;;  %6186 = vmatprep.mubr.bf16.mxu0 %v14580_v20  ;;  %v5934_v61 = vcombine.high %v5930_v29, %v5930_v29  ;;  %5946 = vst [vmem:[#allocation3 + $0x77] sm:$0x1] %v5933_v4  ;;  %5949 = vst [vmem:[#allocation3 + $0xd7] sm:$0x1] %v5932_v62  ;;  %v938_v6 = vadd.f32 %v14644_v57, %v11760_v48  ;;  %v6072_v29 = vpop.permute.xlu0 %6071  ;;  %v6145_v62 = vpop.permute.xlu1 %6144 }
0x18f5   : > { %9838 = vmatprep.mubr.msk.bf16.mxu1 %vm10974_vm0, %v14579_v58 }
0x18f6   : > { %6157 = vmatpush1.bf16.msra.mxu0 %v13031_v55  ;;  %5950 = vst [vmem:[#allocation3 + $0xf7] sm:$0x1] %v5934_v61  ;;  %v6147_v61 = vmul.f32 %v6145_v62, %v13275_v3 }
0x18f7   : > { %9825 = vmatpush3.bf16.msra.mxu1 %v13167_v32  ;;  %6158 = vmatprep.subr.bf16.mxu0 %v13035_v40 }
0x18f8   : > { %9826 = vmatprep.subr.bf16.mxu1 %v14579_v58 }
0x18fa   : > { %6159 = vmatpush1.bf16.msra.mxu0 %v13039_v14 }
0x18fb   : > { %9827 = vmatpush3.bf16.msra.mxu1 %v13173_v44  ;;  %6160 = vmatprep.subr.bf16.mxu0 %v13043_v25 }
0x18fc   : > { %9828 = vmatprep.subr.bf16.mxu1 %v14579_v58 }
0x18fe   : > { %6161 = vmatpush1.bf16.msra.mxu0 %v13047_v21 }
0x18ff   : > { %9829 = vmatpush3.bf16.msra.mxu1 %v13179_v23  ;;  %6162 = vmatprep.subr.bf16.mxu0 %v13051_v54 }
0x1900   : > { %9830 = vmatprep.subr.bf16.mxu1 %v14579_v58 }
0x1902   : > { %6163 = vmatpush1.bf16.msra.mxu0 %v13055_v51 }
0x1903   : > { %9831 = vmatpush3.bf16.msra.mxu1 %v13185_v27  ;;  %6164 = vmatprep.subr.bf16.mxu0 %v13059_v50 }
0x1904   : > { %9832 = vmatprep.subr.bf16.mxu1 %v14579_v58 }
0x1906   : > { %6165 = vmatpush1.bf16.msra.mxu0 %v13063_v53 }
0x1907   : > { %9833 = vmatpush3.bf16.msra.mxu1 %v13191_v42  ;;  %6166 = vmatprep.subr.bf16.mxu0 %v13067_v47 }
0x1908   : > { %9834 = vmatprep.subr.bf16.mxu1 %v14579_v58 }
0x190a   : > { %6167 = vmatpush1.bf16.msra.mxu0 %v13071_v12 }
0x190b   : > { %9835 = vmatpush3.bf16.msra.mxu1 %v13197_v60  ;;  %6168 = vmatprep.subr.bf16.mxu0 %v13075_v31 }
0x190c   : > { %9836 = vmatprep.subr.bf16.mxu1 %v14579_v58 }
0x190e   : > { %6169 = vmatpush1.bf16.msra.mxu0 %v13079_v33 }
0x190f   : > { %9837 = vmatpush3.bf16.msra.mxu1 %v13203_v28  ;;  %6344 = vmatprep.subr.bf16.mxu0 %v13002_v24 }
0x1910   : > { %9842 = vmatprep.subr.bf16.mxu1 %v14579_v58 }
0x19b1   : > { %v5998_v63 = vpop.f32.mrf.mxu0  ;;  %v6039_v17 = vpop.f32.mrf.mxu1 }
0x19b2   : > { %v6045_v7 = vadd.f32 %v5998_v63, %v938_v6  ;;  %v6059_v49 = vadd.f32 %v13268_v39, %v6039_v17 }
0x19b3   : > { %v6000_v34 = vpop.f32.mrf.mxu0  ;;  %v9820_v45 = vpop.f32.mrf.mxu1 }
0x19b4   : > { %v8880_v26 = vmul.f32 -1.442695, %v6045_v7  ;;  %v6052_v9 = vadd.f32 %v6000_v34, %v940_v0  ;;  %v13336_v0 = vld [vmem:[#allocation4 + $0xa8] ss:$12 sps:$4 sm:$0xff]  }
0x19b5   : > { %v6002_v37 = vpop.f32.mrf.mxu0  ;;  %v6042_v5 = vpop.f32.mrf.mxu1 }
0x19b6   : > { %10428 = vpow2.f32 %v8880_v26  ;;  %v8881_v30 = vmul.f32 -1.442695, %v6052_v9 }
0x19b7   : > { %v6003_v18 = vpop.f32.mrf.mxu0  ;;  %v9821_v24 = vpop.f32.mrf.mxu1 }
0x19b8   : > { %10430 = vpow2.f32 %v8881_v30  ;;  %v13341_v24 = vld [vmem:[#allocation4 + $0x94] ss:$12 sps:$4 sm:$0xff]  }
0x19c3   : > { %v10429_v15 = vpop.eup %10428 }
0x19c4   : > { %v6049_v11 = vadd.f32 1.0, %v10429_v15 }
0x19c5   : > { %v10431_v19 = vpop.eup %10430 }
0x19c6   : > { %10432 = vrcp.f32 %v6049_v11  ;;  %v6056_v35 = vadd.f32 1.0, %v10431_v19 }
0x19c8   : > { %10434 = vrcp.f32 %v6056_v35 }
0x19d3   : > { %v10433_v41 = vpop.eup %10432 }
0x19d4   : > { %v6060_v52 = vmul.f32 %v10433_v41, %v6059_v49 }
0x19d5   : > { %v10435_v36 = vpop.eup %10434 }
0x19d6   : > { %v6061_v16 = vadd.f32 %v6060_v52, %v14646_v38  ;;  %v6063_v43 = vsub.f32 1.0, %v10435_v36  ;;  %v6065_v46 = vmul.f32 %v10435_v36, %v13275_v3 }
0x19d8   : > { %10436 = vtanh.f32 %v6061_v16 }
0x19e5   : > { %v10437_v13 = vpop.eup %10436 }
0x19e6   : > { %v6064_v59 = vmul.f32 %v10437_v13, %v6063_v43  ;;  %v14649_v43 = vld [vmem:[#allocation80_spill] sm:$0xff] }
0x19e7   : > { %v1110_v13 = vadd.f32 %v14649_v43, %v11673_v22 }
0x19e8   : > { %v6066_v10 = vadd.f32 %v6065_v46, %v6064_v59 }
0x19ea   : > { %v6074_v4 = vmul.f32 %v6072_v29, %v6066_v10 }
0x19ec   : > { %v6076_v57 = vcombine.high %v6074_v4, %v6074_v4  ;;  %v6083_v6 = vrot.slane %v6074_v4, %v11788_v8  ;;  %v13328_v63 = vadd.f32 %v6147_v61, %v6074_v4 }
0x19ee   : > { %v6090_v7 = vrot.slane %v6076_v57, %v11788_v8  ;;  %v6091_v17 = vcombine.high %v6083_v6, %v6083_v6  ;;  %v6099_v34 = vrot.slane %v6083_v6, %v11788_v8  ;;  %8883 = vst.sshfl [vmem:[#allocation3 + $0x18] sm:$0x1 pattern:$0x73625140] %v6083_v6  ;;  %v6153_v26 = vpack.c.bf16 %v13328_v63, %v13328_v63  ;;  %v6262_v6 = vpop.permute.xlu0 %6261 }
0x19f0   : > { %v6092_v45 = vcombine.high %v6090_v7, %v6090_v7  ;;  %v6106_v37 = vrot.slane %v6090_v7, %v11788_v8  ;;  %v6113_v2 = vrot.slane %v6091_v17, %v11788_v8  ;;  %v6121_v3 = vcombine.high %v6099_v34, %v6099_v34  ;;  %8884 = vst.sshfl [vmem:[#allocation3 + $0x38] sm:$0x1 pattern:$0x73625140] %v6091_v17 }
0x19f1   : > { %8885 = vst.sshfl [vmem:[#allocation3 + $0x98] sm:$0x1 pattern:$0x73625140] %v6090_v7  ;;  %6187 = vmatmul.mubr.bf16.vlgmr.msra.gmra.mxu0 %v6153_v26  ;;  %9839 = vmatmul.mubr.bf16.vlgmr.msra.gmra.mxu1 %v6153_v26  ;;  %v6335_v7 = vpop.permute.xlu1 %6334 }
0x19f2   : > { %6345 = vmatpush1.bf16.msra.mxu0 %v13336_v0  ;;  %v6120_v5 = vrot.slane %v6092_v45, %v11788_v8  ;;  %v6122_v18 = vcombine.high %v6106_v37, %v6106_v37  ;;  %v6123_v9 = vcombine.high %v6113_v2, %v6113_v2  ;;  %6135 = vst [vmem:[#allocation3 + $0x58] sm:$0x1] %v6121_v3  ;;  %8886 = vst.sshfl [vmem:[#allocation3 + $0xb8] sm:$0x1 pattern:$0x73625140] %v6092_v45 }
0x19f3   : > { %9843 = vmatpush3.bf16.msra.mxu1 %v13158_v1  ;;  %6346 = vmatprep.subr.bf16.mxu0 %v13341_v24  ;;  %v6337_v34 = vmul.f32 %v6335_v7, %v13328_v63 }
0x19f4   : > { %9844 = vmatprep.subr.bf16.mxu1 %v14579_v58  ;;  %6376 = vmatprep.mubr.bf16.mxu0 %v14580_v20  ;;  %v6124_v30 = vcombine.high %v6120_v5, %v6120_v5  ;;  %6136 = vst [vmem:[#allocation3 + $0x78] sm:$0x1] %v6123_v9  ;;  %6139 = vst [vmem:[#allocation3 + $0xd8] sm:$0x1] %v6122_v18 }
0x19f5   : > { %9858 = vmatprep.mubr.msk.bf16.mxu1 %vm10974_vm0, %v14579_v58 }
0x19f6   : > { %6347 = vmatpush1.bf16.msra.mxu0 %v13031_v55  ;;  %6140 = vst [vmem:[#allocation3 + $0xf8] sm:$0x1] %v6124_v30  ;;  %v13374_v55 = vld [vmem:[#allocation4 + $0xac] ss:$12 sps:$4 sm:$0xff]  }
0x19f7   : > { %9845 = vmatpush3.bf16.msra.mxu1 %v13167_v32  ;;  %6348 = vmatprep.subr.bf16.mxu0 %v13035_v40  ;;  %v14647_v40 = vld [vmem:[#allocation45_spill] sm:$0xff] }
0x19f8   : > { %9846 = vmatprep.subr.bf16.mxu1 %v14579_v58 }
0x19fa   : > { %6349 = vmatpush1.bf16.msra.mxu0 %v13039_v14  ;;  %v942_v14 = vadd.f32 %v14647_v40, %v11760_v48 }
0x19fb   : > { %9847 = vmatpush3.bf16.msra.mxu1 %v13173_v44  ;;  %6350 = vmatprep.subr.bf16.mxu0 %v13043_v25 }
0x19fc   : > { %9848 = vmatprep.subr.bf16.mxu1 %v14579_v58 }
0x19fe   : > { %6351 = vmatpush1.bf16.msra.mxu0 %v13047_v21 }
0x19ff   : > { %9849 = vmatpush3.bf16.msra.mxu1 %v13179_v23  ;;  %6352 = vmatprep.subr.bf16.mxu0 %v13051_v54 }
0x1a00   : > { %9850 = vmatprep.subr.bf16.mxu1 %v14579_v58 }
0x1a02   : > { %6353 = vmatpush1.bf16.msra.mxu0 %v13055_v51 }
0x1a03   : > { %9851 = vmatpush3.bf16.msra.mxu1 %v13185_v27  ;;  %6354 = vmatprep.subr.bf16.mxu0 %v13059_v50 }
0x1a04   : > { %9852 = vmatprep.subr.bf16.mxu1 %v14579_v58 }
0x1a06   : > { %6355 = vmatpush1.bf16.msra.mxu0 %v13063_v53 }
0x1a07   : > { %9853 = vmatpush3.bf16.msra.mxu1 %v13191_v42  ;;  %6356 = vmatprep.subr.bf16.mxu0 %v13067_v47 }
0x1a08   : > { %9854 = vmatprep.subr.bf16.mxu1 %v14579_v58 }
0x1a0a   : > { %6357 = vmatpush1.bf16.msra.mxu0 %v13071_v12  ;;  %v14648_v12 = vld [vmem:[#allocation46_spill] sm:$0xff] }
0x1a0b   : > { %9855 = vmatpush3.bf16.msra.mxu1 %v13197_v60  ;;  %6358 = vmatprep.subr.bf16.mxu0 %v13075_v31  ;;  %v944_v31 = vadd.f32 %v14648_v12, %v11775_v56  ;;  %v13420_v12 = vld [vmem:[#allocation4 + $0x60] ss:$12 sps:$4 sm:$0xff]  }
0x1a0c   : > { %9856 = vmatprep.subr.bf16.mxu1 %v14579_v58 }
0x1a0e   : > { %6359 = vmatpush1.bf16.msra.mxu0 %v13079_v33 }
0x1a0f   : > { %9857 = vmatpush3.bf16.msra.mxu1 %v13203_v28  ;;  %6534 = vmatprep.subr.bf16.mxu0 %v13374_v55 }
0x1a10   : > { %9862 = vmatprep.subr.bf16.mxu1 %v14579_v58 }
0x1ab1   : > { %v6188_v25 = vpop.f32.mrf.mxu0  ;;  %v6229_v54 = vpop.f32.mrf.mxu1 }
0x1ab2   : > { %v6235_v21 = vadd.f32 %v6188_v25, %v942_v14  ;;  %v6249_v16 = vadd.f32 %v13268_v39, %v6229_v54 }
0x1ab3   : > { %v6190_v51 = vpop.f32.mrf.mxu0  ;;  %v9840_v53 = vpop.f32.mrf.mxu1 }
0x1ab4   : > { %v8887_v50 = vmul.f32 -1.442695, %v6235_v21  ;;  %v6242_v11 = vadd.f32 %v6190_v51, %v944_v31  ;;  %v13404_v51 = vld [vmem:[#allocation4 + $0x90] ss:$12 sps:$4 sm:$0xff]   ;;  %v13412_v53 = vld [vmem:[#allocation4 + $0x78] ss:$12 sps:$4 sm:$0xff]  }
0x1ab5   : > { %v6192_v47 = vpop.f32.mrf.mxu0  ;;  %v6232_v33 = vpop.f32.mrf.mxu1  ;;  %v13424_v31 = vld [vmem:[#allocation4 + $0x4c] ss:$12 sps:$4 sm:$0xff]  }
0x1ab6   : > { %10438 = vpow2.f32 %v8887_v50  ;;  %v8888_v35 = vmul.f32 -1.442695, %v6242_v11  ;;  %v13408_v50 = vld [vmem:[#allocation4 + $0x7c] ss:$12 sps:$4 sm:$0xff]   ;;  %v13416_v47 = vld [vmem:[#allocation4 + $0x64] ss:$12 sps:$4 sm:$0xff]  }
0x1ab7   : > { %v6193_v15 = vpop.f32.mrf.mxu0  ;;  %v9841_v19 = vpop.f32.mrf.mxu1  ;;  %v13428_v33 = vld [vmem:[#allocation4 + $0x48] ss:$12 sps:$4 sm:$0xff]   ;;  %v13436_v11 = vld [vmem:[#allocation4 + $0x30] ss:$12 sps:$4 sm:$0xff]  }
0x1ab8   : > { %10440 = vpow2.f32 %v8888_v35  ;;  %v13432_v15 = vld [vmem:[#allocation4 + $0x34] ss:$12 sps:$4 sm:$0xff]   ;;  %v13440_v19 = vld [vmem:[#allocation4 + $0x1c] ss:$12 sps:$4 sm:$0xff]   ;;  %v13444_v35 = vld [vmem:[#allocation4 + $0x18] ss:$12 sps:$4 sm:$0xff]  }
0x1ac3   : > { %v10439_v49 = vpop.eup %10438 }
0x1ac4   : > { %v6239_v41 = vadd.f32 1.0, %v10439_v49  ;;  %v13448_v49 = vld [vmem:[#allocation4 + $0x4] ss:$12 sps:$4 sm:$0xff]  }
0x1ac5   : > { %v10441_v52 = vpop.eup %10440 }
0x1ac6   : > { %10442 = vrcp.f32 %v6239_v41  ;;  %v6246_v38 = vadd.f32 1.0, %v10441_v52  ;;  %v13452_v41 = vld [vmem:[#allocation4] ss:$12 sps:$4 sm:$0xff]  }
0x1ac7   : > { %v14650_v52 = vld [vmem:[#allocation47_spill] sm:$0xff] }
0x1ac8   : > { %10444 = vrcp.f32 %v6246_v38  ;;  %v948_v38 = vadd.f32 %v14650_v52, %v11760_v48  ;;  %v6525_v52 = vpop.permute.xlu1 %6524 }
0x1ad3   : > { %v10443_v36 = vpop.eup %10442 }
0x1ad4   : > { %v6250_v59 = vmul.f32 %v10443_v36, %v6249_v16 }
0x1ad5   : > { %v10445_v10 = vpop.eup %10444 }
0x1ad6   : > { %v6251_v46 = vadd.f32 %v6250_v59, %v1110_v13  ;;  %v6253_v29 = vsub.f32 1.0, %v10445_v10  ;;  %v6255_v61 = vmul.f32 %v10445_v10, %v13328_v63 }
0x1ad8   : > { %10446 = vtanh.f32 %v6251_v46 }
0x1ae5   : > { %v10447_v62 = vpop.eup %10446 }
0x1ae6   : > { %v6254_v4 = vmul.f32 %v10447_v62, %v6253_v29  ;;  %v14651_v29 = vld [vmem:[#allocation48_spill] sm:$0xff] }
0x1ae7   : > { %v950_v62 = vadd.f32 %v14651_v29, %v11775_v56 }
0x1ae8   : > { %v6256_v57 = vadd.f32 %v6255_v61, %v6254_v4 }
0x1aea   : > { %v6264_v17 = vmul.f32 %v6262_v6, %v6256_v57 }
0x1aec   : > { %v6266_v26 = vcombine.high %v6264_v17, %v6264_v17  ;;  %v6273_v45 = vrot.slane %v6264_v17, %v11788_v8  ;;  %v13388_v37 = vadd.f32 %v6337_v34, %v6264_v17 }
0x1aee   : > { %v6280_v2 = vrot.slane %v6266_v26, %v11788_v8  ;;  %v6281_v3 = vcombine.high %v6273_v45, %v6273_v45  ;;  %v6289_v5 = vrot.slane %v6273_v45, %v11788_v8  ;;  %8890 = vst.sshfl [vmem:[#allocation3 + $0x19] sm:$0x1 pattern:$0x73625140] %v6273_v45  ;;  %v6343_v18 = vpack.c.bf16 %v13388_v37, %v13388_v37 }
0x1af0   : > { %v6282_v9 = vcombine.high %v6280_v2, %v6280_v2  ;;  %v6296_v30 = vrot.slane %v6280_v2, %v11788_v8  ;;  %v6303_v40 = vrot.slane %v6281_v3, %v11788_v8  ;;  %v6311_v63 = vcombine.high %v6289_v5, %v6289_v5  ;;  %8891 = vst.sshfl [vmem:[#allocation3 + $0x39] sm:$0x1 pattern:$0x73625140] %v6281_v3 }
0x1af1   : > { %8892 = vst.sshfl [vmem:[#allocation3 + $0x99] sm:$0x1 pattern:$0x73625140] %v6280_v2  ;;  %6377 = vmatmul.mubr.bf16.vlgmr.msra.gmra.mxu0 %v6343_v18  ;;  %9859 = vmatmul.mubr.bf16.vlgmr.msra.gmra.mxu1 %v6343_v18  ;;  %v14652_v18 = vld [vmem:[#allocation77_spill] sm:$0xff] }
0x1af2   : > { %6535 = vmatpush1.bf16.msra.mxu0 %v13336_v0  ;;  %v6310_v14 = vrot.slane %v6282_v9, %v11788_v8  ;;  %v6312_v25 = vcombine.high %v6296_v30, %v6296_v30  ;;  %v6313_v21 = vcombine.high %v6303_v40, %v6303_v40  ;;  %6325 = vst [vmem:[#allocation3 + $0x59] sm:$0x1] %v6311_v63  ;;  %8893 = vst.sshfl [vmem:[#allocation3 + $0xb9] sm:$0x1 pattern:$0x73625140] %v6282_v9 }
0x1af3   : > { %9863 = vmatpush3.bf16.msra.mxu1 %v13158_v1  ;;  %6536 = vmatprep.subr.bf16.mxu0 %v13341_v24 }
0x1af4   : > { %9864 = vmatprep.subr.bf16.mxu1 %v14579_v58  ;;  %6566 = vmatprep.mubr.bf16.mxu0 %v14580_v20  ;;  %v6314_v54 = vcombine.high %v6310_v14, %v6310_v14  ;;  %6326 = vst [vmem:[#allocation3 + $0x79] sm:$0x1] %v6313_v21  ;;  %6329 = vst [vmem:[#allocation3 + $0xd9] sm:$0x1] %v6312_v25 }
0x1af5   : > { %9878 = vmatprep.mubr.msk.bf16.mxu1 %vm10974_vm0, %v14579_v58 }
0x1af6   : > { %6537 = vmatpush1.bf16.msra.mxu0 %v13404_v51  ;;  %6330 = vst [vmem:[#allocation3 + $0xf9] sm:$0x1] %v6314_v54  ;;  %v6452_v54 = vpop.permute.xlu0 %6451 }
0x1af7   : > { %9865 = vmatpush3.bf16.msra.mxu1 %v13167_v32  ;;  %6538 = vmatprep.subr.bf16.mxu0 %v13408_v50 }
0x1af8   : > { %9866 = vmatprep.subr.bf16.mxu1 %v14579_v58 }
0x1afa   : > { %6539 = vmatpush1.bf16.msra.mxu0 %v13412_v53 }
0x1afb   : > { %9867 = vmatpush3.bf16.msra.mxu1 %v13173_v44  ;;  %6540 = vmatprep.subr.bf16.mxu0 %v13416_v47 }
0x1afc   : > { %9868 = vmatprep.subr.bf16.mxu1 %v14579_v58 }
0x1afe   : > { %6541 = vmatpush1.bf16.msra.mxu0 %v13420_v12 }
0x1aff   : > { %9869 = vmatpush3.bf16.msra.mxu1 %v13179_v23  ;;  %6542 = vmatprep.subr.bf16.mxu0 %v13424_v31 }
0x1b00   : > { %9870 = vmatprep.subr.bf16.mxu1 %v14579_v58 }
0x1b02   : > { %6543 = vmatpush1.bf16.msra.mxu0 %v13428_v33 }
0x1b03   : > { %9871 = vmatpush3.bf16.msra.mxu1 %v13185_v27  ;;  %6544 = vmatprep.subr.bf16.mxu0 %v13432_v15 }
0x1b04   : > { %9872 = vmatprep.subr.bf16.mxu1 %v14579_v58 }
0x1b06   : > { %6545 = vmatpush1.bf16.msra.mxu0 %v13436_v11 }
0x1b07   : > { %9873 = vmatpush3.bf16.msra.mxu1 %v13191_v42  ;;  %6546 = vmatprep.subr.bf16.mxu0 %v13440_v19 }
0x1b08   : > { %9874 = vmatprep.subr.bf16.mxu1 %v14579_v58 }
0x1b0a   : > { %6547 = vmatpush1.bf16.msra.mxu0 %v13444_v35 }
0x1b0b   : > { %9875 = vmatpush3.bf16.msra.mxu1 %v13197_v60  ;;  %6548 = vmatprep.subr.bf16.mxu0 %v13448_v49 }
0x1b0c   : > { %9876 = vmatprep.subr.bf16.mxu1 %v14579_v58 }
0x1b0e   : > { %6549 = vmatpush1.bf16.msra.mxu0 %v13452_v41 }
0x1b0f   : > { %9877 = vmatpush3.bf16.msra.mxu1 %v13203_v28  ;;  %6724 = vmatprep.subr.bf16.mxu0 %v13374_v55 }
0x1b10   : > { %9882 = vmatprep.subr.bf16.mxu1 %v14579_v58 }
0x1bb1   : > { %v6378_v16 = vpop.f32.mrf.mxu0  ;;  %v6419_v43 = vpop.f32.mrf.mxu1 }
0x1bb2   : > { %v6425_v36 = vadd.f32 %v6378_v16, %v948_v38  ;;  %v6439_v2 = vadd.f32 %v13268_v39, %v6419_v43  ;;  %v6527_v16 = vmul.f32 %v6525_v52, %v13388_v37  ;;  %v14655_v52 = vld [vmem:[#allocation79_spill] sm:$0xff] }
0x1bb3   : > { %v6380_v13 = vpop.f32.mrf.mxu0  ;;  %v9860_v46 = vpop.f32.mrf.mxu1 }
0x1bb4   : > { %v8894_v59 = vmul.f32 -1.442695, %v6425_v36  ;;  %v6432_v57 = vadd.f32 %v6380_v13, %v950_v62 }
0x1bb5   : > { %v6382_v10 = vpop.f32.mrf.mxu0  ;;  %v6422_v4 = vpop.f32.mrf.mxu1 }
0x1bb6   : > { %10448 = vpow2.f32 %v8894_v59  ;;  %v8895_v7 = vmul.f32 -1.442695, %v6432_v57 }
0x1bb7   : > { %v6383_v61 = vpop.f32.mrf.mxu0  ;;  %v9861_v6 = vpop.f32.mrf.mxu1 }
0x1bb8   : > { %10450 = vpow2.f32 %v8895_v7 }
0x1bc3   : > { %v10449_v17 = vpop.eup %10448 }
0x1bc4   : > { %v6429_v34 = vadd.f32 1.0, %v10449_v17 }
0x1bc5   : > { %v10451_v26 = vpop.eup %10450 }
0x1bc6   : > { %10452 = vrcp.f32 %v6429_v34  ;;  %v6436_v45 = vadd.f32 1.0, %v10451_v26 }
0x1bc8   : > { %10454 = vrcp.f32 %v6436_v45  ;;  %v14654_v45 = vld [vmem:[#allocation50_spill] sm:$0xff] }
0x1bd3   : > { %v10453_v3 = vpop.eup %10452 }
0x1bd4   : > { %v6440_v5 = vmul.f32 %v10453_v3, %v6439_v2  ;;  %v954_v2 = vadd.f32 %v14654_v45, %v11775_v56 }
0x1bd5   : > { %v10455_v30 = vpop.eup %10454 }
0x1bd6   : > { %v6441_v9 = vadd.f32 %v6440_v5, %v14652_v18  ;;  %v6443_v40 = vsub.f32 1.0, %v10455_v30  ;;  %v6445_v25 = vmul.f32 %v10455_v30, %v13388_v37 }
0x1bd8   : > { %10456 = vtanh.f32 %v6441_v9 }
0x1be5   : > { %v10457_v63 = vpop.eup %10456 }
0x1be6   : > { %v6444_v14 = vmul.f32 %v10457_v63, %v6443_v40 }
0x1be8   : > { %v6446_v21 = vadd.f32 %v6445_v25, %v6444_v14 }
0x1bea   : > { %v6454_v38 = vmul.f32 %v6452_v54, %v6446_v21 }
0x1bec   : > { %v6456_v36 = vcombine.high %v6454_v38, %v6454_v38  ;;  %v6463_v43 = vrot.slane %v6454_v38, %v11788_v8  ;;  %v13467_v13 = vadd.f32 %v6527_v16, %v6454_v38 }
0x1bee   : > { %v6470_v59 = vrot.slane %v6456_v36, %v11788_v8  ;;  %v6471_v46 = vcombine.high %v6463_v43, %v6463_v43  ;;  %v6479_v10 = vrot.slane %v6463_v43, %v11788_v8  ;;  %8897 = vst.sshfl [vmem:[#allocation3 + $0x1a] sm:$0x1 pattern:$0x73625140] %v6463_v43  ;;  %v6533_v29 = vpack.c.bf16 %v13467_v13, %v13467_v13 }
0x1bf0   : > { %v6472_v62 = vcombine.high %v6470_v59, %v6470_v59  ;;  %v6486_v4 = vrot.slane %v6470_v59, %v11788_v8  ;;  %v6493_v61 = vrot.slane %v6471_v46, %v11788_v8  ;;  %v6501_v37 = vcombine.high %v6479_v10, %v6479_v10  ;;  %8898 = vst.sshfl [vmem:[#allocation3 + $0x3a] sm:$0x1 pattern:$0x73625140] %v6471_v46 }
0x1bf1   : > { %8899 = vst.sshfl [vmem:[#allocation3 + $0x9a] sm:$0x1 pattern:$0x73625140] %v6470_v59  ;;  %6567 = vmatmul.mubr.bf16.vlgmr.msra.gmra.mxu0 %v6533_v29  ;;  %9879 = vmatmul.mubr.bf16.vlgmr.msra.gmra.mxu1 %v6533_v29  ;;  %v6642_v29 = vpop.permute.xlu0 %6641 }
0x1bf2   : > { %6725 = vmatpush1.bf16.msra.mxu0 %v13336_v0  ;;  %v6500_v57 = vrot.slane %v6472_v62, %v11788_v8  ;;  %v6502_v6 = vcombine.high %v6486_v4, %v6486_v4  ;;  %v6503_v7 = vcombine.high %v6493_v61, %v6493_v61  ;;  %6515 = vst [vmem:[#allocation3 + $0x5a] sm:$0x1] %v6501_v37  ;;  %8900 = vst.sshfl [vmem:[#allocation3 + $0xba] sm:$0x1 pattern:$0x73625140] %v6472_v62  ;;  %v6715_v62 = vpop.permute.xlu1 %6714 }
0x1bf3   : > { %9883 = vmatpush3.bf16.msra.mxu1 %v13158_v1  ;;  %6726 = vmatprep.subr.bf16.mxu0 %v13341_v24  ;;  %v14653_v1 = vld [vmem:[#allocation49_spill] sm:$0xff]  ;;  %v6717_v61 = vmul.f32 %v6715_v62, %v13467_v13 }
0x1bf4   : > { %9884 = vmatprep.subr.bf16.mxu1 %v14579_v58  ;;  %6756 = vmatprep.mubr.bf16.mxu0 %v14580_v20  ;;  %v6504_v17 = vcombine.high %v6500_v57, %v6500_v57  ;;  %6516 = vst [vmem:[#allocation3 + $0x7a] sm:$0x1] %v6503_v7  ;;  %6519 = vst [vmem:[#allocation3 + $0xda] sm:$0x1] %v6502_v6 }
0x1bf5   : > { %9898 = vmatprep.mubr.msk.bf16.mxu1 %vm10974_vm0, %v14579_v58 }
0x1bf6   : > { %6727 = vmatpush1.bf16.msra.mxu0 %v13404_v51  ;;  %6520 = vst [vmem:[#allocation3 + $0xfa] sm:$0x1] %v6504_v17 }
0x1bf7   : > { %9885 = vmatpush3.bf16.msra.mxu1 %v13167_v32  ;;  %6728 = vmatprep.subr.bf16.mxu0 %v13408_v50  ;;  %v952_v32 = vadd.f32 %v14653_v1, %v11760_v48 }
0x1bf8   : > { %9886 = vmatprep.subr.bf16.mxu1 %v14579_v58 }
0x1bfa   : > { %6729 = vmatpush1.bf16.msra.mxu0 %v13412_v53 }
0x1bfb   : > { %9887 = vmatpush3.bf16.msra.mxu1 %v13173_v44  ;;  %6730 = vmatprep.subr.bf16.mxu0 %v13416_v47 }
0x1bfc   : > { %9888 = vmatprep.subr.bf16.mxu1 %v14579_v58 }
0x1bfe   : > { %6731 = vmatpush1.bf16.msra.mxu0 %v13420_v12 }
0x1bff   : > { %9889 = vmatpush3.bf16.msra.mxu1 %v13179_v23  ;;  %6732 = vmatprep.subr.bf16.mxu0 %v13424_v31 }
0x1c00   : > { %9890 = vmatprep.subr.bf16.mxu1 %v14579_v58 }
0x1c02   : > { %6733 = vmatpush1.bf16.msra.mxu0 %v13428_v33 }
0x1c03   : > { %9891 = vmatpush3.bf16.msra.mxu1 %v13185_v27  ;;  %6734 = vmatprep.subr.bf16.mxu0 %v13432_v15 }
0x1c04   : > { %9892 = vmatprep.subr.bf16.mxu1 %v14579_v58 }
0x1c06   : > { %6735 = vmatpush1.bf16.msra.mxu0 %v13436_v11 }
0x1c07   : > { %9893 = vmatpush3.bf16.msra.mxu1 %v13191_v42  ;;  %6736 = vmatprep.subr.bf16.mxu0 %v13440_v19 }
0x1c08   : > { %9894 = vmatprep.subr.bf16.mxu1 %v14579_v58 }
0x1c0a   : > { %6737 = vmatpush1.bf16.msra.mxu0 %v13444_v35 }
0x1c0b   : > { %9895 = vmatpush3.bf16.msra.mxu1 %v13197_v60  ;;  %6738 = vmatprep.subr.bf16.mxu0 %v13448_v49 }
0x1c0c   : > { %9896 = vmatprep.subr.bf16.mxu1 %v14579_v58 }
0x1c0e   : > { %6739 = vmatpush1.bf16.msra.mxu0 %v13452_v41 }
0x1c0f   : > { %9897 = vmatpush3.bf16.msra.mxu1 %v13203_v28  ;;  %6914 = vmatprep.subr.bf16.mxu0 %v13374_v55 }
0x1c10   : > { %9902 = vmatprep.subr.bf16.mxu1 %v14579_v58 }
0x1cb1   : > { %v6568_v44 = vpop.f32.mrf.mxu0  ;;  %v6609_v27 = vpop.f32.mrf.mxu1 }
0x1cb2   : > { %v6615_v23 = vadd.f32 %v6568_v44, %v952_v32  ;;  %v6629_v25 = vadd.f32 %v13268_v39, %v6609_v27 }
0x1cb3   : > { %v6570_v42 = vpop.f32.mrf.mxu0  ;;  %v9880_v34 = vpop.f32.mrf.mxu1 }
0x1cb4   : > { %v8901_v60 = vmul.f32 -1.442695, %v6615_v23  ;;  %v6622_v5 = vadd.f32 %v6570_v42, %v954_v2  ;;  %v13539_v2 = vld [vmem:[#allocation4 + $0x98] ss:$12 sps:$4 sm:$0xff]  }
0x1cb5   : > { %v6572_v26 = vpop.f32.mrf.mxu0  ;;  %v6612_v3 = vpop.f32.mrf.mxu1 }
0x1cb6   : > { %10458 = vpow2.f32 %v8901_v60  ;;  %v8902_v9 = vmul.f32 -1.442695, %v6622_v5  ;;  %v13530_v26 = vld [vmem:[#allocation4 + $0xb0] ss:$12 sps:$4 sm:$0xff]   ;;  %v13545_v3 = vld [vmem:[#allocation4 + $0x80] ss:$12 sps:$4 sm:$0xff]  }
0x1cb7   : > { %v6573_v28 = vpop.f32.mrf.mxu0  ;;  %v9881_v18 = vpop.f32.mrf.mxu1  ;;  %v13557_v5 = vld [vmem:[#allocation4 + $0x50] ss:$12 sps:$4 sm:$0xff]  }
0x1cb8   : > { %10460 = vpow2.f32 %v8902_v9  ;;  %v13551_v28 = vld [vmem:[#allocation4 + $0x68] ss:$12 sps:$4 sm:$0xff]   ;;  %v13563_v18 = vld [vmem:[#allocation4 + $0x38] ss:$12 sps:$4 sm:$0xff]   ;;  %v13569_v9 = vld [vmem:[#allocation4 + $0x20] ss:$12 sps:$4 sm:$0xff]  }
0x1cc3   : > { %v10459_v30 = vpop.eup %10458 }
0x1cc4   : > { %v6619_v40 = vadd.f32 1.0, %v10459_v30  ;;  %v13575_v30 = vld [vmem:[#allocation4 + $0x8] ss:$12 sps:$4 sm:$0xff]  }
0x1cc5   : > { %v10461_v63 = vpop.eup %10460 }
0x1cc6   : > { %10462 = vrcp.f32 %v6619_v40  ;;  %v6626_v14 = vadd.f32 1.0, %v10461_v63  ;;  %v14656_v40 = vld [vmem:[#allocation51_spill] sm:$0xff] }
0x1cc7   : > { %v958_v63 = vadd.f32 %v14656_v40, %v11760_v48  ;;  %v6905_v40 = vpop.permute.xlu1 %6904 }
0x1cc8   : > { %10464 = vrcp.f32 %v6626_v14 }
0x1cd3   : > { %v10463_v21 = vpop.eup %10462 }
0x1cd4   : > { %v6630_v54 = vmul.f32 %v10463_v21, %v6629_v25 }
0x1cd5   : > { %v10465_v16 = vpop.eup %10464 }
0x1cd6   : > { %v6631_v38 = vadd.f32 %v6630_v54, %v14655_v52  ;;  %v6633_v36 = vsub.f32 1.0, %v10465_v16  ;;  %v6635_v46 = vmul.f32 %v10465_v16, %v13467_v13 }
0x1cd8   : > { %10466 = vtanh.f32 %v6631_v38 }
0x1ce5   : > { %v10467_v43 = vpop.eup %10466 }
0x1ce6   : > { %v6634_v59 = vmul.f32 %v10467_v43, %v6633_v36  ;;  %v14657_v36 = vld [vmem:[#allocation52_spill] sm:$0xff] }
0x1ce7   : > { %v960_v43 = vadd.f32 %v14657_v36, %v11775_v56 }
0x1ce8   : > { %v6636_v10 = vadd.f32 %v6635_v46, %v6634_v59 }
0x1cea   : > { %v6644_v4 = vmul.f32 %v6642_v29, %v6636_v10 }
0x1cec   : > { %v6646_v37 = vcombine.high %v6644_v4, %v6644_v4  ;;  %v6653_v57 = vrot.slane %v6644_v4, %v11788_v8  ;;  %v13520_v6 = vadd.f32 %v6717_v61, %v6644_v4 }
0x1cee   : > { %v6660_v7 = vrot.slane %v6646_v37, %v11788_v8  ;;  %v6661_v17 = vcombine.high %v6653_v57, %v6653_v57  ;;  %v6669_v1 = vrot.slane %v6653_v57, %v11788_v8  ;;  %8904 = vst.sshfl [vmem:[#allocation3 + $0x1b] sm:$0x1 pattern:$0x73625140] %v6653_v57  ;;  %v6723_v32 = vpack.c.bf16 %v13520_v6, %v13520_v6 }
0x1cf0   : > { %v6662_v44 = vcombine.high %v6660_v7, %v6660_v7  ;;  %v6676_v23 = vrot.slane %v6660_v7, %v11788_v8  ;;  %v6683_v27 = vrot.slane %v6661_v17, %v11788_v8  ;;  %v6691_v13 = vcombine.high %v6669_v1, %v6669_v1  ;;  %8905 = vst.sshfl [vmem:[#allocation3 + $0x3b] sm:$0x1 pattern:$0x73625140] %v6661_v17 }
0x1cf1   : > { %8906 = vst.sshfl [vmem:[#allocation3 + $0x9b] sm:$0x1 pattern:$0x73625140] %v6660_v7  ;;  %6757 = vmatmul.mubr.bf16.vlgmr.msra.gmra.mxu0 %v6723_v32  ;;  %9899 = vmatmul.mubr.bf16.vlgmr.msra.gmra.mxu1 %v6723_v32  ;;  %v14658_v32 = vld [vmem:[#allocation82_spill] sm:$0xff] }
0x1cf2   : > { %6915 = vmatpush1.bf16.msra.mxu0 %v13336_v0  ;;  %v6690_v42 = vrot.slane %v6662_v44, %v11788_v8  ;;  %v6692_v60 = vcombine.high %v6676_v23, %v6676_v23  ;;  %v6693_v34 = vcombine.high %v6683_v27, %v6683_v27  ;;  %6705 = vst [vmem:[#allocation3 + $0x5b] sm:$0x1] %v6691_v13  ;;  %8907 = vst.sshfl [vmem:[#allocation3 + $0xbb] sm:$0x1 pattern:$0x73625140] %v6662_v44 }
0x1cf3   : > { %9903 = vmatpush3.bf16.msra.mxu1 %v13530_v26  ;;  %6916 = vmatprep.subr.bf16.mxu0 %v13341_v24 }
0x1cf4   : > { %9904 = vmatprep.subr.bf16.mxu1 %v14579_v58  ;;  %6946 = vmatprep.mubr.bf16.mxu0 %v14580_v20  ;;  %v6694_v45 = vcombine.high %v6690_v42, %v6690_v42  ;;  %6706 = vst [vmem:[#allocation3 + $0x7b] sm:$0x1] %v6693_v34  ;;  %6709 = vst [vmem:[#allocation3 + $0xdb] sm:$0x1] %v6692_v60 }
0x1cf5   : > { %9918 = vmatprep.mubr.msk.bf16.mxu1 %vm10974_vm0, %v14579_v58 }
0x1cf6   : > { %6917 = vmatpush1.bf16.msra.mxu0 %v13404_v51  ;;  %6710 = vst [vmem:[#allocation3 + $0xfb] sm:$0x1] %v6694_v45  ;;  %v6832_v45 = vpop.permute.xlu0 %6831 }
0x1cf7   : > { %9905 = vmatpush3.bf16.msra.mxu1 %v13539_v2  ;;  %6918 = vmatprep.subr.bf16.mxu0 %v13408_v50 }
0x1cf8   : > { %9906 = vmatprep.subr.bf16.mxu1 %v14579_v58 }
0x1cfa   : > { %6919 = vmatpush1.bf16.msra.mxu0 %v13412_v53 }
0x1cfb   : > { %9907 = vmatpush3.bf16.msra.mxu1 %v13545_v3  ;;  %6920 = vmatprep.subr.bf16.mxu0 %v13416_v47 }
0x1cfc   : > { %9908 = vmatprep.subr.bf16.mxu1 %v14579_v58 }
0x1cfe   : > { %6921 = vmatpush1.bf16.msra.mxu0 %v13420_v12 }
0x1cff   : > { %9909 = vmatpush3.bf16.msra.mxu1 %v13551_v28  ;;  %6922 = vmatprep.subr.bf16.mxu0 %v13424_v31 }
0x1d00   : > { %9910 = vmatprep.subr.bf16.mxu1 %v14579_v58 }
0x1d02   : > { %6923 = vmatpush1.bf16.msra.mxu0 %v13428_v33 }
0x1d03   : > { %9911 = vmatpush3.bf16.msra.mxu1 %v13557_v5  ;;  %6924 = vmatprep.subr.bf16.mxu0 %v13432_v15 }
0x1d04   : > { %9912 = vmatprep.subr.bf16.mxu1 %v14579_v58 }
0x1d06   : > { %6925 = vmatpush1.bf16.msra.mxu0 %v13436_v11 }
0x1d07   : > { %9913 = vmatpush3.bf16.msra.mxu1 %v13563_v18  ;;  %6926 = vmatprep.subr.bf16.mxu0 %v13440_v19 }
0x1d08   : > { %9914 = vmatprep.subr.bf16.mxu1 %v14579_v58 }
0x1d0a   : > { %6927 = vmatpush1.bf16.msra.mxu0 %v13444_v35 }
0x1d0b   : > { %9915 = vmatpush3.bf16.msra.mxu1 %v13569_v9  ;;  %6928 = vmatprep.subr.bf16.mxu0 %v13448_v49 }
0x1d0c   : > { %9916 = vmatprep.subr.bf16.mxu1 %v14579_v58 }
0x1d0e   : > { %6929 = vmatpush1.bf16.msra.mxu0 %v13452_v41 }
0x1d0f   : > { %9917 = vmatpush3.bf16.msra.mxu1 %v13575_v30  ;;  %7104 = vmatprep.subr.bf16.mxu0 %v13374_v55 }
0x1d10   : > { %9922 = vmatprep.subr.bf16.mxu1 %v14579_v58 }
0x1db1   : > { %v6758_v14 = vpop.f32.mrf.mxu0  ;;  %v6799_v21 = vpop.f32.mrf.mxu1 }
0x1db2   : > { %v6805_v25 = vadd.f32 %v6758_v14, %v958_v63  ;;  %v6819_v7 = vadd.f32 %v13268_v39, %v6799_v21  ;;  %v6907_v14 = vmul.f32 %v6905_v40, %v13520_v6 }
0x1db3   : > { %v6760_v54 = vpop.f32.mrf.mxu0  ;;  %v9900_v38 = vpop.f32.mrf.mxu1 }
0x1db4   : > { %v8908_v52 = vmul.f32 -1.442695, %v6805_v25  ;;  %v6812_v10 = vadd.f32 %v6760_v54, %v960_v43 }
0x1db5   : > { %v6762_v16 = vpop.f32.mrf.mxu0  ;;  %v6802_v59 = vpop.f32.mrf.mxu1 }
0x1db6   : > { %10468 = vpow2.f32 %v8908_v52  ;;  %v8909_v62 = vmul.f32 -1.442695, %v6812_v10 }
0x1db7   : > { %v6763_v46 = vpop.f32.mrf.mxu0  ;;  %v9901_v29 = vpop.f32.mrf.mxu1 }
0x1db8   : > { %10470 = vpow2.f32 %v8909_v62 }
0x1dc3   : > { %v10469_v4 = vpop.eup %10468 }
0x1dc4   : > { %v6809_v61 = vadd.f32 1.0, %v10469_v4  ;;  %v14659_v4 = vld [vmem:[#allocation53_spill] sm:$0xff] }
0x1dc5   : > { %v10471_v37 = vpop.eup %10470 }
0x1dc6   : > { %10472 = vrcp.f32 %v6809_v61  ;;  %v6816_v57 = vadd.f32 1.0, %v10471_v37  ;;  %v962_v61 = vadd.f32 %v14659_v4, %v11760_v48  ;;  %v7095_v4 = vpop.permute.xlu1 %7094 }
0x1dc8   : > { %10474 = vrcp.f32 %v6816_v57 }
0x1dd3   : > { %v10473_v17 = vpop.eup %10472 }
0x1dd4   : > { %v6820_v1 = vmul.f32 %v10473_v17, %v6819_v7 }
0x1dd5   : > { %v10475_v23 = vpop.eup %10474 }
0x1dd6   : > { %v6821_v44 = vadd.f32 %v6820_v1, %v14658_v32  ;;  %v6823_v27 = vsub.f32 1.0, %v10475_v23  ;;  %v6825_v60 = vmul.f32 %v10475_v23, %v13520_v6  ;;  %v14660_v23 = vld [vmem:[#allocation54_spill] sm:$0xff] }
0x1dd8   : > { %10476 = vtanh.f32 %v6821_v44 }
0x1de5   : > { %v10477_v13 = vpop.eup %10476 }
0x1de6   : > { %v6824_v42 = vmul.f32 %v10477_v13, %v6823_v27  ;;  %v964_v27 = vadd.f32 %v14660_v23, %v11775_v56 }
0x1de8   : > { %v6826_v34 = vadd.f32 %v6825_v60, %v6824_v42 }
0x1dea   : > { %v6834_v63 = vmul.f32 %v6832_v45, %v6826_v34 }
0x1dec   : > { %v6836_v25 = vcombine.high %v6834_v63, %v6834_v63  ;;  %v6843_v39 = vrot.slane %v6834_v63, %v11788_v8  ;;  %v13589_v21 = vadd.f32 %v6907_v14, %v6834_v63 }
0x1dee   : > { %v6850_v54 = vrot.slane %v6836_v25, %v11788_v8  ;;  %v6851_v52 = vcombine.high %v6843_v39, %v6843_v39  ;;  %v6859_v38 = vrot.slane %v6843_v39, %v11788_v8  ;;  %8911 = vst.sshfl [vmem:[#allocation3 + $0x1c] sm:$0x1 pattern:$0x73625140] %v6843_v39  ;;  %v6913_v16 = vpack.c.bf16 %v13589_v21, %v13589_v21  ;;  %v13640_v25 = vld [vmem:[%s14424_s6] ss:$0 sm:$0xff] }
0x1df0   : > { %v6852_v36 = vcombine.high %v6850_v54, %v6850_v54  ;;  %v6866_v43 = vrot.slane %v6850_v54, %v11788_v8  ;;  %v6873_v59 = vrot.slane %v6851_v52, %v11788_v8  ;;  %v6881_v6 = vcombine.high %v6859_v38, %v6859_v38  ;;  %8912 = vst.sshfl [vmem:[#allocation3 + $0x3c] sm:$0x1 pattern:$0x73625140] %v6851_v52  ;;  %v14661_v52 = vld [vmem:[#allocation84_spill] sm:$0xff] }
0x1df1   : > { %8913 = vst.sshfl [vmem:[#allocation3 + $0x9c] sm:$0x1 pattern:$0x73625140] %v6850_v54  ;;  %6947 = vmatmul.mubr.bf16.vlgmr.msra.gmra.mxu0 %v6913_v16  ;;  %9919 = vmatmul.mubr.bf16.vlgmr.msra.gmra.mxu1 %v6913_v16  ;;  %v1126_v38 = vadd.f32 %v14661_v52, %v11673_v22 }
0x1df2   : > { %7105 = vmatpush1.bf16.msra.mxu0 %v13336_v0  ;;  %v6880_v46 = vrot.slane %v6852_v36, %v11788_v8  ;;  %v6882_v10 = vcombine.high %v6866_v43, %v6866_v43  ;;  %v6883_v29 = vcombine.high %v6873_v59, %v6873_v59  ;;  %6895 = vst [vmem:[#allocation3 + $0x5c] sm:$0x1] %v6881_v6  ;;  %8914 = vst.sshfl [vmem:[#allocation3 + $0xbc] sm:$0x1 pattern:$0x73625140] %v6852_v36 }
0x1df3   : > { %9923 = vmatpush3.bf16.msra.mxu1 %v13530_v26  ;;  %7106 = vmatprep.subr.bf16.mxu0 %v13341_v24 }
0x1df4   : > { %9924 = vmatprep.subr.bf16.mxu1 %v14579_v58  ;;  %7136 = vmatprep.mubr.bf16.mxu0 %v14580_v20  ;;  %v6884_v62 = vcombine.high %v6880_v46, %v6880_v46  ;;  %6896 = vst [vmem:[#allocation3 + $0x7c] sm:$0x1] %v6883_v29  ;;  %6899 = vst [vmem:[#allocation3 + $0xdc] sm:$0x1] %v6882_v10 }
0x1df5   : > { %9938 = vmatprep.mubr.msk.bf16.mxu1 %vm10974_vm0, %v14579_v58 }
0x1df6   : > { %7107 = vmatpush1.bf16.msra.mxu0 %v13404_v51  ;;  %6900 = vst [vmem:[#allocation3 + $0xfc] sm:$0x1] %v6884_v62  ;;  %v7022_v62 = vpop.permute.xlu0 %7021 }
0x1df7   : > { %9925 = vmatpush3.bf16.msra.mxu1 %v13539_v2  ;;  %7108 = vmatprep.subr.bf16.mxu0 %v13408_v50 }
0x1df8   : > { %9926 = vmatprep.subr.bf16.mxu1 %v14579_v58 }
0x1dfa   : > { %7109 = vmatpush1.bf16.msra.mxu0 %v13412_v53 }
0x1dfb   : > { %9927 = vmatpush3.bf16.msra.mxu1 %v13545_v3  ;;  %7110 = vmatprep.subr.bf16.mxu0 %v13416_v47 }
0x1dfc   : > { %9928 = vmatprep.subr.bf16.mxu1 %v14579_v58 }
0x1dfe   : > { %7111 = vmatpush1.bf16.msra.mxu0 %v13420_v12 }
0x1dff   : > { %9929 = vmatpush3.bf16.msra.mxu1 %v13551_v28  ;;  %7112 = vmatprep.subr.bf16.mxu0 %v13424_v31 }
0x1e00   : > { %9930 = vmatprep.subr.bf16.mxu1 %v14579_v58 }
0x1e02   : > { %7113 = vmatpush1.bf16.msra.mxu0 %v13428_v33 }
0x1e03   : > { %9931 = vmatpush3.bf16.msra.mxu1 %v13557_v5  ;;  %7114 = vmatprep.subr.bf16.mxu0 %v13432_v15 }
0x1e04   : > { %9932 = vmatprep.subr.bf16.mxu1 %v14579_v58 }
0x1e06   : > { %7115 = vmatpush1.bf16.msra.mxu0 %v13436_v11 }
0x1e07   : > { %9933 = vmatpush3.bf16.msra.mxu1 %v13563_v18  ;;  %7116 = vmatprep.subr.bf16.mxu0 %v13440_v19 }
0x1e08   : > { %9934 = vmatprep.subr.bf16.mxu1 %v14579_v58 }
0x1e0a   : > { %7117 = vmatpush1.bf16.msra.mxu0 %v13444_v35 }
0x1e0b   : > { %9935 = vmatpush3.bf16.msra.mxu1 %v13569_v9  ;;  %7118 = vmatprep.subr.bf16.mxu0 %v13448_v49 }
0x1e0c   : > { %9936 = vmatprep.subr.bf16.mxu1 %v14579_v58 }
0x1e0e   : > { %7119 = vmatpush1.bf16.msra.mxu0 %v13452_v41 }
0x1e0f   : > { %9937 = vmatpush3.bf16.msra.mxu1 %v13575_v30  ;;  %7294 = vmatprep.subr.bf16.mxu0 %v13374_v55 }
0x1e10   : > { %9942 = vmatprep.subr.bf16.mxu1 %v14579_v58 }
0x1eb1   : > { %v6948_v37 = vpop.f32.mrf.mxu0  ;;  %v6989_v7 = vpop.f32.mrf.mxu1 }
0x1eb2   : > { %v6995_v57 = vadd.f32 %v6948_v37, %v962_v61  ;;  %v7009_v39 = vadd.f32 %v13640_v25, %v6989_v7  ;;  %v7097_v37 = vmul.f32 %v7095_v4, %v13589_v21 }
0x1eb3   : > { %v6950_v17 = vpop.f32.mrf.mxu0  ;;  %v9920_v32 = vpop.f32.mrf.mxu1 }
0x1eb4   : > { %v8915_v1 = vmul.f32 -1.442695, %v6995_v57  ;;  %v7002_v60 = vadd.f32 %v6950_v17, %v964_v27 }
0x1eb5   : > { %v6952_v44 = vpop.f32.mrf.mxu0  ;;  %v6992_v13 = vpop.f32.mrf.mxu1 }
0x1eb6   : > { %10478 = vpow2.f32 %v8915_v1  ;;  %v8916_v34 = vmul.f32 -1.442695, %v7002_v60 }
0x1eb7   : > { %v6953_v42 = vpop.f32.mrf.mxu0  ;;  %v9921_v55 = vpop.f32.mrf.mxu1 }
0x1eb8   : > { %10480 = vpow2.f32 %v8916_v34 }
0x1ec3   : > { %v10479_v45 = vpop.eup %10478 }
0x1ec4   : > { %v6999_v40 = vadd.f32 1.0, %v10479_v45  ;;  %v14664_v45 = vld [vmem:[#allocation81_spill] sm:$0xff] }
0x1ec5   : > { %v10481_v63 = vpop.eup %10480 }
0x1ec6   : > { %10482 = vrcp.f32 %v6999_v40  ;;  %v7006_v14 = vadd.f32 1.0, %v10481_v63 }
0x1ec8   : > { %10484 = vrcp.f32 %v7006_v14 }
0x1ed3   : > { %v10483_v54 = vpop.eup %10482 }
0x1ed4   : > { %v7010_v16 = vmul.f32 %v10483_v54, %v7009_v39 }
0x1ed5   : > { %v10485_v43 = vpop.eup %10484 }
0x1ed6   : > { %v7011_v36 = vadd.f32 %v7010_v16, %v1126_v38  ;;  %v7013_v59 = vsub.f32 1.0, %v10485_v43  ;;  %v7015_v10 = vmul.f32 %v10485_v43, %v13589_v21  ;;  %v7212_v16 = vpop.permute.xlu0 %7211 }
0x1ed8   : > { %10486 = vtanh.f32 %v7011_v36  ;;  %v7285_v36 = vpop.permute.xlu1 %7284 }
0x1ee5   : > { %v10487_v6 = vpop.eup %10486 }
0x1ee6   : > { %v7014_v46 = vmul.f32 %v10487_v6, %v7013_v59 }
0x1ee8   : > { %v7016_v29 = vadd.f32 %v7015_v10, %v7014_v46 }
0x1eea   : > { %v7024_v61 = vmul.f32 %v7022_v62, %v7016_v29  ;;  %v10164_v29 = vld [vmem:[#allocation7 + $0x70] ss:$8 sps:$4 sm:$0xff]  }
0x1eec   : > { %v7026_v57 = vcombine.high %v7024_v61, %v7024_v61  ;;  %v7033_v7 = vrot.slane %v7024_v61, %v11788_v8  ;;  %v13648_v22 = vadd.f32 %v7097_v37, %v7024_v61 }
0x1eee   : > { %v7040_v17 = vrot.slane %v7026_v57, %v11788_v8  ;;  %v7041_v1 = vcombine.high %v7033_v7, %v7033_v7  ;;  %v7049_v32 = vrot.slane %v7033_v7, %v11788_v8  ;;  %8918 = vst.sshfl [vmem:[#allocation3 + $0x1d] sm:$0x1 pattern:$0x73625140] %v7033_v7  ;;  %v7103_v44 = vpack.c.bf16 %v13648_v22, %v13648_v22  ;;  %v10169_v57 = vld [vmem:[#allocation7 + $0x64] ss:$8 sps:$4 sm:$0xff]  }
0x1eef   : > { %v7287_v59 = vmul.f32 %v7285_v36, %v13648_v22 }
0x1ef0   : > { %v7042_v23 = vcombine.high %v7040_v17, %v7040_v17  ;;  %v7056_v27 = vrot.slane %v7040_v17, %v11788_v8  ;;  %v7063_v13 = vrot.slane %v7041_v1, %v11788_v8  ;;  %v7071_v21 = vcombine.high %v7049_v32, %v7049_v32  ;;  %8919 = vst.sshfl [vmem:[#allocation3 + $0x3d] sm:$0x1 pattern:$0x73625140] %v7041_v1  ;;  %v10167_v32 = vld [vmem:[#allocation7 + $0x60] ss:$8 sps:$4 sm:$0xff]  }
0x1ef1   : > { %8920 = vst.sshfl [vmem:[#allocation3 + $0x9d] sm:$0x1 pattern:$0x73625140] %v7040_v17  ;;  %7137 = vmatmul.mubr.bf16.vlgmr.msra.gmra.mxu0 %v7103_v44  ;;  %9939 = vmatmul.mubr.bf16.vlgmr.msra.gmra.mxu1 %v7103_v44 }
0x1ef2   : > { %7295 = vmatpush1.bf16.msra.mxu0 %v13336_v0  ;;  %v7070_v42 = vrot.slane %v7042_v23, %v11788_v8  ;;  %v7072_v60 = vcombine.high %v7056_v27, %v7056_v27  ;;  %v7073_v55 = vcombine.high %v7063_v13, %v7063_v13  ;;  %7085 = vst [vmem:[#allocation3 + $0x5d] sm:$0x1] %v7071_v21  ;;  %8921 = vst.sshfl [vmem:[#allocation3 + $0xbd] sm:$0x1 pattern:$0x73625140] %v7042_v23 }
0x1ef3   : > { %9943 = vmatpush3.bf16.msra.mxu1 %v13530_v26  ;;  %7296 = vmatprep.subr.bf16.mxu0 %v13341_v24  ;;  %v10166_v0 = vld [vmem:[#allocation7 + $0x74] ss:$8 sps:$4 sm:$0xff]  }
0x1ef4   : > { %9944 = vmatprep.subr.bf16.mxu1 %v14579_v58  ;;  %7326 = vmatprep.mubr.bf16.mxu0 %v14580_v20  ;;  %v7074_v34 = vcombine.high %v7070_v42, %v7070_v42  ;;  %7086 = vst [vmem:[#allocation3 + $0x7d] sm:$0x1] %v7073_v55  ;;  %7089 = vst [vmem:[#allocation3 + $0xdd] sm:$0x1] %v7072_v60  ;;  %v14662_v24 = vld [vmem:[#allocation56_spill] sm:$0xff] }
0x1ef5   : > { %9958 = vmatprep.mubr.msk.bf16.mxu1 %vm10974_vm0, %v14579_v58  ;;  %v10172_v13 = vld [vmem:[#allocation7 + $0x54] ss:$8 sps:$4 sm:$0xff]   ;;  %v10170_v42 = vld [vmem:[#allocation7 + $0x50] ss:$8 sps:$4 sm:$0xff]   ;;  %v10175_v60 = vld [vmem:[#allocation7 + $0x44] ss:$8 sps:$4 sm:$0xff]  }
0x1ef6   : > { %7297 = vmatpush1.bf16.msra.mxu0 %v13404_v51  ;;  %7090 = vst [vmem:[#allocation3 + $0xfd] sm:$0x1] %v7074_v34  ;;  %v968_v51 = vadd.f32 %v14662_v24, %v11760_v48  ;;  %v10173_v55 = vld [vmem:[#allocation7 + $0x40] ss:$8 sps:$4 sm:$0xff]   ;;  %v10178_v34 = vld [vmem:[#allocation7 + $0x34] ss:$8 sps:$4 sm:$0xff]  }
0x1ef7   : > { %9945 = vmatpush3.bf16.msra.mxu1 %v13539_v2  ;;  %7298 = vmatprep.subr.bf16.mxu0 %v13408_v50  ;;  %v10181_v24 = vld [vmem:[#allocation7 + $0x24] ss:$8 sps:$4 sm:$0xff]  }
0x1ef8   : > { %9946 = vmatprep.subr.bf16.mxu1 %v14579_v58 }
0x1efa   : > { %7299 = vmatpush1.bf16.msra.mxu0 %v13412_v53 }
0x1efb   : > { %9947 = vmatpush3.bf16.msra.mxu1 %v13545_v3  ;;  %7300 = vmatprep.subr.bf16.mxu0 %v13416_v47 }
0x1efc   : > { %9948 = vmatprep.subr.bf16.mxu1 %v14579_v58 }
0x1efe   : > { %7301 = vmatpush1.bf16.msra.mxu0 %v13420_v12 }
0x1eff   : > { %9949 = vmatpush3.bf16.msra.mxu1 %v13551_v28  ;;  %7302 = vmatprep.subr.bf16.mxu0 %v13424_v31 }
0x1f00   : > { %9950 = vmatprep.subr.bf16.mxu1 %v14579_v58 }
0x1f02   : > { %7303 = vmatpush1.bf16.msra.mxu0 %v13428_v33 }
0x1f03   : > { %9951 = vmatpush3.bf16.msra.mxu1 %v13557_v5  ;;  %7304 = vmatprep.subr.bf16.mxu0 %v13432_v15 }
0x1f04   : > { %9952 = vmatprep.subr.bf16.mxu1 %v14579_v58 }
0x1f06   : > { %7305 = vmatpush1.bf16.msra.mxu0 %v13436_v11  ;;  %v14663_v11 = vld [vmem:[#allocation57_spill] sm:$0xff] }
0x1f07   : > { %9953 = vmatpush3.bf16.msra.mxu1 %v13563_v18  ;;  %7306 = vmatprep.subr.bf16.mxu0 %v13440_v19  ;;  %v970_v19 = vadd.f32 %v14663_v11, %v11775_v56  ;;  %v14666_v11 = vld [vmem:[#allocation58_spill] sm:$0xff] }
0x1f08   : > { %9954 = vmatprep.subr.bf16.mxu1 %v14579_v58 }
0x1f0a   : > { %7307 = vmatpush1.bf16.msra.mxu0 %v13444_v35 }
0x1f0b   : > { %9955 = vmatpush3.bf16.msra.mxu1 %v13569_v9  ;;  %7308 = vmatprep.subr.bf16.mxu0 %v13448_v49 }
0x1f0c   : > { %9956 = vmatprep.subr.bf16.mxu1 %v14579_v58 }
0x1f0e   : > { %7309 = vmatpush1.bf16.msra.mxu0 %v13452_v41 }
0x1f0f   : > { %9957 = vmatpush3.bf16.msra.mxu1 %v13575_v30  ;;  %7636 = vmatprep.subr.bf16.mxu0 %v10166_v0  ;;  %v10176_v0 = vld [vmem:[#allocation7 + $0x30] ss:$8 sps:$4 sm:$0xff]  }
0x1fb1   : > { %v7138_v50 = vpop.f32.mrf.mxu0  ;;  %v7179_v47 = vpop.f32.mrf.mxu1 }
0x1fb2   : > { %v7185_v53 = vadd.f32 %v7138_v50, %v968_v51  ;;  %v7199_v18 = vadd.f32 %v13640_v25, %v7179_v47  ;;  %v10179_v51 = vld [vmem:[#allocation7 + $0x20] ss:$8 sps:$4 sm:$0xff]   ;;  %v10184_v50 = vld [vmem:[#allocation7 + $0x14] ss:$8 sps:$4 sm:$0xff]   ;;  %v10187_v47 = vld [vmem:[#allocation7 + $0x4] ss:$8 sps:$4 sm:$0xff]  }
0x1fb3   : > { %v7140_v12 = vpop.f32.mrf.mxu0  ;;  %v9940_v33 = vpop.f32.mrf.mxu1 }
0x1fb4   : > { %v8922_v31 = vmul.f32 -1.442695, %v7185_v53  ;;  %v7192_v49 = vadd.f32 %v7140_v12, %v970_v19  ;;  %v10182_v53 = vld [vmem:[#allocation7 + $0x10] ss:$8 sps:$4 sm:$0xff]   ;;  %v10185_v12 = vld [vmem:[#allocation7] ss:$8 sps:$4 sm:$0xff]   ;;  %v972_v19 = vadd.f32 %v14666_v11, %v11760_v48 }
0x1fb5   : > { %v7142_v15 = vpop.f32.mrf.mxu0  ;;  %v7182_v58 = vpop.f32.mrf.mxu1  ;;  %v7480_v33 = vld [vmem:[#allocation3] sm:$0xff] }
0x1fb6   : > { %10488 = vpow2.f32 %v8922_v31  ;;  %v8923_v26 = vmul.f32 -1.442695, %v7192_v49  ;;  %v7481_v31 = vld [vmem:[#allocation3 + $0x8] sm:$0xff] }
0x1fb7   : > { %v7143_v35 = vpop.f32.mrf.mxu0  ;;  %v9941_v41 = vpop.f32.mrf.mxu1  ;;  %v7512_v15 = vpack.c.bf16 %v7481_v31, %v7480_v33 }
0x1fb8   : > { %10490 = vpow2.f32 %v8923_v26 }
0x1fc3   : > { %v10489_v2 = vpop.eup %10488 }
0x1fc4   : > { %v7189_v3 = vadd.f32 1.0, %v10489_v2 }
0x1fc5   : > { %v10491_v28 = vpop.eup %10490 }
0x1fc6   : > { %10492 = vrcp.f32 %v7189_v3  ;;  %v7196_v5 = vadd.f32 1.0, %v10491_v28  ;;  %v14667_v28 = vld [vmem:[#allocation59_spill] sm:$0xff] }
0x1fc8   : > { %10494 = vrcp.f32 %v7196_v5  ;;  %v974_v5 = vadd.f32 %v14667_v28, %v11775_v56  ;;  %v7489_v28 = vld [vmem:[#allocation3 + $0x48] sm:$0xff] }
0x1fd3   : > { %v10493_v9 = vpop.eup %10492 }
0x1fd4   : > { %v7200_v30 = vmul.f32 %v10493_v9, %v7199_v18 }
0x1fd5   : > { %v10495_v63 = vpop.eup %10494 }
0x1fd6   : > { %v7201_v40 = vadd.f32 %v7200_v30, %v14664_v45  ;;  %v7203_v14 = vsub.f32 1.0, %v10495_v63  ;;  %v7205_v52 = vmul.f32 %v10495_v63, %v13648_v22 }
0x1fd8   : > { %10496 = vtanh.f32 %v7201_v40 }
0x1fe5   : > { %v10497_v39 = vpop.eup %10496 }
0x1fe6   : > { %v7204_v54 = vmul.f32 %v10497_v39, %v7203_v14  ;;  %v7544_v39 = vld [vmem:[%s14426_s8] sm:$0x3] }
0x1fe8   : > { %v7206_v38 = vadd.f32 %v7205_v52, %v7204_v54  ;;  %v14668_v52 = vld [vmem:[#allocation55_spill] sm:$0xff] }
0x1fe9   : > { %v14670_v56 = vsub.s32 0, %v14668_v52 }
0x1fea   : > { %v7214_v43 = vmul.f32 %v7212_v16, %v7206_v38  ;;  %v14669_v38 = vsub.s32 1, %v14668_v52  ;;  %v7497_v52 = vld [vmem:[#allocation3 + $0x88] sm:$0xff] }
0x1feb   : > { %v13723_v36 = vrot.slane %v7544_v39, %v14670_v56 }
0x1fec   : > { %v7216_v6 = vcombine.high %v7214_v43, %v7214_v43  ;;  %v7223_v46 = vrot.slane %v7214_v43, %v11788_v8  ;;  %v13699_v10 = vadd.f32 %v7287_v59, %v7214_v43  ;;  %v13719_v16 = vrot.slane %v7544_v39, %v14669_v38  ;;  %v7494_v39 = vld [vmem:[#allocation3 + $0x70] sm:$0xff]  ;;  %v7496_v38 = vld [vmem:[#allocation3 + $0x80] sm:$0xff] }
0x1fed   : > { %v7520_v56 = vpack.c.bf16 %v7497_v52, %v7496_v38 }
0x1fee   : > { %14665 = vst [vmem:[#allocation85_spill] sm:$0xff] %v13699_v10  ;;  %v7230_v62 = vrot.slane %v7216_v6, %v11788_v8  ;;  %v7231_v4 = vcombine.high %v7223_v46, %v7223_v46  ;;  %v7239_v61 = vrot.slane %v7223_v46, %v11788_v8  ;;  %8925 = vst.sshfl [vmem:[#allocation3 + $0x1e] sm:$0x1 pattern:$0x73625140] %v7223_v46 }
0x1fef   : > { %v7293_v37 = vpack.c.bf16 %v13699_v10, %v13699_v10 }
0x1ff0   : > { %v7232_v7 = vcombine.high %v7230_v62, %v7230_v62  ;;  %v7246_v17 = vrot.slane %v7230_v62, %v11788_v8  ;;  %v7253_v22 = vrot.slane %v7231_v4, %v11788_v8  ;;  %v7261_v1 = vcombine.high %v7239_v61, %v7239_v61  ;;  %8926 = vst.sshfl [vmem:[#allocation3 + $0x3e] sm:$0x1 pattern:$0x73625140] %v7231_v4 }
0x1ff1   : > { %8927 = vst.sshfl [vmem:[#allocation3 + $0x9e] sm:$0x1 pattern:$0x73625140] %v7230_v62  ;;  %7327 = vmatmul.mubr.bf16.vlgmr.msra.gmra.mxu0 %v7293_v37  ;;  %9959 = vmatmul.mubr.bf16.vlgmr.msra.gmra.mxu1 %v7293_v37  ;;  %v14673_v37 = vld [vmem:[#allocation83_spill] sm:$0xff] }
0x1ff2   : > { %7637 = vmatpush1.bf16.msra.mxu0 %v10164_v29  ;;  %v7260_v44 = vrot.slane %v7232_v7, %v11788_v8  ;;  %v7262_v23 = vcombine.high %v7246_v17, %v7246_v17  ;;  %v7263_v27 = vcombine.high %v7253_v22, %v7253_v22  ;;  %7275 = vst [vmem:[#allocation3 + $0x5e] sm:$0x1] %v7261_v1  ;;  %8928 = vst.sshfl [vmem:[#allocation3 + $0xbe] sm:$0x1 pattern:$0x73625140] %v7232_v7 }
0x1ff3   : > { %7638 = vmatprep.subr.bf16.mxu0 %v10169_v57  ;;  %7668 = vmatprep.mubr.bf16.mxu0 %v14580_v20 }
0x1ff4   : > { %v7264_v21 = vcombine.high %v7260_v44, %v7260_v44  ;;  %7276 = vst [vmem:[#allocation3 + $0x7e] sm:$0x1] %v7263_v27  ;;  %7279 = vst [vmem:[#allocation3 + $0xde] sm:$0x1] %v7262_v23 }
0x1ff6   : > { %7639 = vmatpush1.bf16.msra.mxu0 %v10167_v32  ;;  %7280 = vst [vmem:[#allocation3 + $0xfe] sm:$0x1] %v7264_v21 }
0x1ff7   : > { %7640 = vmatprep.subr.bf16.mxu0 %v10172_v13 }
0x1ffa   : > { %7641 = vmatpush1.bf16.msra.mxu0 %v10170_v42  ;;  %v7402_v42 = vpop.permute.xlu0 %7401 }
0x1ffb   : > { %7642 = vmatprep.subr.bf16.mxu0 %v10175_v60 }
0x1ffe   : > { %7643 = vmatpush1.bf16.msra.mxu0 %v10173_v55 }
0x1fff   : > { %7644 = vmatprep.subr.bf16.mxu0 %v10178_v34 }
0x2002   : > { %7645 = vmatpush1.bf16.msra.mxu0 %v10176_v0 }
0x2003   : > { %7646 = vmatprep.subr.bf16.mxu0 %v10181_v24 }
0x2006   : > { %7647 = vmatpush1.bf16.msra.mxu0 %v10179_v51 }
0x2007   : > { %7648 = vmatprep.subr.bf16.mxu0 %v10184_v50 }
0x200a   : > { %7649 = vmatpush1.bf16.msra.mxu0 %v10182_v53 }
0x200b   : > { %7650 = vmatprep.subr.bf16.mxu0 %v10187_v47 }
0x200e   : > { %7651 = vmatpush1.bf16.msra.mxu0 %v10185_v12 }
0x2011   : > { %7669 = vmatmul.mubr.bf16.vlgmr.msra.gmra.mxu0 %v7512_v15 }
0x2012   : > { %7678 = vmatprep.mubr.bf16.mxu0 %v14580_v20 }
0x20b1   : > { %v7328_v58 = vpop.f32.mrf.mxu0  ;;  %v7369_v49 = vpop.f32.mrf.mxu1 }
0x20b2   : > { %v7375_v35 = vadd.f32 %v7328_v58, %v972_v19  ;;  %v7389_v59 = vadd.f32 %v13640_v25, %v7369_v49  ;;  %v7482_v19 = vld [vmem:[#allocation3 + $0x10] sm:$0xff]  ;;  %v7485_v49 = vld [vmem:[#allocation3 + $0x28] sm:$0xff] }
0x20b3   : > { %v7330_v41 = vpop.f32.mrf.mxu0  ;;  %v9960_v2 = vpop.f32.mrf.mxu1 }
0x20b4   : > { %v8929_v26 = vmul.f32 -1.442695, %v7375_v35  ;;  %v7382_v30 = vadd.f32 %v7330_v41, %v974_v5  ;;  %v7484_v41 = vld [vmem:[#allocation3 + $0x20] sm:$0xff]  ;;  %v7486_v2 = vld [vmem:[#allocation3 + $0x30] sm:$0xff] }
0x20b5   : > { %v7332_v3 = vpop.f32.mrf.mxu0  ;;  %v7372_v18 = vpop.f32.mrf.mxu1  ;;  %v7488_v5 = vld [vmem:[#allocation3 + $0x40] sm:$0xff] }
0x20b6   : > { %10498 = vpow2.f32 %v8929_v26  ;;  %v8930_v40 = vmul.f32 -1.442695, %v7382_v30  ;;  %v7514_v26 = vpack.c.bf16 %v7485_v49, %v7484_v41  ;;  %v7516_v18 = vpack.c.bf16 %v7489_v28, %v7488_v5  ;;  %v7490_v30 = vld [vmem:[#allocation3 + $0x50] sm:$0xff] }
0x20b7   : > { %v7333_v9 = vpop.f32.mrf.mxu0  ;;  %v9961_v45 = vpop.f32.mrf.mxu1 }
0x20b8   : > { %10500 = vpow2.f32 %v8930_v40  ;;  %v7493_v40 = vld [vmem:[#allocation3 + $0x68] sm:$0xff] }
0x20c3   : > { %v10499_v63 = vpop.eup %10498 }
0x20c4   : > { %v7379_v14 = vadd.f32 1.0, %v10499_v63  ;;  %v7492_v63 = vld [vmem:[#allocation3 + $0x60] sm:$0xff] }
0x20c5   : > { %v10501_v48 = vpop.eup %10500 }
0x20c6   : > { %10502 = vrcp.f32 %v7379_v14  ;;  %v7386_v54 = vadd.f32 1.0, %v10501_v48  ;;  %v7518_v14 = vpack.c.bf16 %v7493_v40, %v7492_v63 }
0x20c8   : > { %10504 = vrcp.f32 %v7386_v54 }
0x20d1   : > { %v7670_v43 = vpop.f32.mrf.mxu0 }
0x20d2   : > { %v13730_v4 = vadd.f32 %v7670_v43, %v13723_v36 }
0x20d3   : > { %v10503_v6 = vpop.eup %10502  ;;  %v7672_v46 = vpop.f32.mrf.mxu0 }
0x20d4   : > { %v7390_v29 = vmul.f32 %v10503_v6, %v7389_v59  ;;  %v13727_v62 = vadd.f32 %v7672_v46, %v13719_v16  ;;  %14672 = vst [vmem:[#allocation86_spill] sm:$0xff] %v13730_v4  ;;  %v7498_v59 = vld [vmem:[#allocation3 + $0x90] sm:$0xff]  ;;  %v7501_v46 = vld [vmem:[#allocation3 + $0xa8] sm:$0xff] }
0x20d5   : > { %v7674_v61 = vpop.f32.mrf.mxu0  ;;  %v10505_v32 = vpop.eup %10504 }
0x20d6   : > { %14671 = vst [vmem:[#allocation60_spill] sm:$0xff] %v13727_v62  ;;  %v7391_v57 = vadd.f32 %v7390_v29, %v14673_v37  ;;  %v7829_v17 = vmax.f32 %v13730_v4, %v13727_v62  ;;  %v13736_v25 = vadd.f32 %v7674_v61, %v13723_v36  ;;  %v7393_v44 = vsub.f32 1.0, %v10505_v32  ;;  %v7500_v29 = vld [vmem:[#allocation3 + $0xa0] sm:$0xff] }
0x20d7   : > { %v7676_v7 = vpop.f32.mrf.mxu0  ;;  %v7395_v13 = vmul.f32 %v10505_v32, %v13699_v10  ;;  %v7522_v61 = vpack.c.bf16 %v7501_v46, %v7500_v29 }
0x20d8   : > { %10506 = vtanh.f32 %v7391_v57  ;;  %14674 = vst [vmem:[#allocation87_spill] sm:$0xff] %v13736_v25  ;;  %v13739_v22 = vadd.f32 %v7676_v7, %v13719_v16  ;;  %7830 = vmax.xlane.f32.xlu1 %v7829_v17  ;;  %v7502_v57 = vld [vmem:[#allocation3 + $0xb0] sm:$0xff]  ;;  %v7505_v17 = vld [vmem:[#allocation3 + $0xc8] sm:$0xff] }
0x20da   : > { %14675 = vst [vmem:[#allocation62_spill] sm:$0xff] %v13739_v22  ;;  %v7832_v1 = vmax.f32 %v13736_v25, %v13739_v22 }
0x20dc   : > { %7833 = vmax.xlane.f32.xlu0 %v7832_v1  ;;  %v7504_v1 = vld [vmem:[#allocation3 + $0xc0] sm:$0xff] }
0x20dd   : > { %v7524_v32 = vpack.c.bf16 %v7505_v17, %v7504_v1 }
0x20e5   : > { %v10507_v23 = vpop.eup %10506 }
0x20e6   : > { %v7394_v27 = vmul.f32 %v10507_v23, %v7393_v44  ;;  %v7506_v23 = vld [vmem:[#allocation3 + $0xd0] sm:$0xff] }
0x20e8   : > { %v7396_v21 = vadd.f32 %v7395_v13, %v7394_v27  ;;  %v7509_v13 = vld [vmem:[#allocation3 + $0xe8] sm:$0xff] }
0x20ea   : > { %v13744_v60 = vmul.f32 %v7402_v42, %v7396_v21  ;;  %v7508_v21 = vld [vmem:[#allocation3 + $0xe0] sm:$0xff] }
0x20eb   : > { %v7526_v42 = vpack.c.bf16 %v7509_v13, %v7508_v21 }
0x20ec   : > { %14676 = vst [vmem:[#allocation88_spill] sm:$0xff] %v13744_v60  ;;  %v7406_v55 = vcombine.high %v13744_v60, %v13744_v60  ;;  %v7413_v34 = vrot.slane %v13744_v60, %v11788_v8 }
0x20ee   : > { %v7420_v0 = vrot.slane %v7406_v55, %v11788_v8  ;;  %v7421_v24 = vcombine.high %v7413_v34, %v7413_v34  ;;  %v7429_v51 = vrot.slane %v7413_v34, %v11788_v8  ;;  %8932 = vst.sshfl [vmem:[#allocation3 + $0x1f] sm:$0x1 pattern:$0x73625140] %v7413_v34  ;;  %v7510_v34 = vld [vmem:[#allocation3 + $0xf0] sm:$0xff] }
0x20f0   : > { %v7422_v50 = vcombine.high %v7420_v0, %v7420_v0  ;;  %v7436_v53 = vrot.slane %v7420_v0, %v11788_v8  ;;  %v7443_v47 = vrot.slane %v7421_v24, %v11788_v8  ;;  %v7451_v12 = vcombine.high %v7429_v51, %v7429_v51  ;;  %8933 = vst.sshfl [vmem:[#allocation3 + $0x3f] sm:$0x1 pattern:$0x73625140] %v7421_v24 }
0x20f1   : > { %8934 = vst.sshfl [vmem:[#allocation3 + $0x9f] sm:$0x1 pattern:$0x73625140] %v7420_v0 }
0x20f2   : > { %v7450_v31 = vrot.slane %v7422_v50, %v11788_v8  ;;  %v7452_v33 = vcombine.high %v7436_v53, %v7436_v53  ;;  %v7453_v15 = vcombine.high %v7443_v47, %v7443_v47  ;;  %7465 = vst [vmem:[#allocation3 + $0x5f] sm:$0x1] %v7451_v12  ;;  %8935 = vst.sshfl [vmem:[#allocation3 + $0xbf] sm:$0x1 pattern:$0x73625140] %v7422_v50 }
0x20f4   : > { %v7454_v11 = vcombine.high %v7450_v31, %v7450_v31  ;;  %7466 = vst [vmem:[#allocation3 + $0x7f] sm:$0x1] %v7453_v15  ;;  %7469 = vst [vmem:[#allocation3 + $0xdf] sm:$0x1] %v7452_v33 }
0x20f5   : > { %v7483_v58 = vld [vmem:[#allocation3 + $0x18] sm:$0xff] }
0x20f6   : > { %7470 = vst [vmem:[#allocation3 + $0xff] sm:$0x1] %v7454_v11  ;;  %v7513_v35 = vpack.c.bf16 %v7483_v58, %v7482_v19 }
0x20f7   : > { %v7487_v8 = vld [vmem:[#allocation3 + $0x38] sm:$0xff] }
0x20f8   : > { %7679 = vmatmul.mubr.bf16.gmra.mxu0 %v7513_v35  ;;  %v7515_v3 = vpack.c.bf16 %v7487_v8, %v7486_v2  ;;  %v7499_v43 = vld [vmem:[#allocation3 + $0x98] sm:$0xff] }
0x20f9   : > { %7688 = vmatprep.mubr.bf16.mxu0 %v14580_v20  ;;  %v7491_v9 = vld [vmem:[#allocation3 + $0x58] sm:$0xff]  ;;  %v7521_v6 = vpack.c.bf16 %v7499_v43, %v7498_v59 }
0x20fa   : > { %v7517_v45 = vpack.c.bf16 %v7491_v9, %v7490_v30  ;;  %v7503_v37 = vld [vmem:[#allocation3 + $0xb8] sm:$0xff] }
0x20fb   : > { %v7495_v48 = vld [vmem:[#allocation3 + $0x78] sm:$0xff]  ;;  %v7523_v7 = vpack.c.bf16 %v7503_v37, %v7502_v57 }
0x20fc   : > { %v7519_v54 = vpack.c.bf16 %v7495_v48, %v7494_v39  ;;  %v7507_v44 = vld [vmem:[#allocation3 + $0xd8] sm:$0xff] }
0x20fd   : > { %v7525_v27 = vpack.c.bf16 %v7507_v44, %v7506_v23  ;;  %v7511_v55 = vld [vmem:[#allocation3 + $0xf8] sm:$0xff] }
0x20fe   : > { %v7527_v0 = vpack.c.bf16 %v7511_v55, %v7510_v34 }
0x2100   : > { %7689 = vmatmul.mubr.bf16.gmra.mxu0 %v7514_v26 }
0x2101   : > { %7698 = vmatprep.mubr.bf16.mxu0 %v14580_v20 }
0x2108   : > { %7699 = vmatmul.mubr.bf16.gmra.mxu0 %v7515_v3 }
0x2109   : > { %7708 = vmatprep.mubr.bf16.mxu0 %v14580_v20 }
0x2110   : > { %7709 = vmatmul.mubr.bf16.gmra.mxu0 %v7516_v18 }
0x2111   : > { %7718 = vmatprep.mubr.bf16.mxu0 %v14580_v20 }
0x2118   : > { %7719 = vmatmul.mubr.bf16.gmra.mxu0 %v7517_v45 }
0x2119   : > { %7728 = vmatprep.mubr.bf16.mxu0 %v14580_v20 }
0x2120   : > { %7729 = vmatmul.mubr.bf16.gmra.mxu0 %v7518_v14 }
0x2121   : > { %7738 = vmatprep.mubr.bf16.mxu0 %v14580_v20 }
0x2128   : > { %7739 = vmatmul.mubr.bf16.gmra.mxu0 %v7519_v54 }
0x2129   : > { %7748 = vmatprep.mubr.bf16.mxu0 %v14580_v20 }
0x2130   : > { %7749 = vmatmul.mubr.bf16.gmra.mxu0 %v7520_v56 }
0x2131   : > { %7758 = vmatprep.mubr.bf16.mxu0 %v14580_v20 }
0x2138   : > { %7759 = vmatmul.mubr.bf16.gmra.mxu0 %v7521_v6 }
0x2139   : > { %7768 = vmatprep.mubr.bf16.mxu0 %v14580_v20 }
0x2140   : > { %7769 = vmatmul.mubr.bf16.gmra.mxu0 %v7522_v61 }
0x2141   : > { %7778 = vmatprep.mubr.bf16.mxu0 %v14580_v20 }
0x2148   : > { %7779 = vmatmul.mubr.bf16.gmra.mxu0 %v7523_v7 }
0x2149   : > { %7788 = vmatprep.mubr.bf16.mxu0 %v14580_v20 }
0x2150   : > { %7789 = vmatmul.mubr.bf16.gmra.mxu0 %v7524_v32 }
0x2151   : > { %7798 = vmatprep.mubr.bf16.mxu0 %v14580_v20 }
0x2158   : > { %7799 = vmatmul.mubr.bf16.gmra.mxu0 %v7525_v27 }
0x2159   : > { %7808 = vmatprep.mubr.bf16.mxu0 %v14580_v20 }
0x2160   : > { %7809 = vmatmul.mubr.bf16.gmra.mxu0 %v7526_v42 }
0x2161   : > { %7818 = vmatprep.mubr.bf16.mxu0 %v14580_v20 }
0x2168   : > { %7819 = vmatmul.mubr.bf16.gmra.mxu0 %v7527_v0 }
0x21b8   : > { %v7680_v24 = vpop.f32.mrf.mxu0 }
0x21b9   : > { %v13770_v50 = vadd.f32 %v7680_v24, %v13723_v36 }
0x21ba   : > { %v7682_v51 = vpop.f32.mrf.mxu0 }
0x21bb   : > { %v13773_v53 = vadd.f32 %v7682_v51, %v13719_v16 }
0x21bc   : > { %v7684_v47 = vpop.f32.mrf.mxu0 }
0x21bd   : > { %v7835_v12 = vmax.f32 %v13770_v50, %v13773_v53  ;;  %v13778_v33 = vadd.f32 %v7684_v47, %v13723_v36 }
0x21be   : > { %v7686_v31 = vpop.f32.mrf.mxu0 }
0x21bf   : > { %v13781_v20 = vadd.f32 %v7686_v31, %v13719_v16  ;;  %7836 = vmax.xlane.f32.xlu0 %v7835_v12 }
0x21c0   : > { %v7690_v15 = vpop.f32.mrf.mxu0 }
0x21c1   : > { %14677 = vst [vmem:[#allocation89_spill] sm:$0xff] %v13781_v20  ;;  %v7838_v11 = vmax.f32 %v13778_v33, %v13781_v20  ;;  %v13786_v58 = vadd.f32 %v7690_v15, %v13723_v36 }
0x21c2   : > { %v7692_v19 = vpop.f32.mrf.mxu0 }
0x21c3   : > { %14678 = vst [vmem:[#allocation64_spill] sm:$0xff] %v13786_v58  ;;  %v13789_v35 = vadd.f32 %v7692_v19, %v13719_v16  ;;  %7839 = vmax.xlane.f32.xlu1 %v7838_v11 }
0x21c4   : > { %v7694_v49 = vpop.f32.mrf.mxu0 }
0x21c5   : > { %14679 = vst [vmem:[#allocation90_spill] sm:$0xff] %v13789_v35  ;;  %v7841_v41 = vmax.f32 %v13786_v58, %v13789_v35  ;;  %v13794_v8 = vadd.f32 %v7694_v49, %v13723_v36 }
0x21c6   : > { %v7696_v26 = vpop.f32.mrf.mxu0 }
0x21c7   : > { %14680 = vst [vmem:[#allocation91_spill] sm:$0xff] %v13794_v8  ;;  %v13797_v2 = vadd.f32 %v7696_v26, %v13719_v16  ;;  %7842 = vmax.xlane.f32.xlu0 %v7841_v41 }
0x21c8   : > { %v7700_v3 = vpop.f32.mrf.mxu0 }
0x21c9   : > { %14681 = vst [vmem:[#allocation61_spill] sm:$0xff] %v13797_v2  ;;  %v7844_v28 = vmax.f32 %v13794_v8, %v13797_v2  ;;  %v13802_v18 = vadd.f32 %v7700_v3, %v13723_v36 }
0x21ca   : > { %v7702_v5 = vpop.f32.mrf.mxu0 }
0x21cb   : > { %14682 = vst [vmem:[#allocation92_spill] sm:$0xff] %v13802_v18  ;;  %v13805_v9 = vadd.f32 %v7702_v5, %v13719_v16  ;;  %7845 = vmax.xlane.f32.xlu1 %v7844_v28 }
0x21cc   : > { %v7704_v30 = vpop.f32.mrf.mxu0 }
0x21cd   : > { %14683 = vst [vmem:[#allocation93_spill] sm:$0xff] %v13805_v9  ;;  %v7847_v45 = vmax.f32 %v13802_v18, %v13805_v9  ;;  %v13810_v63 = vadd.f32 %v7704_v30, %v13723_v36 }
0x21ce   : > { %v7706_v40 = vpop.f32.mrf.mxu0 }
0x21cf   : > { %v13813_v14 = vadd.f32 %v7706_v40, %v13719_v16  ;;  %7848 = vmax.xlane.f32.xlu0 %v7847_v45 }
0x21d0   : > { %v7710_v48 = vpop.f32.mrf.mxu0 }
0x21d1   : > { %14684 = vst [vmem:[#allocation63_spill] sm:$0xff] %v13813_v14  ;;  %v7850_v39 = vmax.f32 %v13810_v63, %v13813_v14  ;;  %v13818_v52 = vadd.f32 %v7710_v48, %v13723_v36 }
0x21d2   : > { %v7712_v54 = vpop.f32.mrf.mxu0 }
0x21d3   : > { %v13821_v38 = vadd.f32 %v7712_v54, %v13719_v16  ;;  %7851 = vmax.xlane.f32.xlu1 %v7850_v39 }
0x21d4   : > { %v7714_v56 = vpop.f32.mrf.mxu0 }
0x21d5   : > { %14685 = vst [vmem:[#allocation94_spill] sm:$0xff] %v13821_v38  ;;  %v7853_v43 = vmax.f32 %v13818_v52, %v13821_v38  ;;  %v13826_v6 = vadd.f32 %v7714_v56, %v13723_v36 }
0x21d6   : > { %v7716_v59 = vpop.f32.mrf.mxu0 }
0x21d7   : > { %v13829_v46 = vadd.f32 %v7716_v59, %v13719_v16  ;;  %7854 = vmax.xlane.f32.xlu0 %v7853_v43 }
0x21d8   : > { %v7720_v29 = vpop.f32.mrf.mxu0 }
0x21d9   : > { %14686 = vst [vmem:[#allocation95_spill] sm:$0xff] %v13829_v46  ;;  %v7856_v61 = vmax.f32 %v13826_v6, %v13829_v46  ;;  %v13834_v57 = vadd.f32 %v7720_v29, %v13723_v36 }
0x21da   : > { %v7722_v37 = vpop.f32.mrf.mxu0 }
0x21db   : > { %v13837_v7 = vadd.f32 %v7722_v37, %v13719_v16  ;;  %7857 = vmax.xlane.f32.xlu1 %v7856_v61 }
0x21dc   : > { %v7724_v17 = vpop.f32.mrf.mxu0 }
0x21dd   : > { %14687 = vst [vmem:[#allocation66_spill] sm:$0xff] %v13837_v7  ;;  %v7859_v1 = vmax.f32 %v13834_v57, %v13837_v7  ;;  %v13842_v44 = vadd.f32 %v7724_v17, %v13723_v36 }
0x21de   : > { %v7726_v32 = vpop.f32.mrf.mxu0 }
0x21df   : > { %v13845_v23 = vadd.f32 %v7726_v32, %v13719_v16  ;;  %7860 = vmax.xlane.f32.xlu0 %v7859_v1 }
0x21e0   : > { %v7730_v27 = vpop.f32.mrf.mxu0 }
0x21e1   : > { %14688 = vst [vmem:[#allocation96_spill] sm:$0xff] %v13845_v23  ;;  %v7862_v13 = vmax.f32 %v13842_v44, %v13845_v23  ;;  %v13850_v42 = vadd.f32 %v7730_v27, %v13723_v36 }
0x21e2   : > { %v7732_v21 = vpop.f32.mrf.mxu0 }
0x21e3   : > { %v13853_v55 = vadd.f32 %v7732_v21, %v13719_v16  ;;  %7863 = vmax.xlane.f32.xlu1 %v7862_v13 }
0x21e4   : > { %v7734_v34 = vpop.f32.mrf.mxu0 }
0x21e5   : > { %14689 = vst [vmem:[#allocation97_spill] sm:$0xff] %v13853_v55  ;;  %v7865_v0 = vmax.f32 %v13850_v42, %v13853_v55  ;;  %v13858_v51 = vadd.f32 %v7734_v34, %v13723_v36 }
0x21e6   : > { %v7736_v24 = vpop.f32.mrf.mxu0 }
0x21e7   : > { %v13861_v47 = vadd.f32 %v7736_v24, %v13719_v16  ;;  %7866 = vmax.xlane.f32.xlu0 %v7865_v0 }
0x21e8   : > { %v7740_v12 = vpop.f32.mrf.mxu0 }
0x21e9   : > { %14690 = vst [vmem:[#allocation68_spill] sm:$0xff] %v13861_v47  ;;  %v7868_v31 = vmax.f32 %v13858_v51, %v13861_v47  ;;  %v13866_v11 = vadd.f32 %v7740_v12, %v13723_v36 }
0x21ea   : > { %v7742_v15 = vpop.f32.mrf.mxu0 }
0x21eb   : > { %v13869_v19 = vadd.f32 %v7742_v15, %v13719_v16  ;;  %7869 = vmax.xlane.f32.xlu1 %v7868_v31 }
0x21ec   : > { %v7744_v49 = vpop.f32.mrf.mxu0 }
0x21ed   : > { %14691 = vst [vmem:[#allocation23_spill] sm:$0xff] %v13869_v19  ;;  %v7871_v41 = vmax.f32 %v13866_v11, %v13869_v19  ;;  %v13874_v3 = vadd.f32 %v7744_v49, %v13723_v36 }
0x21ee   : > { %v7746_v26 = vpop.f32.mrf.mxu0 }
0x21ef   : > { %v13877_v28 = vadd.f32 %v7746_v26, %v13719_v16  ;;  %7872 = vmax.xlane.f32.xlu0 %v7871_v41 }
0x21f0   : > { %v7750_v5 = vpop.f32.mrf.mxu0 }
0x21f1   : > { %14692 = vst [vmem:[#allocation24_spill] sm:$0xff] %v13877_v28  ;;  %v7874_v30 = vmax.f32 %v13874_v3, %v13877_v28  ;;  %v13882_v40 = vadd.f32 %v7750_v5, %v13723_v36 }
0x21f2   : > { %v7752_v45 = vpop.f32.mrf.mxu0 }
0x21f3   : > { %v13885_v48 = vadd.f32 %v7752_v45, %v13719_v16  ;;  %7875 = vmax.xlane.f32.xlu1 %v7874_v30 }
0x21f4   : > { %v7754_v39 = vpop.f32.mrf.mxu0 }
0x21f5   : > { %14693 = vst [vmem:[#allocation65_spill] sm:$0xff] %v13885_v48  ;;  %v7877_v54 = vmax.f32 %v13882_v40, %v13885_v48  ;;  %v13890_v43 = vadd.f32 %v7754_v39, %v13723_v36 }
0x21f6   : > { %v7756_v56 = vpop.f32.mrf.mxu0 }
0x21f7   : > { %v13893_v59 = vadd.f32 %v7756_v56, %v13719_v16  ;;  %7878 = vmax.xlane.f32.xlu0 %v7877_v54 }
0x21f8   : > { %v7760_v29 = vpop.f32.mrf.mxu0 }
0x21f9   : > { %14694 = vst [vmem:[#allocation25_spill] sm:$0xff] %v13893_v59  ;;  %v7880_v61 = vmax.f32 %v13890_v43, %v13893_v59  ;;  %v13898_v17 = vadd.f32 %v7760_v29, %v13723_v36 }
0x21fa   : > { %v7762_v37 = vpop.f32.mrf.mxu0 }
0x21fb   : > { %v13901_v1 = vadd.f32 %v7762_v37, %v13719_v16  ;;  %7881 = vmax.xlane.f32.xlu1 %v7880_v61 }
0x21fc   : > { %v7764_v32 = vpop.f32.mrf.mxu0 }
0x21fd   : > { %14695 = vst [vmem:[#allocation26_spill] sm:$0xff] %v13901_v1  ;;  %v7883_v27 = vmax.f32 %v13898_v17, %v13901_v1  ;;  %v13906_v21 = vadd.f32 %v7764_v32, %v13723_v36 }
0x21fe   : > { %v7766_v13 = vpop.f32.mrf.mxu0 }
0x21ff   : > { %v13909_v34 = vadd.f32 %v7766_v13, %v13719_v16  ;;  %7884 = vmax.xlane.f32.xlu0 %v7883_v27 }
0x2200   : > { %v7770_v0 = vpop.f32.mrf.mxu0 }
0x2201   : > { %14696 = vst [vmem:[#allocation67_spill] sm:$0xff] %v13909_v34  ;;  %v7886_v24 = vmax.f32 %v13906_v21, %v13909_v34  ;;  %v13914_v31 = vadd.f32 %v7770_v0, %v13723_v36 }
0x2202   : > { %v7772_v12 = vpop.f32.mrf.mxu0 }
0x2203   : > { %v13917_v15 = vadd.f32 %v7772_v12, %v13719_v16  ;;  %7887 = vmax.xlane.f32.xlu1 %v7886_v24 }
0x2204   : > { %v7774_v49 = vpop.f32.mrf.mxu0 }
0x2205   : > { %14697 = vst [vmem:[#allocation27_spill] sm:$0xff] %v13917_v15  ;;  %v7889_v41 = vmax.f32 %v13914_v31, %v13917_v15  ;;  %v13922_v5 = vadd.f32 %v7774_v49, %v13723_v36 }
0x2206   : > { %v7776_v26 = vpop.f32.mrf.mxu0 }
0x2207   : > { %v13925_v30 = vadd.f32 %v7776_v26, %v13719_v16  ;;  %7890 = vmax.xlane.f32.xlu0 %v7889_v41 }
0x2208   : > { %v7780_v45 = vpop.f32.mrf.mxu0 }
0x2209   : > { %14698 = vst [vmem:[#allocation28_spill] sm:$0xff] %v13925_v30  ;;  %v7892_v39 = vmax.f32 %v13922_v5, %v13925_v30  ;;  %v13930_v56 = vadd.f32 %v7780_v45, %v13723_v36  ;;  %v13951_v45 = vpop.xlane.xlu1 %7830 }
0x220a   : > { %v7782_v54 = vpop.f32.mrf.mxu0  ;;  %14704 = vst [vmem:[#allocation32_spill] sm:$0xff] %v13951_v45 }
0x220b   : > { %v13933_v29 = vadd.f32 %v7782_v54, %v13719_v16  ;;  %7893 = vmax.xlane.f32.xlu1 %v7892_v39 }
0x220c   : > { %v7784_v61 = vpop.f32.mrf.mxu0 }
0x220d   : > { %14699 = vst [vmem:[#allocation70_spill] sm:$0xff] %v13933_v29  ;;  %v7895_v37 = vmax.f32 %v13930_v56, %v13933_v29  ;;  %v13938_v27 = vadd.f32 %v7784_v61, %v13723_v36 }
0x220e   : > { %v7786_v32 = vpop.f32.mrf.mxu0 }
0x220f   : > { %14700 = vst [vmem:[#allocation29_spill] sm:$0xff] %v13938_v27  ;;  %v13941_v13 = vadd.f32 %v7786_v32, %v13719_v16  ;;  %7896 = vmax.xlane.f32.xlu0 %v7895_v37  ;;  %v7925_v32 = vsub.f32 %v13730_v4, %v13951_v45 }
0x2210   : > { %v7790_v0 = vpop.f32.mrf.mxu0 }
0x2211   : > { %14701 = vst [vmem:[#allocation30_spill] sm:$0xff] %v13941_v13  ;;  %v7898_v24 = vmax.f32 %v13938_v27, %v13941_v13  ;;  %v13946_v49 = vadd.f32 %v7790_v0, %v13723_v36 }
0x2212   : > { %v7792_v12 = vpop.f32.mrf.mxu0 }
0x2213   : > { %14702 = vst [vmem:[#allocation72_spill] sm:$0xff] %v13946_v49  ;;  %v13949_v41 = vadd.f32 %v7792_v12, %v13719_v16  ;;  %7899 = vmax.xlane.f32.xlu1 %v7898_v24  ;;  %v7926_v24 = vsub.f32 %v13727_v62, %v13951_v45  ;;  %v13965_v12 = vpop.xlane.xlu0 %7833 }
0x2214   : > { %v7794_v26 = vpop.f32.mrf.mxu0  ;;  %14707 = vst [vmem:[#allocation34_spill] sm:$0xff] %v13965_v12  ;;  %v7927_v4 = vsub.f32 %v13736_v25, %v13965_v12  ;;  %v7928_v62 = vsub.f32 %v13739_v22, %v13965_v12 }
0x2215   : > { %14703 = vst [vmem:[#allocation31_spill] sm:$0xff] %v13949_v41  ;;  %v7901_v39 = vmax.f32 %v13946_v49, %v13949_v41  ;;  %v13956_v61 = vadd.f32 %v7794_v26, %v13723_v36  ;;  %v7991_v49 = vmul.f32 1.442695, %v7926_v24 }
0x2216   : > { %v7796_v54 = vpop.f32.mrf.mxu0  ;;  %v7995_v25 = vmul.f32 1.442695, %v7928_v62 }
0x2217   : > { %14705 = vst [vmem:[#allocation69_spill] sm:$0xff] %v13956_v61  ;;  %v13959_v37 = vadd.f32 %v7796_v54, %v13719_v16  ;;  %7902 = vmax.xlane.f32.xlu0 %v7901_v39  ;;  %v7989_v39 = vmul.f32 1.442695, %v7925_v32 }
0x2218   : > { %v7800_v0 = vpop.f32.mrf.mxu0 }
0x2219   : > { %14706 = vst [vmem:[#allocation33_spill] sm:$0xff] %v13959_v37  ;;  %v7904_v60 = vmax.f32 %v13956_v61, %v13959_v37  ;;  %v13970_v26 = vadd.f32 %v7800_v0, %v13723_v36  ;;  %10508 = vpow2.f32 %v7989_v39 }
0x221a   : > { %v7802_v10 = vpop.f32.mrf.mxu0  ;;  %10510 = vpow2.f32 %v7991_v49 }
0x221b   : > { %v13973_v54 = vadd.f32 %v7802_v10, %v13719_v16  ;;  %7905 = vmax.xlane.f32.xlu1 %v7904_v60  ;;  %v7993_v60 = vmul.f32 1.442695, %v7927_v4 }
0x221c   : > { %v7804_v41 = vpop.f32.mrf.mxu0 }
0x221d   : > { %14708 = vst [vmem:[#allocation71_spill] sm:$0xff] %v13973_v54  ;;  %v7907_v45 = vmax.f32 %v13970_v26, %v13973_v54  ;;  %v13982_v0 = vadd.f32 %v7804_v41, %v13723_v36  ;;  %10512 = vpow2.f32 %v7993_v60 }
0x221e   : > { %v7806_v37 = vpop.f32.mrf.mxu0  ;;  %10514 = vpow2.f32 %v7995_v25 }
0x221f   : > { %14709 = vst [vmem:[#allocation35_spill] sm:$0xff] %v13982_v0  ;;  %v13985_v10 = vadd.f32 %v7806_v37, %v13719_v16  ;;  %7908 = vmax.xlane.f32.xlu0 %v7907_v45 }
0x2220   : > { %v7810_v32 = vpop.f32.mrf.mxu0 }
0x2221   : > { %14710 = vst [vmem:[#allocation36_spill] sm:$0xff] %v13985_v10  ;;  %v7910_v24 = vmax.f32 %v13982_v0, %v13985_v10  ;;  %v13990_v12 = vadd.f32 %v7810_v32, %v13723_v36 }
0x2222   : > { %v7812_v22 = vpop.f32.mrf.mxu0 }
0x2223   : > { %14711 = vst [vmem:[#allocation74_spill] sm:$0xff] %v13990_v12  ;;  %v13993_v54 = vadd.f32 %v7812_v22, %v13719_v16  ;;  %7911 = vmax.xlane.f32.xlu1 %v7910_v24 }
0x2224   : > { %v7814_v41 = vpop.f32.mrf.mxu0 }
0x2225   : > { %14712 = vst [vmem:[#allocation37_spill] sm:$0xff] %v13993_v54  ;;  %v7913_v4 = vmax.f32 %v13990_v12, %v13993_v54  ;;  %v13998_v62 = vadd.f32 %v7814_v41, %v13723_v36 }
0x2226   : > { %v7816_v45 = vpop.f32.mrf.mxu0  ;;  %v10509_v24 = vpop.eup %10508 }
0x2227   : > { %14713 = vst [vmem:[#allocation38_spill] sm:$0xff] %v13998_v62  ;;  %v14001_v49 = vadd.f32 %v7816_v45, %v13719_v16  ;;  %7914 = vmax.xlane.f32.xlu0 %v7913_v4  ;;  %v10511_v45 = vpop.eup %10510 }
0x2228   : > { %v7820_v37 = vpop.f32.mrf.mxu0 }
0x2229   : > { %14714 = vst [vmem:[#allocation76_spill] sm:$0xff] %v14001_v49  ;;  %v7916_v22 = vmax.f32 %v13998_v62, %v14001_v49  ;;  %v14006_v60 = vadd.f32 %v7820_v37, %v13723_v36  ;;  %v8117_v62 = vadd.f32 %v10511_v45, %v10509_v24 }
0x222a   : > { %v7822_v39 = vpop.f32.mrf.mxu0  ;;  %v10513_v37 = vpop.eup %10512 }
0x222b   : > { %14715 = vst [vmem:[#allocation39_spill] sm:$0xff] %v14006_v60  ;;  %v14009_v25 = vadd.f32 %v7822_v39, %v13719_v16  ;;  %7917 = vmax.xlane.f32.xlu1 %v7916_v22  ;;  %v10515_v22 = vpop.eup %10514 }
0x222c   : > { %v7824_v32 = vpop.f32.mrf.mxu0  ;;  %v8120_v12 = vadd.f32 %v10515_v22, %v10513_v37 }
0x222d   : > { %14716 = vst [vmem:[#allocation40_spill] sm:$0xff] %v14009_v25  ;;  %v7919_v41 = vmax.f32 %v14006_v60, %v14009_v25  ;;  %v14014_v4 = vadd.f32 %v7824_v32, %v13723_v36 }
0x222e   : > { %v7826_v54 = vpop.f32.mrf.mxu0 }
0x222f   : > { %14717 = vst [vmem:[#allocation73_spill] sm:$0xff] %v14014_v4  ;;  %v14017_v49 = vadd.f32 %v7826_v54, %v13719_v16  ;;  %7920 = vmax.xlane.f32.xlu0 %v7919_v41 }
0x2231   : > { %14718 = vst [vmem:[#allocation41_spill] sm:$0xff] %v14017_v49  ;;  %v7922_v39 = vmax.f32 %v14014_v4, %v14017_v49 }
0x2233   : > { %7923 = vmax.xlane.f32.xlu1 %v7922_v39  ;;  %8118 = vadd.xlane.f32.xlu0 %v8117_v62 }
0x2237   : > { %8121 = vadd.xlane.f32.xlu1 %v8120_v12 }
0x2248   : > { %v14021_v25 = vpop.xlane.xlu0 %7836 }
0x2249   : > { %v7929_v36 = vsub.f32 %v13770_v50, %v14021_v25  ;;  %v7930_v16 = vsub.f32 %v13773_v53, %v14021_v25 }
0x224b   : > { %v7997_v54 = vmul.f32 1.442695, %v7929_v36  ;;  %v7999_v32 = vmul.f32 1.442695, %v7930_v16 }
0x224c   : > { %v14027_v41 = vpop.xlane.xlu1 %7839 }
0x224d   : > { %10516 = vpow2.f32 %v7997_v54  ;;  %v7931_v24 = vsub.f32 %v13778_v33, %v14027_v41  ;;  %v7932_v62 = vsub.f32 %v13781_v20, %v14027_v41 }
0x224e   : > { %10518 = vpow2.f32 %v7999_v32 }
0x224f   : > { %v8001_v12 = vmul.f32 1.442695, %v7931_v24  ;;  %v8003_v45 = vmul.f32 1.442695, %v7932_v62 }
0x2250   : > { %v14033_v37 = vpop.xlane.xlu0 %7842 }
0x2251   : > { %10520 = vpow2.f32 %v8001_v12  ;;  %v7933_v39 = vsub.f32 %v13786_v58, %v14033_v37  ;;  %v7934_v22 = vsub.f32 %v13789_v35, %v14033_v37 }
0x2252   : > { %10522 = vpow2.f32 %v8003_v45 }
0x2253   : > { %v8005_v36 = vmul.f32 1.442695, %v7933_v39  ;;  %v8007_v16 = vmul.f32 1.442695, %v7934_v22 }
0x2254   : > { %v14039_v54 = vpop.xlane.xlu1 %7845 }
0x2255   : > { %10524 = vpow2.f32 %v8005_v36  ;;  %v7935_v32 = vsub.f32 %v13794_v8, %v14039_v54  ;;  %v7936_v24 = vsub.f32 %v13797_v2, %v14039_v54 }
0x2256   : > { %10526 = vpow2.f32 %v8007_v16 }
0x2257   : > { %v8009_v62 = vmul.f32 1.442695, %v7935_v32  ;;  %v8011_v12 = vmul.f32 1.442695, %v7936_v24 }
0x2258   : > { %v14045_v20 = vpop.xlane.xlu0 %7848 }
0x2259   : > { %10528 = vpow2.f32 %v8009_v62  ;;  %v7937_v45 = vsub.f32 %v13802_v18, %v14045_v20  ;;  %v7938_v39 = vsub.f32 %v13805_v9, %v14045_v20 }
0x225a   : > { %v10517_v22 = vpop.eup %10516  ;;  %10530 = vpow2.f32 %v8011_v12 }
0x225b   : > { %v10519_v36 = vpop.eup %10518  ;;  %v8013_v35 = vmul.f32 1.442695, %v7937_v45  ;;  %v8015_v8 = vmul.f32 1.442695, %v7938_v39 }
0x225c   : > { %v14051_v58 = vpop.xlane.xlu1 %7851  ;;  %v8123_v2 = vadd.f32 %v10519_v36, %v10517_v22 }
0x225d   : > { %10532 = vpow2.f32 %v8013_v35  ;;  %v7939_v16 = vsub.f32 %v13810_v63, %v14051_v58  ;;  %v7940_v32 = vsub.f32 %v13813_v14, %v14051_v58 }
0x225e   : > { %v10521_v24 = vpop.eup %10520  ;;  %10534 = vpow2.f32 %v8015_v8  ;;  %8124 = vadd.xlane.f32.xlu0 %v8123_v2 }
0x225f   : > { %v10523_v62 = vpop.eup %10522  ;;  %v8017_v9 = vmul.f32 1.442695, %v7939_v16  ;;  %v8019_v18 = vmul.f32 1.442695, %v7940_v32 }
0x2260   : > { %v14057_v12 = vpop.xlane.xlu0 %7854  ;;  %v8126_v45 = vadd.f32 %v10523_v62, %v10521_v24 }
0x2261   : > { %10536 = vpow2.f32 %v8017_v9  ;;  %v7941_v39 = vsub.f32 %v13818_v52, %v14057_v12  ;;  %v7942_v35 = vsub.f32 %v13821_v38, %v14057_v12 }
0x2262   : > { %v10525_v22 = vpop.eup %10524  ;;  %10538 = vpow2.f32 %v8019_v18  ;;  %8127 = vadd.xlane.f32.xlu1 %v8126_v45 }
0x2263   : > { %v10527_v36 = vpop.eup %10526  ;;  %v8021_v14 = vmul.f32 1.442695, %v7941_v39  ;;  %v8023_v8 = vmul.f32 1.442695, %v7942_v35 }
0x2264   : > { %v14063_v2 = vpop.xlane.xlu1 %7857  ;;  %v8129_v16 = vadd.f32 %v10527_v36, %v10525_v22 }
0x2265   : > { %10540 = vpow2.f32 %v8021_v14  ;;  %v7943_v32 = vsub.f32 %v13826_v6, %v14063_v2  ;;  %v7944_v9 = vsub.f32 %v13829_v46, %v14063_v2 }
0x2266   : > { %v10529_v24 = vpop.eup %10528  ;;  %10542 = vpow2.f32 %v8023_v8  ;;  %8130 = vadd.xlane.f32.xlu0 %v8129_v16 }
0x2267   : > { %v10531_v62 = vpop.eup %10530  ;;  %v8025_v38 = vmul.f32 1.442695, %v7943_v32  ;;  %v8027_v18 = vmul.f32 1.442695, %v7944_v9 }
0x2268   : > { %v14069_v45 = vpop.xlane.xlu0 %7860  ;;  %v8132_v39 = vadd.f32 %v10531_v62, %v10529_v24 }
0x2269   : > { %10544 = vpow2.f32 %v8025_v38  ;;  %v7945_v35 = vsub.f32 %v13834_v57, %v14069_v45  ;;  %v7946_v14 = vsub.f32 %v13837_v7, %v14069_v45 }
0x226a   : > { %v10533_v22 = vpop.eup %10532  ;;  %10546 = vpow2.f32 %v8027_v18  ;;  %8133 = vadd.xlane.f32.xlu1 %v8132_v39 }
0x226b   : > { %v10535_v36 = vpop.eup %10534  ;;  %v8029_v46 = vmul.f32 1.442695, %v7945_v35  ;;  %v8031_v8 = vmul.f32 1.442695, %v7946_v14 }
0x226c   : > { %v14075_v16 = vpop.xlane.xlu1 %7863  ;;  %v8135_v32 = vadd.f32 %v10535_v36, %v10533_v22 }
0x226d   : > { %10548 = vpow2.f32 %v8029_v46  ;;  %v7947_v9 = vsub.f32 %v13842_v44, %v14075_v16  ;;  %v7948_v38 = vsub.f32 %v13845_v23, %v14075_v16 }
0x226e   : > { %v10537_v24 = vpop.eup %10536  ;;  %10550 = vpow2.f32 %v8031_v8  ;;  %8136 = vadd.xlane.f32.xlu0 %v8135_v32 }
0x226f   : > { %v10539_v62 = vpop.eup %10538  ;;  %v8033_v7 = vmul.f32 1.442695, %v7947_v9  ;;  %v8035_v18 = vmul.f32 1.442695, %v7948_v38 }
0x2270   : > { %v14081_v39 = vpop.xlane.xlu0 %7866  ;;  %v8138_v35 = vadd.f32 %v10539_v62, %v10537_v24 }
0x2271   : > { %10552 = vpow2.f32 %v8033_v7  ;;  %v7949_v14 = vsub.f32 %v13850_v42, %v14081_v39  ;;  %v7950_v46 = vsub.f32 %v13853_v55, %v14081_v39 }
0x2272   : > { %v10541_v22 = vpop.eup %10540  ;;  %10554 = vpow2.f32 %v8035_v18  ;;  %8139 = vadd.xlane.f32.xlu1 %v8138_v35 }
0x2273   : > { %v10543_v36 = vpop.eup %10542  ;;  %v8037_v23 = vmul.f32 1.442695, %v7949_v14  ;;  %v8039_v8 = vmul.f32 1.442695, %v7950_v46 }
0x2274   : > { %v14087_v32 = vpop.xlane.xlu1 %7869  ;;  %v8141_v9 = vadd.f32 %v10543_v36, %v10541_v22 }
0x2275   : > { %10556 = vpow2.f32 %v8037_v23  ;;  %v7951_v38 = vsub.f32 %v13858_v51, %v14087_v32  ;;  %v7952_v7 = vsub.f32 %v13861_v47, %v14087_v32 }
0x2276   : > { %v10545_v24 = vpop.eup %10544  ;;  %10558 = vpow2.f32 %v8039_v8  ;;  %8142 = vadd.xlane.f32.xlu0 %v8141_v9 }
0x2277   : > { %v10547_v62 = vpop.eup %10546  ;;  %v8041_v55 = vmul.f32 1.442695, %v7951_v38  ;;  %v8043_v18 = vmul.f32 1.442695, %v7952_v7 }
0x2278   : > { %v14093_v35 = vpop.xlane.xlu0 %7872  ;;  %v8144_v14 = vadd.f32 %v10547_v62, %v10545_v24 }
0x2279   : > { %10560 = vpow2.f32 %v8041_v55  ;;  %v7953_v46 = vsub.f32 %v13866_v11, %v14093_v35  ;;  %v7954_v23 = vsub.f32 %v13869_v19, %v14093_v35 }
0x227a   : > { %v10549_v22 = vpop.eup %10548  ;;  %10562 = vpow2.f32 %v8043_v18  ;;  %8145 = vadd.xlane.f32.xlu1 %v8144_v14 }
0x227b   : > { %v10551_v36 = vpop.eup %10550  ;;  %v8045_v47 = vmul.f32 1.442695, %v7953_v46  ;;  %v8047_v8 = vmul.f32 1.442695, %v7954_v23 }
0x227c   : > { %v14099_v9 = vpop.xlane.xlu1 %7875  ;;  %v8147_v38 = vadd.f32 %v10551_v36, %v10549_v22 }
0x227d   : > { %10564 = vpow2.f32 %v8045_v47  ;;  %v7955_v7 = vsub.f32 %v13874_v3, %v14099_v9  ;;  %v7956_v55 = vsub.f32 %v13877_v28, %v14099_v9 }
0x227e   : > { %v10553_v24 = vpop.eup %10552  ;;  %10566 = vpow2.f32 %v8047_v8  ;;  %8148 = vadd.xlane.f32.xlu0 %v8147_v38 }
0x227f   : > { %v10555_v62 = vpop.eup %10554  ;;  %v8049_v19 = vmul.f32 1.442695, %v7955_v7  ;;  %v8051_v18 = vmul.f32 1.442695, %v7956_v55 }
0x2280   : > { %v14105_v14 = vpop.xlane.xlu0 %7878  ;;  %v8150_v46 = vadd.f32 %v10555_v62, %v10553_v24 }
0x2281   : > { %10568 = vpow2.f32 %v8049_v19  ;;  %v7957_v23 = vsub.f32 %v13882_v40, %v14105_v14  ;;  %v7958_v47 = vsub.f32 %v13885_v48, %v14105_v14 }
0x2282   : > { %v10557_v22 = vpop.eup %10556  ;;  %10570 = vpow2.f32 %v8051_v18  ;;  %8151 = vadd.xlane.f32.xlu1 %v8150_v46 }
0x2283   : > { %v10559_v36 = vpop.eup %10558  ;;  %v8053_v28 = vmul.f32 1.442695, %v7957_v23  ;;  %v8055_v8 = vmul.f32 1.442695, %v7958_v47 }
0x2284   : > { %v14111_v38 = vpop.xlane.xlu1 %7881  ;;  %v8153_v7 = vadd.f32 %v10559_v36, %v10557_v22 }
0x2285   : > { %10572 = vpow2.f32 %v8053_v28  ;;  %v7959_v55 = vsub.f32 %v13890_v43, %v14111_v38  ;;  %v7960_v19 = vsub.f32 %v13893_v59, %v14111_v38 }
0x2286   : > { %v10561_v24 = vpop.eup %10560  ;;  %10574 = vpow2.f32 %v8055_v8  ;;  %8154 = vadd.xlane.f32.xlu0 %v8153_v7 }
0x2287   : > { %v10563_v62 = vpop.eup %10562  ;;  %v8057_v48 = vmul.f32 1.442695, %v7959_v55  ;;  %v8059_v18 = vmul.f32 1.442695, %v7960_v19 }
0x2288   : > { %v14117_v46 = vpop.xlane.xlu0 %7884  ;;  %v8156_v23 = vadd.f32 %v10563_v62, %v10561_v24 }
0x2289   : > { %10576 = vpow2.f32 %v8057_v48  ;;  %v7961_v47 = vsub.f32 %v13898_v17, %v14117_v46  ;;  %v7962_v28 = vsub.f32 %v13901_v1, %v14117_v46 }
0x228a   : > { %v10565_v22 = vpop.eup %10564  ;;  %10578 = vpow2.f32 %v8059_v18  ;;  %8157 = vadd.xlane.f32.xlu1 %v8156_v23 }
0x228b   : > { %v10567_v36 = vpop.eup %10566  ;;  %v8061_v59 = vmul.f32 1.442695, %v7961_v47  ;;  %v8063_v8 = vmul.f32 1.442695, %v7962_v28 }
0x228c   : > { %v14123_v7 = vpop.xlane.xlu1 %7887  ;;  %v8159_v55 = vadd.f32 %v10567_v36, %v10565_v22 }
0x228d   : > { %10580 = vpow2.f32 %v8061_v59  ;;  %v7963_v19 = vsub.f32 %v13906_v21, %v14123_v7  ;;  %v7964_v48 = vsub.f32 %v13909_v34, %v14123_v7 }
0x228e   : > { %v10569_v24 = vpop.eup %10568  ;;  %10582 = vpow2.f32 %v8063_v8  ;;  %8160 = vadd.xlane.f32.xlu0 %v8159_v55 }
0x228f   : > { %v10571_v62 = vpop.eup %10570  ;;  %v8065_v1 = vmul.f32 1.442695, %v7963_v19  ;;  %v8067_v18 = vmul.f32 1.442695, %v7964_v48 }
0x2290   : > { %v14129_v23 = vpop.xlane.xlu0 %7890  ;;  %v8162_v47 = vadd.f32 %v10571_v62, %v10569_v24 }
0x2291   : > { %10584 = vpow2.f32 %v8065_v1  ;;  %v7965_v28 = vsub.f32 %v13914_v31, %v14129_v23  ;;  %v7966_v59 = vsub.f32 %v13917_v15, %v14129_v23 }
0x2292   : > { %v10573_v22 = vpop.eup %10572  ;;  %10586 = vpow2.f32 %v8067_v18  ;;  %8163 = vadd.xlane.f32.xlu1 %v8162_v47 }
0x2293   : > { %v10575_v36 = vpop.eup %10574  ;;  %v8069_v34 = vmul.f32 1.442695, %v7965_v28  ;;  %v8071_v8 = vmul.f32 1.442695, %v7966_v59 }
0x2294   : > { %v14135_v55 = vpop.xlane.xlu1 %7893  ;;  %v8165_v19 = vadd.f32 %v10575_v36, %v10573_v22 }
0x2295   : > { %10588 = vpow2.f32 %v8069_v34  ;;  %v7967_v48 = vsub.f32 %v13922_v5, %v14135_v55  ;;  %v7968_v1 = vsub.f32 %v13925_v30, %v14135_v55 }
0x2296   : > { %v10577_v24 = vpop.eup %10576  ;;  %10590 = vpow2.f32 %v8071_v8  ;;  %8166 = vadd.xlane.f32.xlu0 %v8165_v19 }
0x2297   : > { %v10579_v62 = vpop.eup %10578  ;;  %v8073_v15 = vmul.f32 1.442695, %v7967_v48  ;;  %v8075_v18 = vmul.f32 1.442695, %v7968_v1 }
0x2298   : > { %v14141_v47 = vpop.xlane.xlu0 %7896  ;;  %v8168_v28 = vadd.f32 %v10579_v62, %v10577_v24 }
0x2299   : > { %10592 = vpow2.f32 %v8073_v15  ;;  %v7969_v59 = vsub.f32 %v13930_v56, %v14141_v47  ;;  %v7970_v34 = vsub.f32 %v13933_v29, %v14141_v47 }
0x229a   : > { %v10581_v22 = vpop.eup %10580  ;;  %10594 = vpow2.f32 %v8075_v18  ;;  %8169 = vadd.xlane.f32.xlu1 %v8168_v28 }
0x229b   : > { %v10583_v36 = vpop.eup %10582  ;;  %v8077_v30 = vmul.f32 1.442695, %v7969_v59  ;;  %v8079_v8 = vmul.f32 1.442695, %v7970_v34  ;;  %v14720_v34 = vld [vmem:[#allocation72_spill] sm:$0xff] }
0x229c   : > { %v14147_v19 = vpop.xlane.xlu1 %7899  ;;  %v8171_v48 = vadd.f32 %v10583_v36, %v10581_v22 }
0x229d   : > { %14719 = vst [vmem:[#allocation42_spill] sm:$0xff] %v14147_v19  ;;  %10596 = vpow2.f32 %v8077_v30  ;;  %v7971_v1 = vsub.f32 %v13938_v27, %v14147_v19  ;;  %v7972_v15 = vsub.f32 %v13941_v13, %v14147_v19  ;;  %v14721_v30 = vld [vmem:[#allocation31_spill] sm:$0xff] }
0x229e   : > { %v10585_v24 = vpop.eup %10584  ;;  %10598 = vpow2.f32 %v8079_v8  ;;  %8172 = vadd.xlane.f32.xlu0 %v8171_v48 }
0x229f   : > { %v10587_v62 = vpop.eup %10586  ;;  %v8081_v29 = vmul.f32 1.442695, %v7971_v1  ;;  %v8083_v18 = vmul.f32 1.442695, %v7972_v15 }
0x22a0   : > { %v14153_v28 = vpop.xlane.xlu0 %7902  ;;  %v8174_v59 = vadd.f32 %v10587_v62, %v10585_v24 }
0x22a1   : > { %10600 = vpow2.f32 %v8081_v29  ;;  %v7973_v22 = vsub.f32 %v14720_v34, %v14153_v28  ;;  %v7974_v36 = vsub.f32 %v14721_v30, %v14153_v28  ;;  %v14722_v29 = vld [vmem:[#allocation33_spill] sm:$0xff] }
0x22a2   : > { %v10589_v27 = vpop.eup %10588  ;;  %10602 = vpow2.f32 %v8083_v18  ;;  %8175 = vadd.xlane.f32.xlu1 %v8174_v59 }
0x22a3   : > { %v10591_v13 = vpop.eup %10590  ;;  %v8085_v19 = vmul.f32 1.442695, %v7973_v22  ;;  %v8087_v8 = vmul.f32 1.442695, %v7974_v36 }
0x22a4   : > { %v14159_v48 = vpop.xlane.xlu1 %7905  ;;  %v8177_v1 = vadd.f32 %v10591_v13, %v10589_v27  ;;  %v14723_v13 = vld [vmem:[#allocation71_spill] sm:$0xff] }
0x22a5   : > { %10604 = vpow2.f32 %v8085_v19  ;;  %v7975_v15 = vsub.f32 %v13956_v61, %v14159_v48  ;;  %v7976_v24 = vsub.f32 %v14722_v29, %v14159_v48 }
0x22a6   : > { %v10593_v62 = vpop.eup %10592  ;;  %10606 = vpow2.f32 %v8087_v8  ;;  %8178 = vadd.xlane.f32.xlu0 %v8177_v1 }
0x22a7   : > { %v10595_v30 = vpop.eup %10594  ;;  %v8089_v34 = vmul.f32 1.442695, %v7975_v15  ;;  %v8091_v18 = vmul.f32 1.442695, %v7976_v24 }
0x22a8   : > { %v14165_v59 = vpop.xlane.xlu0 %7908  ;;  %v8180_v22 = vadd.f32 %v10595_v30, %v10593_v62 }
0x22a9   : > { %10608 = vpow2.f32 %v8089_v34  ;;  %v7977_v27 = vsub.f32 %v13970_v26, %v14165_v59  ;;  %v7978_v19 = vsub.f32 %v14723_v13, %v14165_v59 }
0x22aa   : > { %v10597_v36 = vpop.eup %10596  ;;  %10610 = vpow2.f32 %v8091_v18  ;;  %8181 = vadd.xlane.f32.xlu1 %v8180_v22 }
0x22ab   : > { %v10599_v29 = vpop.eup %10598  ;;  %v8093_v61 = vmul.f32 1.442695, %v7977_v27  ;;  %v8095_v8 = vmul.f32 1.442695, %v7978_v19  ;;  %v14726_v19 = vld [vmem:[#allocation74_spill] sm:$0xff] }
0x22ac   : > { %v14171_v1 = vpop.xlane.xlu1 %7911  ;;  %v8183_v15 = vadd.f32 %v10599_v29, %v10597_v36 }
0x22ad   : > { %14724 = vst [vmem:[#allocation75_spill] sm:$0xff] %v14171_v1  ;;  %10612 = vpow2.f32 %v8093_v61  ;;  %v7979_v30 = vsub.f32 %v13982_v0, %v14171_v1  ;;  %v7980_v34 = vsub.f32 %v13985_v10, %v14171_v1  ;;  %v14727_v61 = vld [vmem:[#allocation37_spill] sm:$0xff] }
0x22ae   : > { %v10601_v24 = vpop.eup %10600  ;;  %10614 = vpow2.f32 %v8095_v8  ;;  %8184 = vadd.xlane.f32.xlu0 %v8183_v15 }
0x22af   : > { %v10603_v62 = vpop.eup %10602  ;;  %v8097_v13 = vmul.f32 1.442695, %v7979_v30  ;;  %v8099_v18 = vmul.f32 1.442695, %v7980_v34  ;;  %v14728_v34 = vld [vmem:[#allocation38_spill] sm:$0xff] }
0x22b0   : > { %v14177_v22 = vpop.xlane.xlu0 %7914  ;;  %v8186_v27 = vadd.f32 %v10603_v62, %v10601_v24 }
0x22b1   : > { %14725 = vst [vmem:[#allocation43_spill] sm:$0xff] %v14177_v22  ;;  %10616 = vpow2.f32 %v8097_v13  ;;  %v7981_v29 = vsub.f32 %v14726_v19, %v14177_v22  ;;  %v7982_v36 = vsub.f32 %v14727_v61, %v14177_v22  ;;  %v14729_v13 = vld [vmem:[#allocation76_spill] sm:$0xff] }
0x22b2   : > { %v10605_v0 = vpop.eup %10604  ;;  %10618 = vpow2.f32 %v8099_v18  ;;  %8187 = vadd.xlane.f32.xlu1 %v8186_v27 }
0x22b3   : > { %v10607_v10 = vpop.eup %10606  ;;  %v8101_v1 = vmul.f32 1.442695, %v7981_v29  ;;  %v8103_v8 = vmul.f32 1.442695, %v7982_v36 }
0x22b4   : > { %v14183_v15 = vpop.xlane.xlu1 %7917  ;;  %v8189_v30 = vadd.f32 %v10607_v10, %v10605_v0  ;;  %v14731_v10 = vld [vmem:[#allocation40_spill] sm:$0xff] }
0x22b5   : > { %10620 = vpow2.f32 %v8101_v1  ;;  %v7983_v24 = vsub.f32 %v14728_v34, %v14183_v15  ;;  %v7984_v62 = vsub.f32 %v14729_v13, %v14183_v15 }
0x22b6   : > { %v10609_v19 = vpop.eup %10608  ;;  %10622 = vpow2.f32 %v8103_v8  ;;  %8190 = vadd.xlane.f32.xlu0 %v8189_v30 }
0x22b7   : > { %v10611_v61 = vpop.eup %10610  ;;  %v8105_v22 = vmul.f32 1.442695, %v7983_v24  ;;  %v8107_v18 = vmul.f32 1.442695, %v7984_v62 }
0x22b8   : > { %v14189_v27 = vpop.xlane.xlu0 %7920  ;;  %v8192_v29 = vadd.f32 %v10611_v61, %v10609_v19 }
0x22b9   : > { %14730 = vst [vmem:[#allocation44_spill] sm:$0xff] %v14189_v27  ;;  %10624 = vpow2.f32 %v8105_v22  ;;  %v7985_v0 = vsub.f32 %v14006_v60, %v14189_v27  ;;  %v7986_v1 = vsub.f32 %v14731_v10, %v14189_v27  ;;  %v10825_v27 = vld [vmem:[%s11156_s29 + $0xf8] sm:$0xff]  ;;  %s8438_s29 = scalar_lea.sflag [#allocation6], %s442_s15 }
0x22ba   : > { %v10613_v36 = vpop.eup %10612  ;;  %10626 = vpow2.f32 %v8107_v18  ;;  %8193 = vadd.xlane.f32.xlu1 %v8192_v29 }
0x22bb   : > { %v10615_v13 = vpop.eup %10614  ;;  %v8109_v34 = vmul.f32 1.442695, %v7985_v0  ;;  %v8111_v8 = vmul.f32 1.442695, %v7986_v1 }
0x22bc   : > { %v14195_v30 = vpop.xlane.xlu1 %7923  ;;  %v8119_v24 = vpop.xlane.xlu0 %8118  ;;  %v8195_v62 = vadd.f32 %v10615_v13, %v10613_v36 }
0x22bd   : > { %14732 = vst [vmem:[#allocation78_spill] sm:$0xff] %v14195_v30  ;;  %10628 = vpow2.f32 %v8109_v34  ;;  %v7987_v22 = vsub.f32 %v14014_v4, %v14195_v30  ;;  %v7988_v19 = vsub.f32 %v14017_v49, %v14195_v30 }
0x22be   : > { %v10617_v61 = vpop.eup %10616  ;;  %10630 = vpow2.f32 %v8111_v8  ;;  %8196 = vadd.xlane.f32.xlu0 %v8195_v62 }
0x22bf   : > { %v10619_v10 = vpop.eup %10618  ;;  %v8113_v18 = vmul.f32 1.442695, %v7987_v22  ;;  %v8115_v29 = vmul.f32 1.442695, %v7988_v19  ;;  %10632 = vlog2.f32 %v8119_v24 }
0x22c0   : > { %v8122_v0 = vpop.xlane.xlu1 %8121  ;;  %v8198_v1 = vadd.f32 %v10619_v10, %v10617_v61  ;;  %v14733_v61 = vld [vmem:[#allocation32_spill] sm:$0xff] }
0x22c1   : > { %10634 = vpow2.f32 %v8113_v18 }
0x22c2   : > { %v10621_v60 = vpop.eup %10620  ;;  %10636 = vpow2.f32 %v8115_v29  ;;  %8199 = vadd.xlane.f32.xlu1 %v8198_v1  ;;  %v14735_v1 = vld [vmem:[#allocation60_spill] sm:$0xff] }
0x22c3   : > { %v10623_v34 = vpop.eup %10622  ;;  %10638 = vlog2.f32 %v8122_v0  ;;  %v14734_v0 = vld [vmem:[#allocation86_spill] sm:$0xff] }
0x22c4   : > { %v8201_v13 = vadd.f32 %v10623_v34, %v10621_v60 }
0x22c6   : > { %v10625_v36 = vpop.eup %10624  ;;  %8202 = vadd.xlane.f32.xlu0 %v8201_v13 }
0x22c7   : > { %v10627_v4 = vpop.eup %10626 }
0x22c8   : > { %v8204_v49 = vadd.f32 %v10627_v4, %v10625_v36  ;;  %v14737_v36 = vld [vmem:[#allocation87_spill] sm:$0xff] }
0x22ca   : > { %v10629_v30 = vpop.eup %10628  ;;  %8205 = vadd.xlane.f32.xlu1 %v8204_v49 }
0x22cb   : > { %v10631_v8 = vpop.eup %10630 }
0x22cc   : > { %v10633_v62 = vpop.eup %10632  ;;  %v8207_v24 = vadd.f32 %v10631_v8, %v10629_v30  ;;  %v14736_v30 = vld [vmem:[#allocation34_spill] sm:$0xff] }
0x22cd   : > { %v8214_v22 = vmul.f32 0.6931472, %v10633_v62  ;;  %v14738_v62 = vld [vmem:[#allocation62_spill] sm:$0xff] }
0x22ce   : > { %v10635_v10 = vpop.eup %10634  ;;  %8208 = vadd.xlane.f32.xlu0 %v8207_v24 }
0x22cf   : > { %v10637_v19 = vpop.eup %10636  ;;  %v8277_v60 = vadd.f32 %v8214_v22, %v14733_v61  ;;  %v7471_v22 = vsub.f32 1.0, %v10825_v27 }
0x22d0   : > { %v10639_v18 = vpop.eup %10638  ;;  %v8210_v29 = vadd.f32 %v10637_v19, %v10635_v10 }
0x22d1   : > { %v8309_v4 = vsub.f32 %v14734_v0, %v8277_v60  ;;  %v8310_v34 = vsub.f32 %v14735_v1, %v8277_v60  ;;  %v8216_v49 = vmul.f32 0.6931472, %v10639_v18 }
0x22d2   : > { %8211 = vadd.xlane.f32.xlu1 %v8210_v29 }
0x22d3   : > { %8373 = vst [vmem:[%s11158_s30] sm:$0xff] %v8309_v4  ;;  %8374 = vst [vmem:[%s11158_s30 + $0x8] sm:$0xff] %v8310_v34  ;;  %v8278_v13 = vadd.f32 %v8216_v49, %v14736_v30 }
0x22d5   : > { %v8311_v8 = vsub.f32 %v14737_v36, %v8278_v13  ;;  %v8312_v24 = vsub.f32 %v14738_v62, %v8278_v13 }
0x22d7   : > { %8375 = vst [vmem:[%s11158_s30 + $0x10] sm:$0xff] %v8311_v8  ;;  %8376 = vst [vmem:[%s11158_s30 + $0x18] sm:$0xff] %v8312_v24  ;;  %v14739_v8 = vld [vmem:[#allocation89_spill] sm:$0xff] }
0x22e4   : > { %7474 = vperm.xlu0 %10082, %v7471_v22  }
0x22e7   : > { %v8125_v10 = vpop.xlane.xlu0 %8124 }
0x22e8   : > { %10640 = vlog2.f32 %v8125_v10  ;;  %v14740_v10 = vld [vmem:[#allocation64_spill] sm:$0xff] }
0x22eb   : > { %v8128_v19 = vpop.xlane.xlu1 %8127 }
0x22ec   : > { %10642 = vlog2.f32 %v8128_v19  ;;  %v14741_v19 = vld [vmem:[#allocation90_spill] sm:$0xff] }
0x22ef   : > { %v8131_v61 = vpop.xlane.xlu0 %8130 }
0x22f0   : > { %10644 = vlog2.f32 %v8131_v61 }
0x22f3   : > { %v8134_v60 = vpop.xlane.xlu1 %8133 }
0x22f4   : > { %10646 = vlog2.f32 %v8134_v60 }
0x22f5   : > { %v10641_v18 = vpop.eup %10640 }
0x22f6   : > { %v8218_v29 = vmul.f32 0.6931472, %v10641_v18 }
0x22f7   : > { %v8137_v0 = vpop.xlane.xlu0 %8136 }
0x22f8   : > { %v8279_v4 = vadd.f32 %v8218_v29, %v14021_v25  ;;  %10648 = vlog2.f32 %v8137_v0  ;;  %v14742_v0 = vld [vmem:[#allocation91_spill] sm:$0xff] }
0x22f9   : > { %v10643_v27 = vpop.eup %10642 }
0x22fa   : > { %v8313_v1 = vsub.f32 %v13770_v50, %v8279_v4  ;;  %v8314_v34 = vsub.f32 %v13773_v53, %v8279_v4  ;;  %v8220_v49 = vmul.f32 0.6931472, %v10643_v27  ;;  %v14743_v4 = vld [vmem:[#allocation61_spill] sm:$0xff] }
0x22fb   : > { %v8140_v30 = vpop.xlane.xlu1 %8139 }
0x22fc   : > { %8377 = vst [vmem:[%s11158_s30 + $0x20] sm:$0xff] %v8313_v1  ;;  %8378 = vst [vmem:[%s11158_s30 + $0x28] sm:$0xff] %v8314_v34  ;;  %v8280_v13 = vadd.f32 %v8220_v49, %v14027_v41  ;;  %10650 = vlog2.f32 %v8140_v30 }
0x22fd   : > { %v10645_v36 = vpop.eup %10644 }
0x22fe   : > { %v8315_v25 = vsub.f32 %v13778_v33, %v8280_v13  ;;  %v8316_v62 = vsub.f32 %v14739_v8, %v8280_v13  ;;  %v8222_v24 = vmul.f32 0.6931472, %v10645_v36  ;;  %v14744_v13 = vld [vmem:[#allocation92_spill] sm:$0xff]  ;;  %v14745_v36 = vld [vmem:[#allocation93_spill] sm:$0xff] }
0x22ff   : > { %v8143_v22 = vpop.xlane.xlu0 %8142 }
0x2300   : > { %8379 = vst [vmem:[%s11158_s30 + $0x30] sm:$0xff] %v8315_v25  ;;  %8380 = vst [vmem:[%s11158_s30 + $0x38] sm:$0xff] %v8316_v62  ;;  %v8281_v50 = vadd.f32 %v8222_v24, %v14033_v37  ;;  %10652 = vlog2.f32 %v8143_v22 }
0x2301   : > { %v10647_v53 = vpop.eup %10646 }
0x2302   : > { %v8317_v41 = vsub.f32 %v14740_v10, %v8281_v50  ;;  %v8318_v61 = vsub.f32 %v14741_v19, %v8281_v50  ;;  %v8224_v60 = vmul.f32 0.6931472, %v10647_v53  ;;  %v14746_v50 = vld [vmem:[#allocation63_spill] sm:$0xff] }
0x2303   : > { %v8146_v18 = vpop.xlane.xlu1 %8145 }
0x2304   : > { %8381 = vst [vmem:[%s11158_s30 + $0x40] sm:$0xff] %v8317_v41  ;;  %8382 = vst [vmem:[%s11158_s30 + $0x48] sm:$0xff] %v8318_v61  ;;  %v8282_v33 = vadd.f32 %v8224_v60, %v14039_v54  ;;  %10654 = vlog2.f32 %v8146_v18  ;;  %v14747_v60 = vld [vmem:[#allocation94_spill] sm:$0xff] }
0x2305   : > { %v10649_v29 = vpop.eup %10648 }
0x2306   : > { %v8319_v37 = vsub.f32 %v14742_v0, %v8282_v33  ;;  %v8320_v27 = vsub.f32 %v14743_v4, %v8282_v33  ;;  %v8226_v1 = vmul.f32 0.6931472, %v10649_v29 }
0x2307   : > { %v8149_v34 = vpop.xlane.xlu0 %8148 }
0x2308   : > { %8383 = vst [vmem:[%s11158_s30 + $0x50] sm:$0xff] %v8319_v37  ;;  %8384 = vst [vmem:[%s11158_s30 + $0x58] sm:$0xff] %v8320_v27  ;;  %v8283_v49 = vadd.f32 %v8226_v1, %v14045_v20  ;;  %10656 = vlog2.f32 %v8149_v34  ;;  %v14748_v37 = vld [vmem:[#allocation95_spill] sm:$0xff] }
0x2309   : > { %v10651_v30 = vpop.eup %10650 }
0x230a   : > { %v8321_v54 = vsub.f32 %v14744_v13, %v8283_v49  ;;  %v8322_v25 = vsub.f32 %v14745_v36, %v8283_v49  ;;  %v8228_v8 = vmul.f32 0.6931472, %v10651_v30  ;;  %v14749_v49 = vld [vmem:[#allocation66_spill] sm:$0xff] }
0x230b   : > { %v8152_v62 = vpop.xlane.xlu1 %8151 }
0x230c   : > { %8385 = vst [vmem:[%s11158_s30 + $0x60] sm:$0xff] %v8321_v54  ;;  %8386 = vst [vmem:[%s11158_s30 + $0x68] sm:$0xff] %v8322_v25  ;;  %v8284_v24 = vadd.f32 %v8228_v8, %v14051_v58  ;;  %10658 = vlog2.f32 %v8152_v62  ;;  %v14750_v25 = vld [vmem:[#allocation96_spill] sm:$0xff] }
0x230d   : > { %v10653_v22 = vpop.eup %10652 }
0x230e   : > { %v8323_v20 = vsub.f32 %v13810_v63, %v8284_v24  ;;  %v8324_v53 = vsub.f32 %v14746_v50, %v8284_v24  ;;  %v8230_v10 = vmul.f32 0.6931472, %v10653_v22 }
0x230f   : > { %v8155_v41 = vpop.xlane.xlu0 %8154 }
0x2310   : > { %8387 = vst [vmem:[%s11158_s30 + $0x70] sm:$0xff] %v8323_v20  ;;  %8388 = vst [vmem:[%s11158_s30 + $0x78] sm:$0xff] %v8324_v53  ;;  %v8285_v19 = vadd.f32 %v8230_v10, %v14057_v12  ;;  %10660 = vlog2.f32 %v8155_v41  ;;  %v14751_v20 = vld [vmem:[#allocation97_spill] sm:$0xff] }
0x2311   : > { %v10655_v61 = vpop.eup %10654 }
0x2312   : > { %v8325_v58 = vsub.f32 %v13818_v52, %v8285_v19  ;;  %v8326_v18 = vsub.f32 %v14747_v60, %v8285_v19  ;;  %v8232_v33 = vmul.f32 0.6931472, %v10655_v61  ;;  %v14752_v19 = vld [vmem:[#allocation68_spill] sm:$0xff] }
0x2313   : > { %v8158_v29 = vpop.xlane.xlu1 %8157 }
0x2314   : > { %8389 = vst [vmem:[%s11158_s30 + $0x80] sm:$0xff] %v8325_v58  ;;  %8390 = vst [vmem:[%s11158_s30 + $0x88] sm:$0xff] %v8326_v18  ;;  %v8286_v63 = vadd.f32 %v8232_v33, %v14063_v2  ;;  %10662 = vlog2.f32 %v8158_v29  ;;  %v14753_v33 = vld [vmem:[#allocation23_spill] sm:$0xff] }
0x2315   : > { %v10657_v0 = vpop.eup %10656 }
0x2316   : > { %v8327_v12 = vsub.f32 %v13826_v6, %v8286_v63  ;;  %v8328_v4 = vsub.f32 %v14748_v37, %v8286_v63  ;;  %v8234_v27 = vmul.f32 0.6931472, %v10657_v0  ;;  %v14754_v37 = vld [vmem:[#allocation24_spill] sm:$0xff] }
0x2317   : > { %v8161_v1 = vpop.xlane.xlu0 %8160 }
0x2318   : > { %8391 = vst [vmem:[%s11158_s30 + $0x90] sm:$0xff] %v8327_v12  ;;  %8392 = vst [vmem:[%s11158_s30 + $0x98] sm:$0xff] %v8328_v4  ;;  %v8287_v52 = vadd.f32 %v8234_v27, %v14069_v45  ;;  %10664 = vlog2.f32 %v8161_v1 }
0x2319   : > { %v10659_v34 = vpop.eup %10658 }
0x231a   : > { %v8329_v2 = vsub.f32 %v13834_v57, %v8287_v52  ;;  %v8330_v30 = vsub.f32 %v14749_v49, %v8287_v52  ;;  %v8236_v13 = vmul.f32 0.6931472, %v10659_v34  ;;  %v14755_v34 = vld [vmem:[#allocation65_spill] sm:$0xff] }
0x231b   : > { %v8164_v54 = vpop.xlane.xlu1 %8163 }
0x231c   : > { %8393 = vst [vmem:[%s11158_s30 + $0xa0] sm:$0xff] %v8329_v2  ;;  %8394 = vst [vmem:[%s11158_s30 + $0xa8] sm:$0xff] %v8330_v30  ;;  %v8288_v6 = vadd.f32 %v8236_v13, %v14075_v16  ;;  %10666 = vlog2.f32 %v8164_v54  ;;  %v14756_v54 = vld [vmem:[#allocation25_spill] sm:$0xff] }
0x231d   : > { %v10661_v36 = vpop.eup %10660 }
0x231e   : > { %v8331_v45 = vsub.f32 %v13842_v44, %v8288_v6  ;;  %v8332_v8 = vsub.f32 %v14750_v25, %v8288_v6  ;;  %v8238_v62 = vmul.f32 0.6931472, %v10661_v36 }
0x231f   : > { %v8167_v24 = vpop.xlane.xlu0 %8166 }
0x2320   : > { %8395 = vst [vmem:[%s11158_s30 + $0xb0] sm:$0xff] %v8331_v45  ;;  %8396 = vst [vmem:[%s11158_s30 + $0xb8] sm:$0xff] %v8332_v8  ;;  %v8289_v57 = vadd.f32 %v8238_v62, %v14081_v39  ;;  %10668 = vlog2.f32 %v8167_v24  ;;  %v14757_v8 = vld [vmem:[#allocation26_spill] sm:$0xff] }
0x2321   : > { %v10663_v22 = vpop.eup %10662 }
0x2322   : > { %v8333_v16 = vsub.f32 %v13850_v42, %v8289_v57  ;;  %v8334_v50 = vsub.f32 %v14751_v20, %v8289_v57  ;;  %v8240_v53 = vmul.f32 0.6931472, %v10663_v22 }
0x2323   : > { %v8170_v10 = vpop.xlane.xlu1 %8169 }
0x2324   : > { %8397 = vst [vmem:[%s11158_s30 + $0xc0] sm:$0xff] %v8333_v16  ;;  %8398 = vst [vmem:[%s11158_s30 + $0xc8] sm:$0xff] %v8334_v50  ;;  %v8290_v44 = vadd.f32 %v8240_v53, %v14087_v32  ;;  %10670 = vlog2.f32 %v8170_v10  ;;  %v14758_v16 = vld [vmem:[#allocation67_spill] sm:$0xff] }
0x2325   : > { %v10665_v41 = vpop.eup %10664 }
0x2326   : > { %v8335_v39 = vsub.f32 %v13858_v51, %v8290_v44  ;;  %v8336_v61 = vsub.f32 %v14752_v19, %v8290_v44  ;;  %v8242_v58 = vmul.f32 0.6931472, %v10665_v41  ;;  %v14759_v44 = vld [vmem:[#allocation27_spill] sm:$0xff] }
0x2327   : > { %v8173_v60 = vpop.xlane.xlu0 %8172 }
0x2328   : > { %8399 = vst [vmem:[%s11158_s30 + $0xd0] sm:$0xff] %v8335_v39  ;;  %8400 = vst [vmem:[%s11158_s30 + $0xd8] sm:$0xff] %v8336_v61  ;;  %v8291_v42 = vadd.f32 %v8242_v58, %v14093_v35  ;;  %10672 = vlog2.f32 %v8173_v60  ;;  %v14760_v58 = vld [vmem:[#allocation28_spill] sm:$0xff] }
0x2329   : > { %v10667_v18 = vpop.eup %10666 }
0x232a   : > { %v8337_v32 = vsub.f32 %v13866_v11, %v8291_v42  ;;  %v8338_v29 = vsub.f32 %v14753_v33, %v8291_v42  ;;  %v8244_v63 = vmul.f32 0.6931472, %v10667_v18  ;;  %v14761_v33 = vld [vmem:[#allocation70_spill] sm:$0xff] }
0x232b   : > { %v8176_v0 = vpop.xlane.xlu1 %8175 }
0x232c   : > { %8401 = vst [vmem:[%s11158_s30 + $0xe0] sm:$0xff] %v8337_v32  ;;  %8402 = vst [vmem:[%s11158_s30 + $0xe8] sm:$0xff] %v8338_v29  ;;  %v8292_v51 = vadd.f32 %v8244_v63, %v14099_v9  ;;  %10674 = vlog2.f32 %v8176_v0 }
0x232d   : > { %v10669_v12 = vpop.eup %10668 }
0x232e   : > { %v8339_v35 = vsub.f32 %v13874_v3, %v8292_v51  ;;  %v8340_v4 = vsub.f32 %v14754_v37, %v8292_v51  ;;  %v8246_v27 = vmul.f32 0.6931472, %v10669_v12  ;;  %v14764_v37 = vld [vmem:[#allocation30_spill] sm:$0xff] }
0x232f   : > { %v8179_v1 = vpop.xlane.xlu0 %8178 }
0x2330   : > { %8403 = vst [vmem:[%s11158_s30 + $0xf0] sm:$0xff] %v8339_v35  ;;  %8404 = vst [vmem:[%s11158_s30 + $0xf8] sm:$0xff] %v8340_v4  ;;  %v8293_v11 = vadd.f32 %v8246_v27, %v14105_v14  ;;  %10676 = vlog2.f32 %v8179_v1  ;;  %v14763_v35 = vld [vmem:[#allocation29_spill] sm:$0xff] }
0x2331   : > { %v10671_v52 = vpop.eup %10670 }
0x2332   : > { %v8341_v9 = vsub.f32 %v13882_v40, %v8293_v11  ;;  %v8342_v2 = vsub.f32 %v14755_v34, %v8293_v11  ;;  %v8248_v49 = vmul.f32 0.6931472, %v10671_v52  ;;  %v14765_v52 = vld [vmem:[#allocation72_spill] sm:$0xff]  ;;  %v14766_v34 = vld [vmem:[#allocation31_spill] sm:$0xff] }
0x2333   : > { %v8182_v30 = vpop.xlane.xlu1 %8181 }
0x2334   : > { %8405 = vst [vmem:[%s11158_s30 + $0x100] sm:$0xff] %v8341_v9  ;;  %8406 = vst [vmem:[%s11158_s30 + $0x108] sm:$0xff] %v8342_v2  ;;  %v8294_v3 = vadd.f32 %v8248_v49, %v14111_v38  ;;  %10678 = vlog2.f32 %v8182_v30 }
0x2335   : > { %v10673_v13 = vpop.eup %10672 }
0x2336   : > { %v8343_v14 = vsub.f32 %v13890_v43, %v8294_v3  ;;  %v8344_v6 = vsub.f32 %v14756_v54, %v8294_v3  ;;  %v8250_v36 = vmul.f32 0.6931472, %v10673_v13  ;;  %v14768_v54 = vld [vmem:[#allocation33_spill] sm:$0xff] }
0x2337   : > { %v8185_v45 = vpop.xlane.xlu0 %8184 }
0x2338   : > { %8407 = vst [vmem:[%s11158_s30 + $0x110] sm:$0xff] %v8343_v14  ;;  %8408 = vst [vmem:[%s11158_s30 + $0x118] sm:$0xff] %v8344_v6  ;;  %v8295_v40 = vadd.f32 %v8250_v36, %v14117_v46  ;;  %10680 = vlog2.f32 %v8185_v45  ;;  %v14767_v14 = vld [vmem:[#allocation69_spill] sm:$0xff] }
0x2339   : > { %v10675_v25 = vpop.eup %10674 }
0x233a   : > { %v8345_v38 = vsub.f32 %v13898_v17, %v8295_v40  ;;  %v8346_v62 = vsub.f32 %v14757_v8, %v8295_v40  ;;  %v8252_v24 = vmul.f32 0.6931472, %v10675_v25 }
0x233b   : > { %v8188_v57 = vpop.xlane.xlu1 %8187 }
0x233c   : > { %8409 = vst [vmem:[%s11158_s30 + $0x120] sm:$0xff] %v8345_v38  ;;  %8410 = vst [vmem:[%s11158_s30 + $0x128] sm:$0xff] %v8346_v62  ;;  %v8296_v43 = vadd.f32 %v8252_v24, %v14123_v7  ;;  %10682 = vlog2.f32 %v8188_v57  ;;  %v14769_v38 = vld [vmem:[#allocation71_spill] sm:$0xff] }
0x233d   : > { %v10677_v22 = vpop.eup %10676  ;;  %v14770_v57 = vld [vmem:[#allocation75_spill] sm:$0xff] }
0x233e   : > { %v8347_v46 = vsub.f32 %v13906_v21, %v8296_v43  ;;  %v8348_v20 = vsub.f32 %v14758_v16, %v8296_v43  ;;  %v8254_v50 = vmul.f32 0.6931472, %v10677_v22  ;;  %v14772_v16 = vld [vmem:[#allocation36_spill] sm:$0xff] }
0x233f   : > { %v8191_v53 = vpop.xlane.xlu0 %8190 }
0x2340   : > { %8411 = vst [vmem:[%s11158_s30 + $0x130] sm:$0xff] %v8347_v46  ;;  %8412 = vst [vmem:[%s11158_s30 + $0x138] sm:$0xff] %v8348_v20  ;;  %v8297_v17 = vadd.f32 %v8254_v50, %v14129_v23  ;;  %10684 = vlog2.f32 %v8191_v53  ;;  %v14771_v46 = vld [vmem:[#allocation35_spill] sm:$0xff] }
0x2341   : > { %v10679_v10 = vpop.eup %10678 }
0x2342   : > { %v8349_v7 = vsub.f32 %v13914_v31, %v8297_v17  ;;  %v8350_v41 = vsub.f32 %v14759_v44, %v8297_v17  ;;  %v8256_v39 = vmul.f32 0.6931472, %v10679_v10  ;;  %v14774_v10 = vld [vmem:[#allocation85_spill] sm:$0xff] }
0x2343   : > { %v8194_v19 = vpop.xlane.xlu1 %8193 }
0x2344   : > { %8413 = vst [vmem:[%s11158_s30 + $0x140] sm:$0xff] %v8349_v7  ;;  %8414 = vst [vmem:[%s11158_s30 + $0x148] sm:$0xff] %v8350_v41  ;;  %v8298_v21 = vadd.f32 %v8256_v39, %v14135_v55  ;;  %10686 = vlog2.f32 %v8194_v19  ;;  %v14775_v41 = vld [vmem:[#allocation74_spill] sm:$0xff]  ;;  %v14776_v19 = vld [vmem:[#allocation37_spill] sm:$0xff] }
0x2345   : > { %v10681_v61 = vpop.eup %10680 }
0x2346   : > { %v8351_v23 = vsub.f32 %v13922_v5, %v8298_v21  ;;  %v8352_v60 = vsub.f32 %v14760_v58, %v8298_v21  ;;  %v8258_v42 = vmul.f32 0.6931472, %v10681_v61  ;;  %v14762_v5 = vld [vmem:[#allocation42_spill] sm:$0xff] }
0x2347   : > { %v8197_v18 = vpop.xlane.xlu0 %8196 }
0x2348   : > { %8415 = vst [vmem:[%s11158_s30 + $0x150] sm:$0xff] %v8351_v23  ;;  %8416 = vst [vmem:[%s11158_s30 + $0x158] sm:$0xff] %v8352_v60  ;;  %v8299_v31 = vadd.f32 %v8258_v42, %v14141_v47  ;;  %10688 = vlog2.f32 %v8197_v18  ;;  %v14777_v23 = vld [vmem:[#allocation88_spill] sm:$0xff]  ;;  %v14778_v18 = vld [vmem:[#allocation38_spill] sm:$0xff] }
0x2349   : > { %v10683_v32 = vpop.eup %10682 }
0x234a   : > { %v8353_v55 = vsub.f32 %v13930_v56, %v8299_v31  ;;  %v8354_v29 = vsub.f32 %v14761_v33, %v8299_v31  ;;  %v8260_v63 = vmul.f32 0.6931472, %v10683_v32  ;;  %v14779_v32 = vld [vmem:[#allocation76_spill] sm:$0xff] }
0x234b   : > { %v8200_v0 = vpop.xlane.xlu1 %8199 }
0x234c   : > { %8417 = vst [vmem:[%s11158_s30 + $0x160] sm:$0xff] %v8353_v55  ;;  %8418 = vst [vmem:[%s11158_s30 + $0x168] sm:$0xff] %v8354_v29  ;;  %v8300_v51 = vadd.f32 %v8260_v63, %v14762_v5  ;;  %10690 = vlog2.f32 %v8200_v0  ;;  %v14780_v29 = vld [vmem:[#allocation44_spill] sm:$0xff]  ;;  %v14781_v5 = vld [vmem:[#allocation39_spill] sm:$0xff] }
0x234d   : > { %v10685_v12 = vpop.eup %10684 }
0x234e   : > { %v8355_v47 = vsub.f32 %v14763_v35, %v8300_v51  ;;  %v8356_v4 = vsub.f32 %v14764_v37, %v8300_v51  ;;  %v8262_v27 = vmul.f32 0.6931472, %v10685_v12  ;;  %v14782_v12 = vld [vmem:[#allocation40_spill] sm:$0xff] }
0x234f   : > { %v8203_v1 = vpop.xlane.xlu0 %8202 }
0x2350   : > { %8419 = vst [vmem:[%s11158_s30 + $0x170] sm:$0xff] %v8355_v47  ;;  %8420 = vst [vmem:[%s11158_s30 + $0x178] sm:$0xff] %v8356_v4  ;;  %v8301_v56 = vadd.f32 %v8262_v27, %v14153_v28  ;;  %10692 = vlog2.f32 %v8203_v1  ;;  %v14783_v47 = vld [vmem:[#allocation78_spill] sm:$0xff]  ;;  %v14784_v4 = vld [vmem:[#allocation73_spill] sm:$0xff] }
0x2351   : > { %v10687_v11 = vpop.eup %10686  ;;  %v14785_v1 = vld [vmem:[#allocation41_spill] sm:$0xff] }
0x2352   : > { %v8357_v9 = vsub.f32 %v14765_v52, %v8301_v56  ;;  %v8358_v2 = vsub.f32 %v14766_v34, %v8301_v56  ;;  %v8264_v49 = vmul.f32 0.6931472, %v10687_v11 }
0x2353   : > { %v8206_v30 = vpop.xlane.xlu1 %8205 }
0x2354   : > { %8421 = vst [vmem:[%s11158_s30 + $0x180] sm:$0xff] %v8357_v9  ;;  %8422 = vst [vmem:[%s11158_s30 + $0x188] sm:$0xff] %v8358_v2  ;;  %v8302_v3 = vadd.f32 %v8264_v49, %v14159_v48  ;;  %10694 = vlog2.f32 %v8206_v30 }
0x2355   : > { %v10689_v13 = vpop.eup %10688 }
0x2356   : > { %v8359_v28 = vsub.f32 %v14767_v14, %v8302_v3  ;;  %v8360_v6 = vsub.f32 %v14768_v54, %v8302_v3  ;;  %v8266_v36 = vmul.f32 0.6931472, %v10689_v13 }
0x2357   : > { %v8209_v45 = vpop.xlane.xlu0 %8208 }
0x2358   : > { %8423 = vst [vmem:[%s11158_s30 + $0x190] sm:$0xff] %v8359_v28  ;;  %8424 = vst [vmem:[%s11158_s30 + $0x198] sm:$0xff] %v8360_v6  ;;  %v8303_v40 = vadd.f32 %v8266_v36, %v14165_v59  ;;  %10696 = vlog2.f32 %v8209_v45 }
0x2359   : > { %v10691_v25 = vpop.eup %10690 }
0x235a   : > { %v8361_v48 = vsub.f32 %v13970_v26, %v8303_v40  ;;  %v8362_v8 = vsub.f32 %v14769_v38, %v8303_v40  ;;  %v8268_v62 = vmul.f32 0.6931472, %v10691_v25  ;;  %v14773_v26 = vld [vmem:[#allocation43_spill] sm:$0xff] }
0x235b   : > { %v8212_v24 = vpop.xlane.xlu1 %8211 }
0x235c   : > { %8425 = vst [vmem:[%s11158_s30 + $0x1a0] sm:$0xff] %v8361_v48  ;;  %8426 = vst [vmem:[%s11158_s30 + $0x1a8] sm:$0xff] %v8362_v8  ;;  %v8304_v43 = vadd.f32 %v8268_v62, %v14770_v57  ;;  %10698 = vlog2.f32 %v8212_v24 }
0x235d   : > { %v10693_v22 = vpop.eup %10692 }
0x235e   : > { %v8363_v59 = vsub.f32 %v14771_v46, %v8304_v43  ;;  %v8364_v20 = vsub.f32 %v14772_v16, %v8304_v43  ;;  %v8270_v50 = vmul.f32 0.6931472, %v10693_v22 }
0x235f   : > { %v7475_v53 = vpop.permute.xlu0 %7474 }
0x2360   : > { %8427 = vst [vmem:[%s11158_s30 + $0x1b0] sm:$0xff] %v8363_v59  ;;  %8428 = vst [vmem:[%s11158_s30 + $0x1b8] sm:$0xff] %v8364_v20  ;;  %v8305_v17 = vadd.f32 %v8270_v50, %v14773_v26  ;;  %v7477_v7 = vmul.f32 %v7475_v53, %v14774_v10 }
0x2361   : > { %v10695_v44 = vpop.eup %10694 }
0x2362   : > { %v8365_v39 = vsub.f32 %v14775_v41, %v8305_v17  ;;  %v8366_v21 = vsub.f32 %v14776_v19, %v8305_v17  ;;  %v8272_v61 = vmul.f32 0.6931472, %v10695_v44  ;;  %v7478_v58 = vadd.f32 %v7477_v7, %v14777_v23 }
0x2364   : > { %8429 = vst [vmem:[%s11158_s30 + $0x1c0] sm:$0xff] %v8365_v39  ;;  %8430 = vst [vmem:[%s11158_s30 + $0x1c8] sm:$0xff] %v8366_v21  ;;  %v8306_v60 = vadd.f32 %v8272_v61, %v14183_v15 }
0x2365   : > { %7479 = vst [vmem:[#allocation10] sm:$0xff] %v7478_v58  ;;  %v10697_v42 = vpop.eup %10696 }
0x2366   : > { %v8367_v31 = vsub.f32 %v14778_v18, %v8306_v60  ;;  %v8368_v55 = vsub.f32 %v14779_v32, %v8306_v60  ;;  %v8274_v33 = vmul.f32 0.6931472, %v10697_v42 }
0x2368   : > { %8431 = vst [vmem:[%s11158_s30 + $0x1d0] sm:$0xff] %v8367_v31  ;;  %8432 = vst [vmem:[%s11158_s30 + $0x1d8] sm:$0xff] %v8368_v55  ;;  %v8307_v63 = vadd.f32 %v8274_v33, %v14780_v29 }
0x2369   : > { %v10699_v0 = vpop.eup %10698 }
0x236a   : > { %v8369_v51 = vsub.f32 %v14781_v5, %v8307_v63  ;;  %v8370_v35 = vsub.f32 %v14782_v12, %v8307_v63  ;;  %v8276_v15 = vmul.f32 0.6931472, %v10699_v0 }
0x236c   : > { %8433 = vst [vmem:[%s11158_s30 + $0x1e0] sm:$0xff] %v8369_v51  ;;  %8434 = vst [vmem:[%s11158_s30 + $0x1e8] sm:$0xff] %v8370_v35  ;;  %v8308_v37 = vadd.f32 %v8276_v15, %v14783_v47 }
0x236e   : > { %v8371_v27 = vsub.f32 %v14784_v4, %v8308_v37  ;;  %v8372_v56 = vsub.f32 %v14785_v1, %v8308_v37 }
0x2370   : > { %8435 = vst [vmem:[%s11158_s30 + $0x1f0] sm:$0xff] %v8371_v27  ;;  %8436 = vst [vmem:[%s11158_s30 + $0x1f8] sm:$0xff] %v8372_v56 }
0x2371   : > { %s8961_s26 = sshll.u32 %s10956_s16, 10  ;;  %s8465_s11 = sshll.u32 %s11158_s30, 4  ;;  %s8466_s11 = int_to_ptr.vmem [resolvable:$true] %s8465_s11 }
0x2372   : > { %s8454_s22 = scalar_lea.hbm %s14427_s9, %s8961_s26  ;;  %s10976_s25 = smov 1024  }
0x2373   : > { %p14786_p8 = scmp.ne.s32.totalorder %s14510_s24, 0  ;;  %s10977_s15 = smov 2048  }
0x2374   : > { %s10978_s12 = smov 4   ;;  %s10979_s20 = smov 256  }
0x2375   : > { %9986 = sst [smem:[#allocation13]] (%p14786_p8), %s10976_s25  ;;  %s10980_s16 = smov 16  }
0x2376   : > { %9987 = sst [smem:[#allocation13 + $0x1]] (%p14786_p8), %s10977_s15  ;;  %s10981_s30 = smov 131072  }
0x2377   : > { %9988 = sst [smem:[#allocation13 + $0x2]] (%p14786_p8), %s10978_s12  ;;  %s10982_s19 = smov 0  }
0x2378   : > { %9989 = sst [smem:[#allocation13 + $0x3]] (%p14786_p8), %s10979_s20  ;;  %s10983_s17 = smov [#allocation10]  }
0x2379   : > { %9990 = sst [smem:[#allocation13 + $0x4]] (%p14786_p8), %s10979_s20  ;;  %s8494_s28 = sshll.u32 %s10983_s17, 4  ;;  %s8495_s28 = int_to_ptr.vmem [resolvable:$true] %s8494_s28 }
0x237a   : > { %9991 = sst [smem:[#allocation13 + $0x5]] (%p14786_p8), %s10980_s16  ;;  %s10878_s26 = scalar_lea.vmem %s8495_s28, 128 }
0x237b   : > { %9992 = dma.general (%p14786_p8), %s8466_s11, 8192, %s8454_s22, %s8438_s29, %s10981_s30, [#allocation13], %s10982_s19, 0  }
0x237c   : > { %p10879_p10 = scmp.ne.s32.totalorder %s8495_s28, %s10878_s26  ;;  %p14787_p11 = scmp.ne.s32.totalorder %s14508_s23, 0 }
0x237d   : > { %p10885_p7 = scmp.lt.s32.totalorder %s8495_s28, %s8495_s28  ;;  %p10886_p9 = scmp.lt.s32.totalorder %s10878_s26, %s10878_s26 }
0x237e   : > { %p10880_p13 = pnand %p10879_p10, %p14787_p11 }
0x237f   : > { %p10887_p12 = por %p10886_p9, %p10885_p7 }
0x2380   : > { %p10881_p0 = pneg %p10880_p13 }
0x2382   : > { %p10888_p1 = pnand %p10887_p12, %p10881_p0 }
0x2384   : > { %10891 = shalt.err (!%p10888_p1)
}
0x2385   : > { %9994 = dma.vmem_to_hbm [thread:$0]  (%p14787_p11), %s8495_s28, 128, %s14428_s10, [#allocation11]  }
0x2386   : > { %10935 = dma.done.wait (%p14787_p11), [#allocation11], 128  }
0x2387   : > { %10937 = vsyncadd (%p14787_p11), [#allocation11], 4294967168 }
0x2388 PF: > { %s14788_s24 = sld [smem:[#allocation21_spill]]  ;;  %p10015_p3 = scmp.ge.s32.totalorder %s10964_s18, 2 }
0x2389   : > { %s8510_s29 = sand.u32 1, %s10944_s13  }
0x238a   : > { %s8511_s11 = scalar_lea.sflag [#allocation6], %s8510_s29 }
0x238e   : > { %p14789_p6 = scmp.ne.s32.totalorder %s14788_s24, 0 }
0x2390   : > { %p10006_p5 = pnand %p10015_p3, %p14789_p6 }
0x2392   : > { %p10007_p2 = pneg %p10006_p5 }
0x2394   : > { %10939 = dma.done.wait (%p10007_p2), %s8511_s11, 8192  }
0x2395   : > { %10941 = vsyncadd (%p10007_p2), %s8511_s11, 4294959104  ;;  %s27_s18 = sadd.s32 1, %s10964_s18   ;;  %s14790_s22 = sld [smem:[#allocation18_spill]] }
0x2396   : > { %p24_p4 = scmp.ge.s32.totalorder %s27_s18, 4   ;;  %s14791_s15 = sld [smem:[#allocation22_spill]] }
0x2397   : > { %s14792_s16 = sld [smem:[#allocation19_spill]]  ;;  %s14794_s13 = smov %s10948_s14 }
0x2398   : > { %s14793_s17 = sld [smem:[#allocation20_spill]]  ;;  %26 = sbr.rel (!%p24_p4) target bundleno = 7 (0x7), region = 186 }
0x239b   : > { %s14795_s14 = smov %s14790_s22 }
0x239d   :  { %8516 = vsyncpa [#allocation5], 1 }
0x239e   :  { %8518 = vsyncpa [#allocation5 + $0x1], 1 }
0x239f   :  { %8519 = vsyncpa [#allocation8], 1 }
0x23a0   :  { %8520 = vsyncpa [#allocation6], 1 }
0x23a1   :  { %8522 = vsyncpa [#allocation6 + $0x1], 1 }
0x23a2   :  { %8523 = vsyncpa [#allocation11], 1 }

</bundles_post_ra>
